<compile_context>
chip_gen: v7x
topology: tpu7x:2x2x1
jax: 0.10.0
libtpu: 0.0.40
codegen_flags: <defaults>
</compile_context>

<pallas_src>
import jax
import jax.numpy as jnp
from jax.experimental import pallas as pl
from jax.experimental.pallas import tpu as pltpu

_EPS = 1e-5  # nn.InstanceNorm2d default eps (affine=False, biased variance)


def _make_residual_block_kernel(C, H, W):
    HW = H * W
    Hp, Wp = H + 2, W + 2
    taps = [(dy, dx) for dy in range(3) for dx in range(3)]  # dy-major

    def kernel(x_ref, w1_ref, b1_ref, w2_ref, b2_ref, o_ref, xp_ref, patches_ref):
        # x_ref   : (C, H*W)      flattened spatial on lanes (lane-dense load)
        # w*_ref  : (C, 9*C)      im2col-ordered weight matrices
        # b*_ref  : (C, 1)
        # o_ref   : (C, H*W)      lane-dense store
        # xp_ref  : (H+2, C, W+2) f32 scratch: reflection-padded plane
        # patches_ref : (9*C, H*W) f32 scratch: im2col matrix
        x = x_ref[...].astype(jnp.float32)  # (C, HW)

        def write_interior(v):  # v: (C, HW) f32 -> interior of padded plane
            for r in range(H):
                xp_ref[r + 1, :, 1:W + 1] = v[:, r * W:(r + 1) * W]

        def reflect_edges():
            # Rows first; corners get fixed up by the column pass.
            xp_ref[0] = xp_ref[2]                       # top    <- original row 1
            xp_ref[Hp - 1] = xp_ref[Hp - 3]             # bottom <- original row H-2
            xp_ref[:, :, 0:1] = xp_ref[:, :, 2:3]       # left   <- original col 1
            xp_ref[:, :, Wp - 1:Wp] = xp_ref[:, :, Wp - 3:Wp - 2]  # right <- col W-2

        def im2col():
            for k, (dy, dx) in enumerate(taps):
                for r in range(H):
                    patches_ref[k * C:(k + 1) * C, r * W:(r + 1) * W] = (
                        xp_ref[dy + r, :, dx:dx + W])

        def conv(w_ref, b_ref):
            # Single lane-dense MXU matmul per conv: (C, 9C) @ (9C, HW).
            return (jnp.dot(w_ref[...].astype(jnp.float32), patches_ref[...],
                            preferred_element_type=jnp.float32)
                    + b_ref[...].astype(jnp.float32))

        def instance_norm(v):  # (C, HW), reduce over the lane (spatial) axis
            mean = jnp.mean(v, axis=1, keepdims=True)
            cent = v - mean
            var = jnp.mean(cent * cent, axis=1, keepdims=True)
            return cent * jax.lax.rsqrt(var + _EPS)

        # ---- reflect_pad -> conv1 -> InstanceNorm -> ReLU ----
        write_interior(x)
        reflect_edges()
        im2col()
        h = jnp.maximum(instance_norm(conv(w1_ref, b1_ref)), 0.0)

        # ---- reflect_pad -> conv2 -> InstanceNorm ----
        write_interior(h)
        reflect_edges()
        im2col()
        y = instance_norm(conv(w2_ref, b2_ref))

        # ---- residual add ----
        o_ref[...] = (x + y).astype(o_ref.dtype)

    return kernel


def residual_block_forward(x, w1, b1, w2, b2):
    """x: (N, C, H, W); w*: (C, C, 3, 3); b*: (C,). Returns (N, C, H, W)."""
    N, C, H, W = x.shape
    HW = H * W
    assert w1.shape == (C, C, 3, 3) and w2.shape == (C, C, 3, 3), (w1.shape, w2.shape)
    assert b1.shape == (C,) and b2.shape == (C,), (b1.shape, b2.shape)

    def pack_weight(w):
        # (C_out, C_in, 3, 3) -> (C_out, 9*C_in), column order (dy, dx, ci)
        # to match the im2col row ordering used in the kernel.
        return jnp.transpose(w, (0, 2, 3, 1)).reshape(C, 9 * C).astype(jnp.float32)

    w1m, w2m = pack_weight(w1), pack_weight(w2)
    b1c = b1.reshape(C, 1).astype(jnp.float32)
    b2c = b2.reshape(C, 1).astype(jnp.float32)

    # Metadata-only reshape so the kernel sees a lane-dense (multiple-of-128)
    # last dim for both the input load and the output store.
    x2d = x.reshape(N, C, HW)

    kernel = _make_residual_block_kernel(C, H, W)

    out2d = pl.pallas_call(
        kernel,
        out_shape=jax.ShapeDtypeStruct((N, C, HW), x.dtype),
        grid_spec=pltpu.PrefetchScalarGridSpec(
            num_scalar_prefetch=0,
            grid=(N,),  # one image per grid step; BlockSpec double-buffers x/o
            in_specs=[
                pl.BlockSpec((None, C, HW), lambda n: (n, 0, 0)),   # x (squeezed N)
                pl.BlockSpec((C, 9 * C), lambda n: (0, 0)),         # w1 (resident)
                pl.BlockSpec((C, 1), lambda n: (0, 0)),             # b1
                pl.BlockSpec((C, 9 * C), lambda n: (0, 0)),         # w2
                pl.BlockSpec((C, 1), lambda n: (0, 0)),             # b2
            ],
            out_specs=pl.BlockSpec((None, C, HW), lambda n: (n, 0, 0)),
            scratch_shapes=[
                pltpu.VMEM((H + 2, C, W + 2), jnp.float32),  # padded plane
                pltpu.VMEM((9 * C, HW), jnp.float32),        # im2col patches
            ],
        ),
        compiler_params=pltpu.CompilerParams(
            dimension_semantics=("parallel",),     # shard images on v7x megacore
            vmem_limit_bytes=32 * 1024 * 1024,     # explicit budget (portable v5e/v6e/v7x)
        ),
    )(x2d, w1m, b1c, w2m, b2c)

    return out2d.reshape(N, C, H, W)


class ResidualBlock:
    """JAX/Pallas equivalent of the PyTorch ResidualBlock (CycleGAN)."""

    def __init__(self, w1, b1, w2, b2):
        self.w1, self.b1, self.w2, self.b2 = w1, b1, w2, b2

    def __call__(self, x):
        return residual_block_forward(x, self.w1, self.b1, self.w2, self.b2)


def residual_block_ref(x, w1, b1, w2, b2, eps=_EPS):
    """Pure-JAX reference (mirrors the PyTorch module) for validation."""
    def conv(inp, w, b):
        p = jnp.pad(inp, ((0, 0), (0, 0), (1, 1), (1, 1)), mode="reflect")
        y = jax.lax.conv_general_dilated(
            p, w, window_strides=(1, 1), padding="VALID",
            dimension_numbers=("NCHW", "OIHW", "NCHW"))
        return y + b[None, :, None, None]

    def inorm(v):
        m = jnp.mean(v, axis=(2, 3), keepdims=True)
        var = jnp.var(v, axis=(2, 3), keepdims=True)
        return (v - m) / jnp.sqrt(var + eps)

    h = jax.nn.relu(inorm(conv(x, w1, b1)))
    return x + inorm(conv(h, w2, b2))


if __name__ == "__main__":
    key = jax.random.PRNGKey(0)
    kx, k1, k2, k3, k4 = jax.random.split(key, 5)

    N, C, H, W = 2, 4, 16, 16  # in_features = 4
    x = jax.random.normal(kx, (N, C, H, W), dtype=jnp.float32)
    w1 = jax.random.normal(k1, (C, C, 3, 3), dtype=jnp.float32) * 0.2
    b1 = jax.random.normal(k2, (C,), dtype=jnp.float32) * 0.1
    w2 = jax.random.normal(k3, (C, C, 3, 3), dtype=jnp.float32) * 0.2
    b2 = jax.random.normal(k4, (C,), dtype=jnp.float32) * 0.1

    block = ResidualBlock(w1, b1, w2, b2)
    out = jax.block_until_ready(block(x))

    ref = residual_block_ref(x, w1, b1, w2, b2)
    assert out.shape == (N, C, H, W), out.shape
    max_err = float(jnp.max(jnp.abs(out - ref)))
    assert jnp.allclose(out, ref, atol=2e-3, rtol=2e-3), f"max abs err {max_err}"

    print("KERNEL_OK")
</pallas_src>

<mosaic_0001>
module attributes {stable_mosaic.version = 11 : i64} {
  func.func @kernel(%arg0: i32, %arg1: memref<1x4x256xf32, #tpu.memory_space<vmem>>, %arg2: memref<4x36xf32, #tpu.memory_space<vmem>>, %arg3: memref<4x1xf32, #tpu.memory_space<vmem>>, %arg4: memref<4x36xf32, #tpu.memory_space<vmem>>, %arg5: memref<4x1xf32, #tpu.memory_space<vmem>>, %arg6: memref<1x4x256xf32, #tpu.memory_space<vmem>>, %arg7: memref<18x4x18xf32, #tpu.memory_space<vmem>>, %arg8: memref<36x256xf32, #tpu.memory_space<vmem>>) attributes {dimension_semantics = [#tpu.dimension_semantics<parallel>], iteration_bounds = array<i64: 2>, scalar_prefetch = 0 : i64, scratch_operands = 2 : i64, tpu.core_type = #tpu.core_type<tc>, window_params = [{transform_indices = @transform_0, window_bounds = array<i64: 1, 4, 256>}, {pipeline_mode = #tpu.pipeline_mode<synchronous>, transform_indices = @transform_1, window_bounds = array<i64: 4, 36>}, {pipeline_mode = #tpu.pipeline_mode<synchronous>, transform_indices = @transform_2, window_bounds = array<i64: 4, 1>}, {pipeline_mode = #tpu.pipeline_mode<synchronous>, transform_indices = @transform_3, window_bounds = array<i64: 4, 36>}, {pipeline_mode = #tpu.pipeline_mode<synchronous>, transform_indices = @transform_4, window_bounds = array<i64: 4, 1>}, {transform_indices = @transform_5, window_bounds = array<i64: 1, 4, 256>}]} {
    %c0 = arith.constant 0 : index
    %c0_0 = arith.constant 0 : index
    %c0_1 = arith.constant 0 : index
    %0 = vector.load %arg1[%c0, %c0_0, %c0_1] : memref<1x4x256xf32, #tpu.memory_space<vmem>>, vector<1x4x256xf32>
    %1 = vector.shape_cast %0 : vector<1x4x256xf32> to vector<4x256xf32>
    %2 = vector.extract_strided_slice %1 {offsets = [0, 0], sizes = [4, 16], strides = [1, 1]} : vector<4x256xf32> to vector<4x16xf32>
    %c1 = arith.constant 1 : index
    %c0_2 = arith.constant 0 : index
    %c1_3 = arith.constant 1 : index
    %3 = vector.load %arg7[%c1, %c0_2, %c1_3] : memref<18x4x18xf32, #tpu.memory_space<vmem>>, vector<1x4x16xf32>
    %4 = vector.shape_cast %3 : vector<1x4x16xf32> to vector<4x16xf32>
    %5 = vector.shape_cast %2 : vector<4x16xf32> to vector<1x4x16xf32>
    tpu.vector_store %arg7[%c1, %c0_2, %c1_3], %5 {strides = array<i32>} : memref<18x4x18xf32, #tpu.memory_space<vmem>>, vector<1x4x16xf32>,
    %6 = vector.extract_strided_slice %1 {offsets = [0, 16], sizes = [4, 16], strides = [1, 1]} : vector<4x256xf32> to vector<4x16xf32>
    %c2 = arith.constant 2 : index
    %c0_4 = arith.constant 0 : index
    %c1_5 = arith.constant 1 : index
    %7 = vector.load %arg7[%c2, %c0_4, %c1_5] : memref<18x4x18xf32, #tpu.memory_space<vmem>>, vector<1x4x16xf32>
    %8 = vector.shape_cast %7 : vector<1x4x16xf32> to vector<4x16xf32>
    %9 = vector.shape_cast %6 : vector<4x16xf32> to vector<1x4x16xf32>
    tpu.vector_store %arg7[%c2, %c0_4, %c1_5], %9 {strides = array<i32>} : memref<18x4x18xf32, #tpu.memory_space<vmem>>, vector<1x4x16xf32>,
    %10 = vector.extract_strided_slice %1 {offsets = [0, 32], sizes = [4, 16], strides = [1, 1]} : vector<4x256xf32> to vector<4x16xf32>
    %c3 = arith.constant 3 : index
    %c0_6 = arith.constant 0 : index
    %c1_7 = arith.constant 1 : index
    %11 = vector.load %arg7[%c3, %c0_6, %c1_7] : memref<18x4x18xf32, #tpu.memory_space<vmem>>, vector<1x4x16xf32>
    %12 = vector.shape_cast %11 : vector<1x4x16xf32> to vector<4x16xf32>
    %13 = vector.shape_cast %10 : vector<4x16xf32> to vector<1x4x16xf32>
    tpu.vector_store %arg7[%c3, %c0_6, %c1_7], %13 {strides = array<i32>} : memref<18x4x18xf32, #tpu.memory_space<vmem>>, vector<1x4x16xf32>,
    %14 = vector.extract_strided_slice %1 {offsets = [0, 48], sizes = [4, 16], strides = [1, 1]} : vector<4x256xf32> to vector<4x16xf32>
    %c4 = arith.constant 4 : index
    %c0_8 = arith.constant 0 : index
    %c1_9 = arith.constant 1 : index
    %15 = vector.load %arg7[%c4, %c0_8, %c1_9] : memref<18x4x18xf32, #tpu.memory_space<vmem>>, vector<1x4x16xf32>
    %16 = vector.shape_cast %15 : vector<1x4x16xf32> to vector<4x16xf32>
    %17 = vector.shape_cast %14 : vector<4x16xf32> to vector<1x4x16xf32>
    tpu.vector_store %arg7[%c4, %c0_8, %c1_9], %17 {strides = array<i32>} : memref<18x4x18xf32, #tpu.memory_space<vmem>>, vector<1x4x16xf32>,
    %18 = vector.extract_strided_slice %1 {offsets = [0, 64], sizes = [4, 16], strides = [1, 1]} : vector<4x256xf32> to vector<4x16xf32>
    %c5 = arith.constant 5 : index
    %c0_10 = arith.constant 0 : index
    %c1_11 = arith.constant 1 : index
    %19 = vector.load %arg7[%c5, %c0_10, %c1_11] : memref<18x4x18xf32, #tpu.memory_space<vmem>>, vector<1x4x16xf32>
    %20 = vector.shape_cast %19 : vector<1x4x16xf32> to vector<4x16xf32>
    %21 = vector.shape_cast %18 : vector<4x16xf32> to vector<1x4x16xf32>
    tpu.vector_store %arg7[%c5, %c0_10, %c1_11], %21 {strides = array<i32>} : memref<18x4x18xf32, #tpu.memory_space<vmem>>, vector<1x4x16xf32>,
    %22 = vector.extract_strided_slice %1 {offsets = [0, 80], sizes = [4, 16], strides = [1, 1]} : vector<4x256xf32> to vector<4x16xf32>
    %c6 = arith.constant 6 : index
    %c0_12 = arith.constant 0 : index
    %c1_13 = arith.constant 1 : index
    %23 = vector.load %arg7[%c6, %c0_12, %c1_13] : memref<18x4x18xf32, #tpu.memory_space<vmem>>, vector<1x4x16xf32>
    %24 = vector.shape_cast %23 : vector<1x4x16xf32> to vector<4x16xf32>
    %25 = vector.shape_cast %22 : vector<4x16xf32> to vector<1x4x16xf32>
    tpu.vector_store %arg7[%c6, %c0_12, %c1_13], %25 {strides = array<i32>} : memref<18x4x18xf32, #tpu.memory_space<vmem>>, vector<1x4x16xf32>,
    %26 = vector.extract_strided_slice %1 {offsets = [0, 96], sizes = [4, 16], strides = [1, 1]} : vector<4x256xf32> to vector<4x16xf32>
    %c7 = arith.constant 7 : index
    %c0_14 = arith.constant 0 : index
    %c1_15 = arith.constant 1 : index
    %27 = vector.load %arg7[%c7, %c0_14, %c1_15] : memref<18x4x18xf32, #tpu.memory_space<vmem>>, vector<1x4x16xf32>
    %28 = vector.shape_cast %27 : vector<1x4x16xf32> to vector<4x16xf32>
    %29 = vector.shape_cast %26 : vector<4x16xf32> to vector<1x4x16xf32>
    tpu.vector_store %arg7[%c7, %c0_14, %c1_15], %29 {strides = array<i32>} : memref<18x4x18xf32, #tpu.memory_space<vmem>>, vector<1x4x16xf32>,
    %30 = vector.extract_strided_slice %1 {offsets = [0, 112], sizes = [4, 16], strides = [1, 1]} : vector<4x256xf32> to vector<4x16xf32>
    %c8 = arith.constant 8 : index
    %c0_16 = arith.constant 0 : index
    %c1_17 = arith.constant 1 : index
    %31 = vector.load %arg7[%c8, %c0_16, %c1_17] : memref<18x4x18xf32, #tpu.memory_space<vmem>>, vector<1x4x16xf32>
    %32 = vector.shape_cast %31 : vector<1x4x16xf32> to vector<4x16xf32>
    %33 = vector.shape_cast %30 : vector<4x16xf32> to vector<1x4x16xf32>
    tpu.vector_store %arg7[%c8, %c0_16, %c1_17], %33 {strides = array<i32>} : memref<18x4x18xf32, #tpu.memory_space<vmem>>, vector<1x4x16xf32>,
    %34 = vector.extract_strided_slice %1 {offsets = [0, 128], sizes = [4, 16], strides = [1, 1]} : vector<4x256xf32> to vector<4x16xf32>
    %c9 = arith.constant 9 : index
    %c0_18 = arith.constant 0 : index
    %c1_19 = arith.constant 1 : index
    %35 = vector.load %arg7[%c9, %c0_18, %c1_19] : memref<18x4x18xf32, #tpu.memory_space<vmem>>, vector<1x4x16xf32>
    %36 = vector.shape_cast %35 : vector<1x4x16xf32> to vector<4x16xf32>
    %37 = vector.shape_cast %34 : vector<4x16xf32> to vector<1x4x16xf32>
    tpu.vector_store %arg7[%c9, %c0_18, %c1_19], %37 {strides = array<i32>} : memref<18x4x18xf32, #tpu.memory_space<vmem>>, vector<1x4x16xf32>,
    %38 = vector.extract_strided_slice %1 {offsets = [0, 144], sizes = [4, 16], strides = [1, 1]} : vector<4x256xf32> to vector<4x16xf32>
    %c10 = arith.constant 10 : index
    %c0_20 = arith.constant 0 : index
    %c1_21 = arith.constant 1 : index
    %39 = vector.load %arg7[%c10, %c0_20, %c1_21] : memref<18x4x18xf32, #tpu.memory_space<vmem>>, vector<1x4x16xf32>
    %40 = vector.shape_cast %39 : vector<1x4x16xf32> to vector<4x16xf32>
    %41 = vector.shape_cast %38 : vector<4x16xf32> to vector<1x4x16xf32>
    tpu.vector_store %arg7[%c10, %c0_20, %c1_21], %41 {strides = array<i32>} : memref<18x4x18xf32, #tpu.memory_space<vmem>>, vector<1x4x16xf32>,
    %42 = vector.extract_strided_slice %1 {offsets = [0, 160], sizes = [4, 16], strides = [1, 1]} : vector<4x256xf32> to vector<4x16xf32>
    %c11 = arith.constant 11 : index
    %c0_22 = arith.constant 0 : index
    %c1_23 = arith.constant 1 : index
    %43 = vector.load %arg7[%c11, %c0_22, %c1_23] : memref<18x4x18xf32, #tpu.memory_space<vmem>>, vector<1x4x16xf32>
    %44 = vector.shape_cast %43 : vector<1x4x16xf32> to vector<4x16xf32>
    %45 = vector.shape_cast %42 : vector<4x16xf32> to vector<1x4x16xf32>
    tpu.vector_store %arg7[%c11, %c0_22, %c1_23], %45 {strides = array<i32>} : memref<18x4x18xf32, #tpu.memory_space<vmem>>, vector<1x4x16xf32>,
    %46 = vector.extract_strided_slice %1 {offsets = [0, 176], sizes = [4, 16], strides = [1, 1]} : vector<4x256xf32> to vector<4x16xf32>
    %c12 = arith.constant 12 : index
    %c0_24 = arith.constant 0 : index
    %c1_25 = arith.constant 1 : index
    %47 = vector.load %arg7[%c12, %c0_24, %c1_25] : memref<18x4x18xf32, #tpu.memory_space<vmem>>, vector<1x4x16xf32>
    %48 = vector.shape_cast %47 : vector<1x4x16xf32> to vector<4x16xf32>
    %49 = vector.shape_cast %46 : vector<4x16xf32> to vector<1x4x16xf32>
    tpu.vector_store %arg7[%c12, %c0_24, %c1_25], %49 {strides = array<i32>} : memref<18x4x18xf32, #tpu.memory_space<vmem>>, vector<1x4x16xf32>,
    %50 = vector.extract_strided_slice %1 {offsets = [0, 192], sizes = [4, 16], strides = [1, 1]} : vector<4x256xf32> to vector<4x16xf32>
    %c13 = arith.constant 13 : index
    %c0_26 = arith.constant 0 : index
    %c1_27 = arith.constant 1 : index
    %51 = vector.load %arg7[%c13, %c0_26, %c1_27] : memref<18x4x18xf32, #tpu.memory_space<vmem>>, vector<1x4x16xf32>
    %52 = vector.shape_cast %51 : vector<1x4x16xf32> to vector<4x16xf32>
    %53 = vector.shape_cast %50 : vector<4x16xf32> to vector<1x4x16xf32>
    tpu.vector_store %arg7[%c13, %c0_26, %c1_27], %53 {strides = array<i32>} : memref<18x4x18xf32, #tpu.memory_space<vmem>>, vector<1x4x16xf32>,
    %54 = vector.extract_strided_slice %1 {offsets = [0, 208], sizes = [4, 16], strides = [1, 1]} : vector<4x256xf32> to vector<4x16xf32>
    %c14 = arith.constant 14 : index
    %c0_28 = arith.constant 0 : index
    %c1_29 = arith.constant 1 : index
    %55 = vector.load %arg7[%c14, %c0_28, %c1_29] : memref<18x4x18xf32, #tpu.memory_space<vmem>>, vector<1x4x16xf32>
    %56 = vector.shape_cast %55 : vector<1x4x16xf32> to vector<4x16xf32>
    %57 = vector.shape_cast %54 : vector<4x16xf32> to vector<1x4x16xf32>
    tpu.vector_store %arg7[%c14, %c0_28, %c1_29], %57 {strides = array<i32>} : memref<18x4x18xf32, #tpu.memory_space<vmem>>, vector<1x4x16xf32>,
    %58 = vector.extract_strided_slice %1 {offsets = [0, 224], sizes = [4, 16], strides = [1, 1]} : vector<4x256xf32> to vector<4x16xf32>
    %c15 = arith.constant 15 : index
    %c0_30 = arith.constant 0 : index
    %c1_31 = arith.constant 1 : index
    %59 = vector.load %arg7[%c15, %c0_30, %c1_31] : memref<18x4x18xf32, #tpu.memory_space<vmem>>, vector<1x4x16xf32>
    %60 = vector.shape_cast %59 : vector<1x4x16xf32> to vector<4x16xf32>
    %61 = vector.shape_cast %58 : vector<4x16xf32> to vector<1x4x16xf32>
    tpu.vector_store %arg7[%c15, %c0_30, %c1_31], %61 {strides = array<i32>} : memref<18x4x18xf32, #tpu.memory_space<vmem>>, vector<1x4x16xf32>,
    %62 = vector.extract_strided_slice %1 {offsets = [0, 240], sizes = [4, 16], strides = [1, 1]} : vector<4x256xf32> to vector<4x16xf32>
    %c16 = arith.constant 16 : index
    %c0_32 = arith.constant 0 : index
    %c1_33 = arith.constant 1 : index
    %63 = vector.load %arg7[%c16, %c0_32, %c1_33] : memref<18x4x18xf32, #tpu.memory_space<vmem>>, vector<1x4x16xf32>
    %64 = vector.shape_cast %63 : vector<1x4x16xf32> to vector<4x16xf32>
    %65 = vector.shape_cast %62 : vector<4x16xf32> to vector<1x4x16xf32>
    tpu.vector_store %arg7[%c16, %c0_32, %c1_33], %65 {strides = array<i32>} : memref<18x4x18xf32, #tpu.memory_space<vmem>>, vector<1x4x16xf32>,
    %c2_34 = arith.constant 2 : index
    %c0_35 = arith.constant 0 : index
    %c0_36 = arith.constant 0 : index
    %66 = vector.load %arg7[%c2_34, %c0_35, %c0_36] : memref<18x4x18xf32, #tpu.memory_space<vmem>>, vector<1x4x18xf32>
    %67 = vector.shape_cast %66 : vector<1x4x18xf32> to vector<4x18xf32>
    %c0_37 = arith.constant 0 : index
    %c0_38 = arith.constant 0 : index
    %c0_39 = arith.constant 0 : index
    %68 = vector.load %arg7[%c0_37, %c0_38, %c0_39] : memref<18x4x18xf32, #tpu.memory_space<vmem>>, vector<1x4x18xf32>
    %69 = vector.shape_cast %68 : vector<1x4x18xf32> to vector<4x18xf32>
    %70 = vector.shape_cast %67 : vector<4x18xf32> to vector<1x4x18xf32>
    tpu.vector_store %arg7[%c0_37, %c0_38, %c0_39], %70 {strides = array<i32>} : memref<18x4x18xf32, #tpu.memory_space<vmem>>, vector<1x4x18xf32>,
    %c15_40 = arith.constant 15 : index
    %c0_41 = arith.constant 0 : index
    %c0_42 = arith.constant 0 : index
    %71 = vector.load %arg7[%c15_40, %c0_41, %c0_42] : memref<18x4x18xf32, #tpu.memory_space<vmem>>, vector<1x4x18xf32>
    %72 = vector.shape_cast %71 : vector<1x4x18xf32> to vector<4x18xf32>
    %c17 = arith.constant 17 : index
    %c0_43 = arith.constant 0 : index
    %c0_44 = arith.constant 0 : index
    %73 = vector.load %arg7[%c17, %c0_43, %c0_44] : memref<18x4x18xf32, #tpu.memory_space<vmem>>, vector<1x4x18xf32>
    %74 = vector.shape_cast %73 : vector<1x4x18xf32> to vector<4x18xf32>
    %75 = vector.shape_cast %72 : vector<4x18xf32> to vector<1x4x18xf32>
    tpu.vector_store %arg7[%c17, %c0_43, %c0_44], %75 {strides = array<i32>} : memref<18x4x18xf32, #tpu.memory_space<vmem>>, vector<1x4x18xf32>,
    %c0_45 = arith.constant 0 : index
    %c0_46 = arith.constant 0 : index
    %c2_47 = arith.constant 2 : index
    %76 = vector.load %arg7[%c0_45, %c0_46, %c2_47] : memref<18x4x18xf32, #tpu.memory_space<vmem>>, vector<18x4x1xf32>
    %c0_48 = arith.constant 0 : index
    %c0_49 = arith.constant 0 : index
    %c0_50 = arith.constant 0 : index
    %77 = vector.load %arg7[%c0_48, %c0_49, %c0_50] : memref<18x4x18xf32, #tpu.memory_space<vmem>>, vector<18x4x1xf32>
    tpu.vector_store %arg7[%c0_48, %c0_49, %c0_50], %76 {strides = array<i32>} : memref<18x4x18xf32, #tpu.memory_space<vmem>>, vector<18x4x1xf32>,
    %c0_51 = arith.constant 0 : index
    %c0_52 = arith.constant 0 : index
    %c15_53 = arith.constant 15 : index
    %78 = vector.load %arg7[%c0_51, %c0_52, %c15_53] : memref<18x4x18xf32, #tpu.memory_space<vmem>>, vector<18x4x1xf32>
    %c0_54 = arith.constant 0 : index
    %c0_55 = arith.constant 0 : index
    %c17_56 = arith.constant 17 : index
    %79 = vector.load %arg7[%c0_54, %c0_55, %c17_56] : memref<18x4x18xf32, #tpu.memory_space<vmem>>, vector<18x4x1xf32>
    tpu.vector_store %arg7[%c0_54, %c0_55, %c17_56], %78 {strides = array<i32>} : memref<18x4x18xf32, #tpu.memory_space<vmem>>, vector<18x4x1xf32>,
    %c0_57 = arith.constant 0 : index
    %c0_58 = arith.constant 0 : index
    %c0_59 = arith.constant 0 : index
    %80 = vector.load %arg7[%c0_57, %c0_58, %c0_59] : memref<18x4x18xf32, #tpu.memory_space<vmem>>, vector<1x4x16xf32>
    %81 = vector.shape_cast %80 : vector<1x4x16xf32> to vector<4x16xf32>
    %c0_60 = arith.constant 0 : index
    %c0_61 = arith.constant 0 : index
    %82 = vector.load %arg8[%c0_60, %c0_61] : memref<36x256xf32, #tpu.memory_space<vmem>>, vector<4x16xf32>
    tpu.vector_store %arg8[%c0_60, %c0_61], %81 {strides = array<i32>} : memref<36x256xf32, #tpu.memory_space<vmem>>, vector<4x16xf32>,
    %c1_62 = arith.constant 1 : index
    %c0_63 = arith.constant 0 : index
    %c0_64 = arith.constant 0 : index
    %83 = vector.load %arg7[%c1_62, %c0_63, %c0_64] : memref<18x4x18xf32, #tpu.memory_space<vmem>>, vector<1x4x16xf32>
    %84 = vector.shape_cast %83 : vector<1x4x16xf32> to vector<4x16xf32>
    %c0_65 = arith.constant 0 : index
    %c16_66 = arith.constant 16 : index
    %85 = vector.load %arg8[%c0_65, %c16_66] : memref<36x256xf32, #tpu.memory_space<vmem>>, vector<4x16xf32>
    tpu.vector_store %arg8[%c0_65, %c16_66], %84 {strides = array<i32>} : memref<36x256xf32, #tpu.memory_space<vmem>>, vector<4x16xf32>,
    %c2_67 = arith.constant 2 : index
    %c0_68 = arith.constant 0 : index
    %c0_69 = arith.constant 0 : index
    %86 = vector.load %arg7[%c2_67, %c0_68, %c0_69] : memref<18x4x18xf32, #tpu.memory_space<vmem>>, vector<1x4x16xf32>
    %87 = vector.shape_cast %86 : vector<1x4x16xf32> to vector<4x16xf32>
    %c0_70 = arith.constant 0 : index
    %c32 = arith.constant 32 : index
    %88 = vector.load %arg8[%c0_70, %c32] : memref<36x256xf32, #tpu.memory_space<vmem>>, vector<4x16xf32>
    tpu.vector_store %arg8[%c0_70, %c32], %87 {strides = array<i32>} : memref<36x256xf32, #tpu.memory_space<vmem>>, vector<4x16xf32>,
    %c3_71 = arith.constant 3 : index
    %c0_72 = arith.constant 0 : index
    %c0_73 = arith.constant 0 : index
    %89 = vector.load %arg7[%c3_71, %c0_72, %c0_73] : memref<18x4x18xf32, #tpu.memory_space<vmem>>, vector<1x4x16xf32>
    %90 = vector.shape_cast %89 : vector<1x4x16xf32> to vector<4x16xf32>
    %c0_74 = arith.constant 0 : index
    %c48 = arith.constant 48 : index
    %91 = vector.load %arg8[%c0_74, %c48] : memref<36x256xf32, #tpu.memory_space<vmem>>, vector<4x16xf32>
    tpu.vector_store %arg8[%c0_74, %c48], %90 {strides = array<i32>} : memref<36x256xf32, #tpu.memory_space<vmem>>, vector<4x16xf32>,
    %c4_75 = arith.constant 4 : index
    %c0_76 = arith.constant 0 : index
    %c0_77 = arith.constant 0 : index
    %92 = vector.load %arg7[%c4_75, %c0_76, %c0_77] : memref<18x4x18xf32, #tpu.memory_space<vmem>>, vector<1x4x16xf32>
    %93 = vector.shape_cast %92 : vector<1x4x16xf32> to vector<4x16xf32>
    %c0_78 = arith.constant 0 : index
    %c64 = arith.constant 64 : index
    %94 = vector.load %arg8[%c0_78, %c64] : memref<36x256xf32, #tpu.memory_space<vmem>>, vector<4x16xf32>
    tpu.vector_store %arg8[%c0_78, %c64], %93 {strides = array<i32>} : memref<36x256xf32, #tpu.memory_space<vmem>>, vector<4x16xf32>,
    %c5_79 = arith.constant 5 : index
    %c0_80 = arith.constant 0 : index
    %c0_81 = arith.constant 0 : index
    %95 = vector.load %arg7[%c5_79, %c0_80, %c0_81] : memref<18x4x18xf32, #tpu.memory_space<vmem>>, vector<1x4x16xf32>
    %96 = vector.shape_cast %95 : vector<1x4x16xf32> to vector<4x16xf32>
    %c0_82 = arith.constant 0 : index
    %c80 = arith.constant 80 : index
    %97 = vector.load %arg8[%c0_82, %c80] : memref<36x256xf32, #tpu.memory_space<vmem>>, vector<4x16xf32>
    tpu.vector_store %arg8[%c0_82, %c80], %96 {strides = array<i32>} : memref<36x256xf32, #tpu.memory_space<vmem>>, vector<4x16xf32>,
    %c6_83 = arith.constant 6 : index
    %c0_84 = arith.constant 0 : index
    %c0_85 = arith.constant 0 : index
    %98 = vector.load %arg7[%c6_83, %c0_84, %c0_85] : memref<18x4x18xf32, #tpu.memory_space<vmem>>, vector<1x4x16xf32>
    %99 = vector.shape_cast %98 : vector<1x4x16xf32> to vector<4x16xf32>
    %c0_86 = arith.constant 0 : index
    %c96 = arith.constant 96 : index
    %100 = vector.load %arg8[%c0_86, %c96] : memref<36x256xf32, #tpu.memory_space<vmem>>, vector<4x16xf32>
    tpu.vector_store %arg8[%c0_86, %c96], %99 {strides = array<i32>} : memref<36x256xf32, #tpu.memory_space<vmem>>, vector<4x16xf32>,
    %c7_87 = arith.constant 7 : index
    %c0_88 = arith.constant 0 : index
    %c0_89 = arith.constant 0 : index
    %101 = vector.load %arg7[%c7_87, %c0_88, %c0_89] : memref<18x4x18xf32, #tpu.memory_space<vmem>>, vector<1x4x16xf32>
    %102 = vector.shape_cast %101 : vector<1x4x16xf32> to vector<4x16xf32>
    %c0_90 = arith.constant 0 : index
    %c112 = arith.constant 112 : index
    %103 = vector.load %arg8[%c0_90, %c112] : memref<36x256xf32, #tpu.memory_space<vmem>>, vector<4x16xf32>
    tpu.vector_store %arg8[%c0_90, %c112], %102 {strides = array<i32>} : memref<36x256xf32, #tpu.memory_space<vmem>>, vector<4x16xf32>,
    %c8_91 = arith.constant 8 : index
    %c0_92 = arith.constant 0 : index
    %c0_93 = arith.constant 0 : index
    %104 = vector.load %arg7[%c8_91, %c0_92, %c0_93] : memref<18x4x18xf32, #tpu.memory_space<vmem>>, vector<1x4x16xf32>
    %105 = vector.shape_cast %104 : vector<1x4x16xf32> to vector<4x16xf32>
    %c0_94 = arith.constant 0 : index
    %c128 = arith.constant 128 : index
    %106 = vector.load %arg8[%c0_94, %c128] : memref<36x256xf32, #tpu.memory_space<vmem>>, vector<4x16xf32>
    tpu.vector_store %arg8[%c0_94, %c128], %105 {strides = array<i32>} : memref<36x256xf32, #tpu.memory_space<vmem>>, vector<4x16xf32>,
    %c9_95 = arith.constant 9 : index
    %c0_96 = arith.constant 0 : index
    %c0_97 = arith.constant 0 : index
    %107 = vector.load %arg7[%c9_95, %c0_96, %c0_97] : memref<18x4x18xf32, #tpu.memory_space<vmem>>, vector<1x4x16xf32>
    %108 = vector.shape_cast %107 : vector<1x4x16xf32> to vector<4x16xf32>
    %c0_98 = arith.constant 0 : index
    %c144 = arith.constant 144 : index
    %109 = vector.load %arg8[%c0_98, %c144] : memref<36x256xf32, #tpu.memory_space<vmem>>, vector<4x16xf32>
    tpu.vector_store %arg8[%c0_98, %c144], %108 {strides = array<i32>} : memref<36x256xf32, #tpu.memory_space<vmem>>, vector<4x16xf32>,
    %c10_99 = arith.constant 10 : index
    %c0_100 = arith.constant 0 : index
    %c0_101 = arith.constant 0 : index
    %110 = vector.load %arg7[%c10_99, %c0_100, %c0_101] : memref<18x4x18xf32, #tpu.memory_space<vmem>>, vector<1x4x16xf32>
    %111 = vector.shape_cast %110 : vector<1x4x16xf32> to vector<4x16xf32>
    %c0_102 = arith.constant 0 : index
    %c160 = arith.constant 160 : index
    %112 = vector.load %arg8[%c0_102, %c160] : memref<36x256xf32, #tpu.memory_space<vmem>>, vector<4x16xf32>
    tpu.vector_store %arg8[%c0_102, %c160], %111 {strides = array<i32>} : memref<36x256xf32, #tpu.memory_space<vmem>>, vector<4x16xf32>,
    %c11_103 = arith.constant 11 : index
    %c0_104 = arith.constant 0 : index
    %c0_105 = arith.constant 0 : index
    %113 = vector.load %arg7[%c11_103, %c0_104, %c0_105] : memref<18x4x18xf32, #tpu.memory_space<vmem>>, vector<1x4x16xf32>
    %114 = vector.shape_cast %113 : vector<1x4x16xf32> to vector<4x16xf32>
    %c0_106 = arith.constant 0 : index
    %c176 = arith.constant 176 : index
    %115 = vector.load %arg8[%c0_106, %c176] : memref<36x256xf32, #tpu.memory_space<vmem>>, vector<4x16xf32>
    tpu.vector_store %arg8[%c0_106, %c176], %114 {strides = array<i32>} : memref<36x256xf32, #tpu.memory_space<vmem>>, vector<4x16xf32>,
    %c12_107 = arith.constant 12 : index
    %c0_108 = arith.constant 0 : index
    %c0_109 = arith.constant 0 : index
    %116 = vector.load %arg7[%c12_107, %c0_108, %c0_109] : memref<18x4x18xf32, #tpu.memory_space<vmem>>, vector<1x4x16xf32>
    %117 = vector.shape_cast %116 : vector<1x4x16xf32> to vector<4x16xf32>
    %c0_110 = arith.constant 0 : index
    %c192 = arith.constant 192 : index
    %118 = vector.load %arg8[%c0_110, %c192] : memref<36x256xf32, #tpu.memory_space<vmem>>, vector<4x16xf32>
    tpu.vector_store %arg8[%c0_110, %c192], %117 {strides = array<i32>} : memref<36x256xf32, #tpu.memory_space<vmem>>, vector<4x16xf32>,
    %c13_111 = arith.constant 13 : index
    %c0_112 = arith.constant 0 : index
    %c0_113 = arith.constant 0 : index
    %119 = vector.load %arg7[%c13_111, %c0_112, %c0_113] : memref<18x4x18xf32, #tpu.memory_space<vmem>>, vector<1x4x16xf32>
    %120 = vector.shape_cast %119 : vector<1x4x16xf32> to vector<4x16xf32>
    %c0_114 = arith.constant 0 : index
    %c208 = arith.constant 208 : index
    %121 = vector.load %arg8[%c0_114, %c208] : memref<36x256xf32, #tpu.memory_space<vmem>>, vector<4x16xf32>
    tpu.vector_store %arg8[%c0_114, %c208], %120 {strides = array<i32>} : memref<36x256xf32, #tpu.memory_space<vmem>>, vector<4x16xf32>,
    %c14_115 = arith.constant 14 : index
    %c0_116 = arith.constant 0 : index
    %c0_117 = arith.constant 0 : index
    %122 = vector.load %arg7[%c14_115, %c0_116, %c0_117] : memref<18x4x18xf32, #tpu.memory_space<vmem>>, vector<1x4x16xf32>
    %123 = vector.shape_cast %122 : vector<1x4x16xf32> to vector<4x16xf32>
    %c0_118 = arith.constant 0 : index
    %c224 = arith.constant 224 : index
    %124 = vector.load %arg8[%c0_118, %c224] : memref<36x256xf32, #tpu.memory_space<vmem>>, vector<4x16xf32>
    tpu.vector_store %arg8[%c0_118, %c224], %123 {strides = array<i32>} : memref<36x256xf32, #tpu.memory_space<vmem>>, vector<4x16xf32>,
    %c15_119 = arith.constant 15 : index
    %c0_120 = arith.constant 0 : index
    %c0_121 = arith.constant 0 : index
    %125 = vector.load %arg7[%c15_119, %c0_120, %c0_121] : memref<18x4x18xf32, #tpu.memory_space<vmem>>, vector<1x4x16xf32>
    %126 = vector.shape_cast %125 : vector<1x4x16xf32> to vector<4x16xf32>
    %c0_122 = arith.constant 0 : index
    %c240 = arith.constant 240 : index
    %127 = vector.load %arg8[%c0_122, %c240] : memref<36x256xf32, #tpu.memory_space<vmem>>, vector<4x16xf32>
    tpu.vector_store %arg8[%c0_122, %c240], %126 {strides = array<i32>} : memref<36x256xf32, #tpu.memory_space<vmem>>, vector<4x16xf32>,
    %c0_123 = arith.constant 0 : index
    %c0_124 = arith.constant 0 : index
    %c1_125 = arith.constant 1 : index
    %128 = vector.load %arg7[%c0_123, %c0_124, %c1_125] : memref<18x4x18xf32, #tpu.memory_space<vmem>>, vector<1x4x16xf32>
    %129 = vector.shape_cast %128 : vector<1x4x16xf32> to vector<4x16xf32>
    %c4_126 = arith.constant 4 : index
    %c0_127 = arith.constant 0 : index
    %130 = vector.load %arg8[%c4_126, %c0_127] : memref<36x256xf32, #tpu.memory_space<vmem>>, vector<4x16xf32>
    tpu.vector_store %arg8[%c4_126, %c0_127], %129 {strides = array<i32>} : memref<36x256xf32, #tpu.memory_space<vmem>>, vector<4x16xf32>,
    %c1_128 = arith.constant 1 : index
    %c0_129 = arith.constant 0 : index
    %c1_130 = arith.constant 1 : index
    %131 = vector.load %arg7[%c1_128, %c0_129, %c1_130] : memref<18x4x18xf32, #tpu.memory_space<vmem>>, vector<1x4x16xf32>
    %132 = vector.shape_cast %131 : vector<1x4x16xf32> to vector<4x16xf32>
    %c4_131 = arith.constant 4 : index
    %c16_132 = arith.constant 16 : index
    %133 = vector.load %arg8[%c4_131, %c16_132] : memref<36x256xf32, #tpu.memory_space<vmem>>, vector<4x16xf32>
    tpu.vector_store %arg8[%c4_131, %c16_132], %132 {strides = array<i32>} : memref<36x256xf32, #tpu.memory_space<vmem>>, vector<4x16xf32>,
    %c2_133 = arith.constant 2 : index
    %c0_134 = arith.constant 0 : index
    %c1_135 = arith.constant 1 : index
    %134 = vector.load %arg7[%c2_133, %c0_134, %c1_135] : memref<18x4x18xf32, #tpu.memory_space<vmem>>, vector<1x4x16xf32>
    %135 = vector.shape_cast %134 : vector<1x4x16xf32> to vector<4x16xf32>
    %c4_136 = arith.constant 4 : index
    %c32_137 = arith.constant 32 : index
    %136 = vector.load %arg8[%c4_136, %c32_137] : memref<36x256xf32, #tpu.memory_space<vmem>>, vector<4x16xf32>
    tpu.vector_store %arg8[%c4_136, %c32_137], %135 {strides = array<i32>} : memref<36x256xf32, #tpu.memory_space<vmem>>, vector<4x16xf32>,
    %c3_138 = arith.constant 3 : index
    %c0_139 = arith.constant 0 : index
    %c1_140 = arith.constant 1 : index
    %137 = vector.load %arg7[%c3_138, %c0_139, %c1_140] : memref<18x4x18xf32, #tpu.memory_space<vmem>>, vector<1x4x16xf32>
    %138 = vector.shape_cast %137 : vector<1x4x16xf32> to vector<4x16xf32>
    %c4_141 = arith.constant 4 : index
    %c48_142 = arith.constant 48 : index
    %139 = vector.load %arg8[%c4_141, %c48_142] : memref<36x256xf32, #tpu.memory_space<vmem>>, vector<4x16xf32>
    tpu.vector_store %arg8[%c4_141, %c48_142], %138 {strides = array<i32>} : memref<36x256xf32, #tpu.memory_space<vmem>>, vector<4x16xf32>,
    %c4_143 = arith.constant 4 : index
    %c0_144 = arith.constant 0 : index
    %c1_145 = arith.constant 1 : index
    %140 = vector.load %arg7[%c4_143, %c0_144, %c1_145] : memref<18x4x18xf32, #tpu.memory_space<vmem>>, vector<1x4x16xf32>
    %141 = vector.shape_cast %140 : vector<1x4x16xf32> to vector<4x16xf32>
    %c4_146 = arith.constant 4 : index
    %c64_147 = arith.constant 64 : index
    %142 = vector.load %arg8[%c4_146, %c64_147] : memref<36x256xf32, #tpu.memory_space<vmem>>, vector<4x16xf32>
    tpu.vector_store %arg8[%c4_146, %c64_147], %141 {strides = array<i32>} : memref<36x256xf32, #tpu.memory_space<vmem>>, vector<4x16xf32>,
    %c5_148 = arith.constant 5 : index
    %c0_149 = arith.constant 0 : index
    %c1_150 = arith.constant 1 : index
    %143 = vector.load %arg7[%c5_148, %c0_149, %c1_150] : memref<18x4x18xf32, #tpu.memory_space<vmem>>, vector<1x4x16xf32>
    %144 = vector.shape_cast %143 : vector<1x4x16xf32> to vector<4x16xf32>
    %c4_151 = arith.constant 4 : index
    %c80_152 = arith.constant 80 : index
    %145 = vector.load %arg8[%c4_151, %c80_152] : memref<36x256xf32, #tpu.memory_space<vmem>>, vector<4x16xf32>
    tpu.vector_store %arg8[%c4_151, %c80_152], %144 {strides = array<i32>} : memref<36x256xf32, #tpu.memory_space<vmem>>, vector<4x16xf32>,
    %c6_153 = arith.constant 6 : index
    %c0_154 = arith.constant 0 : index
    %c1_155 = arith.constant 1 : index
    %146 = vector.load %arg7[%c6_153, %c0_154, %c1_155] : memref<18x4x18xf32, #tpu.memory_space<vmem>>, vector<1x4x16xf32>
    %147 = vector.shape_cast %146 : vector<1x4x16xf32> to vector<4x16xf32>
    %c4_156 = arith.constant 4 : index
    %c96_157 = arith.constant 96 : index
    %148 = vector.load %arg8[%c4_156, %c96_157] : memref<36x256xf32, #tpu.memory_space<vmem>>, vector<4x16xf32>
    tpu.vector_store %arg8[%c4_156, %c96_157], %147 {strides = array<i32>} : memref<36x256xf32, #tpu.memory_space<vmem>>, vector<4x16xf32>,
    %c7_158 = arith.constant 7 : index
    %c0_159 = arith.constant 0 : index
    %c1_160 = arith.constant 1 : index
    %149 = vector.load %arg7[%c7_158, %c0_159, %c1_160] : memref<18x4x18xf32, #tpu.memory_space<vmem>>, vector<1x4x16xf32>
    %150 = vector.shape_cast %149 : vector<1x4x16xf32> to vector<4x16xf32>
    %c4_161 = arith.constant 4 : index
    %c112_162 = arith.constant 112 : index
    %151 = vector.load %arg8[%c4_161, %c112_162] : memref<36x256xf32, #tpu.memory_space<vmem>>, vector<4x16xf32>
    tpu.vector_store %arg8[%c4_161, %c112_162], %150 {strides = array<i32>} : memref<36x256xf32, #tpu.memory_space<vmem>>, vector<4x16xf32>,
    %c8_163 = arith.constant 8 : index
    %c0_164 = arith.constant 0 : index
    %c1_165 = arith.constant 1 : index
    %152 = vector.load %arg7[%c8_163, %c0_164, %c1_165] : memref<18x4x18xf32, #tpu.memory_space<vmem>>, vector<1x4x16xf32>
    %153 = vector.shape_cast %152 : vector<1x4x16xf32> to vector<4x16xf32>
    %c4_166 = arith.constant 4 : index
    %c128_167 = arith.constant 128 : index
    %154 = vector.load %arg8[%c4_166, %c128_167] : memref<36x256xf32, #tpu.memory_space<vmem>>, vector<4x16xf32>
    tpu.vector_store %arg8[%c4_166, %c128_167], %153 {strides = array<i32>} : memref<36x256xf32, #tpu.memory_space<vmem>>, vector<4x16xf32>,
    %c9_168 = arith.constant 9 : index
    %c0_169 = arith.constant 0 : index
    %c1_170 = arith.constant 1 : index
    %155 = vector.load %arg7[%c9_168, %c0_169, %c1_170] : memref<18x4x18xf32, #tpu.memory_space<vmem>>, vector<1x4x16xf32>
    %156 = vector.shape_cast %155 : vector<1x4x16xf32> to vector<4x16xf32>
    %c4_171 = arith.constant 4 : index
    %c144_172 = arith.constant 144 : index
    %157 = vector.load %arg8[%c4_171, %c144_172] : memref<36x256xf32, #tpu.memory_space<vmem>>, vector<4x16xf32>
    tpu.vector_store %arg8[%c4_171, %c144_172], %156 {strides = array<i32>} : memref<36x256xf32, #tpu.memory_space<vmem>>, vector<4x16xf32>,
    %c10_173 = arith.constant 10 : index
    %c0_174 = arith.constant 0 : index
    %c1_175 = arith.constant 1 : index
    %158 = vector.load %arg7[%c10_173, %c0_174, %c1_175] : memref<18x4x18xf32, #tpu.memory_space<vmem>>, vector<1x4x16xf32>
    %159 = vector.shape_cast %158 : vector<1x4x16xf32> to vector<4x16xf32>
    %c4_176 = arith.constant 4 : index
    %c160_177 = arith.constant 160 : index
    %160 = vector.load %arg8[%c4_176, %c160_177] : memref<36x256xf32, #tpu.memory_space<vmem>>, vector<4x16xf32>
    tpu.vector_store %arg8[%c4_176, %c160_177], %159 {strides = array<i32>} : memref<36x256xf32, #tpu.memory_space<vmem>>, vector<4x16xf32>,
    %c11_178 = arith.constant 11 : index
    %c0_179 = arith.constant 0 : index
    %c1_180 = arith.constant 1 : index
    %161 = vector.load %arg7[%c11_178, %c0_179, %c1_180] : memref<18x4x18xf32, #tpu.memory_space<vmem>>, vector<1x4x16xf32>
    %162 = vector.shape_cast %161 : vector<1x4x16xf32> to vector<4x16xf32>
    %c4_181 = arith.constant 4 : index
    %c176_182 = arith.constant 176 : index
    %163 = vector.load %arg8[%c4_181, %c176_182] : memref<36x256xf32, #tpu.memory_space<vmem>>, vector<4x16xf32>
    tpu.vector_store %arg8[%c4_181, %c176_182], %162 {strides = array<i32>} : memref<36x256xf32, #tpu.memory_space<vmem>>, vector<4x16xf32>,
    %c12_183 = arith.constant 12 : index
    %c0_184 = arith.constant 0 : index
    %c1_185 = arith.constant 1 : index
    %164 = vector.load %arg7[%c12_183, %c0_184, %c1_185] : memref<18x4x18xf32, #tpu.memory_space<vmem>>, vector<1x4x16xf32>
    %165 = vector.shape_cast %164 : vector<1x4x16xf32> to vector<4x16xf32>
    %c4_186 = arith.constant 4 : index
    %c192_187 = arith.constant 192 : index
    %166 = vector.load %arg8[%c4_186, %c192_187] : memref<36x256xf32, #tpu.memory_space<vmem>>, vector<4x16xf32>
    tpu.vector_store %arg8[%c4_186, %c192_187], %165 {strides = array<i32>} : memref<36x256xf32, #tpu.memory_space<vmem>>, vector<4x16xf32>,
    %c13_188 = arith.constant 13 : index
    %c0_189 = arith.constant 0 : index
    %c1_190 = arith.constant 1 : index
    %167 = vector.load %arg7[%c13_188, %c0_189, %c1_190] : memref<18x4x18xf32, #tpu.memory_space<vmem>>, vector<1x4x16xf32>
    %168 = vector.shape_cast %167 : vector<1x4x16xf32> to vector<4x16xf32>
    %c4_191 = arith.constant 4 : index
    %c208_192 = arith.constant 208 : index
    %169 = vector.load %arg8[%c4_191, %c208_192] : memref<36x256xf32, #tpu.memory_space<vmem>>, vector<4x16xf32>
    tpu.vector_store %arg8[%c4_191, %c208_192], %168 {strides = array<i32>} : memref<36x256xf32, #tpu.memory_space<vmem>>, vector<4x16xf32>,
    %c14_193 = arith.constant 14 : index
    %c0_194 = arith.constant 0 : index
    %c1_195 = arith.constant 1 : index
    %170 = vector.load %arg7[%c14_193, %c0_194, %c1_195] : memref<18x4x18xf32, #tpu.memory_space<vmem>>, vector<1x4x16xf32>
    %171 = vector.shape_cast %170 : vector<1x4x16xf32> to vector<4x16xf32>
    %c4_196 = arith.constant 4 : index
    %c224_197 = arith.constant 224 : index
    %172 = vector.load %arg8[%c4_196, %c224_197] : memref<36x256xf32, #tpu.memory_space<vmem>>, vector<4x16xf32>
    tpu.vector_store %arg8[%c4_196, %c224_197], %171 {strides = array<i32>} : memref<36x256xf32, #tpu.memory_space<vmem>>, vector<4x16xf32>,
    %c15_198 = arith.constant 15 : index
    %c0_199 = arith.constant 0 : index
    %c1_200 = arith.constant 1 : index
    %173 = vector.load %arg7[%c15_198, %c0_199, %c1_200] : memref<18x4x18xf32, #tpu.memory_space<vmem>>, vector<1x4x16xf32>
    %174 = vector.shape_cast %173 : vector<1x4x16xf32> to vector<4x16xf32>
    %c4_201 = arith.constant 4 : index
    %c240_202 = arith.constant 240 : index
    %175 = vector.load %arg8[%c4_201, %c240_202] : memref<36x256xf32, #tpu.memory_space<vmem>>, vector<4x16xf32>
    tpu.vector_store %arg8[%c4_201, %c240_202], %174 {strides = array<i32>} : memref<36x256xf32, #tpu.memory_space<vmem>>, vector<4x16xf32>,
    %c0_203 = arith.constant 0 : index
    %c0_204 = arith.constant 0 : index
    %c2_205 = arith.constant 2 : index
    %176 = vector.load %arg7[%c0_203, %c0_204, %c2_205] : memref<18x4x18xf32, #tpu.memory_space<vmem>>, vector<1x4x16xf32>
    %177 = vector.shape_cast %176 : vector<1x4x16xf32> to vector<4x16xf32>
    %c8_206 = arith.constant 8 : index
    %c0_207 = arith.constant 0 : index
    %178 = vector.load %arg8[%c8_206, %c0_207] : memref<36x256xf32, #tpu.memory_space<vmem>>, vector<4x16xf32>
    tpu.vector_store %arg8[%c8_206, %c0_207], %177 {strides = array<i32>} : memref<36x256xf32, #tpu.memory_space<vmem>>, vector<4x16xf32>,
    %c1_208 = arith.constant 1 : index
    %c0_209 = arith.constant 0 : index
    %c2_210 = arith.constant 2 : index
    %179 = vector.load %arg7[%c1_208, %c0_209, %c2_210] : memref<18x4x18xf32, #tpu.memory_space<vmem>>, vector<1x4x16xf32>
    %180 = vector.shape_cast %179 : vector<1x4x16xf32> to vector<4x16xf32>
    %c8_211 = arith.constant 8 : index
    %c16_212 = arith.constant 16 : index
    %181 = vector.load %arg8[%c8_211, %c16_212] : memref<36x256xf32, #tpu.memory_space<vmem>>, vector<4x16xf32>
    tpu.vector_store %arg8[%c8_211, %c16_212], %180 {strides = array<i32>} : memref<36x256xf32, #tpu.memory_space<vmem>>, vector<4x16xf32>,
    %c2_213 = arith.constant 2 : index
    %c0_214 = arith.constant 0 : index
    %c2_215 = arith.constant 2 : index
    %182 = vector.load %arg7[%c2_213, %c0_214, %c2_215] : memref<18x4x18xf32, #tpu.memory_space<vmem>>, vector<1x4x16xf32>
    %183 = vector.shape_cast %182 : vector<1x4x16xf32> to vector<4x16xf32>
    %c8_216 = arith.constant 8 : index
    %c32_217 = arith.constant 32 : index
    %184 = vector.load %arg8[%c8_216, %c32_217] : memref<36x256xf32, #tpu.memory_space<vmem>>, vector<4x16xf32>
    tpu.vector_store %arg8[%c8_216, %c32_217], %183 {strides = array<i32>} : memref<36x256xf32, #tpu.memory_space<vmem>>, vector<4x16xf32>,
    %c3_218 = arith.constant 3 : index
    %c0_219 = arith.constant 0 : index
    %c2_220 = arith.constant 2 : index
    %185 = vector.load %arg7[%c3_218, %c0_219, %c2_220] : memref<18x4x18xf32, #tpu.memory_space<vmem>>, vector<1x4x16xf32>
    %186 = vector.shape_cast %185 : vector<1x4x16xf32> to vector<4x16xf32>
    %c8_221 = arith.constant 8 : index
    %c48_222 = arith.constant 48 : index
    %187 = vector.load %arg8[%c8_221, %c48_222] : memref<36x256xf32, #tpu.memory_space<vmem>>, vector<4x16xf32>
    tpu.vector_store %arg8[%c8_221, %c48_222], %186 {strides = array<i32>} : memref<36x256xf32, #tpu.memory_space<vmem>>, vector<4x16xf32>,
    %c4_223 = arith.constant 4 : index
    %c0_224 = arith.constant 0 : index
    %c2_225 = arith.constant 2 : index
    %188 = vector.load %arg7[%c4_223, %c0_224, %c2_225] : memref<18x4x18xf32, #tpu.memory_space<vmem>>, vector<1x4x16xf32>
    %189 = vector.shape_cast %188 : vector<1x4x16xf32> to vector<4x16xf32>
    %c8_226 = arith.constant 8 : index
    %c64_227 = arith.constant 64 : index
    %190 = vector.load %arg8[%c8_226, %c64_227] : memref<36x256xf32, #tpu.memory_space<vmem>>, vector<4x16xf32>
    tpu.vector_store %arg8[%c8_226, %c64_227], %189 {strides = array<i32>} : memref<36x256xf32, #tpu.memory_space<vmem>>, vector<4x16xf32>,
    %c5_228 = arith.constant 5 : index
    %c0_229 = arith.constant 0 : index
    %c2_230 = arith.constant 2 : index
    %191 = vector.load %arg7[%c5_228, %c0_229, %c2_230] : memref<18x4x18xf32, #tpu.memory_space<vmem>>, vector<1x4x16xf32>
    %192 = vector.shape_cast %191 : vector<1x4x16xf32> to vector<4x16xf32>
    %c8_231 = arith.constant 8 : index
    %c80_232 = arith.constant 80 : index
    %193 = vector.load %arg8[%c8_231, %c80_232] : memref<36x256xf32, #tpu.memory_space<vmem>>, vector<4x16xf32>
    tpu.vector_store %arg8[%c8_231, %c80_232], %192 {strides = array<i32>} : memref<36x256xf32, #tpu.memory_space<vmem>>, vector<4x16xf32>,
    %c6_233 = arith.constant 6 : index
    %c0_234 = arith.constant 0 : index
    %c2_235 = arith.constant 2 : index
    %194 = vector.load %arg7[%c6_233, %c0_234, %c2_235] : memref<18x4x18xf32, #tpu.memory_space<vmem>>, vector<1x4x16xf32>
    %195 = vector.shape_cast %194 : vector<1x4x16xf32> to vector<4x16xf32>
    %c8_236 = arith.constant 8 : index
    %c96_237 = arith.constant 96 : index
    %196 = vector.load %arg8[%c8_236, %c96_237] : memref<36x256xf32, #tpu.memory_space<vmem>>, vector<4x16xf32>
    tpu.vector_store %arg8[%c8_236, %c96_237], %195 {strides = array<i32>} : memref<36x256xf32, #tpu.memory_space<vmem>>, vector<4x16xf32>,
    %c7_238 = arith.constant 7 : index
    %c0_239 = arith.constant 0 : index
    %c2_240 = arith.constant 2 : index
    %197 = vector.load %arg7[%c7_238, %c0_239, %c2_240] : memref<18x4x18xf32, #tpu.memory_space<vmem>>, vector<1x4x16xf32>
    %198 = vector.shape_cast %197 : vector<1x4x16xf32> to vector<4x16xf32>
    %c8_241 = arith.constant 8 : index
    %c112_242 = arith.constant 112 : index
    %199 = vector.load %arg8[%c8_241, %c112_242] : memref<36x256xf32, #tpu.memory_space<vmem>>, vector<4x16xf32>
    tpu.vector_store %arg8[%c8_241, %c112_242], %198 {strides = array<i32>} : memref<36x256xf32, #tpu.memory_space<vmem>>, vector<4x16xf32>,
    %c8_243 = arith.constant 8 : index
    %c0_244 = arith.constant 0 : index
    %c2_245 = arith.constant 2 : index
    %200 = vector.load %arg7[%c8_243, %c0_244, %c2_245] : memref<18x4x18xf32, #tpu.memory_space<vmem>>, vector<1x4x16xf32>
    %201 = vector.shape_cast %200 : vector<1x4x16xf32> to vector<4x16xf32>
    %c8_246 = arith.constant 8 : index
    %c128_247 = arith.constant 128 : index
    %202 = vector.load %arg8[%c8_246, %c128_247] : memref<36x256xf32, #tpu.memory_space<vmem>>, vector<4x16xf32>
    tpu.vector_store %arg8[%c8_246, %c128_247], %201 {strides = array<i32>} : memref<36x256xf32, #tpu.memory_space<vmem>>, vector<4x16xf32>,
    %c9_248 = arith.constant 9 : index
    %c0_249 = arith.constant 0 : index
    %c2_250 = arith.constant 2 : index
    %203 = vector.load %arg7[%c9_248, %c0_249, %c2_250] : memref<18x4x18xf32, #tpu.memory_space<vmem>>, vector<1x4x16xf32>
    %204 = vector.shape_cast %203 : vector<1x4x16xf32> to vector<4x16xf32>
    %c8_251 = arith.constant 8 : index
    %c144_252 = arith.constant 144 : index
    %205 = vector.load %arg8[%c8_251, %c144_252] : memref<36x256xf32, #tpu.memory_space<vmem>>, vector<4x16xf32>
    tpu.vector_store %arg8[%c8_251, %c144_252], %204 {strides = array<i32>} : memref<36x256xf32, #tpu.memory_space<vmem>>, vector<4x16xf32>,
    %c10_253 = arith.constant 10 : index
    %c0_254 = arith.constant 0 : index
    %c2_255 = arith.constant 2 : index
    %206 = vector.load %arg7[%c10_253, %c0_254, %c2_255] : memref<18x4x18xf32, #tpu.memory_space<vmem>>, vector<1x4x16xf32>
    %207 = vector.shape_cast %206 : vector<1x4x16xf32> to vector<4x16xf32>
    %c8_256 = arith.constant 8 : index
    %c160_257 = arith.constant 160 : index
    %208 = vector.load %arg8[%c8_256, %c160_257] : memref<36x256xf32, #tpu.memory_space<vmem>>, vector<4x16xf32>
    tpu.vector_store %arg8[%c8_256, %c160_257], %207 {strides = array<i32>} : memref<36x256xf32, #tpu.memory_space<vmem>>, vector<4x16xf32>,
    %c11_258 = arith.constant 11 : index
    %c0_259 = arith.constant 0 : index
    %c2_260 = arith.constant 2 : index
    %209 = vector.load %arg7[%c11_258, %c0_259, %c2_260] : memref<18x4x18xf32, #tpu.memory_space<vmem>>, vector<1x4x16xf32>
    %210 = vector.shape_cast %209 : vector<1x4x16xf32> to vector<4x16xf32>
    %c8_261 = arith.constant 8 : index
    %c176_262 = arith.constant 176 : index
    %211 = vector.load %arg8[%c8_261, %c176_262] : memref<36x256xf32, #tpu.memory_space<vmem>>, vector<4x16xf32>
    tpu.vector_store %arg8[%c8_261, %c176_262], %210 {strides = array<i32>} : memref<36x256xf32, #tpu.memory_space<vmem>>, vector<4x16xf32>,
    %c12_263 = arith.constant 12 : index
    %c0_264 = arith.constant 0 : index
    %c2_265 = arith.constant 2 : index
    %212 = vector.load %arg7[%c12_263, %c0_264, %c2_265] : memref<18x4x18xf32, #tpu.memory_space<vmem>>, vector<1x4x16xf32>
    %213 = vector.shape_cast %212 : vector<1x4x16xf32> to vector<4x16xf32>
    %c8_266 = arith.constant 8 : index
    %c192_267 = arith.constant 192 : index
    %214 = vector.load %arg8[%c8_266, %c192_267] : memref<36x256xf32, #tpu.memory_space<vmem>>, vector<4x16xf32>
    tpu.vector_store %arg8[%c8_266, %c192_267], %213 {strides = array<i32>} : memref<36x256xf32, #tpu.memory_space<vmem>>, vector<4x16xf32>,
    %c13_268 = arith.constant 13 : index
    %c0_269 = arith.constant 0 : index
    %c2_270 = arith.constant 2 : index
    %215 = vector.load %arg7[%c13_268, %c0_269, %c2_270] : memref<18x4x18xf32, #tpu.memory_space<vmem>>, vector<1x4x16xf32>
    %216 = vector.shape_cast %215 : vector<1x4x16xf32> to vector<4x16xf32>
    %c8_271 = arith.constant 8 : index
    %c208_272 = arith.constant 208 : index
    %217 = vector.load %arg8[%c8_271, %c208_272] : memref<36x256xf32, #tpu.memory_space<vmem>>, vector<4x16xf32>
    tpu.vector_store %arg8[%c8_271, %c208_272], %216 {strides = array<i32>} : memref<36x256xf32, #tpu.memory_space<vmem>>, vector<4x16xf32>,
    %c14_273 = arith.constant 14 : index
    %c0_274 = arith.constant 0 : index
    %c2_275 = arith.constant 2 : index
    %218 = vector.load %arg7[%c14_273, %c0_274, %c2_275] : memref<18x4x18xf32, #tpu.memory_space<vmem>>, vector<1x4x16xf32>
    %219 = vector.shape_cast %218 : vector<1x4x16xf32> to vector<4x16xf32>
    %c8_276 = arith.constant 8 : index
    %c224_277 = arith.constant 224 : index
    %220 = vector.load %arg8[%c8_276, %c224_277] : memref<36x256xf32, #tpu.memory_space<vmem>>, vector<4x16xf32>
    tpu.vector_store %arg8[%c8_276, %c224_277], %219 {strides = array<i32>} : memref<36x256xf32, #tpu.memory_space<vmem>>, vector<4x16xf32>,
    %c15_278 = arith.constant 15 : index
    %c0_279 = arith.constant 0 : index
    %c2_280 = arith.constant 2 : index
    %221 = vector.load %arg7[%c15_278, %c0_279, %c2_280] : memref<18x4x18xf32, #tpu.memory_space<vmem>>, vector<1x4x16xf32>
    %222 = vector.shape_cast %221 : vector<1x4x16xf32> to vector<4x16xf32>
    %c8_281 = arith.constant 8 : index
    %c240_282 = arith.constant 240 : index
    %223 = vector.load %arg8[%c8_281, %c240_282] : memref<36x256xf32, #tpu.memory_space<vmem>>, vector<4x16xf32>
    tpu.vector_store %arg8[%c8_281, %c240_282], %222 {strides = array<i32>} : memref<36x256xf32, #tpu.memory_space<vmem>>, vector<4x16xf32>,
    %c1_283 = arith.constant 1 : index
    %c0_284 = arith.constant 0 : index
    %c0_285 = arith.constant 0 : index
    %224 = vector.load %arg7[%c1_283, %c0_284, %c0_285] : memref<18x4x18xf32, #tpu.memory_space<vmem>>, vector<1x4x16xf32>
    %225 = vector.shape_cast %224 : vector<1x4x16xf32> to vector<4x16xf32>
    %c12_286 = arith.constant 12 : index
    %c0_287 = arith.constant 0 : index
    %226 = vector.load %arg8[%c12_286, %c0_287] : memref<36x256xf32, #tpu.memory_space<vmem>>, vector<4x16xf32>
    tpu.vector_store %arg8[%c12_286, %c0_287], %225 {strides = array<i32>} : memref<36x256xf32, #tpu.memory_space<vmem>>, vector<4x16xf32>,
    %c2_288 = arith.constant 2 : index
    %c0_289 = arith.constant 0 : index
    %c0_290 = arith.constant 0 : index
    %227 = vector.load %arg7[%c2_288, %c0_289, %c0_290] : memref<18x4x18xf32, #tpu.memory_space<vmem>>, vector<1x4x16xf32>
    %228 = vector.shape_cast %227 : vector<1x4x16xf32> to vector<4x16xf32>
    %c12_291 = arith.constant 12 : index
    %c16_292 = arith.constant 16 : index
    %229 = vector.load %arg8[%c12_291, %c16_292] : memref<36x256xf32, #tpu.memory_space<vmem>>, vector<4x16xf32>
    tpu.vector_store %arg8[%c12_291, %c16_292], %228 {strides = array<i32>} : memref<36x256xf32, #tpu.memory_space<vmem>>, vector<4x16xf32>,
    %c3_293 = arith.constant 3 : index
    %c0_294 = arith.constant 0 : index
    %c0_295 = arith.constant 0 : index
    %230 = vector.load %arg7[%c3_293, %c0_294, %c0_295] : memref<18x4x18xf32, #tpu.memory_space<vmem>>, vector<1x4x16xf32>
    %231 = vector.shape_cast %230 : vector<1x4x16xf32> to vector<4x16xf32>
    %c12_296 = arith.constant 12 : index
    %c32_297 = arith.constant 32 : index
    %232 = vector.load %arg8[%c12_296, %c32_297] : memref<36x256xf32, #tpu.memory_space<vmem>>, vector<4x16xf32>
    tpu.vector_store %arg8[%c12_296, %c32_297], %231 {strides = array<i32>} : memref<36x256xf32, #tpu.memory_space<vmem>>, vector<4x16xf32>,
    %c4_298 = arith.constant 4 : index
    %c0_299 = arith.constant 0 : index
    %c0_300 = arith.constant 0 : index
    %233 = vector.load %arg7[%c4_298, %c0_299, %c0_300] : memref<18x4x18xf32, #tpu.memory_space<vmem>>, vector<1x4x16xf32>
    %234 = vector.shape_cast %233 : vector<1x4x16xf32> to vector<4x16xf32>
    %c12_301 = arith.constant 12 : index
    %c48_302 = arith.constant 48 : index
    %235 = vector.load %arg8[%c12_301, %c48_302] : memref<36x256xf32, #tpu.memory_space<vmem>>, vector<4x16xf32>
    tpu.vector_store %arg8[%c12_301, %c48_302], %234 {strides = array<i32>} : memref<36x256xf32, #tpu.memory_space<vmem>>, vector<4x16xf32>,
    %c5_303 = arith.constant 5 : index
    %c0_304 = arith.constant 0 : index
    %c0_305 = arith.constant 0 : index
    %236 = vector.load %arg7[%c5_303, %c0_304, %c0_305] : memref<18x4x18xf32, #tpu.memory_space<vmem>>, vector<1x4x16xf32>
    %237 = vector.shape_cast %236 : vector<1x4x16xf32> to vector<4x16xf32>
    %c12_306 = arith.constant 12 : index
    %c64_307 = arith.constant 64 : index
    %238 = vector.load %arg8[%c12_306, %c64_307] : memref<36x256xf32, #tpu.memory_space<vmem>>, vector<4x16xf32>
    tpu.vector_store %arg8[%c12_306, %c64_307], %237 {strides = array<i32>} : memref<36x256xf32, #tpu.memory_space<vmem>>, vector<4x16xf32>,
    %c6_308 = arith.constant 6 : index
    %c0_309 = arith.constant 0 : index
    %c0_310 = arith.constant 0 : index
    %239 = vector.load %arg7[%c6_308, %c0_309, %c0_310] : memref<18x4x18xf32, #tpu.memory_space<vmem>>, vector<1x4x16xf32>
    %240 = vector.shape_cast %239 : vector<1x4x16xf32> to vector<4x16xf32>
    %c12_311 = arith.constant 12 : index
    %c80_312 = arith.constant 80 : index
    %241 = vector.load %arg8[%c12_311, %c80_312] : memref<36x256xf32, #tpu.memory_space<vmem>>, vector<4x16xf32>
    tpu.vector_store %arg8[%c12_311, %c80_312], %240 {strides = array<i32>} : memref<36x256xf32, #tpu.memory_space<vmem>>, vector<4x16xf32>,
    %c7_313 = arith.constant 7 : index
    %c0_314 = arith.constant 0 : index
    %c0_315 = arith.constant 0 : index
    %242 = vector.load %arg7[%c7_313, %c0_314, %c0_315] : memref<18x4x18xf32, #tpu.memory_space<vmem>>, vector<1x4x16xf32>
    %243 = vector.shape_cast %242 : vector<1x4x16xf32> to vector<4x16xf32>
    %c12_316 = arith.constant 12 : index
    %c96_317 = arith.constant 96 : index
    %244 = vector.load %arg8[%c12_316, %c96_317] : memref<36x256xf32, #tpu.memory_space<vmem>>, vector<4x16xf32>
    tpu.vector_store %arg8[%c12_316, %c96_317], %243 {strides = array<i32>} : memref<36x256xf32, #tpu.memory_space<vmem>>, vector<4x16xf32>,
    %c8_318 = arith.constant 8 : index
    %c0_319 = arith.constant 0 : index
    %c0_320 = arith.constant 0 : index
    %245 = vector.load %arg7[%c8_318, %c0_319, %c0_320] : memref<18x4x18xf32, #tpu.memory_space<vmem>>, vector<1x4x16xf32>
    %246 = vector.shape_cast %245 : vector<1x4x16xf32> to vector<4x16xf32>
    %c12_321 = arith.constant 12 : index
    %c112_322 = arith.constant 112 : index
    %247 = vector.load %arg8[%c12_321, %c112_322] : memref<36x256xf32, #tpu.memory_space<vmem>>, vector<4x16xf32>
    tpu.vector_store %arg8[%c12_321, %c112_322], %246 {strides = array<i32>} : memref<36x256xf32, #tpu.memory_space<vmem>>, vector<4x16xf32>,
    %c9_323 = arith.constant 9 : index
    %c0_324 = arith.constant 0 : index
    %c0_325 = arith.constant 0 : index
    %248 = vector.load %arg7[%c9_323, %c0_324, %c0_325] : memref<18x4x18xf32, #tpu.memory_space<vmem>>, vector<1x4x16xf32>
    %249 = vector.shape_cast %248 : vector<1x4x16xf32> to vector<4x16xf32>
    %c12_326 = arith.constant 12 : index
    %c128_327 = arith.constant 128 : index
    %250 = vector.load %arg8[%c12_326, %c128_327] : memref<36x256xf32, #tpu.memory_space<vmem>>, vector<4x16xf32>
    tpu.vector_store %arg8[%c12_326, %c128_327], %249 {strides = array<i32>} : memref<36x256xf32, #tpu.memory_space<vmem>>, vector<4x16xf32>,
    %c10_328 = arith.constant 10 : index
    %c0_329 = arith.constant 0 : index
    %c0_330 = arith.constant 0 : index
    %251 = vector.load %arg7[%c10_328, %c0_329, %c0_330] : memref<18x4x18xf32, #tpu.memory_space<vmem>>, vector<1x4x16xf32>
    %252 = vector.shape_cast %251 : vector<1x4x16xf32> to vector<4x16xf32>
    %c12_331 = arith.constant 12 : index
    %c144_332 = arith.constant 144 : index
    %253 = vector.load %arg8[%c12_331, %c144_332] : memref<36x256xf32, #tpu.memory_space<vmem>>, vector<4x16xf32>
    tpu.vector_store %arg8[%c12_331, %c144_332], %252 {strides = array<i32>} : memref<36x256xf32, #tpu.memory_space<vmem>>, vector<4x16xf32>,
    %c11_333 = arith.constant 11 : index
    %c0_334 = arith.constant 0 : index
    %c0_335 = arith.constant 0 : index
    %254 = vector.load %arg7[%c11_333, %c0_334, %c0_335] : memref<18x4x18xf32, #tpu.memory_space<vmem>>, vector<1x4x16xf32>
    %255 = vector.shape_cast %254 : vector<1x4x16xf32> to vector<4x16xf32>
    %c12_336 = arith.constant 12 : index
    %c160_337 = arith.constant 160 : index
    %256 = vector.load %arg8[%c12_336, %c160_337] : memref<36x256xf32, #tpu.memory_space<vmem>>, vector<4x16xf32>
    tpu.vector_store %arg8[%c12_336, %c160_337], %255 {strides = array<i32>} : memref<36x256xf32, #tpu.memory_space<vmem>>, vector<4x16xf32>,
    %c12_338 = arith.constant 12 : index
    %c0_339 = arith.constant 0 : index
    %c0_340 = arith.constant 0 : index
    %257 = vector.load %arg7[%c12_338, %c0_339, %c0_340] : memref<18x4x18xf32, #tpu.memory_space<vmem>>, vector<1x4x16xf32>
    %258 = vector.shape_cast %257 : vector<1x4x16xf32> to vector<4x16xf32>
    %c12_341 = arith.constant 12 : index
    %c176_342 = arith.constant 176 : index
    %259 = vector.load %arg8[%c12_341, %c176_342] : memref<36x256xf32, #tpu.memory_space<vmem>>, vector<4x16xf32>
    tpu.vector_store %arg8[%c12_341, %c176_342], %258 {strides = array<i32>} : memref<36x256xf32, #tpu.memory_space<vmem>>, vector<4x16xf32>,
    %c13_343 = arith.constant 13 : index
    %c0_344 = arith.constant 0 : index
    %c0_345 = arith.constant 0 : index
    %260 = vector.load %arg7[%c13_343, %c0_344, %c0_345] : memref<18x4x18xf32, #tpu.memory_space<vmem>>, vector<1x4x16xf32>
    %261 = vector.shape_cast %260 : vector<1x4x16xf32> to vector<4x16xf32>
    %c12_346 = arith.constant 12 : index
    %c192_347 = arith.constant 192 : index
    %262 = vector.load %arg8[%c12_346, %c192_347] : memref<36x256xf32, #tpu.memory_space<vmem>>, vector<4x16xf32>
    tpu.vector_store %arg8[%c12_346, %c192_347], %261 {strides = array<i32>} : memref<36x256xf32, #tpu.memory_space<vmem>>, vector<4x16xf32>,
    %c14_348 = arith.constant 14 : index
    %c0_349 = arith.constant 0 : index
    %c0_350 = arith.constant 0 : index
    %263 = vector.load %arg7[%c14_348, %c0_349, %c0_350] : memref<18x4x18xf32, #tpu.memory_space<vmem>>, vector<1x4x16xf32>
    %264 = vector.shape_cast %263 : vector<1x4x16xf32> to vector<4x16xf32>
    %c12_351 = arith.constant 12 : index
    %c208_352 = arith.constant 208 : index
    %265 = vector.load %arg8[%c12_351, %c208_352] : memref<36x256xf32, #tpu.memory_space<vmem>>, vector<4x16xf32>
    tpu.vector_store %arg8[%c12_351, %c208_352], %264 {strides = array<i32>} : memref<36x256xf32, #tpu.memory_space<vmem>>, vector<4x16xf32>,
    %c15_353 = arith.constant 15 : index
    %c0_354 = arith.constant 0 : index
    %c0_355 = arith.constant 0 : index
    %266 = vector.load %arg7[%c15_353, %c0_354, %c0_355] : memref<18x4x18xf32, #tpu.memory_space<vmem>>, vector<1x4x16xf32>
    %267 = vector.shape_cast %266 : vector<1x4x16xf32> to vector<4x16xf32>
    %c12_356 = arith.constant 12 : index
    %c224_357 = arith.constant 224 : index
    %268 = vector.load %arg8[%c12_356, %c224_357] : memref<36x256xf32, #tpu.memory_space<vmem>>, vector<4x16xf32>
    tpu.vector_store %arg8[%c12_356, %c224_357], %267 {strides = array<i32>} : memref<36x256xf32, #tpu.memory_space<vmem>>, vector<4x16xf32>,
    %c16_358 = arith.constant 16 : index
    %c0_359 = arith.constant 0 : index
    %c0_360 = arith.constant 0 : index
    %269 = vector.load %arg7[%c16_358, %c0_359, %c0_360] : memref<18x4x18xf32, #tpu.memory_space<vmem>>, vector<1x4x16xf32>
    %270 = vector.shape_cast %269 : vector<1x4x16xf32> to vector<4x16xf32>
    %c12_361 = arith.constant 12 : index
    %c240_362 = arith.constant 240 : index
    %271 = vector.load %arg8[%c12_361, %c240_362] : memref<36x256xf32, #tpu.memory_space<vmem>>, vector<4x16xf32>
    tpu.vector_store %arg8[%c12_361, %c240_362], %270 {strides = array<i32>} : memref<36x256xf32, #tpu.memory_space<vmem>>, vector<4x16xf32>,
    %c1_363 = arith.constant 1 : index
    %c0_364 = arith.constant 0 : index
    %c1_365 = arith.constant 1 : index
    %272 = vector.load %arg7[%c1_363, %c0_364, %c1_365] : memref<18x4x18xf32, #tpu.memory_space<vmem>>, vector<1x4x16xf32>
    %273 = vector.shape_cast %272 : vector<1x4x16xf32> to vector<4x16xf32>
    %c16_366 = arith.constant 16 : index
    %c0_367 = arith.constant 0 : index
    %274 = vector.load %arg8[%c16_366, %c0_367] : memref<36x256xf32, #tpu.memory_space<vmem>>, vector<4x16xf32>
    tpu.vector_store %arg8[%c16_366, %c0_367], %273 {strides = array<i32>} : memref<36x256xf32, #tpu.memory_space<vmem>>, vector<4x16xf32>,
    %c2_368 = arith.constant 2 : index
    %c0_369 = arith.constant 0 : index
    %c1_370 = arith.constant 1 : index
    %275 = vector.load %arg7[%c2_368, %c0_369, %c1_370] : memref<18x4x18xf32, #tpu.memory_space<vmem>>, vector<1x4x16xf32>
    %276 = vector.shape_cast %275 : vector<1x4x16xf32> to vector<4x16xf32>
    %c16_371 = arith.constant 16 : index
    %c16_372 = arith.constant 16 : index
    %277 = vector.load %arg8[%c16_371, %c16_372] : memref<36x256xf32, #tpu.memory_space<vmem>>, vector<4x16xf32>
    tpu.vector_store %arg8[%c16_371, %c16_372], %276 {strides = array<i32>} : memref<36x256xf32, #tpu.memory_space<vmem>>, vector<4x16xf32>,
    %c3_373 = arith.constant 3 : index
    %c0_374 = arith.constant 0 : index
    %c1_375 = arith.constant 1 : index
    %278 = vector.load %arg7[%c3_373, %c0_374, %c1_375] : memref<18x4x18xf32, #tpu.memory_space<vmem>>, vector<1x4x16xf32>
    %279 = vector.shape_cast %278 : vector<1x4x16xf32> to vector<4x16xf32>
    %c16_376 = arith.constant 16 : index
    %c32_377 = arith.constant 32 : index
    %280 = vector.load %arg8[%c16_376, %c32_377] : memref<36x256xf32, #tpu.memory_space<vmem>>, vector<4x16xf32>
    tpu.vector_store %arg8[%c16_376, %c32_377], %279 {strides = array<i32>} : memref<36x256xf32, #tpu.memory_space<vmem>>, vector<4x16xf32>,
    %c4_378 = arith.constant 4 : index
    %c0_379 = arith.constant 0 : index
    %c1_380 = arith.constant 1 : index
    %281 = vector.load %arg7[%c4_378, %c0_379, %c1_380] : memref<18x4x18xf32, #tpu.memory_space<vmem>>, vector<1x4x16xf32>
    %282 = vector.shape_cast %281 : vector<1x4x16xf32> to vector<4x16xf32>
    %c16_381 = arith.constant 16 : index
    %c48_382 = arith.constant 48 : index
    %283 = vector.load %arg8[%c16_381, %c48_382] : memref<36x256xf32, #tpu.memory_space<vmem>>, vector<4x16xf32>
    tpu.vector_store %arg8[%c16_381, %c48_382], %282 {strides = array<i32>} : memref<36x256xf32, #tpu.memory_space<vmem>>, vector<4x16xf32>,
    %c5_383 = arith.constant 5 : index
    %c0_384 = arith.constant 0 : index
    %c1_385 = arith.constant 1 : index
    %284 = vector.load %arg7[%c5_383, %c0_384, %c1_385] : memref<18x4x18xf32, #tpu.memory_space<vmem>>, vector<1x4x16xf32>
    %285 = vector.shape_cast %284 : vector<1x4x16xf32> to vector<4x16xf32>
    %c16_386 = arith.constant 16 : index
    %c64_387 = arith.constant 64 : index
    %286 = vector.load %arg8[%c16_386, %c64_387] : memref<36x256xf32, #tpu.memory_space<vmem>>, vector<4x16xf32>
    tpu.vector_store %arg8[%c16_386, %c64_387], %285 {strides = array<i32>} : memref<36x256xf32, #tpu.memory_space<vmem>>, vector<4x16xf32>,
    %c6_388 = arith.constant 6 : index
    %c0_389 = arith.constant 0 : index
    %c1_390 = arith.constant 1 : index
    %287 = vector.load %arg7[%c6_388, %c0_389, %c1_390] : memref<18x4x18xf32, #tpu.memory_space<vmem>>, vector<1x4x16xf32>
    %288 = vector.shape_cast %287 : vector<1x4x16xf32> to vector<4x16xf32>
    %c16_391 = arith.constant 16 : index
    %c80_392 = arith.constant 80 : index
    %289 = vector.load %arg8[%c16_391, %c80_392] : memref<36x256xf32, #tpu.memory_space<vmem>>, vector<4x16xf32>
    tpu.vector_store %arg8[%c16_391, %c80_392], %288 {strides = array<i32>} : memref<36x256xf32, #tpu.memory_space<vmem>>, vector<4x16xf32>,
    %c7_393 = arith.constant 7 : index
    %c0_394 = arith.constant 0 : index
    %c1_395 = arith.constant 1 : index
    %290 = vector.load %arg7[%c7_393, %c0_394, %c1_395] : memref<18x4x18xf32, #tpu.memory_space<vmem>>, vector<1x4x16xf32>
    %291 = vector.shape_cast %290 : vector<1x4x16xf32> to vector<4x16xf32>
    %c16_396 = arith.constant 16 : index
    %c96_397 = arith.constant 96 : index
    %292 = vector.load %arg8[%c16_396, %c96_397] : memref<36x256xf32, #tpu.memory_space<vmem>>, vector<4x16xf32>
    tpu.vector_store %arg8[%c16_396, %c96_397], %291 {strides = array<i32>} : memref<36x256xf32, #tpu.memory_space<vmem>>, vector<4x16xf32>,
    %c8_398 = arith.constant 8 : index
    %c0_399 = arith.constant 0 : index
    %c1_400 = arith.constant 1 : index
    %293 = vector.load %arg7[%c8_398, %c0_399, %c1_400] : memref<18x4x18xf32, #tpu.memory_space<vmem>>, vector<1x4x16xf32>
    %294 = vector.shape_cast %293 : vector<1x4x16xf32> to vector<4x16xf32>
    %c16_401 = arith.constant 16 : index
    %c112_402 = arith.constant 112 : index
    %295 = vector.load %arg8[%c16_401, %c112_402] : memref<36x256xf32, #tpu.memory_space<vmem>>, vector<4x16xf32>
    tpu.vector_store %arg8[%c16_401, %c112_402], %294 {strides = array<i32>} : memref<36x256xf32, #tpu.memory_space<vmem>>, vector<4x16xf32>,
    %c9_403 = arith.constant 9 : index
    %c0_404 = arith.constant 0 : index
    %c1_405 = arith.constant 1 : index
    %296 = vector.load %arg7[%c9_403, %c0_404, %c1_405] : memref<18x4x18xf32, #tpu.memory_space<vmem>>, vector<1x4x16xf32>
    %297 = vector.shape_cast %296 : vector<1x4x16xf32> to vector<4x16xf32>
    %c16_406 = arith.constant 16 : index
    %c128_407 = arith.constant 128 : index
    %298 = vector.load %arg8[%c16_406, %c128_407] : memref<36x256xf32, #tpu.memory_space<vmem>>, vector<4x16xf32>
    tpu.vector_store %arg8[%c16_406, %c128_407], %297 {strides = array<i32>} : memref<36x256xf32, #tpu.memory_space<vmem>>, vector<4x16xf32>,
    %c10_408 = arith.constant 10 : index
    %c0_409 = arith.constant 0 : index
    %c1_410 = arith.constant 1 : index
    %299 = vector.load %arg7[%c10_408, %c0_409, %c1_410] : memref<18x4x18xf32, #tpu.memory_space<vmem>>, vector<1x4x16xf32>
    %300 = vector.shape_cast %299 : vector<1x4x16xf32> to vector<4x16xf32>
    %c16_411 = arith.constant 16 : index
    %c144_412 = arith.constant 144 : index
    %301 = vector.load %arg8[%c16_411, %c144_412] : memref<36x256xf32, #tpu.memory_space<vmem>>, vector<4x16xf32>
    tpu.vector_store %arg8[%c16_411, %c144_412], %300 {strides = array<i32>} : memref<36x256xf32, #tpu.memory_space<vmem>>, vector<4x16xf32>,
    %c11_413 = arith.constant 11 : index
    %c0_414 = arith.constant 0 : index
    %c1_415 = arith.constant 1 : index
    %302 = vector.load %arg7[%c11_413, %c0_414, %c1_415] : memref<18x4x18xf32, #tpu.memory_space<vmem>>, vector<1x4x16xf32>
    %303 = vector.shape_cast %302 : vector<1x4x16xf32> to vector<4x16xf32>
    %c16_416 = arith.constant 16 : index
    %c160_417 = arith.constant 160 : index
    %304 = vector.load %arg8[%c16_416, %c160_417] : memref<36x256xf32, #tpu.memory_space<vmem>>, vector<4x16xf32>
    tpu.vector_store %arg8[%c16_416, %c160_417], %303 {strides = array<i32>} : memref<36x256xf32, #tpu.memory_space<vmem>>, vector<4x16xf32>,
    %c12_418 = arith.constant 12 : index
    %c0_419 = arith.constant 0 : index
    %c1_420 = arith.constant 1 : index
    %305 = vector.load %arg7[%c12_418, %c0_419, %c1_420] : memref<18x4x18xf32, #tpu.memory_space<vmem>>, vector<1x4x16xf32>
    %306 = vector.shape_cast %305 : vector<1x4x16xf32> to vector<4x16xf32>
    %c16_421 = arith.constant 16 : index
    %c176_422 = arith.constant 176 : index
    %307 = vector.load %arg8[%c16_421, %c176_422] : memref<36x256xf32, #tpu.memory_space<vmem>>, vector<4x16xf32>
    tpu.vector_store %arg8[%c16_421, %c176_422], %306 {strides = array<i32>} : memref<36x256xf32, #tpu.memory_space<vmem>>, vector<4x16xf32>,
    %c13_423 = arith.constant 13 : index
    %c0_424 = arith.constant 0 : index
    %c1_425 = arith.constant 1 : index
    %308 = vector.load %arg7[%c13_423, %c0_424, %c1_425] : memref<18x4x18xf32, #tpu.memory_space<vmem>>, vector<1x4x16xf32>
    %309 = vector.shape_cast %308 : vector<1x4x16xf32> to vector<4x16xf32>
    %c16_426 = arith.constant 16 : index
    %c192_427 = arith.constant 192 : index
    %310 = vector.load %arg8[%c16_426, %c192_427] : memref<36x256xf32, #tpu.memory_space<vmem>>, vector<4x16xf32>
    tpu.vector_store %arg8[%c16_426, %c192_427], %309 {strides = array<i32>} : memref<36x256xf32, #tpu.memory_space<vmem>>, vector<4x16xf32>,
    %c14_428 = arith.constant 14 : index
    %c0_429 = arith.constant 0 : index
    %c1_430 = arith.constant 1 : index
    %311 = vector.load %arg7[%c14_428, %c0_429, %c1_430] : memref<18x4x18xf32, #tpu.memory_space<vmem>>, vector<1x4x16xf32>
    %312 = vector.shape_cast %311 : vector<1x4x16xf32> to vector<4x16xf32>
    %c16_431 = arith.constant 16 : index
    %c208_432 = arith.constant 208 : index
    %313 = vector.load %arg8[%c16_431, %c208_432] : memref<36x256xf32, #tpu.memory_space<vmem>>, vector<4x16xf32>
    tpu.vector_store %arg8[%c16_431, %c208_432], %312 {strides = array<i32>} : memref<36x256xf32, #tpu.memory_space<vmem>>, vector<4x16xf32>,
    %c15_433 = arith.constant 15 : index
    %c0_434 = arith.constant 0 : index
    %c1_435 = arith.constant 1 : index
    %314 = vector.load %arg7[%c15_433, %c0_434, %c1_435] : memref<18x4x18xf32, #tpu.memory_space<vmem>>, vector<1x4x16xf32>
    %315 = vector.shape_cast %314 : vector<1x4x16xf32> to vector<4x16xf32>
    %c16_436 = arith.constant 16 : index
    %c224_437 = arith.constant 224 : index
    %316 = vector.load %arg8[%c16_436, %c224_437] : memref<36x256xf32, #tpu.memory_space<vmem>>, vector<4x16xf32>
    tpu.vector_store %arg8[%c16_436, %c224_437], %315 {strides = array<i32>} : memref<36x256xf32, #tpu.memory_space<vmem>>, vector<4x16xf32>,
    %c16_438 = arith.constant 16 : index
    %c0_439 = arith.constant 0 : index
    %c1_440 = arith.constant 1 : index
    %317 = vector.load %arg7[%c16_438, %c0_439, %c1_440] : memref<18x4x18xf32, #tpu.memory_space<vmem>>, vector<1x4x16xf32>
    %318 = vector.shape_cast %317 : vector<1x4x16xf32> to vector<4x16xf32>
    %c16_441 = arith.constant 16 : index
    %c240_442 = arith.constant 240 : index
    %319 = vector.load %arg8[%c16_441, %c240_442] : memref<36x256xf32, #tpu.memory_space<vmem>>, vector<4x16xf32>
    tpu.vector_store %arg8[%c16_441, %c240_442], %318 {strides = array<i32>} : memref<36x256xf32, #tpu.memory_space<vmem>>, vector<4x16xf32>,
    %c1_443 = arith.constant 1 : index
    %c0_444 = arith.constant 0 : index
    %c2_445 = arith.constant 2 : index
    %320 = vector.load %arg7[%c1_443, %c0_444, %c2_445] : memref<18x4x18xf32, #tpu.memory_space<vmem>>, vector<1x4x16xf32>
    %321 = vector.shape_cast %320 : vector<1x4x16xf32> to vector<4x16xf32>
    %c20 = arith.constant 20 : index
    %c0_446 = arith.constant 0 : index
    %322 = vector.load %arg8[%c20, %c0_446] : memref<36x256xf32, #tpu.memory_space<vmem>>, vector<4x16xf32>
    tpu.vector_store %arg8[%c20, %c0_446], %321 {strides = array<i32>} : memref<36x256xf32, #tpu.memory_space<vmem>>, vector<4x16xf32>,
    %c2_447 = arith.constant 2 : index
    %c0_448 = arith.constant 0 : index
    %c2_449 = arith.constant 2 : index
    %323 = vector.load %arg7[%c2_447, %c0_448, %c2_449] : memref<18x4x18xf32, #tpu.memory_space<vmem>>, vector<1x4x16xf32>
    %324 = vector.shape_cast %323 : vector<1x4x16xf32> to vector<4x16xf32>
    %c20_450 = arith.constant 20 : index
    %c16_451 = arith.constant 16 : index
    %325 = vector.load %arg8[%c20_450, %c16_451] : memref<36x256xf32, #tpu.memory_space<vmem>>, vector<4x16xf32>
    tpu.vector_store %arg8[%c20_450, %c16_451], %324 {strides = array<i32>} : memref<36x256xf32, #tpu.memory_space<vmem>>, vector<4x16xf32>,
    %c3_452 = arith.constant 3 : index
    %c0_453 = arith.constant 0 : index
    %c2_454 = arith.constant 2 : index
    %326 = vector.load %arg7[%c3_452, %c0_453, %c2_454] : memref<18x4x18xf32, #tpu.memory_space<vmem>>, vector<1x4x16xf32>
    %327 = vector.shape_cast %326 : vector<1x4x16xf32> to vector<4x16xf32>
    %c20_455 = arith.constant 20 : index
    %c32_456 = arith.constant 32 : index
    %328 = vector.load %arg8[%c20_455, %c32_456] : memref<36x256xf32, #tpu.memory_space<vmem>>, vector<4x16xf32>
    tpu.vector_store %arg8[%c20_455, %c32_456], %327 {strides = array<i32>} : memref<36x256xf32, #tpu.memory_space<vmem>>, vector<4x16xf32>,
    %c4_457 = arith.constant 4 : index
    %c0_458 = arith.constant 0 : index
    %c2_459 = arith.constant 2 : index
    %329 = vector.load %arg7[%c4_457, %c0_458, %c2_459] : memref<18x4x18xf32, #tpu.memory_space<vmem>>, vector<1x4x16xf32>
    %330 = vector.shape_cast %329 : vector<1x4x16xf32> to vector<4x16xf32>
    %c20_460 = arith.constant 20 : index
    %c48_461 = arith.constant 48 : index
    %331 = vector.load %arg8[%c20_460, %c48_461] : memref<36x256xf32, #tpu.memory_space<vmem>>, vector<4x16xf32>
    tpu.vector_store %arg8[%c20_460, %c48_461], %330 {strides = array<i32>} : memref<36x256xf32, #tpu.memory_space<vmem>>, vector<4x16xf32>,
    %c5_462 = arith.constant 5 : index
    %c0_463 = arith.constant 0 : index
    %c2_464 = arith.constant 2 : index
    %332 = vector.load %arg7[%c5_462, %c0_463, %c2_464] : memref<18x4x18xf32, #tpu.memory_space<vmem>>, vector<1x4x16xf32>
    %333 = vector.shape_cast %332 : vector<1x4x16xf32> to vector<4x16xf32>
    %c20_465 = arith.constant 20 : index
    %c64_466 = arith.constant 64 : index
    %334 = vector.load %arg8[%c20_465, %c64_466] : memref<36x256xf32, #tpu.memory_space<vmem>>, vector<4x16xf32>
    tpu.vector_store %arg8[%c20_465, %c64_466], %333 {strides = array<i32>} : memref<36x256xf32, #tpu.memory_space<vmem>>, vector<4x16xf32>,
    %c6_467 = arith.constant 6 : index
    %c0_468 = arith.constant 0 : index
    %c2_469 = arith.constant 2 : index
    %335 = vector.load %arg7[%c6_467, %c0_468, %c2_469] : memref<18x4x18xf32, #tpu.memory_space<vmem>>, vector<1x4x16xf32>
    %336 = vector.shape_cast %335 : vector<1x4x16xf32> to vector<4x16xf32>
    %c20_470 = arith.constant 20 : index
    %c80_471 = arith.constant 80 : index
    %337 = vector.load %arg8[%c20_470, %c80_471] : memref<36x256xf32, #tpu.memory_space<vmem>>, vector<4x16xf32>
    tpu.vector_store %arg8[%c20_470, %c80_471], %336 {strides = array<i32>} : memref<36x256xf32, #tpu.memory_space<vmem>>, vector<4x16xf32>,
    %c7_472 = arith.constant 7 : index
    %c0_473 = arith.constant 0 : index
    %c2_474 = arith.constant 2 : index
    %338 = vector.load %arg7[%c7_472, %c0_473, %c2_474] : memref<18x4x18xf32, #tpu.memory_space<vmem>>, vector<1x4x16xf32>
    %339 = vector.shape_cast %338 : vector<1x4x16xf32> to vector<4x16xf32>
    %c20_475 = arith.constant 20 : index
    %c96_476 = arith.constant 96 : index
    %340 = vector.load %arg8[%c20_475, %c96_476] : memref<36x256xf32, #tpu.memory_space<vmem>>, vector<4x16xf32>
    tpu.vector_store %arg8[%c20_475, %c96_476], %339 {strides = array<i32>} : memref<36x256xf32, #tpu.memory_space<vmem>>, vector<4x16xf32>,
    %c8_477 = arith.constant 8 : index
    %c0_478 = arith.constant 0 : index
    %c2_479 = arith.constant 2 : index
    %341 = vector.load %arg7[%c8_477, %c0_478, %c2_479] : memref<18x4x18xf32, #tpu.memory_space<vmem>>, vector<1x4x16xf32>
    %342 = vector.shape_cast %341 : vector<1x4x16xf32> to vector<4x16xf32>
    %c20_480 = arith.constant 20 : index
    %c112_481 = arith.constant 112 : index
    %343 = vector.load %arg8[%c20_480, %c112_481] : memref<36x256xf32, #tpu.memory_space<vmem>>, vector<4x16xf32>
    tpu.vector_store %arg8[%c20_480, %c112_481], %342 {strides = array<i32>} : memref<36x256xf32, #tpu.memory_space<vmem>>, vector<4x16xf32>,
    %c9_482 = arith.constant 9 : index
    %c0_483 = arith.constant 0 : index
    %c2_484 = arith.constant 2 : index
    %344 = vector.load %arg7[%c9_482, %c0_483, %c2_484] : memref<18x4x18xf32, #tpu.memory_space<vmem>>, vector<1x4x16xf32>
    %345 = vector.shape_cast %344 : vector<1x4x16xf32> to vector<4x16xf32>
    %c20_485 = arith.constant 20 : index
    %c128_486 = arith.constant 128 : index
    %346 = vector.load %arg8[%c20_485, %c128_486] : memref<36x256xf32, #tpu.memory_space<vmem>>, vector<4x16xf32>
    tpu.vector_store %arg8[%c20_485, %c128_486], %345 {strides = array<i32>} : memref<36x256xf32, #tpu.memory_space<vmem>>, vector<4x16xf32>,
    %c10_487 = arith.constant 10 : index
    %c0_488 = arith.constant 0 : index
    %c2_489 = arith.constant 2 : index
    %347 = vector.load %arg7[%c10_487, %c0_488, %c2_489] : memref<18x4x18xf32, #tpu.memory_space<vmem>>, vector<1x4x16xf32>
    %348 = vector.shape_cast %347 : vector<1x4x16xf32> to vector<4x16xf32>
    %c20_490 = arith.constant 20 : index
    %c144_491 = arith.constant 144 : index
    %349 = vector.load %arg8[%c20_490, %c144_491] : memref<36x256xf32, #tpu.memory_space<vmem>>, vector<4x16xf32>
    tpu.vector_store %arg8[%c20_490, %c144_491], %348 {strides = array<i32>} : memref<36x256xf32, #tpu.memory_space<vmem>>, vector<4x16xf32>,
    %c11_492 = arith.constant 11 : index
    %c0_493 = arith.constant 0 : index
    %c2_494 = arith.constant 2 : index
    %350 = vector.load %arg7[%c11_492, %c0_493, %c2_494] : memref<18x4x18xf32, #tpu.memory_space<vmem>>, vector<1x4x16xf32>
    %351 = vector.shape_cast %350 : vector<1x4x16xf32> to vector<4x16xf32>
    %c20_495 = arith.constant 20 : index
    %c160_496 = arith.constant 160 : index
    %352 = vector.load %arg8[%c20_495, %c160_496] : memref<36x256xf32, #tpu.memory_space<vmem>>, vector<4x16xf32>
    tpu.vector_store %arg8[%c20_495, %c160_496], %351 {strides = array<i32>} : memref<36x256xf32, #tpu.memory_space<vmem>>, vector<4x16xf32>,
    %c12_497 = arith.constant 12 : index
    %c0_498 = arith.constant 0 : index
    %c2_499 = arith.constant 2 : index
    %353 = vector.load %arg7[%c12_497, %c0_498, %c2_499] : memref<18x4x18xf32, #tpu.memory_space<vmem>>, vector<1x4x16xf32>
    %354 = vector.shape_cast %353 : vector<1x4x16xf32> to vector<4x16xf32>
    %c20_500 = arith.constant 20 : index
    %c176_501 = arith.constant 176 : index
    %355 = vector.load %arg8[%c20_500, %c176_501] : memref<36x256xf32, #tpu.memory_space<vmem>>, vector<4x16xf32>
    tpu.vector_store %arg8[%c20_500, %c176_501], %354 {strides = array<i32>} : memref<36x256xf32, #tpu.memory_space<vmem>>, vector<4x16xf32>,
    %c13_502 = arith.constant 13 : index
    %c0_503 = arith.constant 0 : index
    %c2_504 = arith.constant 2 : index
    %356 = vector.load %arg7[%c13_502, %c0_503, %c2_504] : memref<18x4x18xf32, #tpu.memory_space<vmem>>, vector<1x4x16xf32>
    %357 = vector.shape_cast %356 : vector<1x4x16xf32> to vector<4x16xf32>
    %c20_505 = arith.constant 20 : index
    %c192_506 = arith.constant 192 : index
    %358 = vector.load %arg8[%c20_505, %c192_506] : memref<36x256xf32, #tpu.memory_space<vmem>>, vector<4x16xf32>
    tpu.vector_store %arg8[%c20_505, %c192_506], %357 {strides = array<i32>} : memref<36x256xf32, #tpu.memory_space<vmem>>, vector<4x16xf32>,
    %c14_507 = arith.constant 14 : index
    %c0_508 = arith.constant 0 : index
    %c2_509 = arith.constant 2 : index
    %359 = vector.load %arg7[%c14_507, %c0_508, %c2_509] : memref<18x4x18xf32, #tpu.memory_space<vmem>>, vector<1x4x16xf32>
    %360 = vector.shape_cast %359 : vector<1x4x16xf32> to vector<4x16xf32>
    %c20_510 = arith.constant 20 : index
    %c208_511 = arith.constant 208 : index
    %361 = vector.load %arg8[%c20_510, %c208_511] : memref<36x256xf32, #tpu.memory_space<vmem>>, vector<4x16xf32>
    tpu.vector_store %arg8[%c20_510, %c208_511], %360 {strides = array<i32>} : memref<36x256xf32, #tpu.memory_space<vmem>>, vector<4x16xf32>,
    %c15_512 = arith.constant 15 : index
    %c0_513 = arith.constant 0 : index
    %c2_514 = arith.constant 2 : index
    %362 = vector.load %arg7[%c15_512, %c0_513, %c2_514] : memref<18x4x18xf32, #tpu.memory_space<vmem>>, vector<1x4x16xf32>
    %363 = vector.shape_cast %362 : vector<1x4x16xf32> to vector<4x16xf32>
    %c20_515 = arith.constant 20 : index
    %c224_516 = arith.constant 224 : index
    %364 = vector.load %arg8[%c20_515, %c224_516] : memref<36x256xf32, #tpu.memory_space<vmem>>, vector<4x16xf32>
    tpu.vector_store %arg8[%c20_515, %c224_516], %363 {strides = array<i32>} : memref<36x256xf32, #tpu.memory_space<vmem>>, vector<4x16xf32>,
    %c16_517 = arith.constant 16 : index
    %c0_518 = arith.constant 0 : index
    %c2_519 = arith.constant 2 : index
    %365 = vector.load %arg7[%c16_517, %c0_518, %c2_519] : memref<18x4x18xf32, #tpu.memory_space<vmem>>, vector<1x4x16xf32>
    %366 = vector.shape_cast %365 : vector<1x4x16xf32> to vector<4x16xf32>
    %c20_520 = arith.constant 20 : index
    %c240_521 = arith.constant 240 : index
    %367 = vector.load %arg8[%c20_520, %c240_521] : memref<36x256xf32, #tpu.memory_space<vmem>>, vector<4x16xf32>
    tpu.vector_store %arg8[%c20_520, %c240_521], %366 {strides = array<i32>} : memref<36x256xf32, #tpu.memory_space<vmem>>, vector<4x16xf32>,
    %c2_522 = arith.constant 2 : index
    %c0_523 = arith.constant 0 : index
    %c0_524 = arith.constant 0 : index
    %368 = vector.load %arg7[%c2_522, %c0_523, %c0_524] : memref<18x4x18xf32, #tpu.memory_space<vmem>>, vector<1x4x16xf32>
    %369 = vector.shape_cast %368 : vector<1x4x16xf32> to vector<4x16xf32>
    %c24 = arith.constant 24 : index
    %c0_525 = arith.constant 0 : index
    %370 = vector.load %arg8[%c24, %c0_525] : memref<36x256xf32, #tpu.memory_space<vmem>>, vector<4x16xf32>
    tpu.vector_store %arg8[%c24, %c0_525], %369 {strides = array<i32>} : memref<36x256xf32, #tpu.memory_space<vmem>>, vector<4x16xf32>,
    %c3_526 = arith.constant 3 : index
    %c0_527 = arith.constant 0 : index
    %c0_528 = arith.constant 0 : index
    %371 = vector.load %arg7[%c3_526, %c0_527, %c0_528] : memref<18x4x18xf32, #tpu.memory_space<vmem>>, vector<1x4x16xf32>
    %372 = vector.shape_cast %371 : vector<1x4x16xf32> to vector<4x16xf32>
    %c24_529 = arith.constant 24 : index
    %c16_530 = arith.constant 16 : index
    %373 = vector.load %arg8[%c24_529, %c16_530] : memref<36x256xf32, #tpu.memory_space<vmem>>, vector<4x16xf32>
    tpu.vector_store %arg8[%c24_529, %c16_530], %372 {strides = array<i32>} : memref<36x256xf32, #tpu.memory_space<vmem>>, vector<4x16xf32>,
    %c4_531 = arith.constant 4 : index
    %c0_532 = arith.constant 0 : index
    %c0_533 = arith.constant 0 : index
    %374 = vector.load %arg7[%c4_531, %c0_532, %c0_533] : memref<18x4x18xf32, #tpu.memory_space<vmem>>, vector<1x4x16xf32>
    %375 = vector.shape_cast %374 : vector<1x4x16xf32> to vector<4x16xf32>
    %c24_534 = arith.constant 24 : index
    %c32_535 = arith.constant 32 : index
    %376 = vector.load %arg8[%c24_534, %c32_535] : memref<36x256xf32, #tpu.memory_space<vmem>>, vector<4x16xf32>
    tpu.vector_store %arg8[%c24_534, %c32_535], %375 {strides = array<i32>} : memref<36x256xf32, #tpu.memory_space<vmem>>, vector<4x16xf32>,
    %c5_536 = arith.constant 5 : index
    %c0_537 = arith.constant 0 : index
    %c0_538 = arith.constant 0 : index
    %377 = vector.load %arg7[%c5_536, %c0_537, %c0_538] : memref<18x4x18xf32, #tpu.memory_space<vmem>>, vector<1x4x16xf32>
    %378 = vector.shape_cast %377 : vector<1x4x16xf32> to vector<4x16xf32>
    %c24_539 = arith.constant 24 : index
    %c48_540 = arith.constant 48 : index
    %379 = vector.load %arg8[%c24_539, %c48_540] : memref<36x256xf32, #tpu.memory_space<vmem>>, vector<4x16xf32>
    tpu.vector_store %arg8[%c24_539, %c48_540], %378 {strides = array<i32>} : memref<36x256xf32, #tpu.memory_space<vmem>>, vector<4x16xf32>,
    %c6_541 = arith.constant 6 : index
    %c0_542 = arith.constant 0 : index
    %c0_543 = arith.constant 0 : index
    %380 = vector.load %arg7[%c6_541, %c0_542, %c0_543] : memref<18x4x18xf32, #tpu.memory_space<vmem>>, vector<1x4x16xf32>
    %381 = vector.shape_cast %380 : vector<1x4x16xf32> to vector<4x16xf32>
    %c24_544 = arith.constant 24 : index
    %c64_545 = arith.constant 64 : index
    %382 = vector.load %arg8[%c24_544, %c64_545] : memref<36x256xf32, #tpu.memory_space<vmem>>, vector<4x16xf32>
    tpu.vector_store %arg8[%c24_544, %c64_545], %381 {strides = array<i32>} : memref<36x256xf32, #tpu.memory_space<vmem>>, vector<4x16xf32>,
    %c7_546 = arith.constant 7 : index
    %c0_547 = arith.constant 0 : index
    %c0_548 = arith.constant 0 : index
    %383 = vector.load %arg7[%c7_546, %c0_547, %c0_548] : memref<18x4x18xf32, #tpu.memory_space<vmem>>, vector<1x4x16xf32>
    %384 = vector.shape_cast %383 : vector<1x4x16xf32> to vector<4x16xf32>
    %c24_549 = arith.constant 24 : index
    %c80_550 = arith.constant 80 : index
    %385 = vector.load %arg8[%c24_549, %c80_550] : memref<36x256xf32, #tpu.memory_space<vmem>>, vector<4x16xf32>
    tpu.vector_store %arg8[%c24_549, %c80_550], %384 {strides = array<i32>} : memref<36x256xf32, #tpu.memory_space<vmem>>, vector<4x16xf32>,
    %c8_551 = arith.constant 8 : index
    %c0_552 = arith.constant 0 : index
    %c0_553 = arith.constant 0 : index
    %386 = vector.load %arg7[%c8_551, %c0_552, %c0_553] : memref<18x4x18xf32, #tpu.memory_space<vmem>>, vector<1x4x16xf32>
    %387 = vector.shape_cast %386 : vector<1x4x16xf32> to vector<4x16xf32>
    %c24_554 = arith.constant 24 : index
    %c96_555 = arith.constant 96 : index
    %388 = vector.load %arg8[%c24_554, %c96_555] : memref<36x256xf32, #tpu.memory_space<vmem>>, vector<4x16xf32>
    tpu.vector_store %arg8[%c24_554, %c96_555], %387 {strides = array<i32>} : memref<36x256xf32, #tpu.memory_space<vmem>>, vector<4x16xf32>,
    %c9_556 = arith.constant 9 : index
    %c0_557 = arith.constant 0 : index
    %c0_558 = arith.constant 0 : index
    %389 = vector.load %arg7[%c9_556, %c0_557, %c0_558] : memref<18x4x18xf32, #tpu.memory_space<vmem>>, vector<1x4x16xf32>
    %390 = vector.shape_cast %389 : vector<1x4x16xf32> to vector<4x16xf32>
    %c24_559 = arith.constant 24 : index
    %c112_560 = arith.constant 112 : index
    %391 = vector.load %arg8[%c24_559, %c112_560] : memref<36x256xf32, #tpu.memory_space<vmem>>, vector<4x16xf32>
    tpu.vector_store %arg8[%c24_559, %c112_560], %390 {strides = array<i32>} : memref<36x256xf32, #tpu.memory_space<vmem>>, vector<4x16xf32>,
    %c10_561 = arith.constant 10 : index
    %c0_562 = arith.constant 0 : index
    %c0_563 = arith.constant 0 : index
    %392 = vector.load %arg7[%c10_561, %c0_562, %c0_563] : memref<18x4x18xf32, #tpu.memory_space<vmem>>, vector<1x4x16xf32>
    %393 = vector.shape_cast %392 : vector<1x4x16xf32> to vector<4x16xf32>
    %c24_564 = arith.constant 24 : index
    %c128_565 = arith.constant 128 : index
    %394 = vector.load %arg8[%c24_564, %c128_565] : memref<36x256xf32, #tpu.memory_space<vmem>>, vector<4x16xf32>
    tpu.vector_store %arg8[%c24_564, %c128_565], %393 {strides = array<i32>} : memref<36x256xf32, #tpu.memory_space<vmem>>, vector<4x16xf32>,
    %c11_566 = arith.constant 11 : index
    %c0_567 = arith.constant 0 : index
    %c0_568 = arith.constant 0 : index
    %395 = vector.load %arg7[%c11_566, %c0_567, %c0_568] : memref<18x4x18xf32, #tpu.memory_space<vmem>>, vector<1x4x16xf32>
    %396 = vector.shape_cast %395 : vector<1x4x16xf32> to vector<4x16xf32>
    %c24_569 = arith.constant 24 : index
    %c144_570 = arith.constant 144 : index
    %397 = vector.load %arg8[%c24_569, %c144_570] : memref<36x256xf32, #tpu.memory_space<vmem>>, vector<4x16xf32>
    tpu.vector_store %arg8[%c24_569, %c144_570], %396 {strides = array<i32>} : memref<36x256xf32, #tpu.memory_space<vmem>>, vector<4x16xf32>,
    %c12_571 = arith.constant 12 : index
    %c0_572 = arith.constant 0 : index
    %c0_573 = arith.constant 0 : index
    %398 = vector.load %arg7[%c12_571, %c0_572, %c0_573] : memref<18x4x18xf32, #tpu.memory_space<vmem>>, vector<1x4x16xf32>
    %399 = vector.shape_cast %398 : vector<1x4x16xf32> to vector<4x16xf32>
    %c24_574 = arith.constant 24 : index
    %c160_575 = arith.constant 160 : index
    %400 = vector.load %arg8[%c24_574, %c160_575] : memref<36x256xf32, #tpu.memory_space<vmem>>, vector<4x16xf32>
    tpu.vector_store %arg8[%c24_574, %c160_575], %399 {strides = array<i32>} : memref<36x256xf32, #tpu.memory_space<vmem>>, vector<4x16xf32>,
    %c13_576 = arith.constant 13 : index
    %c0_577 = arith.constant 0 : index
    %c0_578 = arith.constant 0 : index
    %401 = vector.load %arg7[%c13_576, %c0_577, %c0_578] : memref<18x4x18xf32, #tpu.memory_space<vmem>>, vector<1x4x16xf32>
    %402 = vector.shape_cast %401 : vector<1x4x16xf32> to vector<4x16xf32>
    %c24_579 = arith.constant 24 : index
    %c176_580 = arith.constant 176 : index
    %403 = vector.load %arg8[%c24_579, %c176_580] : memref<36x256xf32, #tpu.memory_space<vmem>>, vector<4x16xf32>
    tpu.vector_store %arg8[%c24_579, %c176_580], %402 {strides = array<i32>} : memref<36x256xf32, #tpu.memory_space<vmem>>, vector<4x16xf32>,
    %c14_581 = arith.constant 14 : index
    %c0_582 = arith.constant 0 : index
    %c0_583 = arith.constant 0 : index
    %404 = vector.load %arg7[%c14_581, %c0_582, %c0_583] : memref<18x4x18xf32, #tpu.memory_space<vmem>>, vector<1x4x16xf32>
    %405 = vector.shape_cast %404 : vector<1x4x16xf32> to vector<4x16xf32>
    %c24_584 = arith.constant 24 : index
    %c192_585 = arith.constant 192 : index
    %406 = vector.load %arg8[%c24_584, %c192_585] : memref<36x256xf32, #tpu.memory_space<vmem>>, vector<4x16xf32>
    tpu.vector_store %arg8[%c24_584, %c192_585], %405 {strides = array<i32>} : memref<36x256xf32, #tpu.memory_space<vmem>>, vector<4x16xf32>,
    %c15_586 = arith.constant 15 : index
    %c0_587 = arith.constant 0 : index
    %c0_588 = arith.constant 0 : index
    %407 = vector.load %arg7[%c15_586, %c0_587, %c0_588] : memref<18x4x18xf32, #tpu.memory_space<vmem>>, vector<1x4x16xf32>
    %408 = vector.shape_cast %407 : vector<1x4x16xf32> to vector<4x16xf32>
    %c24_589 = arith.constant 24 : index
    %c208_590 = arith.constant 208 : index
    %409 = vector.load %arg8[%c24_589, %c208_590] : memref<36x256xf32, #tpu.memory_space<vmem>>, vector<4x16xf32>
    tpu.vector_store %arg8[%c24_589, %c208_590], %408 {strides = array<i32>} : memref<36x256xf32, #tpu.memory_space<vmem>>, vector<4x16xf32>,
    %c16_591 = arith.constant 16 : index
    %c0_592 = arith.constant 0 : index
    %c0_593 = arith.constant 0 : index
    %410 = vector.load %arg7[%c16_591, %c0_592, %c0_593] : memref<18x4x18xf32, #tpu.memory_space<vmem>>, vector<1x4x16xf32>
    %411 = vector.shape_cast %410 : vector<1x4x16xf32> to vector<4x16xf32>
    %c24_594 = arith.constant 24 : index
    %c224_595 = arith.constant 224 : index
    %412 = vector.load %arg8[%c24_594, %c224_595] : memref<36x256xf32, #tpu.memory_space<vmem>>, vector<4x16xf32>
    tpu.vector_store %arg8[%c24_594, %c224_595], %411 {strides = array<i32>} : memref<36x256xf32, #tpu.memory_space<vmem>>, vector<4x16xf32>,
    %c17_596 = arith.constant 17 : index
    %c0_597 = arith.constant 0 : index
    %c0_598 = arith.constant 0 : index
    %413 = vector.load %arg7[%c17_596, %c0_597, %c0_598] : memref<18x4x18xf32, #tpu.memory_space<vmem>>, vector<1x4x16xf32>
    %414 = vector.shape_cast %413 : vector<1x4x16xf32> to vector<4x16xf32>
    %c24_599 = arith.constant 24 : index
    %c240_600 = arith.constant 240 : index
    %415 = vector.load %arg8[%c24_599, %c240_600] : memref<36x256xf32, #tpu.memory_space<vmem>>, vector<4x16xf32>
    tpu.vector_store %arg8[%c24_599, %c240_600], %414 {strides = array<i32>} : memref<36x256xf32, #tpu.memory_space<vmem>>, vector<4x16xf32>,
    %c2_601 = arith.constant 2 : index
    %c0_602 = arith.constant 0 : index
    %c1_603 = arith.constant 1 : index
    %416 = vector.load %arg7[%c2_601, %c0_602, %c1_603] : memref<18x4x18xf32, #tpu.memory_space<vmem>>, vector<1x4x16xf32>
    %417 = vector.shape_cast %416 : vector<1x4x16xf32> to vector<4x16xf32>
    %c28 = arith.constant 28 : index
    %c0_604 = arith.constant 0 : index
    %418 = vector.load %arg8[%c28, %c0_604] : memref<36x256xf32, #tpu.memory_space<vmem>>, vector<4x16xf32>
    tpu.vector_store %arg8[%c28, %c0_604], %417 {strides = array<i32>} : memref<36x256xf32, #tpu.memory_space<vmem>>, vector<4x16xf32>,
    %c3_605 = arith.constant 3 : index
    %c0_606 = arith.constant 0 : index
    %c1_607 = arith.constant 1 : index
    %419 = vector.load %arg7[%c3_605, %c0_606, %c1_607] : memref<18x4x18xf32, #tpu.memory_space<vmem>>, vector<1x4x16xf32>
    %420 = vector.shape_cast %419 : vector<1x4x16xf32> to vector<4x16xf32>
    %c28_608 = arith.constant 28 : index
    %c16_609 = arith.constant 16 : index
    %421 = vector.load %arg8[%c28_608, %c16_609] : memref<36x256xf32, #tpu.memory_space<vmem>>, vector<4x16xf32>
    tpu.vector_store %arg8[%c28_608, %c16_609], %420 {strides = array<i32>} : memref<36x256xf32, #tpu.memory_space<vmem>>, vector<4x16xf32>,
    %c4_610 = arith.constant 4 : index
    %c0_611 = arith.constant 0 : index
    %c1_612 = arith.constant 1 : index
    %422 = vector.load %arg7[%c4_610, %c0_611, %c1_612] : memref<18x4x18xf32, #tpu.memory_space<vmem>>, vector<1x4x16xf32>
    %423 = vector.shape_cast %422 : vector<1x4x16xf32> to vector<4x16xf32>
    %c28_613 = arith.constant 28 : index
    %c32_614 = arith.constant 32 : index
    %424 = vector.load %arg8[%c28_613, %c32_614] : memref<36x256xf32, #tpu.memory_space<vmem>>, vector<4x16xf32>
    tpu.vector_store %arg8[%c28_613, %c32_614], %423 {strides = array<i32>} : memref<36x256xf32, #tpu.memory_space<vmem>>, vector<4x16xf32>,
    %c5_615 = arith.constant 5 : index
    %c0_616 = arith.constant 0 : index
    %c1_617 = arith.constant 1 : index
    %425 = vector.load %arg7[%c5_615, %c0_616, %c1_617] : memref<18x4x18xf32, #tpu.memory_space<vmem>>, vector<1x4x16xf32>
    %426 = vector.shape_cast %425 : vector<1x4x16xf32> to vector<4x16xf32>
    %c28_618 = arith.constant 28 : index
    %c48_619 = arith.constant 48 : index
    %427 = vector.load %arg8[%c28_618, %c48_619] : memref<36x256xf32, #tpu.memory_space<vmem>>, vector<4x16xf32>
    tpu.vector_store %arg8[%c28_618, %c48_619], %426 {strides = array<i32>} : memref<36x256xf32, #tpu.memory_space<vmem>>, vector<4x16xf32>,
    %c6_620 = arith.constant 6 : index
    %c0_621 = arith.constant 0 : index
    %c1_622 = arith.constant 1 : index
    %428 = vector.load %arg7[%c6_620, %c0_621, %c1_622] : memref<18x4x18xf32, #tpu.memory_space<vmem>>, vector<1x4x16xf32>
    %429 = vector.shape_cast %428 : vector<1x4x16xf32> to vector<4x16xf32>
    %c28_623 = arith.constant 28 : index
    %c64_624 = arith.constant 64 : index
    %430 = vector.load %arg8[%c28_623, %c64_624] : memref<36x256xf32, #tpu.memory_space<vmem>>, vector<4x16xf32>
    tpu.vector_store %arg8[%c28_623, %c64_624], %429 {strides = array<i32>} : memref<36x256xf32, #tpu.memory_space<vmem>>, vector<4x16xf32>,
    %c7_625 = arith.constant 7 : index
    %c0_626 = arith.constant 0 : index
    %c1_627 = arith.constant 1 : index
    %431 = vector.load %arg7[%c7_625, %c0_626, %c1_627] : memref<18x4x18xf32, #tpu.memory_space<vmem>>, vector<1x4x16xf32>
    %432 = vector.shape_cast %431 : vector<1x4x16xf32> to vector<4x16xf32>
    %c28_628 = arith.constant 28 : index
    %c80_629 = arith.constant 80 : index
    %433 = vector.load %arg8[%c28_628, %c80_629] : memref<36x256xf32, #tpu.memory_space<vmem>>, vector<4x16xf32>
    tpu.vector_store %arg8[%c28_628, %c80_629], %432 {strides = array<i32>} : memref<36x256xf32, #tpu.memory_space<vmem>>, vector<4x16xf32>,
    %c8_630 = arith.constant 8 : index
    %c0_631 = arith.constant 0 : index
    %c1_632 = arith.constant 1 : index
    %434 = vector.load %arg7[%c8_630, %c0_631, %c1_632] : memref<18x4x18xf32, #tpu.memory_space<vmem>>, vector<1x4x16xf32>
    %435 = vector.shape_cast %434 : vector<1x4x16xf32> to vector<4x16xf32>
    %c28_633 = arith.constant 28 : index
    %c96_634 = arith.constant 96 : index
    %436 = vector.load %arg8[%c28_633, %c96_634] : memref<36x256xf32, #tpu.memory_space<vmem>>, vector<4x16xf32>
    tpu.vector_store %arg8[%c28_633, %c96_634], %435 {strides = array<i32>} : memref<36x256xf32, #tpu.memory_space<vmem>>, vector<4x16xf32>,
    %c9_635 = arith.constant 9 : index
    %c0_636 = arith.constant 0 : index
    %c1_637 = arith.constant 1 : index
    %437 = vector.load %arg7[%c9_635, %c0_636, %c1_637] : memref<18x4x18xf32, #tpu.memory_space<vmem>>, vector<1x4x16xf32>
    %438 = vector.shape_cast %437 : vector<1x4x16xf32> to vector<4x16xf32>
    %c28_638 = arith.constant 28 : index
    %c112_639 = arith.constant 112 : index
    %439 = vector.load %arg8[%c28_638, %c112_639] : memref<36x256xf32, #tpu.memory_space<vmem>>, vector<4x16xf32>
    tpu.vector_store %arg8[%c28_638, %c112_639], %438 {strides = array<i32>} : memref<36x256xf32, #tpu.memory_space<vmem>>, vector<4x16xf32>,
    %c10_640 = arith.constant 10 : index
    %c0_641 = arith.constant 0 : index
    %c1_642 = arith.constant 1 : index
    %440 = vector.load %arg7[%c10_640, %c0_641, %c1_642] : memref<18x4x18xf32, #tpu.memory_space<vmem>>, vector<1x4x16xf32>
    %441 = vector.shape_cast %440 : vector<1x4x16xf32> to vector<4x16xf32>
    %c28_643 = arith.constant 28 : index
    %c128_644 = arith.constant 128 : index
    %442 = vector.load %arg8[%c28_643, %c128_644] : memref<36x256xf32, #tpu.memory_space<vmem>>, vector<4x16xf32>
    tpu.vector_store %arg8[%c28_643, %c128_644], %441 {strides = array<i32>} : memref<36x256xf32, #tpu.memory_space<vmem>>, vector<4x16xf32>,
    %c11_645 = arith.constant 11 : index
    %c0_646 = arith.constant 0 : index
    %c1_647 = arith.constant 1 : index
    %443 = vector.load %arg7[%c11_645, %c0_646, %c1_647] : memref<18x4x18xf32, #tpu.memory_space<vmem>>, vector<1x4x16xf32>
    %444 = vector.shape_cast %443 : vector<1x4x16xf32> to vector<4x16xf32>
    %c28_648 = arith.constant 28 : index
    %c144_649 = arith.constant 144 : index
    %445 = vector.load %arg8[%c28_648, %c144_649] : memref<36x256xf32, #tpu.memory_space<vmem>>, vector<4x16xf32>
    tpu.vector_store %arg8[%c28_648, %c144_649], %444 {strides = array<i32>} : memref<36x256xf32, #tpu.memory_space<vmem>>, vector<4x16xf32>,
    %c12_650 = arith.constant 12 : index
    %c0_651 = arith.constant 0 : index
    %c1_652 = arith.constant 1 : index
    %446 = vector.load %arg7[%c12_650, %c0_651, %c1_652] : memref<18x4x18xf32, #tpu.memory_space<vmem>>, vector<1x4x16xf32>
    %447 = vector.shape_cast %446 : vector<1x4x16xf32> to vector<4x16xf32>
    %c28_653 = arith.constant 28 : index
    %c160_654 = arith.constant 160 : index
    %448 = vector.load %arg8[%c28_653, %c160_654] : memref<36x256xf32, #tpu.memory_space<vmem>>, vector<4x16xf32>
    tpu.vector_store %arg8[%c28_653, %c160_654], %447 {strides = array<i32>} : memref<36x256xf32, #tpu.memory_space<vmem>>, vector<4x16xf32>,
    %c13_655 = arith.constant 13 : index
    %c0_656 = arith.constant 0 : index
    %c1_657 = arith.constant 1 : index
    %449 = vector.load %arg7[%c13_655, %c0_656, %c1_657] : memref<18x4x18xf32, #tpu.memory_space<vmem>>, vector<1x4x16xf32>
    %450 = vector.shape_cast %449 : vector<1x4x16xf32> to vector<4x16xf32>
    %c28_658 = arith.constant 28 : index
    %c176_659 = arith.constant 176 : index
    %451 = vector.load %arg8[%c28_658, %c176_659] : memref<36x256xf32, #tpu.memory_space<vmem>>, vector<4x16xf32>
    tpu.vector_store %arg8[%c28_658, %c176_659], %450 {strides = array<i32>} : memref<36x256xf32, #tpu.memory_space<vmem>>, vector<4x16xf32>,
    %c14_660 = arith.constant 14 : index
    %c0_661 = arith.constant 0 : index
    %c1_662 = arith.constant 1 : index
    %452 = vector.load %arg7[%c14_660, %c0_661, %c1_662] : memref<18x4x18xf32, #tpu.memory_space<vmem>>, vector<1x4x16xf32>
    %453 = vector.shape_cast %452 : vector<1x4x16xf32> to vector<4x16xf32>
    %c28_663 = arith.constant 28 : index
    %c192_664 = arith.constant 192 : index
    %454 = vector.load %arg8[%c28_663, %c192_664] : memref<36x256xf32, #tpu.memory_space<vmem>>, vector<4x16xf32>
    tpu.vector_store %arg8[%c28_663, %c192_664], %453 {strides = array<i32>} : memref<36x256xf32, #tpu.memory_space<vmem>>, vector<4x16xf32>,
    %c15_665 = arith.constant 15 : index
    %c0_666 = arith.constant 0 : index
    %c1_667 = arith.constant 1 : index
    %455 = vector.load %arg7[%c15_665, %c0_666, %c1_667] : memref<18x4x18xf32, #tpu.memory_space<vmem>>, vector<1x4x16xf32>
    %456 = vector.shape_cast %455 : vector<1x4x16xf32> to vector<4x16xf32>
    %c28_668 = arith.constant 28 : index
    %c208_669 = arith.constant 208 : index
    %457 = vector.load %arg8[%c28_668, %c208_669] : memref<36x256xf32, #tpu.memory_space<vmem>>, vector<4x16xf32>
    tpu.vector_store %arg8[%c28_668, %c208_669], %456 {strides = array<i32>} : memref<36x256xf32, #tpu.memory_space<vmem>>, vector<4x16xf32>,
    %c16_670 = arith.constant 16 : index
    %c0_671 = arith.constant 0 : index
    %c1_672 = arith.constant 1 : index
    %458 = vector.load %arg7[%c16_670, %c0_671, %c1_672] : memref<18x4x18xf32, #tpu.memory_space<vmem>>, vector<1x4x16xf32>
    %459 = vector.shape_cast %458 : vector<1x4x16xf32> to vector<4x16xf32>
    %c28_673 = arith.constant 28 : index
    %c224_674 = arith.constant 224 : index
    %460 = vector.load %arg8[%c28_673, %c224_674] : memref<36x256xf32, #tpu.memory_space<vmem>>, vector<4x16xf32>
    tpu.vector_store %arg8[%c28_673, %c224_674], %459 {strides = array<i32>} : memref<36x256xf32, #tpu.memory_space<vmem>>, vector<4x16xf32>,
    %c17_675 = arith.constant 17 : index
    %c0_676 = arith.constant 0 : index
    %c1_677 = arith.constant 1 : index
    %461 = vector.load %arg7[%c17_675, %c0_676, %c1_677] : memref<18x4x18xf32, #tpu.memory_space<vmem>>, vector<1x4x16xf32>
    %462 = vector.shape_cast %461 : vector<1x4x16xf32> to vector<4x16xf32>
    %c28_678 = arith.constant 28 : index
    %c240_679 = arith.constant 240 : index
    %463 = vector.load %arg8[%c28_678, %c240_679] : memref<36x256xf32, #tpu.memory_space<vmem>>, vector<4x16xf32>
    tpu.vector_store %arg8[%c28_678, %c240_679], %462 {strides = array<i32>} : memref<36x256xf32, #tpu.memory_space<vmem>>, vector<4x16xf32>,
    %c2_680 = arith.constant 2 : index
    %c0_681 = arith.constant 0 : index
    %c2_682 = arith.constant 2 : index
    %464 = vector.load %arg7[%c2_680, %c0_681, %c2_682] : memref<18x4x18xf32, #tpu.memory_space<vmem>>, vector<1x4x16xf32>
    %465 = vector.shape_cast %464 : vector<1x4x16xf32> to vector<4x16xf32>
    %c32_683 = arith.constant 32 : index
    %c0_684 = arith.constant 0 : index
    %466 = vector.load %arg8[%c32_683, %c0_684] : memref<36x256xf32, #tpu.memory_space<vmem>>, vector<4x16xf32>
    tpu.vector_store %arg8[%c32_683, %c0_684], %465 {strides = array<i32>} : memref<36x256xf32, #tpu.memory_space<vmem>>, vector<4x16xf32>,
    %c3_685 = arith.constant 3 : index
    %c0_686 = arith.constant 0 : index
    %c2_687 = arith.constant 2 : index
    %467 = vector.load %arg7[%c3_685, %c0_686, %c2_687] : memref<18x4x18xf32, #tpu.memory_space<vmem>>, vector<1x4x16xf32>
    %468 = vector.shape_cast %467 : vector<1x4x16xf32> to vector<4x16xf32>
    %c32_688 = arith.constant 32 : index
    %c16_689 = arith.constant 16 : index
    %469 = vector.load %arg8[%c32_688, %c16_689] : memref<36x256xf32, #tpu.memory_space<vmem>>, vector<4x16xf32>
    tpu.vector_store %arg8[%c32_688, %c16_689], %468 {strides = array<i32>} : memref<36x256xf32, #tpu.memory_space<vmem>>, vector<4x16xf32>,
    %c4_690 = arith.constant 4 : index
    %c0_691 = arith.constant 0 : index
    %c2_692 = arith.constant 2 : index
    %470 = vector.load %arg7[%c4_690, %c0_691, %c2_692] : memref<18x4x18xf32, #tpu.memory_space<vmem>>, vector<1x4x16xf32>
    %471 = vector.shape_cast %470 : vector<1x4x16xf32> to vector<4x16xf32>
    %c32_693 = arith.constant 32 : index
    %c32_694 = arith.constant 32 : index
    %472 = vector.load %arg8[%c32_693, %c32_694] : memref<36x256xf32, #tpu.memory_space<vmem>>, vector<4x16xf32>
    tpu.vector_store %arg8[%c32_693, %c32_694], %471 {strides = array<i32>} : memref<36x256xf32, #tpu.memory_space<vmem>>, vector<4x16xf32>,
    %c5_695 = arith.constant 5 : index
    %c0_696 = arith.constant 0 : index
    %c2_697 = arith.constant 2 : index
    %473 = vector.load %arg7[%c5_695, %c0_696, %c2_697] : memref<18x4x18xf32, #tpu.memory_space<vmem>>, vector<1x4x16xf32>
    %474 = vector.shape_cast %473 : vector<1x4x16xf32> to vector<4x16xf32>
    %c32_698 = arith.constant 32 : index
    %c48_699 = arith.constant 48 : index
    %475 = vector.load %arg8[%c32_698, %c48_699] : memref<36x256xf32, #tpu.memory_space<vmem>>, vector<4x16xf32>
    tpu.vector_store %arg8[%c32_698, %c48_699], %474 {strides = array<i32>} : memref<36x256xf32, #tpu.memory_space<vmem>>, vector<4x16xf32>,
    %c6_700 = arith.constant 6 : index
    %c0_701 = arith.constant 0 : index
    %c2_702 = arith.constant 2 : index
    %476 = vector.load %arg7[%c6_700, %c0_701, %c2_702] : memref<18x4x18xf32, #tpu.memory_space<vmem>>, vector<1x4x16xf32>
    %477 = vector.shape_cast %476 : vector<1x4x16xf32> to vector<4x16xf32>
    %c32_703 = arith.constant 32 : index
    %c64_704 = arith.constant 64 : index
    %478 = vector.load %arg8[%c32_703, %c64_704] : memref<36x256xf32, #tpu.memory_space<vmem>>, vector<4x16xf32>
    tpu.vector_store %arg8[%c32_703, %c64_704], %477 {strides = array<i32>} : memref<36x256xf32, #tpu.memory_space<vmem>>, vector<4x16xf32>,
    %c7_705 = arith.constant 7 : index
    %c0_706 = arith.constant 0 : index
    %c2_707 = arith.constant 2 : index
    %479 = vector.load %arg7[%c7_705, %c0_706, %c2_707] : memref<18x4x18xf32, #tpu.memory_space<vmem>>, vector<1x4x16xf32>
    %480 = vector.shape_cast %479 : vector<1x4x16xf32> to vector<4x16xf32>
    %c32_708 = arith.constant 32 : index
    %c80_709 = arith.constant 80 : index
    %481 = vector.load %arg8[%c32_708, %c80_709] : memref<36x256xf32, #tpu.memory_space<vmem>>, vector<4x16xf32>
    tpu.vector_store %arg8[%c32_708, %c80_709], %480 {strides = array<i32>} : memref<36x256xf32, #tpu.memory_space<vmem>>, vector<4x16xf32>,
    %c8_710 = arith.constant 8 : index
    %c0_711 = arith.constant 0 : index
    %c2_712 = arith.constant 2 : index
    %482 = vector.load %arg7[%c8_710, %c0_711, %c2_712] : memref<18x4x18xf32, #tpu.memory_space<vmem>>, vector<1x4x16xf32>
    %483 = vector.shape_cast %482 : vector<1x4x16xf32> to vector<4x16xf32>
    %c32_713 = arith.constant 32 : index
    %c96_714 = arith.constant 96 : index
    %484 = vector.load %arg8[%c32_713, %c96_714] : memref<36x256xf32, #tpu.memory_space<vmem>>, vector<4x16xf32>
    tpu.vector_store %arg8[%c32_713, %c96_714], %483 {strides = array<i32>} : memref<36x256xf32, #tpu.memory_space<vmem>>, vector<4x16xf32>,
    %c9_715 = arith.constant 9 : index
    %c0_716 = arith.constant 0 : index
    %c2_717 = arith.constant 2 : index
    %485 = vector.load %arg7[%c9_715, %c0_716, %c2_717] : memref<18x4x18xf32, #tpu.memory_space<vmem>>, vector<1x4x16xf32>
    %486 = vector.shape_cast %485 : vector<1x4x16xf32> to vector<4x16xf32>
    %c32_718 = arith.constant 32 : index
    %c112_719 = arith.constant 112 : index
    %487 = vector.load %arg8[%c32_718, %c112_719] : memref<36x256xf32, #tpu.memory_space<vmem>>, vector<4x16xf32>
    tpu.vector_store %arg8[%c32_718, %c112_719], %486 {strides = array<i32>} : memref<36x256xf32, #tpu.memory_space<vmem>>, vector<4x16xf32>,
    %c10_720 = arith.constant 10 : index
    %c0_721 = arith.constant 0 : index
    %c2_722 = arith.constant 2 : index
    %488 = vector.load %arg7[%c10_720, %c0_721, %c2_722] : memref<18x4x18xf32, #tpu.memory_space<vmem>>, vector<1x4x16xf32>
    %489 = vector.shape_cast %488 : vector<1x4x16xf32> to vector<4x16xf32>
    %c32_723 = arith.constant 32 : index
    %c128_724 = arith.constant 128 : index
    %490 = vector.load %arg8[%c32_723, %c128_724] : memref<36x256xf32, #tpu.memory_space<vmem>>, vector<4x16xf32>
    tpu.vector_store %arg8[%c32_723, %c128_724], %489 {strides = array<i32>} : memref<36x256xf32, #tpu.memory_space<vmem>>, vector<4x16xf32>,
    %c11_725 = arith.constant 11 : index
    %c0_726 = arith.constant 0 : index
    %c2_727 = arith.constant 2 : index
    %491 = vector.load %arg7[%c11_725, %c0_726, %c2_727] : memref<18x4x18xf32, #tpu.memory_space<vmem>>, vector<1x4x16xf32>
    %492 = vector.shape_cast %491 : vector<1x4x16xf32> to vector<4x16xf32>
    %c32_728 = arith.constant 32 : index
    %c144_729 = arith.constant 144 : index
    %493 = vector.load %arg8[%c32_728, %c144_729] : memref<36x256xf32, #tpu.memory_space<vmem>>, vector<4x16xf32>
    tpu.vector_store %arg8[%c32_728, %c144_729], %492 {strides = array<i32>} : memref<36x256xf32, #tpu.memory_space<vmem>>, vector<4x16xf32>,
    %c12_730 = arith.constant 12 : index
    %c0_731 = arith.constant 0 : index
    %c2_732 = arith.constant 2 : index
    %494 = vector.load %arg7[%c12_730, %c0_731, %c2_732] : memref<18x4x18xf32, #tpu.memory_space<vmem>>, vector<1x4x16xf32>
    %495 = vector.shape_cast %494 : vector<1x4x16xf32> to vector<4x16xf32>
    %c32_733 = arith.constant 32 : index
    %c160_734 = arith.constant 160 : index
    %496 = vector.load %arg8[%c32_733, %c160_734] : memref<36x256xf32, #tpu.memory_space<vmem>>, vector<4x16xf32>
    tpu.vector_store %arg8[%c32_733, %c160_734], %495 {strides = array<i32>} : memref<36x256xf32, #tpu.memory_space<vmem>>, vector<4x16xf32>,
    %c13_735 = arith.constant 13 : index
    %c0_736 = arith.constant 0 : index
    %c2_737 = arith.constant 2 : index
    %497 = vector.load %arg7[%c13_735, %c0_736, %c2_737] : memref<18x4x18xf32, #tpu.memory_space<vmem>>, vector<1x4x16xf32>
    %498 = vector.shape_cast %497 : vector<1x4x16xf32> to vector<4x16xf32>
    %c32_738 = arith.constant 32 : index
    %c176_739 = arith.constant 176 : index
    %499 = vector.load %arg8[%c32_738, %c176_739] : memref<36x256xf32, #tpu.memory_space<vmem>>, vector<4x16xf32>
    tpu.vector_store %arg8[%c32_738, %c176_739], %498 {strides = array<i32>} : memref<36x256xf32, #tpu.memory_space<vmem>>, vector<4x16xf32>,
    %c14_740 = arith.constant 14 : index
    %c0_741 = arith.constant 0 : index
    %c2_742 = arith.constant 2 : index
    %500 = vector.load %arg7[%c14_740, %c0_741, %c2_742] : memref<18x4x18xf32, #tpu.memory_space<vmem>>, vector<1x4x16xf32>
    %501 = vector.shape_cast %500 : vector<1x4x16xf32> to vector<4x16xf32>
    %c32_743 = arith.constant 32 : index
    %c192_744 = arith.constant 192 : index
    %502 = vector.load %arg8[%c32_743, %c192_744] : memref<36x256xf32, #tpu.memory_space<vmem>>, vector<4x16xf32>
    tpu.vector_store %arg8[%c32_743, %c192_744], %501 {strides = array<i32>} : memref<36x256xf32, #tpu.memory_space<vmem>>, vector<4x16xf32>,
    %c15_745 = arith.constant 15 : index
    %c0_746 = arith.constant 0 : index
    %c2_747 = arith.constant 2 : index
    %503 = vector.load %arg7[%c15_745, %c0_746, %c2_747] : memref<18x4x18xf32, #tpu.memory_space<vmem>>, vector<1x4x16xf32>
    %504 = vector.shape_cast %503 : vector<1x4x16xf32> to vector<4x16xf32>
    %c32_748 = arith.constant 32 : index
    %c208_749 = arith.constant 208 : index
    %505 = vector.load %arg8[%c32_748, %c208_749] : memref<36x256xf32, #tpu.memory_space<vmem>>, vector<4x16xf32>
    tpu.vector_store %arg8[%c32_748, %c208_749], %504 {strides = array<i32>} : memref<36x256xf32, #tpu.memory_space<vmem>>, vector<4x16xf32>,
    %c16_750 = arith.constant 16 : index
    %c0_751 = arith.constant 0 : index
    %c2_752 = arith.constant 2 : index
    %506 = vector.load %arg7[%c16_750, %c0_751, %c2_752] : memref<18x4x18xf32, #tpu.memory_space<vmem>>, vector<1x4x16xf32>
    %507 = vector.shape_cast %506 : vector<1x4x16xf32> to vector<4x16xf32>
    %c32_753 = arith.constant 32 : index
    %c224_754 = arith.constant 224 : index
    %508 = vector.load %arg8[%c32_753, %c224_754] : memref<36x256xf32, #tpu.memory_space<vmem>>, vector<4x16xf32>
    tpu.vector_store %arg8[%c32_753, %c224_754], %507 {strides = array<i32>} : memref<36x256xf32, #tpu.memory_space<vmem>>, vector<4x16xf32>,
    %c17_755 = arith.constant 17 : index
    %c0_756 = arith.constant 0 : index
    %c2_757 = arith.constant 2 : index
    %509 = vector.load %arg7[%c17_755, %c0_756, %c2_757] : memref<18x4x18xf32, #tpu.memory_space<vmem>>, vector<1x4x16xf32>
    %510 = vector.shape_cast %509 : vector<1x4x16xf32> to vector<4x16xf32>
    %c32_758 = arith.constant 32 : index
    %c240_759 = arith.constant 240 : index
    %511 = vector.load %arg8[%c32_758, %c240_759] : memref<36x256xf32, #tpu.memory_space<vmem>>, vector<4x16xf32>
    tpu.vector_store %arg8[%c32_758, %c240_759], %510 {strides = array<i32>} : memref<36x256xf32, #tpu.memory_space<vmem>>, vector<4x16xf32>,
    %c0_760 = arith.constant 0 : index
    %c0_761 = arith.constant 0 : index
    %512 = vector.load %arg2[%c0_760, %c0_761] : memref<4x36xf32, #tpu.memory_space<vmem>>, vector<4x36xf32>
    %c0_762 = arith.constant 0 : index
    %c0_763 = arith.constant 0 : index
    %513 = vector.load %arg8[%c0_762, %c0_763] : memref<36x256xf32, #tpu.memory_space<vmem>>, vector<36x256xf32>
    %cst = arith.constant dense<0.000000e+00> : vector<4x256xf32>
    %514 = tpu.matmul %512, %513, %cst {dimension_numbers = #tpu.dot_dimension_numbers<[1], [0], [0], [1], [0, 0, 1, 1], [], []>} : vector<4x36xf32>, vector<36x256xf32>, vector<4x256xf32> -> vector<4x256xf32>
    %c0_764 = arith.constant 0 : index
    %c0_765 = arith.constant 0 : index
    %515 = vector.load %arg3[%c0_764, %c0_765] : memref<4x1xf32, #tpu.memory_space<vmem>>, vector<4x1xf32>
    %516 = vector.broadcast %515 : vector<4x1xf32> to vector<4x256xf32>
    %517 = arith.addf %514, %516 : vector<4x256xf32>
    %cst_766 = arith.constant dense<0.000000e+00> : vector<4xf32>
    %518 = vector.multi_reduction <add>, %517, %cst_766 [1] : vector<4x256xf32> to vector<4xf32>
    %519 = vector.shape_cast %518 : vector<4xf32> to vector<4x1xf32>
    %cst_767 = arith.constant 2.560000e+02 : f32
    %520 = vector.broadcast %cst_767 : f32 to vector<4x1xf32>
    %521 = arith.divf %519, %520 : vector<4x1xf32>
    %522 = vector.broadcast %521 : vector<4x1xf32> to vector<4x256xf32>
    %523 = arith.subf %517, %522 : vector<4x256xf32>
    %524 = arith.mulf %523, %523 : vector<4x256xf32>
    %cst_768 = arith.constant dense<0.000000e+00> : vector<4xf32>
    %525 = vector.multi_reduction <add>, %524, %cst_768 [1] : vector<4x256xf32> to vector<4xf32>
    %526 = vector.shape_cast %525 : vector<4xf32> to vector<4x1xf32>
    %cst_769 = arith.constant 2.560000e+02 : f32
    %527 = vector.broadcast %cst_769 : f32 to vector<4x1xf32>
    %528 = arith.divf %526, %527 : vector<4x1xf32>
    %cst_770 = arith.constant 9.99999974E-6 : f32
    %529 = vector.broadcast %cst_770 : f32 to vector<4x1xf32>
    %530 = arith.addf %528, %529 : vector<4x1xf32>
    %531 = math.rsqrt %530 : vector<4x1xf32>
    %532 = vector.broadcast %531 : vector<4x1xf32> to vector<4x256xf32>
    %533 = arith.mulf %523, %532 : vector<4x256xf32>
    %cst_771 = arith.constant 0.000000e+00 : f32
    %534 = vector.broadcast %cst_771 : f32 to vector<4x256xf32>
    %535 = arith.maximumf %533, %534 : vector<4x256xf32>
    %536 = vector.extract_strided_slice %535 {offsets = [0, 0], sizes = [4, 16], strides = [1, 1]} : vector<4x256xf32> to vector<4x16xf32>
    %c1_772 = arith.constant 1 : index
    %c0_773 = arith.constant 0 : index
    %c1_774 = arith.constant 1 : index
    %537 = vector.load %arg7[%c1_772, %c0_773, %c1_774] : memref<18x4x18xf32, #tpu.memory_space<vmem>>, vector<1x4x16xf32>
    %538 = vector.shape_cast %537 : vector<1x4x16xf32> to vector<4x16xf32>
    %539 = vector.shape_cast %536 : vector<4x16xf32> to vector<1x4x16xf32>
    tpu.vector_store %arg7[%c1_772, %c0_773, %c1_774], %539 {strides = array<i32>} : memref<18x4x18xf32, #tpu.memory_space<vmem>>, vector<1x4x16xf32>,
    %540 = vector.extract_strided_slice %535 {offsets = [0, 16], sizes = [4, 16], strides = [1, 1]} : vector<4x256xf32> to vector<4x16xf32>
    %c2_775 = arith.constant 2 : index
    %c0_776 = arith.constant 0 : index
    %c1_777 = arith.constant 1 : index
    %541 = vector.load %arg7[%c2_775, %c0_776, %c1_777] : memref<18x4x18xf32, #tpu.memory_space<vmem>>, vector<1x4x16xf32>
    %542 = vector.shape_cast %541 : vector<1x4x16xf32> to vector<4x16xf32>
    %543 = vector.shape_cast %540 : vector<4x16xf32> to vector<1x4x16xf32>
    tpu.vector_store %arg7[%c2_775, %c0_776, %c1_777], %543 {strides = array<i32>} : memref<18x4x18xf32, #tpu.memory_space<vmem>>, vector<1x4x16xf32>,
    %544 = vector.extract_strided_slice %535 {offsets = [0, 32], sizes = [4, 16], strides = [1, 1]} : vector<4x256xf32> to vector<4x16xf32>
    %c3_778 = arith.constant 3 : index
    %c0_779 = arith.constant 0 : index
    %c1_780 = arith.constant 1 : index
    %545 = vector.load %arg7[%c3_778, %c0_779, %c1_780] : memref<18x4x18xf32, #tpu.memory_space<vmem>>, vector<1x4x16xf32>
    %546 = vector.shape_cast %545 : vector<1x4x16xf32> to vector<4x16xf32>
    %547 = vector.shape_cast %544 : vector<4x16xf32> to vector<1x4x16xf32>
    tpu.vector_store %arg7[%c3_778, %c0_779, %c1_780], %547 {strides = array<i32>} : memref<18x4x18xf32, #tpu.memory_space<vmem>>, vector<1x4x16xf32>,
    %548 = vector.extract_strided_slice %535 {offsets = [0, 48], sizes = [4, 16], strides = [1, 1]} : vector<4x256xf32> to vector<4x16xf32>
    %c4_781 = arith.constant 4 : index
    %c0_782 = arith.constant 0 : index
    %c1_783 = arith.constant 1 : index
    %549 = vector.load %arg7[%c4_781, %c0_782, %c1_783] : memref<18x4x18xf32, #tpu.memory_space<vmem>>, vector<1x4x16xf32>
    %550 = vector.shape_cast %549 : vector<1x4x16xf32> to vector<4x16xf32>
    %551 = vector.shape_cast %548 : vector<4x16xf32> to vector<1x4x16xf32>
    tpu.vector_store %arg7[%c4_781, %c0_782, %c1_783], %551 {strides = array<i32>} : memref<18x4x18xf32, #tpu.memory_space<vmem>>, vector<1x4x16xf32>,
    %552 = vector.extract_strided_slice %535 {offsets = [0, 64], sizes = [4, 16], strides = [1, 1]} : vector<4x256xf32> to vector<4x16xf32>
    %c5_784 = arith.constant 5 : index
    %c0_785 = arith.constant 0 : index
    %c1_786 = arith.constant 1 : index
    %553 = vector.load %arg7[%c5_784, %c0_785, %c1_786] : memref<18x4x18xf32, #tpu.memory_space<vmem>>, vector<1x4x16xf32>
    %554 = vector.shape_cast %553 : vector<1x4x16xf32> to vector<4x16xf32>
    %555 = vector.shape_cast %552 : vector<4x16xf32> to vector<1x4x16xf32>
    tpu.vector_store %arg7[%c5_784, %c0_785, %c1_786], %555 {strides = array<i32>} : memref<18x4x18xf32, #tpu.memory_space<vmem>>, vector<1x4x16xf32>,
    %556 = vector.extract_strided_slice %535 {offsets = [0, 80], sizes = [4, 16], strides = [1, 1]} : vector<4x256xf32> to vector<4x16xf32>
    %c6_787 = arith.constant 6 : index
    %c0_788 = arith.constant 0 : index
    %c1_789 = arith.constant 1 : index
    %557 = vector.load %arg7[%c6_787, %c0_788, %c1_789] : memref<18x4x18xf32, #tpu.memory_space<vmem>>, vector<1x4x16xf32>
    %558 = vector.shape_cast %557 : vector<1x4x16xf32> to vector<4x16xf32>
    %559 = vector.shape_cast %556 : vector<4x16xf32> to vector<1x4x16xf32>
    tpu.vector_store %arg7[%c6_787, %c0_788, %c1_789], %559 {strides = array<i32>} : memref<18x4x18xf32, #tpu.memory_space<vmem>>, vector<1x4x16xf32>,
    %560 = vector.extract_strided_slice %535 {offsets = [0, 96], sizes = [4, 16], strides = [1, 1]} : vector<4x256xf32> to vector<4x16xf32>
    %c7_790 = arith.constant 7 : index
    %c0_791 = arith.constant 0 : index
    %c1_792 = arith.constant 1 : index
    %561 = vector.load %arg7[%c7_790, %c0_791, %c1_792] : memref<18x4x18xf32, #tpu.memory_space<vmem>>, vector<1x4x16xf32>
    %562 = vector.shape_cast %561 : vector<1x4x16xf32> to vector<4x16xf32>
    %563 = vector.shape_cast %560 : vector<4x16xf32> to vector<1x4x16xf32>
    tpu.vector_store %arg7[%c7_790, %c0_791, %c1_792], %563 {strides = array<i32>} : memref<18x4x18xf32, #tpu.memory_space<vmem>>, vector<1x4x16xf32>,
    %564 = vector.extract_strided_slice %535 {offsets = [0, 112], sizes = [4, 16], strides = [1, 1]} : vector<4x256xf32> to vector<4x16xf32>
    %c8_793 = arith.constant 8 : index
    %c0_794 = arith.constant 0 : index
    %c1_795 = arith.constant 1 : index
    %565 = vector.load %arg7[%c8_793, %c0_794, %c1_795] : memref<18x4x18xf32, #tpu.memory_space<vmem>>, vector<1x4x16xf32>
    %566 = vector.shape_cast %565 : vector<1x4x16xf32> to vector<4x16xf32>
    %567 = vector.shape_cast %564 : vector<4x16xf32> to vector<1x4x16xf32>
    tpu.vector_store %arg7[%c8_793, %c0_794, %c1_795], %567 {strides = array<i32>} : memref<18x4x18xf32, #tpu.memory_space<vmem>>, vector<1x4x16xf32>,
    %568 = vector.extract_strided_slice %535 {offsets = [0, 128], sizes = [4, 16], strides = [1, 1]} : vector<4x256xf32> to vector<4x16xf32>
    %c9_796 = arith.constant 9 : index
    %c0_797 = arith.constant 0 : index
    %c1_798 = arith.constant 1 : index
    %569 = vector.load %arg7[%c9_796, %c0_797, %c1_798] : memref<18x4x18xf32, #tpu.memory_space<vmem>>, vector<1x4x16xf32>
    %570 = vector.shape_cast %569 : vector<1x4x16xf32> to vector<4x16xf32>
    %571 = vector.shape_cast %568 : vector<4x16xf32> to vector<1x4x16xf32>
    tpu.vector_store %arg7[%c9_796, %c0_797, %c1_798], %571 {strides = array<i32>} : memref<18x4x18xf32, #tpu.memory_space<vmem>>, vector<1x4x16xf32>,
    %572 = vector.extract_strided_slice %535 {offsets = [0, 144], sizes = [4, 16], strides = [1, 1]} : vector<4x256xf32> to vector<4x16xf32>
    %c10_799 = arith.constant 10 : index
    %c0_800 = arith.constant 0 : index
    %c1_801 = arith.constant 1 : index
    %573 = vector.load %arg7[%c10_799, %c0_800, %c1_801] : memref<18x4x18xf32, #tpu.memory_space<vmem>>, vector<1x4x16xf32>
    %574 = vector.shape_cast %573 : vector<1x4x16xf32> to vector<4x16xf32>
    %575 = vector.shape_cast %572 : vector<4x16xf32> to vector<1x4x16xf32>
    tpu.vector_store %arg7[%c10_799, %c0_800, %c1_801], %575 {strides = array<i32>} : memref<18x4x18xf32, #tpu.memory_space<vmem>>, vector<1x4x16xf32>,
    %576 = vector.extract_strided_slice %535 {offsets = [0, 160], sizes = [4, 16], strides = [1, 1]} : vector<4x256xf32> to vector<4x16xf32>
    %c11_802 = arith.constant 11 : index
    %c0_803 = arith.constant 0 : index
    %c1_804 = arith.constant 1 : index
    %577 = vector.load %arg7[%c11_802, %c0_803, %c1_804] : memref<18x4x18xf32, #tpu.memory_space<vmem>>, vector<1x4x16xf32>
    %578 = vector.shape_cast %577 : vector<1x4x16xf32> to vector<4x16xf32>
    %579 = vector.shape_cast %576 : vector<4x16xf32> to vector<1x4x16xf32>
    tpu.vector_store %arg7[%c11_802, %c0_803, %c1_804], %579 {strides = array<i32>} : memref<18x4x18xf32, #tpu.memory_space<vmem>>, vector<1x4x16xf32>,
    %580 = vector.extract_strided_slice %535 {offsets = [0, 176], sizes = [4, 16], strides = [1, 1]} : vector<4x256xf32> to vector<4x16xf32>
    %c12_805 = arith.constant 12 : index
    %c0_806 = arith.constant 0 : index
    %c1_807 = arith.constant 1 : index
    %581 = vector.load %arg7[%c12_805, %c0_806, %c1_807] : memref<18x4x18xf32, #tpu.memory_space<vmem>>, vector<1x4x16xf32>
    %582 = vector.shape_cast %581 : vector<1x4x16xf32> to vector<4x16xf32>
    %583 = vector.shape_cast %580 : vector<4x16xf32> to vector<1x4x16xf32>
    tpu.vector_store %arg7[%c12_805, %c0_806, %c1_807], %583 {strides = array<i32>} : memref<18x4x18xf32, #tpu.memory_space<vmem>>, vector<1x4x16xf32>,
    %584 = vector.extract_strided_slice %535 {offsets = [0, 192], sizes = [4, 16], strides = [1, 1]} : vector<4x256xf32> to vector<4x16xf32>
    %c13_808 = arith.constant 13 : index
    %c0_809 = arith.constant 0 : index
    %c1_810 = arith.constant 1 : index
    %585 = vector.load %arg7[%c13_808, %c0_809, %c1_810] : memref<18x4x18xf32, #tpu.memory_space<vmem>>, vector<1x4x16xf32>
    %586 = vector.shape_cast %585 : vector<1x4x16xf32> to vector<4x16xf32>
    %587 = vector.shape_cast %584 : vector<4x16xf32> to vector<1x4x16xf32>
    tpu.vector_store %arg7[%c13_808, %c0_809, %c1_810], %587 {strides = array<i32>} : memref<18x4x18xf32, #tpu.memory_space<vmem>>, vector<1x4x16xf32>,
    %588 = vector.extract_strided_slice %535 {offsets = [0, 208], sizes = [4, 16], strides = [1, 1]} : vector<4x256xf32> to vector<4x16xf32>
    %c14_811 = arith.constant 14 : index
    %c0_812 = arith.constant 0 : index
    %c1_813 = arith.constant 1 : index
    %589 = vector.load %arg7[%c14_811, %c0_812, %c1_813] : memref<18x4x18xf32, #tpu.memory_space<vmem>>, vector<1x4x16xf32>
    %590 = vector.shape_cast %589 : vector<1x4x16xf32> to vector<4x16xf32>
    %591 = vector.shape_cast %588 : vector<4x16xf32> to vector<1x4x16xf32>
    tpu.vector_store %arg7[%c14_811, %c0_812, %c1_813], %591 {strides = array<i32>} : memref<18x4x18xf32, #tpu.memory_space<vmem>>, vector<1x4x16xf32>,
    %592 = vector.extract_strided_slice %535 {offsets = [0, 224], sizes = [4, 16], strides = [1, 1]} : vector<4x256xf32> to vector<4x16xf32>
    %c15_814 = arith.constant 15 : index
    %c0_815 = arith.constant 0 : index
    %c1_816 = arith.constant 1 : index
    %593 = vector.load %arg7[%c15_814, %c0_815, %c1_816] : memref<18x4x18xf32, #tpu.memory_space<vmem>>, vector<1x4x16xf32>
    %594 = vector.shape_cast %593 : vector<1x4x16xf32> to vector<4x16xf32>
    %595 = vector.shape_cast %592 : vector<4x16xf32> to vector<1x4x16xf32>
    tpu.vector_store %arg7[%c15_814, %c0_815, %c1_816], %595 {strides = array<i32>} : memref<18x4x18xf32, #tpu.memory_space<vmem>>, vector<1x4x16xf32>,
    %596 = vector.extract_strided_slice %535 {offsets = [0, 240], sizes = [4, 16], strides = [1, 1]} : vector<4x256xf32> to vector<4x16xf32>
    %c16_817 = arith.constant 16 : index
    %c0_818 = arith.constant 0 : index
    %c1_819 = arith.constant 1 : index
    %597 = vector.load %arg7[%c16_817, %c0_818, %c1_819] : memref<18x4x18xf32, #tpu.memory_space<vmem>>, vector<1x4x16xf32>
    %598 = vector.shape_cast %597 : vector<1x4x16xf32> to vector<4x16xf32>
    %599 = vector.shape_cast %596 : vector<4x16xf32> to vector<1x4x16xf32>
    tpu.vector_store %arg7[%c16_817, %c0_818, %c1_819], %599 {strides = array<i32>} : memref<18x4x18xf32, #tpu.memory_space<vmem>>, vector<1x4x16xf32>,
    %c2_820 = arith.constant 2 : index
    %c0_821 = arith.constant 0 : index
    %c0_822 = arith.constant 0 : index
    %600 = vector.load %arg7[%c2_820, %c0_821, %c0_822] : memref<18x4x18xf32, #tpu.memory_space<vmem>>, vector<1x4x18xf32>
    %601 = vector.shape_cast %600 : vector<1x4x18xf32> to vector<4x18xf32>
    %c0_823 = arith.constant 0 : index
    %c0_824 = arith.constant 0 : index
    %c0_825 = arith.constant 0 : index
    %602 = vector.load %arg7[%c0_823, %c0_824, %c0_825] : memref<18x4x18xf32, #tpu.memory_space<vmem>>, vector<1x4x18xf32>
    %603 = vector.shape_cast %602 : vector<1x4x18xf32> to vector<4x18xf32>
    %604 = vector.shape_cast %601 : vector<4x18xf32> to vector<1x4x18xf32>
    tpu.vector_store %arg7[%c0_823, %c0_824, %c0_825], %604 {strides = array<i32>} : memref<18x4x18xf32, #tpu.memory_space<vmem>>, vector<1x4x18xf32>,
    %c15_826 = arith.constant 15 : index
    %c0_827 = arith.constant 0 : index
    %c0_828 = arith.constant 0 : index
    %605 = vector.load %arg7[%c15_826, %c0_827, %c0_828] : memref<18x4x18xf32, #tpu.memory_space<vmem>>, vector<1x4x18xf32>
    %606 = vector.shape_cast %605 : vector<1x4x18xf32> to vector<4x18xf32>
    %c17_829 = arith.constant 17 : index
    %c0_830 = arith.constant 0 : index
    %c0_831 = arith.constant 0 : index
    %607 = vector.load %arg7[%c17_829, %c0_830, %c0_831] : memref<18x4x18xf32, #tpu.memory_space<vmem>>, vector<1x4x18xf32>
    %608 = vector.shape_cast %607 : vector<1x4x18xf32> to vector<4x18xf32>
    %609 = vector.shape_cast %606 : vector<4x18xf32> to vector<1x4x18xf32>
    tpu.vector_store %arg7[%c17_829, %c0_830, %c0_831], %609 {strides = array<i32>} : memref<18x4x18xf32, #tpu.memory_space<vmem>>, vector<1x4x18xf32>,
    %c0_832 = arith.constant 0 : index
    %c0_833 = arith.constant 0 : index
    %c2_834 = arith.constant 2 : index
    %610 = vector.load %arg7[%c0_832, %c0_833, %c2_834] : memref<18x4x18xf32, #tpu.memory_space<vmem>>, vector<18x4x1xf32>
    %c0_835 = arith.constant 0 : index
    %c0_836 = arith.constant 0 : index
    %c0_837 = arith.constant 0 : index
    %611 = vector.load %arg7[%c0_835, %c0_836, %c0_837] : memref<18x4x18xf32, #tpu.memory_space<vmem>>, vector<18x4x1xf32>
    tpu.vector_store %arg7[%c0_835, %c0_836, %c0_837], %610 {strides = array<i32>} : memref<18x4x18xf32, #tpu.memory_space<vmem>>, vector<18x4x1xf32>,
    %c0_838 = arith.constant 0 : index
    %c0_839 = arith.constant 0 : index
    %c15_840 = arith.constant 15 : index
    %612 = vector.load %arg7[%c0_838, %c0_839, %c15_840] : memref<18x4x18xf32, #tpu.memory_space<vmem>>, vector<18x4x1xf32>
    %c0_841 = arith.constant 0 : index
    %c0_842 = arith.constant 0 : index
    %c17_843 = arith.constant 17 : index
    %613 = vector.load %arg7[%c0_841, %c0_842, %c17_843] : memref<18x4x18xf32, #tpu.memory_space<vmem>>, vector<18x4x1xf32>
    tpu.vector_store %arg7[%c0_841, %c0_842, %c17_843], %612 {strides = array<i32>} : memref<18x4x18xf32, #tpu.memory_space<vmem>>, vector<18x4x1xf32>,
    %c0_844 = arith.constant 0 : index
    %c0_845 = arith.constant 0 : index
    %c0_846 = arith.constant 0 : index
    %614 = vector.load %arg7[%c0_844, %c0_845, %c0_846] : memref<18x4x18xf32, #tpu.memory_space<vmem>>, vector<1x4x16xf32>
    %615 = vector.shape_cast %614 : vector<1x4x16xf32> to vector<4x16xf32>
    %c0_847 = arith.constant 0 : index
    %c0_848 = arith.constant 0 : index
    %616 = vector.load %arg8[%c0_847, %c0_848] : memref<36x256xf32, #tpu.memory_space<vmem>>, vector<4x16xf32>
    tpu.vector_store %arg8[%c0_847, %c0_848], %615 {strides = array<i32>} : memref<36x256xf32, #tpu.memory_space<vmem>>, vector<4x16xf32>,
    %c1_849 = arith.constant 1 : index
    %c0_850 = arith.constant 0 : index
    %c0_851 = arith.constant 0 : index
    %617 = vector.load %arg7[%c1_849, %c0_850, %c0_851] : memref<18x4x18xf32, #tpu.memory_space<vmem>>, vector<1x4x16xf32>
    %618 = vector.shape_cast %617 : vector<1x4x16xf32> to vector<4x16xf32>
    %c0_852 = arith.constant 0 : index
    %c16_853 = arith.constant 16 : index
    %619 = vector.load %arg8[%c0_852, %c16_853] : memref<36x256xf32, #tpu.memory_space<vmem>>, vector<4x16xf32>
    tpu.vector_store %arg8[%c0_852, %c16_853], %618 {strides = array<i32>} : memref<36x256xf32, #tpu.memory_space<vmem>>, vector<4x16xf32>,
    %c2_854 = arith.constant 2 : index
    %c0_855 = arith.constant 0 : index
    %c0_856 = arith.constant 0 : index
    %620 = vector.load %arg7[%c2_854, %c0_855, %c0_856] : memref<18x4x18xf32, #tpu.memory_space<vmem>>, vector<1x4x16xf32>
    %621 = vector.shape_cast %620 : vector<1x4x16xf32> to vector<4x16xf32>
    %c0_857 = arith.constant 0 : index
    %c32_858 = arith.constant 32 : index
    %622 = vector.load %arg8[%c0_857, %c32_858] : memref<36x256xf32, #tpu.memory_space<vmem>>, vector<4x16xf32>
    tpu.vector_store %arg8[%c0_857, %c32_858], %621 {strides = array<i32>} : memref<36x256xf32, #tpu.memory_space<vmem>>, vector<4x16xf32>,
    %c3_859 = arith.constant 3 : index
    %c0_860 = arith.constant 0 : index
    %c0_861 = arith.constant 0 : index
    %623 = vector.load %arg7[%c3_859, %c0_860, %c0_861] : memref<18x4x18xf32, #tpu.memory_space<vmem>>, vector<1x4x16xf32>
    %624 = vector.shape_cast %623 : vector<1x4x16xf32> to vector<4x16xf32>
    %c0_862 = arith.constant 0 : index
    %c48_863 = arith.constant 48 : index
    %625 = vector.load %arg8[%c0_862, %c48_863] : memref<36x256xf32, #tpu.memory_space<vmem>>, vector<4x16xf32>
    tpu.vector_store %arg8[%c0_862, %c48_863], %624 {strides = array<i32>} : memref<36x256xf32, #tpu.memory_space<vmem>>, vector<4x16xf32>,
    %c4_864 = arith.constant 4 : index
    %c0_865 = arith.constant 0 : index
    %c0_866 = arith.constant 0 : index
    %626 = vector.load %arg7[%c4_864, %c0_865, %c0_866] : memref<18x4x18xf32, #tpu.memory_space<vmem>>, vector<1x4x16xf32>
    %627 = vector.shape_cast %626 : vector<1x4x16xf32> to vector<4x16xf32>
    %c0_867 = arith.constant 0 : index
    %c64_868 = arith.constant 64 : index
    %628 = vector.load %arg8[%c0_867, %c64_868] : memref<36x256xf32, #tpu.memory_space<vmem>>, vector<4x16xf32>
    tpu.vector_store %arg8[%c0_867, %c64_868], %627 {strides = array<i32>} : memref<36x256xf32, #tpu.memory_space<vmem>>, vector<4x16xf32>,
    %c5_869 = arith.constant 5 : index
    %c0_870 = arith.constant 0 : index
    %c0_871 = arith.constant 0 : index
    %629 = vector.load %arg7[%c5_869, %c0_870, %c0_871] : memref<18x4x18xf32, #tpu.memory_space<vmem>>, vector<1x4x16xf32>
    %630 = vector.shape_cast %629 : vector<1x4x16xf32> to vector<4x16xf32>
    %c0_872 = arith.constant 0 : index
    %c80_873 = arith.constant 80 : index
    %631 = vector.load %arg8[%c0_872, %c80_873] : memref<36x256xf32, #tpu.memory_space<vmem>>, vector<4x16xf32>
    tpu.vector_store %arg8[%c0_872, %c80_873], %630 {strides = array<i32>} : memref<36x256xf32, #tpu.memory_space<vmem>>, vector<4x16xf32>,
    %c6_874 = arith.constant 6 : index
    %c0_875 = arith.constant 0 : index
    %c0_876 = arith.constant 0 : index
    %632 = vector.load %arg7[%c6_874, %c0_875, %c0_876] : memref<18x4x18xf32, #tpu.memory_space<vmem>>, vector<1x4x16xf32>
    %633 = vector.shape_cast %632 : vector<1x4x16xf32> to vector<4x16xf32>
    %c0_877 = arith.constant 0 : index
    %c96_878 = arith.constant 96 : index
    %634 = vector.load %arg8[%c0_877, %c96_878] : memref<36x256xf32, #tpu.memory_space<vmem>>, vector<4x16xf32>
    tpu.vector_store %arg8[%c0_877, %c96_878], %633 {strides = array<i32>} : memref<36x256xf32, #tpu.memory_space<vmem>>, vector<4x16xf32>,
    %c7_879 = arith.constant 7 : index
    %c0_880 = arith.constant 0 : index
    %c0_881 = arith.constant 0 : index
    %635 = vector.load %arg7[%c7_879, %c0_880, %c0_881] : memref<18x4x18xf32, #tpu.memory_space<vmem>>, vector<1x4x16xf32>
    %636 = vector.shape_cast %635 : vector<1x4x16xf32> to vector<4x16xf32>
    %c0_882 = arith.constant 0 : index
    %c112_883 = arith.constant 112 : index
    %637 = vector.load %arg8[%c0_882, %c112_883] : memref<36x256xf32, #tpu.memory_space<vmem>>, vector<4x16xf32>
    tpu.vector_store %arg8[%c0_882, %c112_883], %636 {strides = array<i32>} : memref<36x256xf32, #tpu.memory_space<vmem>>, vector<4x16xf32>,
    %c8_884 = arith.constant 8 : index
    %c0_885 = arith.constant 0 : index
    %c0_886 = arith.constant 0 : index
    %638 = vector.load %arg7[%c8_884, %c0_885, %c0_886] : memref<18x4x18xf32, #tpu.memory_space<vmem>>, vector<1x4x16xf32>
    %639 = vector.shape_cast %638 : vector<1x4x16xf32> to vector<4x16xf32>
    %c0_887 = arith.constant 0 : index
    %c128_888 = arith.constant 128 : index
    %640 = vector.load %arg8[%c0_887, %c128_888] : memref<36x256xf32, #tpu.memory_space<vmem>>, vector<4x16xf32>
    tpu.vector_store %arg8[%c0_887, %c128_888], %639 {strides = array<i32>} : memref<36x256xf32, #tpu.memory_space<vmem>>, vector<4x16xf32>,
    %c9_889 = arith.constant 9 : index
    %c0_890 = arith.constant 0 : index
    %c0_891 = arith.constant 0 : index
    %641 = vector.load %arg7[%c9_889, %c0_890, %c0_891] : memref<18x4x18xf32, #tpu.memory_space<vmem>>, vector<1x4x16xf32>
    %642 = vector.shape_cast %641 : vector<1x4x16xf32> to vector<4x16xf32>
    %c0_892 = arith.constant 0 : index
    %c144_893 = arith.constant 144 : index
    %643 = vector.load %arg8[%c0_892, %c144_893] : memref<36x256xf32, #tpu.memory_space<vmem>>, vector<4x16xf32>
    tpu.vector_store %arg8[%c0_892, %c144_893], %642 {strides = array<i32>} : memref<36x256xf32, #tpu.memory_space<vmem>>, vector<4x16xf32>,
    %c10_894 = arith.constant 10 : index
    %c0_895 = arith.constant 0 : index
    %c0_896 = arith.constant 0 : index
    %644 = vector.load %arg7[%c10_894, %c0_895, %c0_896] : memref<18x4x18xf32, #tpu.memory_space<vmem>>, vector<1x4x16xf32>
    %645 = vector.shape_cast %644 : vector<1x4x16xf32> to vector<4x16xf32>
    %c0_897 = arith.constant 0 : index
    %c160_898 = arith.constant 160 : index
    %646 = vector.load %arg8[%c0_897, %c160_898] : memref<36x256xf32, #tpu.memory_space<vmem>>, vector<4x16xf32>
    tpu.vector_store %arg8[%c0_897, %c160_898], %645 {strides = array<i32>} : memref<36x256xf32, #tpu.memory_space<vmem>>, vector<4x16xf32>,
    %c11_899 = arith.constant 11 : index
    %c0_900 = arith.constant 0 : index
    %c0_901 = arith.constant 0 : index
    %647 = vector.load %arg7[%c11_899, %c0_900, %c0_901] : memref<18x4x18xf32, #tpu.memory_space<vmem>>, vector<1x4x16xf32>
    %648 = vector.shape_cast %647 : vector<1x4x16xf32> to vector<4x16xf32>
    %c0_902 = arith.constant 0 : index
    %c176_903 = arith.constant 176 : index
    %649 = vector.load %arg8[%c0_902, %c176_903] : memref<36x256xf32, #tpu.memory_space<vmem>>, vector<4x16xf32>
    tpu.vector_store %arg8[%c0_902, %c176_903], %648 {strides = array<i32>} : memref<36x256xf32, #tpu.memory_space<vmem>>, vector<4x16xf32>,
    %c12_904 = arith.constant 12 : index
    %c0_905 = arith.constant 0 : index
    %c0_906 = arith.constant 0 : index
    %650 = vector.load %arg7[%c12_904, %c0_905, %c0_906] : memref<18x4x18xf32, #tpu.memory_space<vmem>>, vector<1x4x16xf32>
    %651 = vector.shape_cast %650 : vector<1x4x16xf32> to vector<4x16xf32>
    %c0_907 = arith.constant 0 : index
    %c192_908 = arith.constant 192 : index
    %652 = vector.load %arg8[%c0_907, %c192_908] : memref<36x256xf32, #tpu.memory_space<vmem>>, vector<4x16xf32>
    tpu.vector_store %arg8[%c0_907, %c192_908], %651 {strides = array<i32>} : memref<36x256xf32, #tpu.memory_space<vmem>>, vector<4x16xf32>,
    %c13_909 = arith.constant 13 : index
    %c0_910 = arith.constant 0 : index
    %c0_911 = arith.constant 0 : index
    %653 = vector.load %arg7[%c13_909, %c0_910, %c0_911] : memref<18x4x18xf32, #tpu.memory_space<vmem>>, vector<1x4x16xf32>
    %654 = vector.shape_cast %653 : vector<1x4x16xf32> to vector<4x16xf32>
    %c0_912 = arith.constant 0 : index
    %c208_913 = arith.constant 208 : index
    %655 = vector.load %arg8[%c0_912, %c208_913] : memref<36x256xf32, #tpu.memory_space<vmem>>, vector<4x16xf32>
    tpu.vector_store %arg8[%c0_912, %c208_913], %654 {strides = array<i32>} : memref<36x256xf32, #tpu.memory_space<vmem>>, vector<4x16xf32>,
    %c14_914 = arith.constant 14 : index
    %c0_915 = arith.constant 0 : index
    %c0_916 = arith.constant 0 : index
    %656 = vector.load %arg7[%c14_914, %c0_915, %c0_916] : memref<18x4x18xf32, #tpu.memory_space<vmem>>, vector<1x4x16xf32>
    %657 = vector.shape_cast %656 : vector<1x4x16xf32> to vector<4x16xf32>
    %c0_917 = arith.constant 0 : index
    %c224_918 = arith.constant 224 : index
    %658 = vector.load %arg8[%c0_917, %c224_918] : memref<36x256xf32, #tpu.memory_space<vmem>>, vector<4x16xf32>
    tpu.vector_store %arg8[%c0_917, %c224_918], %657 {strides = array<i32>} : memref<36x256xf32, #tpu.memory_space<vmem>>, vector<4x16xf32>,
    %c15_919 = arith.constant 15 : index
    %c0_920 = arith.constant 0 : index
    %c0_921 = arith.constant 0 : index
    %659 = vector.load %arg7[%c15_919, %c0_920, %c0_921] : memref<18x4x18xf32, #tpu.memory_space<vmem>>, vector<1x4x16xf32>
    %660 = vector.shape_cast %659 : vector<1x4x16xf32> to vector<4x16xf32>
    %c0_922 = arith.constant 0 : index
    %c240_923 = arith.constant 240 : index
    %661 = vector.load %arg8[%c0_922, %c240_923] : memref<36x256xf32, #tpu.memory_space<vmem>>, vector<4x16xf32>
    tpu.vector_store %arg8[%c0_922, %c240_923], %660 {strides = array<i32>} : memref<36x256xf32, #tpu.memory_space<vmem>>, vector<4x16xf32>,
    %c0_924 = arith.constant 0 : index
    %c0_925 = arith.constant 0 : index
    %c1_926 = arith.constant 1 : index
    %662 = vector.load %arg7[%c0_924, %c0_925, %c1_926] : memref<18x4x18xf32, #tpu.memory_space<vmem>>, vector<1x4x16xf32>
    %663 = vector.shape_cast %662 : vector<1x4x16xf32> to vector<4x16xf32>
    %c4_927 = arith.constant 4 : index
    %c0_928 = arith.constant 0 : index
    %664 = vector.load %arg8[%c4_927, %c0_928] : memref<36x256xf32, #tpu.memory_space<vmem>>, vector<4x16xf32>
    tpu.vector_store %arg8[%c4_927, %c0_928], %663 {strides = array<i32>} : memref<36x256xf32, #tpu.memory_space<vmem>>, vector<4x16xf32>,
    %c1_929 = arith.constant 1 : index
    %c0_930 = arith.constant 0 : index
    %c1_931 = arith.constant 1 : index
    %665 = vector.load %arg7[%c1_929, %c0_930, %c1_931] : memref<18x4x18xf32, #tpu.memory_space<vmem>>, vector<1x4x16xf32>
    %666 = vector.shape_cast %665 : vector<1x4x16xf32> to vector<4x16xf32>
    %c4_932 = arith.constant 4 : index
    %c16_933 = arith.constant 16 : index
    %667 = vector.load %arg8[%c4_932, %c16_933] : memref<36x256xf32, #tpu.memory_space<vmem>>, vector<4x16xf32>
    tpu.vector_store %arg8[%c4_932, %c16_933], %666 {strides = array<i32>} : memref<36x256xf32, #tpu.memory_space<vmem>>, vector<4x16xf32>,
    %c2_934 = arith.constant 2 : index
    %c0_935 = arith.constant 0 : index
    %c1_936 = arith.constant 1 : index
    %668 = vector.load %arg7[%c2_934, %c0_935, %c1_936] : memref<18x4x18xf32, #tpu.memory_space<vmem>>, vector<1x4x16xf32>
    %669 = vector.shape_cast %668 : vector<1x4x16xf32> to vector<4x16xf32>
    %c4_937 = arith.constant 4 : index
    %c32_938 = arith.constant 32 : index
    %670 = vector.load %arg8[%c4_937, %c32_938] : memref<36x256xf32, #tpu.memory_space<vmem>>, vector<4x16xf32>
    tpu.vector_store %arg8[%c4_937, %c32_938], %669 {strides = array<i32>} : memref<36x256xf32, #tpu.memory_space<vmem>>, vector<4x16xf32>,
    %c3_939 = arith.constant 3 : index
    %c0_940 = arith.constant 0 : index
    %c1_941 = arith.constant 1 : index
    %671 = vector.load %arg7[%c3_939, %c0_940, %c1_941] : memref<18x4x18xf32, #tpu.memory_space<vmem>>, vector<1x4x16xf32>
    %672 = vector.shape_cast %671 : vector<1x4x16xf32> to vector<4x16xf32>
    %c4_942 = arith.constant 4 : index
    %c48_943 = arith.constant 48 : index
    %673 = vector.load %arg8[%c4_942, %c48_943] : memref<36x256xf32, #tpu.memory_space<vmem>>, vector<4x16xf32>
    tpu.vector_store %arg8[%c4_942, %c48_943], %672 {strides = array<i32>} : memref<36x256xf32, #tpu.memory_space<vmem>>, vector<4x16xf32>,
    %c4_944 = arith.constant 4 : index
    %c0_945 = arith.constant 0 : index
    %c1_946 = arith.constant 1 : index
    %674 = vector.load %arg7[%c4_944, %c0_945, %c1_946] : memref<18x4x18xf32, #tpu.memory_space<vmem>>, vector<1x4x16xf32>
    %675 = vector.shape_cast %674 : vector<1x4x16xf32> to vector<4x16xf32>
    %c4_947 = arith.constant 4 : index
    %c64_948 = arith.constant 64 : index
    %676 = vector.load %arg8[%c4_947, %c64_948] : memref<36x256xf32, #tpu.memory_space<vmem>>, vector<4x16xf32>
    tpu.vector_store %arg8[%c4_947, %c64_948], %675 {strides = array<i32>} : memref<36x256xf32, #tpu.memory_space<vmem>>, vector<4x16xf32>,
    %c5_949 = arith.constant 5 : index
    %c0_950 = arith.constant 0 : index
    %c1_951 = arith.constant 1 : index
    %677 = vector.load %arg7[%c5_949, %c0_950, %c1_951] : memref<18x4x18xf32, #tpu.memory_space<vmem>>, vector<1x4x16xf32>
    %678 = vector.shape_cast %677 : vector<1x4x16xf32> to vector<4x16xf32>
    %c4_952 = arith.constant 4 : index
    %c80_953 = arith.constant 80 : index
    %679 = vector.load %arg8[%c4_952, %c80_953] : memref<36x256xf32, #tpu.memory_space<vmem>>, vector<4x16xf32>
    tpu.vector_store %arg8[%c4_952, %c80_953], %678 {strides = array<i32>} : memref<36x256xf32, #tpu.memory_space<vmem>>, vector<4x16xf32>,
    %c6_954 = arith.constant 6 : index
    %c0_955 = arith.constant 0 : index
    %c1_956 = arith.constant 1 : index
    %680 = vector.load %arg7[%c6_954, %c0_955, %c1_956] : memref<18x4x18xf32, #tpu.memory_space<vmem>>, vector<1x4x16xf32>
    %681 = vector.shape_cast %680 : vector<1x4x16xf32> to vector<4x16xf32>
    %c4_957 = arith.constant 4 : index
    %c96_958 = arith.constant 96 : index
    %682 = vector.load %arg8[%c4_957, %c96_958] : memref<36x256xf32, #tpu.memory_space<vmem>>, vector<4x16xf32>
    tpu.vector_store %arg8[%c4_957, %c96_958], %681 {strides = array<i32>} : memref<36x256xf32, #tpu.memory_space<vmem>>, vector<4x16xf32>,
    %c7_959 = arith.constant 7 : index
    %c0_960 = arith.constant 0 : index
    %c1_961 = arith.constant 1 : index
    %683 = vector.load %arg7[%c7_959, %c0_960, %c1_961] : memref<18x4x18xf32, #tpu.memory_space<vmem>>, vector<1x4x16xf32>
    %684 = vector.shape_cast %683 : vector<1x4x16xf32> to vector<4x16xf32>
    %c4_962 = arith.constant 4 : index
    %c112_963 = arith.constant 112 : index
    %685 = vector.load %arg8[%c4_962, %c112_963] : memref<36x256xf32, #tpu.memory_space<vmem>>, vector<4x16xf32>
    tpu.vector_store %arg8[%c4_962, %c112_963], %684 {strides = array<i32>} : memref<36x256xf32, #tpu.memory_space<vmem>>, vector<4x16xf32>,
    %c8_964 = arith.constant 8 : index
    %c0_965 = arith.constant 0 : index
    %c1_966 = arith.constant 1 : index
    %686 = vector.load %arg7[%c8_964, %c0_965, %c1_966] : memref<18x4x18xf32, #tpu.memory_space<vmem>>, vector<1x4x16xf32>
    %687 = vector.shape_cast %686 : vector<1x4x16xf32> to vector<4x16xf32>
    %c4_967 = arith.constant 4 : index
    %c128_968 = arith.constant 128 : index
    %688 = vector.load %arg8[%c4_967, %c128_968] : memref<36x256xf32, #tpu.memory_space<vmem>>, vector<4x16xf32>
    tpu.vector_store %arg8[%c4_967, %c128_968], %687 {strides = array<i32>} : memref<36x256xf32, #tpu.memory_space<vmem>>, vector<4x16xf32>,
    %c9_969 = arith.constant 9 : index
    %c0_970 = arith.constant 0 : index
    %c1_971 = arith.constant 1 : index
    %689 = vector.load %arg7[%c9_969, %c0_970, %c1_971] : memref<18x4x18xf32, #tpu.memory_space<vmem>>, vector<1x4x16xf32>
    %690 = vector.shape_cast %689 : vector<1x4x16xf32> to vector<4x16xf32>
    %c4_972 = arith.constant 4 : index
    %c144_973 = arith.constant 144 : index
    %691 = vector.load %arg8[%c4_972, %c144_973] : memref<36x256xf32, #tpu.memory_space<vmem>>, vector<4x16xf32>
    tpu.vector_store %arg8[%c4_972, %c144_973], %690 {strides = array<i32>} : memref<36x256xf32, #tpu.memory_space<vmem>>, vector<4x16xf32>,
    %c10_974 = arith.constant 10 : index
    %c0_975 = arith.constant 0 : index
    %c1_976 = arith.constant 1 : index
    %692 = vector.load %arg7[%c10_974, %c0_975, %c1_976] : memref<18x4x18xf32, #tpu.memory_space<vmem>>, vector<1x4x16xf32>
    %693 = vector.shape_cast %692 : vector<1x4x16xf32> to vector<4x16xf32>
    %c4_977 = arith.constant 4 : index
    %c160_978 = arith.constant 160 : index
    %694 = vector.load %arg8[%c4_977, %c160_978] : memref<36x256xf32, #tpu.memory_space<vmem>>, vector<4x16xf32>
    tpu.vector_store %arg8[%c4_977, %c160_978], %693 {strides = array<i32>} : memref<36x256xf32, #tpu.memory_space<vmem>>, vector<4x16xf32>,
    %c11_979 = arith.constant 11 : index
    %c0_980 = arith.constant 0 : index
    %c1_981 = arith.constant 1 : index
    %695 = vector.load %arg7[%c11_979, %c0_980, %c1_981] : memref<18x4x18xf32, #tpu.memory_space<vmem>>, vector<1x4x16xf32>
    %696 = vector.shape_cast %695 : vector<1x4x16xf32> to vector<4x16xf32>
    %c4_982 = arith.constant 4 : index
    %c176_983 = arith.constant 176 : index
    %697 = vector.load %arg8[%c4_982, %c176_983] : memref<36x256xf32, #tpu.memory_space<vmem>>, vector<4x16xf32>
    tpu.vector_store %arg8[%c4_982, %c176_983], %696 {strides = array<i32>} : memref<36x256xf32, #tpu.memory_space<vmem>>, vector<4x16xf32>,
    %c12_984 = arith.constant 12 : index
    %c0_985 = arith.constant 0 : index
    %c1_986 = arith.constant 1 : index
    %698 = vector.load %arg7[%c12_984, %c0_985, %c1_986] : memref<18x4x18xf32, #tpu.memory_space<vmem>>, vector<1x4x16xf32>
    %699 = vector.shape_cast %698 : vector<1x4x16xf32> to vector<4x16xf32>
    %c4_987 = arith.constant 4 : index
    %c192_988 = arith.constant 192 : index
    %700 = vector.load %arg8[%c4_987, %c192_988] : memref<36x256xf32, #tpu.memory_space<vmem>>, vector<4x16xf32>
    tpu.vector_store %arg8[%c4_987, %c192_988], %699 {strides = array<i32>} : memref<36x256xf32, #tpu.memory_space<vmem>>, vector<4x16xf32>,
    %c13_989 = arith.constant 13 : index
    %c0_990 = arith.constant 0 : index
    %c1_991 = arith.constant 1 : index
    %701 = vector.load %arg7[%c13_989, %c0_990, %c1_991] : memref<18x4x18xf32, #tpu.memory_space<vmem>>, vector<1x4x16xf32>
    %702 = vector.shape_cast %701 : vector<1x4x16xf32> to vector<4x16xf32>
    %c4_992 = arith.constant 4 : index
    %c208_993 = arith.constant 208 : index
    %703 = vector.load %arg8[%c4_992, %c208_993] : memref<36x256xf32, #tpu.memory_space<vmem>>, vector<4x16xf32>
    tpu.vector_store %arg8[%c4_992, %c208_993], %702 {strides = array<i32>} : memref<36x256xf32, #tpu.memory_space<vmem>>, vector<4x16xf32>,
    %c14_994 = arith.constant 14 : index
    %c0_995 = arith.constant 0 : index
    %c1_996 = arith.constant 1 : index
    %704 = vector.load %arg7[%c14_994, %c0_995, %c1_996] : memref<18x4x18xf32, #tpu.memory_space<vmem>>, vector<1x4x16xf32>
    %705 = vector.shape_cast %704 : vector<1x4x16xf32> to vector<4x16xf32>
    %c4_997 = arith.constant 4 : index
    %c224_998 = arith.constant 224 : index
    %706 = vector.load %arg8[%c4_997, %c224_998] : memref<36x256xf32, #tpu.memory_space<vmem>>, vector<4x16xf32>
    tpu.vector_store %arg8[%c4_997, %c224_998], %705 {strides = array<i32>} : memref<36x256xf32, #tpu.memory_space<vmem>>, vector<4x16xf32>,
    %c15_999 = arith.constant 15 : index
    %c0_1000 = arith.constant 0 : index
    %c1_1001 = arith.constant 1 : index
    %707 = vector.load %arg7[%c15_999, %c0_1000, %c1_1001] : memref<18x4x18xf32, #tpu.memory_space<vmem>>, vector<1x4x16xf32>
    %708 = vector.shape_cast %707 : vector<1x4x16xf32> to vector<4x16xf32>
    %c4_1002 = arith.constant 4 : index
    %c240_1003 = arith.constant 240 : index
    %709 = vector.load %arg8[%c4_1002, %c240_1003] : memref<36x256xf32, #tpu.memory_space<vmem>>, vector<4x16xf32>
    tpu.vector_store %arg8[%c4_1002, %c240_1003], %708 {strides = array<i32>} : memref<36x256xf32, #tpu.memory_space<vmem>>, vector<4x16xf32>,
    %c0_1004 = arith.constant 0 : index
    %c0_1005 = arith.constant 0 : index
    %c2_1006 = arith.constant 2 : index
    %710 = vector.load %arg7[%c0_1004, %c0_1005, %c2_1006] : memref<18x4x18xf32, #tpu.memory_space<vmem>>, vector<1x4x16xf32>
    %711 = vector.shape_cast %710 : vector<1x4x16xf32> to vector<4x16xf32>
    %c8_1007 = arith.constant 8 : index
    %c0_1008 = arith.constant 0 : index
    %712 = vector.load %arg8[%c8_1007, %c0_1008] : memref<36x256xf32, #tpu.memory_space<vmem>>, vector<4x16xf32>
    tpu.vector_store %arg8[%c8_1007, %c0_1008], %711 {strides = array<i32>} : memref<36x256xf32, #tpu.memory_space<vmem>>, vector<4x16xf32>,
    %c1_1009 = arith.constant 1 : index
    %c0_1010 = arith.constant 0 : index
    %c2_1011 = arith.constant 2 : index
    %713 = vector.load %arg7[%c1_1009, %c0_1010, %c2_1011] : memref<18x4x18xf32, #tpu.memory_space<vmem>>, vector<1x4x16xf32>
    %714 = vector.shape_cast %713 : vector<1x4x16xf32> to vector<4x16xf32>
    %c8_1012 = arith.constant 8 : index
    %c16_1013 = arith.constant 16 : index
    %715 = vector.load %arg8[%c8_1012, %c16_1013] : memref<36x256xf32, #tpu.memory_space<vmem>>, vector<4x16xf32>
    tpu.vector_store %arg8[%c8_1012, %c16_1013], %714 {strides = array<i32>} : memref<36x256xf32, #tpu.memory_space<vmem>>, vector<4x16xf32>,
    %c2_1014 = arith.constant 2 : index
    %c0_1015 = arith.constant 0 : index
    %c2_1016 = arith.constant 2 : index
    %716 = vector.load %arg7[%c2_1014, %c0_1015, %c2_1016] : memref<18x4x18xf32, #tpu.memory_space<vmem>>, vector<1x4x16xf32>
    %717 = vector.shape_cast %716 : vector<1x4x16xf32> to vector<4x16xf32>
    %c8_1017 = arith.constant 8 : index
    %c32_1018 = arith.constant 32 : index
    %718 = vector.load %arg8[%c8_1017, %c32_1018] : memref<36x256xf32, #tpu.memory_space<vmem>>, vector<4x16xf32>
    tpu.vector_store %arg8[%c8_1017, %c32_1018], %717 {strides = array<i32>} : memref<36x256xf32, #tpu.memory_space<vmem>>, vector<4x16xf32>,
    %c3_1019 = arith.constant 3 : index
    %c0_1020 = arith.constant 0 : index
    %c2_1021 = arith.constant 2 : index
    %719 = vector.load %arg7[%c3_1019, %c0_1020, %c2_1021] : memref<18x4x18xf32, #tpu.memory_space<vmem>>, vector<1x4x16xf32>
    %720 = vector.shape_cast %719 : vector<1x4x16xf32> to vector<4x16xf32>
    %c8_1022 = arith.constant 8 : index
    %c48_1023 = arith.constant 48 : index
    %721 = vector.load %arg8[%c8_1022, %c48_1023] : memref<36x256xf32, #tpu.memory_space<vmem>>, vector<4x16xf32>
    tpu.vector_store %arg8[%c8_1022, %c48_1023], %720 {strides = array<i32>} : memref<36x256xf32, #tpu.memory_space<vmem>>, vector<4x16xf32>,
    %c4_1024 = arith.constant 4 : index
    %c0_1025 = arith.constant 0 : index
    %c2_1026 = arith.constant 2 : index
    %722 = vector.load %arg7[%c4_1024, %c0_1025, %c2_1026] : memref<18x4x18xf32, #tpu.memory_space<vmem>>, vector<1x4x16xf32>
    %723 = vector.shape_cast %722 : vector<1x4x16xf32> to vector<4x16xf32>
    %c8_1027 = arith.constant 8 : index
    %c64_1028 = arith.constant 64 : index
    %724 = vector.load %arg8[%c8_1027, %c64_1028] : memref<36x256xf32, #tpu.memory_space<vmem>>, vector<4x16xf32>
    tpu.vector_store %arg8[%c8_1027, %c64_1028], %723 {strides = array<i32>} : memref<36x256xf32, #tpu.memory_space<vmem>>, vector<4x16xf32>,
    %c5_1029 = arith.constant 5 : index
    %c0_1030 = arith.constant 0 : index
    %c2_1031 = arith.constant 2 : index
    %725 = vector.load %arg7[%c5_1029, %c0_1030, %c2_1031] : memref<18x4x18xf32, #tpu.memory_space<vmem>>, vector<1x4x16xf32>
    %726 = vector.shape_cast %725 : vector<1x4x16xf32> to vector<4x16xf32>
    %c8_1032 = arith.constant 8 : index
    %c80_1033 = arith.constant 80 : index
    %727 = vector.load %arg8[%c8_1032, %c80_1033] : memref<36x256xf32, #tpu.memory_space<vmem>>, vector<4x16xf32>
    tpu.vector_store %arg8[%c8_1032, %c80_1033], %726 {strides = array<i32>} : memref<36x256xf32, #tpu.memory_space<vmem>>, vector<4x16xf32>,
    %c6_1034 = arith.constant 6 : index
    %c0_1035 = arith.constant 0 : index
    %c2_1036 = arith.constant 2 : index
    %728 = vector.load %arg7[%c6_1034, %c0_1035, %c2_1036] : memref<18x4x18xf32, #tpu.memory_space<vmem>>, vector<1x4x16xf32>
    %729 = vector.shape_cast %728 : vector<1x4x16xf32> to vector<4x16xf32>
    %c8_1037 = arith.constant 8 : index
    %c96_1038 = arith.constant 96 : index
    %730 = vector.load %arg8[%c8_1037, %c96_1038] : memref<36x256xf32, #tpu.memory_space<vmem>>, vector<4x16xf32>
    tpu.vector_store %arg8[%c8_1037, %c96_1038], %729 {strides = array<i32>} : memref<36x256xf32, #tpu.memory_space<vmem>>, vector<4x16xf32>,
    %c7_1039 = arith.constant 7 : index
    %c0_1040 = arith.constant 0 : index
    %c2_1041 = arith.constant 2 : index
    %731 = vector.load %arg7[%c7_1039, %c0_1040, %c2_1041] : memref<18x4x18xf32, #tpu.memory_space<vmem>>, vector<1x4x16xf32>
    %732 = vector.shape_cast %731 : vector<1x4x16xf32> to vector<4x16xf32>
    %c8_1042 = arith.constant 8 : index
    %c112_1043 = arith.constant 112 : index
    %733 = vector.load %arg8[%c8_1042, %c112_1043] : memref<36x256xf32, #tpu.memory_space<vmem>>, vector<4x16xf32>
    tpu.vector_store %arg8[%c8_1042, %c112_1043], %732 {strides = array<i32>} : memref<36x256xf32, #tpu.memory_space<vmem>>, vector<4x16xf32>,
    %c8_1044 = arith.constant 8 : index
    %c0_1045 = arith.constant 0 : index
    %c2_1046 = arith.constant 2 : index
    %734 = vector.load %arg7[%c8_1044, %c0_1045, %c2_1046] : memref<18x4x18xf32, #tpu.memory_space<vmem>>, vector<1x4x16xf32>
    %735 = vector.shape_cast %734 : vector<1x4x16xf32> to vector<4x16xf32>
    %c8_1047 = arith.constant 8 : index
    %c128_1048 = arith.constant 128 : index
    %736 = vector.load %arg8[%c8_1047, %c128_1048] : memref<36x256xf32, #tpu.memory_space<vmem>>, vector<4x16xf32>
    tpu.vector_store %arg8[%c8_1047, %c128_1048], %735 {strides = array<i32>} : memref<36x256xf32, #tpu.memory_space<vmem>>, vector<4x16xf32>,
    %c9_1049 = arith.constant 9 : index
    %c0_1050 = arith.constant 0 : index
    %c2_1051 = arith.constant 2 : index
    %737 = vector.load %arg7[%c9_1049, %c0_1050, %c2_1051] : memref<18x4x18xf32, #tpu.memory_space<vmem>>, vector<1x4x16xf32>
    %738 = vector.shape_cast %737 : vector<1x4x16xf32> to vector<4x16xf32>
    %c8_1052 = arith.constant 8 : index
    %c144_1053 = arith.constant 144 : index
    %739 = vector.load %arg8[%c8_1052, %c144_1053] : memref<36x256xf32, #tpu.memory_space<vmem>>, vector<4x16xf32>
    tpu.vector_store %arg8[%c8_1052, %c144_1053], %738 {strides = array<i32>} : memref<36x256xf32, #tpu.memory_space<vmem>>, vector<4x16xf32>,
    %c10_1054 = arith.constant 10 : index
    %c0_1055 = arith.constant 0 : index
    %c2_1056 = arith.constant 2 : index
    %740 = vector.load %arg7[%c10_1054, %c0_1055, %c2_1056] : memref<18x4x18xf32, #tpu.memory_space<vmem>>, vector<1x4x16xf32>
    %741 = vector.shape_cast %740 : vector<1x4x16xf32> to vector<4x16xf32>
    %c8_1057 = arith.constant 8 : index
    %c160_1058 = arith.constant 160 : index
    %742 = vector.load %arg8[%c8_1057, %c160_1058] : memref<36x256xf32, #tpu.memory_space<vmem>>, vector<4x16xf32>
    tpu.vector_store %arg8[%c8_1057, %c160_1058], %741 {strides = array<i32>} : memref<36x256xf32, #tpu.memory_space<vmem>>, vector<4x16xf32>,
    %c11_1059 = arith.constant 11 : index
    %c0_1060 = arith.constant 0 : index
    %c2_1061 = arith.constant 2 : index
    %743 = vector.load %arg7[%c11_1059, %c0_1060, %c2_1061] : memref<18x4x18xf32, #tpu.memory_space<vmem>>, vector<1x4x16xf32>
    %744 = vector.shape_cast %743 : vector<1x4x16xf32> to vector<4x16xf32>
    %c8_1062 = arith.constant 8 : index
    %c176_1063 = arith.constant 176 : index
    %745 = vector.load %arg8[%c8_1062, %c176_1063] : memref<36x256xf32, #tpu.memory_space<vmem>>, vector<4x16xf32>
    tpu.vector_store %arg8[%c8_1062, %c176_1063], %744 {strides = array<i32>} : memref<36x256xf32, #tpu.memory_space<vmem>>, vector<4x16xf32>,
    %c12_1064 = arith.constant 12 : index
    %c0_1065 = arith.constant 0 : index
    %c2_1066 = arith.constant 2 : index
    %746 = vector.load %arg7[%c12_1064, %c0_1065, %c2_1066] : memref<18x4x18xf32, #tpu.memory_space<vmem>>, vector<1x4x16xf32>
    %747 = vector.shape_cast %746 : vector<1x4x16xf32> to vector<4x16xf32>
    %c8_1067 = arith.constant 8 : index
    %c192_1068 = arith.constant 192 : index
    %748 = vector.load %arg8[%c8_1067, %c192_1068] : memref<36x256xf32, #tpu.memory_space<vmem>>, vector<4x16xf32>
    tpu.vector_store %arg8[%c8_1067, %c192_1068], %747 {strides = array<i32>} : memref<36x256xf32, #tpu.memory_space<vmem>>, vector<4x16xf32>,
    %c13_1069 = arith.constant 13 : index
    %c0_1070 = arith.constant 0 : index
    %c2_1071 = arith.constant 2 : index
    %749 = vector.load %arg7[%c13_1069, %c0_1070, %c2_1071] : memref<18x4x18xf32, #tpu.memory_space<vmem>>, vector<1x4x16xf32>
    %750 = vector.shape_cast %749 : vector<1x4x16xf32> to vector<4x16xf32>
    %c8_1072 = arith.constant 8 : index
    %c208_1073 = arith.constant 208 : index
    %751 = vector.load %arg8[%c8_1072, %c208_1073] : memref<36x256xf32, #tpu.memory_space<vmem>>, vector<4x16xf32>
    tpu.vector_store %arg8[%c8_1072, %c208_1073], %750 {strides = array<i32>} : memref<36x256xf32, #tpu.memory_space<vmem>>, vector<4x16xf32>,
    %c14_1074 = arith.constant 14 : index
    %c0_1075 = arith.constant 0 : index
    %c2_1076 = arith.constant 2 : index
    %752 = vector.load %arg7[%c14_1074, %c0_1075, %c2_1076] : memref<18x4x18xf32, #tpu.memory_space<vmem>>, vector<1x4x16xf32>
    %753 = vector.shape_cast %752 : vector<1x4x16xf32> to vector<4x16xf32>
    %c8_1077 = arith.constant 8 : index
    %c224_1078 = arith.constant 224 : index
    %754 = vector.load %arg8[%c8_1077, %c224_1078] : memref<36x256xf32, #tpu.memory_space<vmem>>, vector<4x16xf32>
    tpu.vector_store %arg8[%c8_1077, %c224_1078], %753 {strides = array<i32>} : memref<36x256xf32, #tpu.memory_space<vmem>>, vector<4x16xf32>,
    %c15_1079 = arith.constant 15 : index
    %c0_1080 = arith.constant 0 : index
    %c2_1081 = arith.constant 2 : index
    %755 = vector.load %arg7[%c15_1079, %c0_1080, %c2_1081] : memref<18x4x18xf32, #tpu.memory_space<vmem>>, vector<1x4x16xf32>
    %756 = vector.shape_cast %755 : vector<1x4x16xf32> to vector<4x16xf32>
    %c8_1082 = arith.constant 8 : index
    %c240_1083 = arith.constant 240 : index
    %757 = vector.load %arg8[%c8_1082, %c240_1083] : memref<36x256xf32, #tpu.memory_space<vmem>>, vector<4x16xf32>
    tpu.vector_store %arg8[%c8_1082, %c240_1083], %756 {strides = array<i32>} : memref<36x256xf32, #tpu.memory_space<vmem>>, vector<4x16xf32>,
    %c1_1084 = arith.constant 1 : index
    %c0_1085 = arith.constant 0 : index
    %c0_1086 = arith.constant 0 : index
    %758 = vector.load %arg7[%c1_1084, %c0_1085, %c0_1086] : memref<18x4x18xf32, #tpu.memory_space<vmem>>, vector<1x4x16xf32>
    %759 = vector.shape_cast %758 : vector<1x4x16xf32> to vector<4x16xf32>
    %c12_1087 = arith.constant 12 : index
    %c0_1088 = arith.constant 0 : index
    %760 = vector.load %arg8[%c12_1087, %c0_1088] : memref<36x256xf32, #tpu.memory_space<vmem>>, vector<4x16xf32>
    tpu.vector_store %arg8[%c12_1087, %c0_1088], %759 {strides = array<i32>} : memref<36x256xf32, #tpu.memory_space<vmem>>, vector<4x16xf32>,
    %c2_1089 = arith.constant 2 : index
    %c0_1090 = arith.constant 0 : index
    %c0_1091 = arith.constant 0 : index
    %761 = vector.load %arg7[%c2_1089, %c0_1090, %c0_1091] : memref<18x4x18xf32, #tpu.memory_space<vmem>>, vector<1x4x16xf32>
    %762 = vector.shape_cast %761 : vector<1x4x16xf32> to vector<4x16xf32>
    %c12_1092 = arith.constant 12 : index
    %c16_1093 = arith.constant 16 : index
    %763 = vector.load %arg8[%c12_1092, %c16_1093] : memref<36x256xf32, #tpu.memory_space<vmem>>, vector<4x16xf32>
    tpu.vector_store %arg8[%c12_1092, %c16_1093], %762 {strides = array<i32>} : memref<36x256xf32, #tpu.memory_space<vmem>>, vector<4x16xf32>,
    %c3_1094 = arith.constant 3 : index
    %c0_1095 = arith.constant 0 : index
    %c0_1096 = arith.constant 0 : index
    %764 = vector.load %arg7[%c3_1094, %c0_1095, %c0_1096] : memref<18x4x18xf32, #tpu.memory_space<vmem>>, vector<1x4x16xf32>
    %765 = vector.shape_cast %764 : vector<1x4x16xf32> to vector<4x16xf32>
    %c12_1097 = arith.constant 12 : index
    %c32_1098 = arith.constant 32 : index
    %766 = vector.load %arg8[%c12_1097, %c32_1098] : memref<36x256xf32, #tpu.memory_space<vmem>>, vector<4x16xf32>
    tpu.vector_store %arg8[%c12_1097, %c32_1098], %765 {strides = array<i32>} : memref<36x256xf32, #tpu.memory_space<vmem>>, vector<4x16xf32>,
    %c4_1099 = arith.constant 4 : index
    %c0_1100 = arith.constant 0 : index
    %c0_1101 = arith.constant 0 : index
    %767 = vector.load %arg7[%c4_1099, %c0_1100, %c0_1101] : memref<18x4x18xf32, #tpu.memory_space<vmem>>, vector<1x4x16xf32>
    %768 = vector.shape_cast %767 : vector<1x4x16xf32> to vector<4x16xf32>
    %c12_1102 = arith.constant 12 : index
    %c48_1103 = arith.constant 48 : index
    %769 = vector.load %arg8[%c12_1102, %c48_1103] : memref<36x256xf32, #tpu.memory_space<vmem>>, vector<4x16xf32>
    tpu.vector_store %arg8[%c12_1102, %c48_1103], %768 {strides = array<i32>} : memref<36x256xf32, #tpu.memory_space<vmem>>, vector<4x16xf32>,
    %c5_1104 = arith.constant 5 : index
    %c0_1105 = arith.constant 0 : index
    %c0_1106 = arith.constant 0 : index
    %770 = vector.load %arg7[%c5_1104, %c0_1105, %c0_1106] : memref<18x4x18xf32, #tpu.memory_space<vmem>>, vector<1x4x16xf32>
    %771 = vector.shape_cast %770 : vector<1x4x16xf32> to vector<4x16xf32>
    %c12_1107 = arith.constant 12 : index
    %c64_1108 = arith.constant 64 : index
    %772 = vector.load %arg8[%c12_1107, %c64_1108] : memref<36x256xf32, #tpu.memory_space<vmem>>, vector<4x16xf32>
    tpu.vector_store %arg8[%c12_1107, %c64_1108], %771 {strides = array<i32>} : memref<36x256xf32, #tpu.memory_space<vmem>>, vector<4x16xf32>,
    %c6_1109 = arith.constant 6 : index
    %c0_1110 = arith.constant 0 : index
    %c0_1111 = arith.constant 0 : index
    %773 = vector.load %arg7[%c6_1109, %c0_1110, %c0_1111] : memref<18x4x18xf32, #tpu.memory_space<vmem>>, vector<1x4x16xf32>
    %774 = vector.shape_cast %773 : vector<1x4x16xf32> to vector<4x16xf32>
    %c12_1112 = arith.constant 12 : index
    %c80_1113 = arith.constant 80 : index
    %775 = vector.load %arg8[%c12_1112, %c80_1113] : memref<36x256xf32, #tpu.memory_space<vmem>>, vector<4x16xf32>
    tpu.vector_store %arg8[%c12_1112, %c80_1113], %774 {strides = array<i32>} : memref<36x256xf32, #tpu.memory_space<vmem>>, vector<4x16xf32>,
    %c7_1114 = arith.constant 7 : index
    %c0_1115 = arith.constant 0 : index
    %c0_1116 = arith.constant 0 : index
    %776 = vector.load %arg7[%c7_1114, %c0_1115, %c0_1116] : memref<18x4x18xf32, #tpu.memory_space<vmem>>, vector<1x4x16xf32>
    %777 = vector.shape_cast %776 : vector<1x4x16xf32> to vector<4x16xf32>
    %c12_1117 = arith.constant 12 : index
    %c96_1118 = arith.constant 96 : index
    %778 = vector.load %arg8[%c12_1117, %c96_1118] : memref<36x256xf32, #tpu.memory_space<vmem>>, vector<4x16xf32>
    tpu.vector_store %arg8[%c12_1117, %c96_1118], %777 {strides = array<i32>} : memref<36x256xf32, #tpu.memory_space<vmem>>, vector<4x16xf32>,
    %c8_1119 = arith.constant 8 : index
    %c0_1120 = arith.constant 0 : index
    %c0_1121 = arith.constant 0 : index
    %779 = vector.load %arg7[%c8_1119, %c0_1120, %c0_1121] : memref<18x4x18xf32, #tpu.memory_space<vmem>>, vector<1x4x16xf32>
    %780 = vector.shape_cast %779 : vector<1x4x16xf32> to vector<4x16xf32>
    %c12_1122 = arith.constant 12 : index
    %c112_1123 = arith.constant 112 : index
    %781 = vector.load %arg8[%c12_1122, %c112_1123] : memref<36x256xf32, #tpu.memory_space<vmem>>, vector<4x16xf32>
    tpu.vector_store %arg8[%c12_1122, %c112_1123], %780 {strides = array<i32>} : memref<36x256xf32, #tpu.memory_space<vmem>>, vector<4x16xf32>,
    %c9_1124 = arith.constant 9 : index
    %c0_1125 = arith.constant 0 : index
    %c0_1126 = arith.constant 0 : index
    %782 = vector.load %arg7[%c9_1124, %c0_1125, %c0_1126] : memref<18x4x18xf32, #tpu.memory_space<vmem>>, vector<1x4x16xf32>
    %783 = vector.shape_cast %782 : vector<1x4x16xf32> to vector<4x16xf32>
    %c12_1127 = arith.constant 12 : index
    %c128_1128 = arith.constant 128 : index
    %784 = vector.load %arg8[%c12_1127, %c128_1128] : memref<36x256xf32, #tpu.memory_space<vmem>>, vector<4x16xf32>
    tpu.vector_store %arg8[%c12_1127, %c128_1128], %783 {strides = array<i32>} : memref<36x256xf32, #tpu.memory_space<vmem>>, vector<4x16xf32>,
    %c10_1129 = arith.constant 10 : index
    %c0_1130 = arith.constant 0 : index
    %c0_1131 = arith.constant 0 : index
    %785 = vector.load %arg7[%c10_1129, %c0_1130, %c0_1131] : memref<18x4x18xf32, #tpu.memory_space<vmem>>, vector<1x4x16xf32>
    %786 = vector.shape_cast %785 : vector<1x4x16xf32> to vector<4x16xf32>
    %c12_1132 = arith.constant 12 : index
    %c144_1133 = arith.constant 144 : index
    %787 = vector.load %arg8[%c12_1132, %c144_1133] : memref<36x256xf32, #tpu.memory_space<vmem>>, vector<4x16xf32>
    tpu.vector_store %arg8[%c12_1132, %c144_1133], %786 {strides = array<i32>} : memref<36x256xf32, #tpu.memory_space<vmem>>, vector<4x16xf32>,
    %c11_1134 = arith.constant 11 : index
    %c0_1135 = arith.constant 0 : index
    %c0_1136 = arith.constant 0 : index
    %788 = vector.load %arg7[%c11_1134, %c0_1135, %c0_1136] : memref<18x4x18xf32, #tpu.memory_space<vmem>>, vector<1x4x16xf32>
    %789 = vector.shape_cast %788 : vector<1x4x16xf32> to vector<4x16xf32>
    %c12_1137 = arith.constant 12 : index
    %c160_1138 = arith.constant 160 : index
    %790 = vector.load %arg8[%c12_1137, %c160_1138] : memref<36x256xf32, #tpu.memory_space<vmem>>, vector<4x16xf32>
    tpu.vector_store %arg8[%c12_1137, %c160_1138], %789 {strides = array<i32>} : memref<36x256xf32, #tpu.memory_space<vmem>>, vector<4x16xf32>,
    %c12_1139 = arith.constant 12 : index
    %c0_1140 = arith.constant 0 : index
    %c0_1141 = arith.constant 0 : index
    %791 = vector.load %arg7[%c12_1139, %c0_1140, %c0_1141] : memref<18x4x18xf32, #tpu.memory_space<vmem>>, vector<1x4x16xf32>
    %792 = vector.shape_cast %791 : vector<1x4x16xf32> to vector<4x16xf32>
    %c12_1142 = arith.constant 12 : index
    %c176_1143 = arith.constant 176 : index
    %793 = vector.load %arg8[%c12_1142, %c176_1143] : memref<36x256xf32, #tpu.memory_space<vmem>>, vector<4x16xf32>
    tpu.vector_store %arg8[%c12_1142, %c176_1143], %792 {strides = array<i32>} : memref<36x256xf32, #tpu.memory_space<vmem>>, vector<4x16xf32>,
    %c13_1144 = arith.constant 13 : index
    %c0_1145 = arith.constant 0 : index
    %c0_1146 = arith.constant 0 : index
    %794 = vector.load %arg7[%c13_1144, %c0_1145, %c0_1146] : memref<18x4x18xf32, #tpu.memory_space<vmem>>, vector<1x4x16xf32>
    %795 = vector.shape_cast %794 : vector<1x4x16xf32> to vector<4x16xf32>
    %c12_1147 = arith.constant 12 : index
    %c192_1148 = arith.constant 192 : index
    %796 = vector.load %arg8[%c12_1147, %c192_1148] : memref<36x256xf32, #tpu.memory_space<vmem>>, vector<4x16xf32>
    tpu.vector_store %arg8[%c12_1147, %c192_1148], %795 {strides = array<i32>} : memref<36x256xf32, #tpu.memory_space<vmem>>, vector<4x16xf32>,
    %c14_1149 = arith.constant 14 : index
    %c0_1150 = arith.constant 0 : index
    %c0_1151 = arith.constant 0 : index
    %797 = vector.load %arg7[%c14_1149, %c0_1150, %c0_1151] : memref<18x4x18xf32, #tpu.memory_space<vmem>>, vector<1x4x16xf32>
    %798 = vector.shape_cast %797 : vector<1x4x16xf32> to vector<4x16xf32>
    %c12_1152 = arith.constant 12 : index
    %c208_1153 = arith.constant 208 : index
    %799 = vector.load %arg8[%c12_1152, %c208_1153] : memref<36x256xf32, #tpu.memory_space<vmem>>, vector<4x16xf32>
    tpu.vector_store %arg8[%c12_1152, %c208_1153], %798 {strides = array<i32>} : memref<36x256xf32, #tpu.memory_space<vmem>>, vector<4x16xf32>,
    %c15_1154 = arith.constant 15 : index
    %c0_1155 = arith.constant 0 : index
    %c0_1156 = arith.constant 0 : index
    %800 = vector.load %arg7[%c15_1154, %c0_1155, %c0_1156] : memref<18x4x18xf32, #tpu.memory_space<vmem>>, vector<1x4x16xf32>
    %801 = vector.shape_cast %800 : vector<1x4x16xf32> to vector<4x16xf32>
    %c12_1157 = arith.constant 12 : index
    %c224_1158 = arith.constant 224 : index
    %802 = vector.load %arg8[%c12_1157, %c224_1158] : memref<36x256xf32, #tpu.memory_space<vmem>>, vector<4x16xf32>
    tpu.vector_store %arg8[%c12_1157, %c224_1158], %801 {strides = array<i32>} : memref<36x256xf32, #tpu.memory_space<vmem>>, vector<4x16xf32>,
    %c16_1159 = arith.constant 16 : index
    %c0_1160 = arith.constant 0 : index
    %c0_1161 = arith.constant 0 : index
    %803 = vector.load %arg7[%c16_1159, %c0_1160, %c0_1161] : memref<18x4x18xf32, #tpu.memory_space<vmem>>, vector<1x4x16xf32>
    %804 = vector.shape_cast %803 : vector<1x4x16xf32> to vector<4x16xf32>
    %c12_1162 = arith.constant 12 : index
    %c240_1163 = arith.constant 240 : index
    %805 = vector.load %arg8[%c12_1162, %c240_1163] : memref<36x256xf32, #tpu.memory_space<vmem>>, vector<4x16xf32>
    tpu.vector_store %arg8[%c12_1162, %c240_1163], %804 {strides = array<i32>} : memref<36x256xf32, #tpu.memory_space<vmem>>, vector<4x16xf32>,
    %c1_1164 = arith.constant 1 : index
    %c0_1165 = arith.constant 0 : index
    %c1_1166 = arith.constant 1 : index
    %806 = vector.load %arg7[%c1_1164, %c0_1165, %c1_1166] : memref<18x4x18xf32, #tpu.memory_space<vmem>>, vector<1x4x16xf32>
    %807 = vector.shape_cast %806 : vector<1x4x16xf32> to vector<4x16xf32>
    %c16_1167 = arith.constant 16 : index
    %c0_1168 = arith.constant 0 : index
    %808 = vector.load %arg8[%c16_1167, %c0_1168] : memref<36x256xf32, #tpu.memory_space<vmem>>, vector<4x16xf32>
    tpu.vector_store %arg8[%c16_1167, %c0_1168], %807 {strides = array<i32>} : memref<36x256xf32, #tpu.memory_space<vmem>>, vector<4x16xf32>,
    %c2_1169 = arith.constant 2 : index
    %c0_1170 = arith.constant 0 : index
    %c1_1171 = arith.constant 1 : index
    %809 = vector.load %arg7[%c2_1169, %c0_1170, %c1_1171] : memref<18x4x18xf32, #tpu.memory_space<vmem>>, vector<1x4x16xf32>
    %810 = vector.shape_cast %809 : vector<1x4x16xf32> to vector<4x16xf32>
    %c16_1172 = arith.constant 16 : index
    %c16_1173 = arith.constant 16 : index
    %811 = vector.load %arg8[%c16_1172, %c16_1173] : memref<36x256xf32, #tpu.memory_space<vmem>>, vector<4x16xf32>
    tpu.vector_store %arg8[%c16_1172, %c16_1173], %810 {strides = array<i32>} : memref<36x256xf32, #tpu.memory_space<vmem>>, vector<4x16xf32>,
    %c3_1174 = arith.constant 3 : index
    %c0_1175 = arith.constant 0 : index
    %c1_1176 = arith.constant 1 : index
    %812 = vector.load %arg7[%c3_1174, %c0_1175, %c1_1176] : memref<18x4x18xf32, #tpu.memory_space<vmem>>, vector<1x4x16xf32>
    %813 = vector.shape_cast %812 : vector<1x4x16xf32> to vector<4x16xf32>
    %c16_1177 = arith.constant 16 : index
    %c32_1178 = arith.constant 32 : index
    %814 = vector.load %arg8[%c16_1177, %c32_1178] : memref<36x256xf32, #tpu.memory_space<vmem>>, vector<4x16xf32>
    tpu.vector_store %arg8[%c16_1177, %c32_1178], %813 {strides = array<i32>} : memref<36x256xf32, #tpu.memory_space<vmem>>, vector<4x16xf32>,
    %c4_1179 = arith.constant 4 : index
    %c0_1180 = arith.constant 0 : index
    %c1_1181 = arith.constant 1 : index
    %815 = vector.load %arg7[%c4_1179, %c0_1180, %c1_1181] : memref<18x4x18xf32, #tpu.memory_space<vmem>>, vector<1x4x16xf32>
    %816 = vector.shape_cast %815 : vector<1x4x16xf32> to vector<4x16xf32>
    %c16_1182 = arith.constant 16 : index
    %c48_1183 = arith.constant 48 : index
    %817 = vector.load %arg8[%c16_1182, %c48_1183] : memref<36x256xf32, #tpu.memory_space<vmem>>, vector<4x16xf32>
    tpu.vector_store %arg8[%c16_1182, %c48_1183], %816 {strides = array<i32>} : memref<36x256xf32, #tpu.memory_space<vmem>>, vector<4x16xf32>,
    %c5_1184 = arith.constant 5 : index
    %c0_1185 = arith.constant 0 : index
    %c1_1186 = arith.constant 1 : index
    %818 = vector.load %arg7[%c5_1184, %c0_1185, %c1_1186] : memref<18x4x18xf32, #tpu.memory_space<vmem>>, vector<1x4x16xf32>
    %819 = vector.shape_cast %818 : vector<1x4x16xf32> to vector<4x16xf32>
    %c16_1187 = arith.constant 16 : index
    %c64_1188 = arith.constant 64 : index
    %820 = vector.load %arg8[%c16_1187, %c64_1188] : memref<36x256xf32, #tpu.memory_space<vmem>>, vector<4x16xf32>
    tpu.vector_store %arg8[%c16_1187, %c64_1188], %819 {strides = array<i32>} : memref<36x256xf32, #tpu.memory_space<vmem>>, vector<4x16xf32>,
    %c6_1189 = arith.constant 6 : index
    %c0_1190 = arith.constant 0 : index
    %c1_1191 = arith.constant 1 : index
    %821 = vector.load %arg7[%c6_1189, %c0_1190, %c1_1191] : memref<18x4x18xf32, #tpu.memory_space<vmem>>, vector<1x4x16xf32>
    %822 = vector.shape_cast %821 : vector<1x4x16xf32> to vector<4x16xf32>
    %c16_1192 = arith.constant 16 : index
    %c80_1193 = arith.constant 80 : index
    %823 = vector.load %arg8[%c16_1192, %c80_1193] : memref<36x256xf32, #tpu.memory_space<vmem>>, vector<4x16xf32>
    tpu.vector_store %arg8[%c16_1192, %c80_1193], %822 {strides = array<i32>} : memref<36x256xf32, #tpu.memory_space<vmem>>, vector<4x16xf32>,
    %c7_1194 = arith.constant 7 : index
    %c0_1195 = arith.constant 0 : index
    %c1_1196 = arith.constant 1 : index
    %824 = vector.load %arg7[%c7_1194, %c0_1195, %c1_1196] : memref<18x4x18xf32, #tpu.memory_space<vmem>>, vector<1x4x16xf32>
    %825 = vector.shape_cast %824 : vector<1x4x16xf32> to vector<4x16xf32>
    %c16_1197 = arith.constant 16 : index
    %c96_1198 = arith.constant 96 : index
    %826 = vector.load %arg8[%c16_1197, %c96_1198] : memref<36x256xf32, #tpu.memory_space<vmem>>, vector<4x16xf32>
    tpu.vector_store %arg8[%c16_1197, %c96_1198], %825 {strides = array<i32>} : memref<36x256xf32, #tpu.memory_space<vmem>>, vector<4x16xf32>,
    %c8_1199 = arith.constant 8 : index
    %c0_1200 = arith.constant 0 : index
    %c1_1201 = arith.constant 1 : index
    %827 = vector.load %arg7[%c8_1199, %c0_1200, %c1_1201] : memref<18x4x18xf32, #tpu.memory_space<vmem>>, vector<1x4x16xf32>
    %828 = vector.shape_cast %827 : vector<1x4x16xf32> to vector<4x16xf32>
    %c16_1202 = arith.constant 16 : index
    %c112_1203 = arith.constant 112 : index
    %829 = vector.load %arg8[%c16_1202, %c112_1203] : memref<36x256xf32, #tpu.memory_space<vmem>>, vector<4x16xf32>
    tpu.vector_store %arg8[%c16_1202, %c112_1203], %828 {strides = array<i32>} : memref<36x256xf32, #tpu.memory_space<vmem>>, vector<4x16xf32>,
    %c9_1204 = arith.constant 9 : index
    %c0_1205 = arith.constant 0 : index
    %c1_1206 = arith.constant 1 : index
    %830 = vector.load %arg7[%c9_1204, %c0_1205, %c1_1206] : memref<18x4x18xf32, #tpu.memory_space<vmem>>, vector<1x4x16xf32>
    %831 = vector.shape_cast %830 : vector<1x4x16xf32> to vector<4x16xf32>
    %c16_1207 = arith.constant 16 : index
    %c128_1208 = arith.constant 128 : index
    %832 = vector.load %arg8[%c16_1207, %c128_1208] : memref<36x256xf32, #tpu.memory_space<vmem>>, vector<4x16xf32>
    tpu.vector_store %arg8[%c16_1207, %c128_1208], %831 {strides = array<i32>} : memref<36x256xf32, #tpu.memory_space<vmem>>, vector<4x16xf32>,
    %c10_1209 = arith.constant 10 : index
    %c0_1210 = arith.constant 0 : index
    %c1_1211 = arith.constant 1 : index
    %833 = vector.load %arg7[%c10_1209, %c0_1210, %c1_1211] : memref<18x4x18xf32, #tpu.memory_space<vmem>>, vector<1x4x16xf32>
    %834 = vector.shape_cast %833 : vector<1x4x16xf32> to vector<4x16xf32>
    %c16_1212 = arith.constant 16 : index
    %c144_1213 = arith.constant 144 : index
    %835 = vector.load %arg8[%c16_1212, %c144_1213] : memref<36x256xf32, #tpu.memory_space<vmem>>, vector<4x16xf32>
    tpu.vector_store %arg8[%c16_1212, %c144_1213], %834 {strides = array<i32>} : memref<36x256xf32, #tpu.memory_space<vmem>>, vector<4x16xf32>,
    %c11_1214 = arith.constant 11 : index
    %c0_1215 = arith.constant 0 : index
    %c1_1216 = arith.constant 1 : index
    %836 = vector.load %arg7[%c11_1214, %c0_1215, %c1_1216] : memref<18x4x18xf32, #tpu.memory_space<vmem>>, vector<1x4x16xf32>
    %837 = vector.shape_cast %836 : vector<1x4x16xf32> to vector<4x16xf32>
    %c16_1217 = arith.constant 16 : index
    %c160_1218 = arith.constant 160 : index
    %838 = vector.load %arg8[%c16_1217, %c160_1218] : memref<36x256xf32, #tpu.memory_space<vmem>>, vector<4x16xf32>
    tpu.vector_store %arg8[%c16_1217, %c160_1218], %837 {strides = array<i32>} : memref<36x256xf32, #tpu.memory_space<vmem>>, vector<4x16xf32>,
    %c12_1219 = arith.constant 12 : index
    %c0_1220 = arith.constant 0 : index
    %c1_1221 = arith.constant 1 : index
    %839 = vector.load %arg7[%c12_1219, %c0_1220, %c1_1221] : memref<18x4x18xf32, #tpu.memory_space<vmem>>, vector<1x4x16xf32>
    %840 = vector.shape_cast %839 : vector<1x4x16xf32> to vector<4x16xf32>
    %c16_1222 = arith.constant 16 : index
    %c176_1223 = arith.constant 176 : index
    %841 = vector.load %arg8[%c16_1222, %c176_1223] : memref<36x256xf32, #tpu.memory_space<vmem>>, vector<4x16xf32>
    tpu.vector_store %arg8[%c16_1222, %c176_1223], %840 {strides = array<i32>} : memref<36x256xf32, #tpu.memory_space<vmem>>, vector<4x16xf32>,
    %c13_1224 = arith.constant 13 : index
    %c0_1225 = arith.constant 0 : index
    %c1_1226 = arith.constant 1 : index
    %842 = vector.load %arg7[%c13_1224, %c0_1225, %c1_1226] : memref<18x4x18xf32, #tpu.memory_space<vmem>>, vector<1x4x16xf32>
    %843 = vector.shape_cast %842 : vector<1x4x16xf32> to vector<4x16xf32>
    %c16_1227 = arith.constant 16 : index
    %c192_1228 = arith.constant 192 : index
    %844 = vector.load %arg8[%c16_1227, %c192_1228] : memref<36x256xf32, #tpu.memory_space<vmem>>, vector<4x16xf32>
    tpu.vector_store %arg8[%c16_1227, %c192_1228], %843 {strides = array<i32>} : memref<36x256xf32, #tpu.memory_space<vmem>>, vector<4x16xf32>,
    %c14_1229 = arith.constant 14 : index
    %c0_1230 = arith.constant 0 : index
    %c1_1231 = arith.constant 1 : index
    %845 = vector.load %arg7[%c14_1229, %c0_1230, %c1_1231] : memref<18x4x18xf32, #tpu.memory_space<vmem>>, vector<1x4x16xf32>
    %846 = vector.shape_cast %845 : vector<1x4x16xf32> to vector<4x16xf32>
    %c16_1232 = arith.constant 16 : index
    %c208_1233 = arith.constant 208 : index
    %847 = vector.load %arg8[%c16_1232, %c208_1233] : memref<36x256xf32, #tpu.memory_space<vmem>>, vector<4x16xf32>
    tpu.vector_store %arg8[%c16_1232, %c208_1233], %846 {strides = array<i32>} : memref<36x256xf32, #tpu.memory_space<vmem>>, vector<4x16xf32>,
    %c15_1234 = arith.constant 15 : index
    %c0_1235 = arith.constant 0 : index
    %c1_1236 = arith.constant 1 : index
    %848 = vector.load %arg7[%c15_1234, %c0_1235, %c1_1236] : memref<18x4x18xf32, #tpu.memory_space<vmem>>, vector<1x4x16xf32>
    %849 = vector.shape_cast %848 : vector<1x4x16xf32> to vector<4x16xf32>
    %c16_1237 = arith.constant 16 : index
    %c224_1238 = arith.constant 224 : index
    %850 = vector.load %arg8[%c16_1237, %c224_1238] : memref<36x256xf32, #tpu.memory_space<vmem>>, vector<4x16xf32>
    tpu.vector_store %arg8[%c16_1237, %c224_1238], %849 {strides = array<i32>} : memref<36x256xf32, #tpu.memory_space<vmem>>, vector<4x16xf32>,
    %c16_1239 = arith.constant 16 : index
    %c0_1240 = arith.constant 0 : index
    %c1_1241 = arith.constant 1 : index
    %851 = vector.load %arg7[%c16_1239, %c0_1240, %c1_1241] : memref<18x4x18xf32, #tpu.memory_space<vmem>>, vector<1x4x16xf32>
    %852 = vector.shape_cast %851 : vector<1x4x16xf32> to vector<4x16xf32>
    %c16_1242 = arith.constant 16 : index
    %c240_1243 = arith.constant 240 : index
    %853 = vector.load %arg8[%c16_1242, %c240_1243] : memref<36x256xf32, #tpu.memory_space<vmem>>, vector<4x16xf32>
    tpu.vector_store %arg8[%c16_1242, %c240_1243], %852 {strides = array<i32>} : memref<36x256xf32, #tpu.memory_space<vmem>>, vector<4x16xf32>,
    %c1_1244 = arith.constant 1 : index
    %c0_1245 = arith.constant 0 : index
    %c2_1246 = arith.constant 2 : index
    %854 = vector.load %arg7[%c1_1244, %c0_1245, %c2_1246] : memref<18x4x18xf32, #tpu.memory_space<vmem>>, vector<1x4x16xf32>
    %855 = vector.shape_cast %854 : vector<1x4x16xf32> to vector<4x16xf32>
    %c20_1247 = arith.constant 20 : index
    %c0_1248 = arith.constant 0 : index
    %856 = vector.load %arg8[%c20_1247, %c0_1248] : memref<36x256xf32, #tpu.memory_space<vmem>>, vector<4x16xf32>
    tpu.vector_store %arg8[%c20_1247, %c0_1248], %855 {strides = array<i32>} : memref<36x256xf32, #tpu.memory_space<vmem>>, vector<4x16xf32>,
    %c2_1249 = arith.constant 2 : index
    %c0_1250 = arith.constant 0 : index
    %c2_1251 = arith.constant 2 : index
    %857 = vector.load %arg7[%c2_1249, %c0_1250, %c2_1251] : memref<18x4x18xf32, #tpu.memory_space<vmem>>, vector<1x4x16xf32>
    %858 = vector.shape_cast %857 : vector<1x4x16xf32> to vector<4x16xf32>
    %c20_1252 = arith.constant 20 : index
    %c16_1253 = arith.constant 16 : index
    %859 = vector.load %arg8[%c20_1252, %c16_1253] : memref<36x256xf32, #tpu.memory_space<vmem>>, vector<4x16xf32>
    tpu.vector_store %arg8[%c20_1252, %c16_1253], %858 {strides = array<i32>} : memref<36x256xf32, #tpu.memory_space<vmem>>, vector<4x16xf32>,
    %c3_1254 = arith.constant 3 : index
    %c0_1255 = arith.constant 0 : index
    %c2_1256 = arith.constant 2 : index
    %860 = vector.load %arg7[%c3_1254, %c0_1255, %c2_1256] : memref<18x4x18xf32, #tpu.memory_space<vmem>>, vector<1x4x16xf32>
    %861 = vector.shape_cast %860 : vector<1x4x16xf32> to vector<4x16xf32>
    %c20_1257 = arith.constant 20 : index
    %c32_1258 = arith.constant 32 : index
    %862 = vector.load %arg8[%c20_1257, %c32_1258] : memref<36x256xf32, #tpu.memory_space<vmem>>, vector<4x16xf32>
    tpu.vector_store %arg8[%c20_1257, %c32_1258], %861 {strides = array<i32>} : memref<36x256xf32, #tpu.memory_space<vmem>>, vector<4x16xf32>,
    %c4_1259 = arith.constant 4 : index
    %c0_1260 = arith.constant 0 : index
    %c2_1261 = arith.constant 2 : index
    %863 = vector.load %arg7[%c4_1259, %c0_1260, %c2_1261] : memref<18x4x18xf32, #tpu.memory_space<vmem>>, vector<1x4x16xf32>
    %864 = vector.shape_cast %863 : vector<1x4x16xf32> to vector<4x16xf32>
    %c20_1262 = arith.constant 20 : index
    %c48_1263 = arith.constant 48 : index
    %865 = vector.load %arg8[%c20_1262, %c48_1263] : memref<36x256xf32, #tpu.memory_space<vmem>>, vector<4x16xf32>
    tpu.vector_store %arg8[%c20_1262, %c48_1263], %864 {strides = array<i32>} : memref<36x256xf32, #tpu.memory_space<vmem>>, vector<4x16xf32>,
    %c5_1264 = arith.constant 5 : index
    %c0_1265 = arith.constant 0 : index
    %c2_1266 = arith.constant 2 : index
    %866 = vector.load %arg7[%c5_1264, %c0_1265, %c2_1266] : memref<18x4x18xf32, #tpu.memory_space<vmem>>, vector<1x4x16xf32>
    %867 = vector.shape_cast %866 : vector<1x4x16xf32> to vector<4x16xf32>
    %c20_1267 = arith.constant 20 : index
    %c64_1268 = arith.constant 64 : index
    %868 = vector.load %arg8[%c20_1267, %c64_1268] : memref<36x256xf32, #tpu.memory_space<vmem>>, vector<4x16xf32>
    tpu.vector_store %arg8[%c20_1267, %c64_1268], %867 {strides = array<i32>} : memref<36x256xf32, #tpu.memory_space<vmem>>, vector<4x16xf32>,
    %c6_1269 = arith.constant 6 : index
    %c0_1270 = arith.constant 0 : index
    %c2_1271 = arith.constant 2 : index
    %869 = vector.load %arg7[%c6_1269, %c0_1270, %c2_1271] : memref<18x4x18xf32, #tpu.memory_space<vmem>>, vector<1x4x16xf32>
    %870 = vector.shape_cast %869 : vector<1x4x16xf32> to vector<4x16xf32>
    %c20_1272 = arith.constant 20 : index
    %c80_1273 = arith.constant 80 : index
    %871 = vector.load %arg8[%c20_1272, %c80_1273] : memref<36x256xf32, #tpu.memory_space<vmem>>, vector<4x16xf32>
    tpu.vector_store %arg8[%c20_1272, %c80_1273], %870 {strides = array<i32>} : memref<36x256xf32, #tpu.memory_space<vmem>>, vector<4x16xf32>,
    %c7_1274 = arith.constant 7 : index
    %c0_1275 = arith.constant 0 : index
    %c2_1276 = arith.constant 2 : index
    %872 = vector.load %arg7[%c7_1274, %c0_1275, %c2_1276] : memref<18x4x18xf32, #tpu.memory_space<vmem>>, vector<1x4x16xf32>
    %873 = vector.shape_cast %872 : vector<1x4x16xf32> to vector<4x16xf32>
    %c20_1277 = arith.constant 20 : index
    %c96_1278 = arith.constant 96 : index
    %874 = vector.load %arg8[%c20_1277, %c96_1278] : memref<36x256xf32, #tpu.memory_space<vmem>>, vector<4x16xf32>
    tpu.vector_store %arg8[%c20_1277, %c96_1278], %873 {strides = array<i32>} : memref<36x256xf32, #tpu.memory_space<vmem>>, vector<4x16xf32>,
    %c8_1279 = arith.constant 8 : index
    %c0_1280 = arith.constant 0 : index
    %c2_1281 = arith.constant 2 : index
    %875 = vector.load %arg7[%c8_1279, %c0_1280, %c2_1281] : memref<18x4x18xf32, #tpu.memory_space<vmem>>, vector<1x4x16xf32>
    %876 = vector.shape_cast %875 : vector<1x4x16xf32> to vector<4x16xf32>
    %c20_1282 = arith.constant 20 : index
    %c112_1283 = arith.constant 112 : index
    %877 = vector.load %arg8[%c20_1282, %c112_1283] : memref<36x256xf32, #tpu.memory_space<vmem>>, vector<4x16xf32>
    tpu.vector_store %arg8[%c20_1282, %c112_1283], %876 {strides = array<i32>} : memref<36x256xf32, #tpu.memory_space<vmem>>, vector<4x16xf32>,
    %c9_1284 = arith.constant 9 : index
    %c0_1285 = arith.constant 0 : index
    %c2_1286 = arith.constant 2 : index
    %878 = vector.load %arg7[%c9_1284, %c0_1285, %c2_1286] : memref<18x4x18xf32, #tpu.memory_space<vmem>>, vector<1x4x16xf32>
    %879 = vector.shape_cast %878 : vector<1x4x16xf32> to vector<4x16xf32>
    %c20_1287 = arith.constant 20 : index
    %c128_1288 = arith.constant 128 : index
    %880 = vector.load %arg8[%c20_1287, %c128_1288] : memref<36x256xf32, #tpu.memory_space<vmem>>, vector<4x16xf32>
    tpu.vector_store %arg8[%c20_1287, %c128_1288], %879 {strides = array<i32>} : memref<36x256xf32, #tpu.memory_space<vmem>>, vector<4x16xf32>,
    %c10_1289 = arith.constant 10 : index
    %c0_1290 = arith.constant 0 : index
    %c2_1291 = arith.constant 2 : index
    %881 = vector.load %arg7[%c10_1289, %c0_1290, %c2_1291] : memref<18x4x18xf32, #tpu.memory_space<vmem>>, vector<1x4x16xf32>
    %882 = vector.shape_cast %881 : vector<1x4x16xf32> to vector<4x16xf32>
    %c20_1292 = arith.constant 20 : index
    %c144_1293 = arith.constant 144 : index
    %883 = vector.load %arg8[%c20_1292, %c144_1293] : memref<36x256xf32, #tpu.memory_space<vmem>>, vector<4x16xf32>
    tpu.vector_store %arg8[%c20_1292, %c144_1293], %882 {strides = array<i32>} : memref<36x256xf32, #tpu.memory_space<vmem>>, vector<4x16xf32>,
    %c11_1294 = arith.constant 11 : index
    %c0_1295 = arith.constant 0 : index
    %c2_1296 = arith.constant 2 : index
    %884 = vector.load %arg7[%c11_1294, %c0_1295, %c2_1296] : memref<18x4x18xf32, #tpu.memory_space<vmem>>, vector<1x4x16xf32>
    %885 = vector.shape_cast %884 : vector<1x4x16xf32> to vector<4x16xf32>
    %c20_1297 = arith.constant 20 : index
    %c160_1298 = arith.constant 160 : index
    %886 = vector.load %arg8[%c20_1297, %c160_1298] : memref<36x256xf32, #tpu.memory_space<vmem>>, vector<4x16xf32>
    tpu.vector_store %arg8[%c20_1297, %c160_1298], %885 {strides = array<i32>} : memref<36x256xf32, #tpu.memory_space<vmem>>, vector<4x16xf32>,
    %c12_1299 = arith.constant 12 : index
    %c0_1300 = arith.constant 0 : index
    %c2_1301 = arith.constant 2 : index
    %887 = vector.load %arg7[%c12_1299, %c0_1300, %c2_1301] : memref<18x4x18xf32, #tpu.memory_space<vmem>>, vector<1x4x16xf32>
    %888 = vector.shape_cast %887 : vector<1x4x16xf32> to vector<4x16xf32>
    %c20_1302 = arith.constant 20 : index
    %c176_1303 = arith.constant 176 : index
    %889 = vector.load %arg8[%c20_1302, %c176_1303] : memref<36x256xf32, #tpu.memory_space<vmem>>, vector<4x16xf32>
    tpu.vector_store %arg8[%c20_1302, %c176_1303], %888 {strides = array<i32>} : memref<36x256xf32, #tpu.memory_space<vmem>>, vector<4x16xf32>,
    %c13_1304 = arith.constant 13 : index
    %c0_1305 = arith.constant 0 : index
    %c2_1306 = arith.constant 2 : index
    %890 = vector.load %arg7[%c13_1304, %c0_1305, %c2_1306] : memref<18x4x18xf32, #tpu.memory_space<vmem>>, vector<1x4x16xf32>
    %891 = vector.shape_cast %890 : vector<1x4x16xf32> to vector<4x16xf32>
    %c20_1307 = arith.constant 20 : index
    %c192_1308 = arith.constant 192 : index
    %892 = vector.load %arg8[%c20_1307, %c192_1308] : memref<36x256xf32, #tpu.memory_space<vmem>>, vector<4x16xf32>
    tpu.vector_store %arg8[%c20_1307, %c192_1308], %891 {strides = array<i32>} : memref<36x256xf32, #tpu.memory_space<vmem>>, vector<4x16xf32>,
    %c14_1309 = arith.constant 14 : index
    %c0_1310 = arith.constant 0 : index
    %c2_1311 = arith.constant 2 : index
    %893 = vector.load %arg7[%c14_1309, %c0_1310, %c2_1311] : memref<18x4x18xf32, #tpu.memory_space<vmem>>, vector<1x4x16xf32>
    %894 = vector.shape_cast %893 : vector<1x4x16xf32> to vector<4x16xf32>
    %c20_1312 = arith.constant 20 : index
    %c208_1313 = arith.constant 208 : index
    %895 = vector.load %arg8[%c20_1312, %c208_1313] : memref<36x256xf32, #tpu.memory_space<vmem>>, vector<4x16xf32>
    tpu.vector_store %arg8[%c20_1312, %c208_1313], %894 {strides = array<i32>} : memref<36x256xf32, #tpu.memory_space<vmem>>, vector<4x16xf32>,
    %c15_1314 = arith.constant 15 : index
    %c0_1315 = arith.constant 0 : index
    %c2_1316 = arith.constant 2 : index
    %896 = vector.load %arg7[%c15_1314, %c0_1315, %c2_1316] : memref<18x4x18xf32, #tpu.memory_space<vmem>>, vector<1x4x16xf32>
    %897 = vector.shape_cast %896 : vector<1x4x16xf32> to vector<4x16xf32>
    %c20_1317 = arith.constant 20 : index
    %c224_1318 = arith.constant 224 : index
    %898 = vector.load %arg8[%c20_1317, %c224_1318] : memref<36x256xf32, #tpu.memory_space<vmem>>, vector<4x16xf32>
    tpu.vector_store %arg8[%c20_1317, %c224_1318], %897 {strides = array<i32>} : memref<36x256xf32, #tpu.memory_space<vmem>>, vector<4x16xf32>,
    %c16_1319 = arith.constant 16 : index
    %c0_1320 = arith.constant 0 : index
    %c2_1321 = arith.constant 2 : index
    %899 = vector.load %arg7[%c16_1319, %c0_1320, %c2_1321] : memref<18x4x18xf32, #tpu.memory_space<vmem>>, vector<1x4x16xf32>
    %900 = vector.shape_cast %899 : vector<1x4x16xf32> to vector<4x16xf32>
    %c20_1322 = arith.constant 20 : index
    %c240_1323 = arith.constant 240 : index
    %901 = vector.load %arg8[%c20_1322, %c240_1323] : memref<36x256xf32, #tpu.memory_space<vmem>>, vector<4x16xf32>
    tpu.vector_store %arg8[%c20_1322, %c240_1323], %900 {strides = array<i32>} : memref<36x256xf32, #tpu.memory_space<vmem>>, vector<4x16xf32>,
    %c2_1324 = arith.constant 2 : index
    %c0_1325 = arith.constant 0 : index
    %c0_1326 = arith.constant 0 : index
    %902 = vector.load %arg7[%c2_1324, %c0_1325, %c0_1326] : memref<18x4x18xf32, #tpu.memory_space<vmem>>, vector<1x4x16xf32>
    %903 = vector.shape_cast %902 : vector<1x4x16xf32> to vector<4x16xf32>
    %c24_1327 = arith.constant 24 : index
    %c0_1328 = arith.constant 0 : index
    %904 = vector.load %arg8[%c24_1327, %c0_1328] : memref<36x256xf32, #tpu.memory_space<vmem>>, vector<4x16xf32>
    tpu.vector_store %arg8[%c24_1327, %c0_1328], %903 {strides = array<i32>} : memref<36x256xf32, #tpu.memory_space<vmem>>, vector<4x16xf32>,
    %c3_1329 = arith.constant 3 : index
    %c0_1330 = arith.constant 0 : index
    %c0_1331 = arith.constant 0 : index
    %905 = vector.load %arg7[%c3_1329, %c0_1330, %c0_1331] : memref<18x4x18xf32, #tpu.memory_space<vmem>>, vector<1x4x16xf32>
    %906 = vector.shape_cast %905 : vector<1x4x16xf32> to vector<4x16xf32>
    %c24_1332 = arith.constant 24 : index
    %c16_1333 = arith.constant 16 : index
    %907 = vector.load %arg8[%c24_1332, %c16_1333] : memref<36x256xf32, #tpu.memory_space<vmem>>, vector<4x16xf32>
    tpu.vector_store %arg8[%c24_1332, %c16_1333], %906 {strides = array<i32>} : memref<36x256xf32, #tpu.memory_space<vmem>>, vector<4x16xf32>,
    %c4_1334 = arith.constant 4 : index
    %c0_1335 = arith.constant 0 : index
    %c0_1336 = arith.constant 0 : index
    %908 = vector.load %arg7[%c4_1334, %c0_1335, %c0_1336] : memref<18x4x18xf32, #tpu.memory_space<vmem>>, vector<1x4x16xf32>
    %909 = vector.shape_cast %908 : vector<1x4x16xf32> to vector<4x16xf32>
    %c24_1337 = arith.constant 24 : index
    %c32_1338 = arith.constant 32 : index
    %910 = vector.load %arg8[%c24_1337, %c32_1338] : memref<36x256xf32, #tpu.memory_space<vmem>>, vector<4x16xf32>
    tpu.vector_store %arg8[%c24_1337, %c32_1338], %909 {strides = array<i32>} : memref<36x256xf32, #tpu.memory_space<vmem>>, vector<4x16xf32>,
    %c5_1339 = arith.constant 5 : index
    %c0_1340 = arith.constant 0 : index
    %c0_1341 = arith.constant 0 : index
    %911 = vector.load %arg7[%c5_1339, %c0_1340, %c0_1341] : memref<18x4x18xf32, #tpu.memory_space<vmem>>, vector<1x4x16xf32>
    %912 = vector.shape_cast %911 : vector<1x4x16xf32> to vector<4x16xf32>
    %c24_1342 = arith.constant 24 : index
    %c48_1343 = arith.constant 48 : index
    %913 = vector.load %arg8[%c24_1342, %c48_1343] : memref<36x256xf32, #tpu.memory_space<vmem>>, vector<4x16xf32>
    tpu.vector_store %arg8[%c24_1342, %c48_1343], %912 {strides = array<i32>} : memref<36x256xf32, #tpu.memory_space<vmem>>, vector<4x16xf32>,
    %c6_1344 = arith.constant 6 : index
    %c0_1345 = arith.constant 0 : index
    %c0_1346 = arith.constant 0 : index
    %914 = vector.load %arg7[%c6_1344, %c0_1345, %c0_1346] : memref<18x4x18xf32, #tpu.memory_space<vmem>>, vector<1x4x16xf32>
    %915 = vector.shape_cast %914 : vector<1x4x16xf32> to vector<4x16xf32>
    %c24_1347 = arith.constant 24 : index
    %c64_1348 = arith.constant 64 : index
    %916 = vector.load %arg8[%c24_1347, %c64_1348] : memref<36x256xf32, #tpu.memory_space<vmem>>, vector<4x16xf32>
    tpu.vector_store %arg8[%c24_1347, %c64_1348], %915 {strides = array<i32>} : memref<36x256xf32, #tpu.memory_space<vmem>>, vector<4x16xf32>,
    %c7_1349 = arith.constant 7 : index
    %c0_1350 = arith.constant 0 : index
    %c0_1351 = arith.constant 0 : index
    %917 = vector.load %arg7[%c7_1349, %c0_1350, %c0_1351] : memref<18x4x18xf32, #tpu.memory_space<vmem>>, vector<1x4x16xf32>
    %918 = vector.shape_cast %917 : vector<1x4x16xf32> to vector<4x16xf32>
    %c24_1352 = arith.constant 24 : index
    %c80_1353 = arith.constant 80 : index
    %919 = vector.load %arg8[%c24_1352, %c80_1353] : memref<36x256xf32, #tpu.memory_space<vmem>>, vector<4x16xf32>
    tpu.vector_store %arg8[%c24_1352, %c80_1353], %918 {strides = array<i32>} : memref<36x256xf32, #tpu.memory_space<vmem>>, vector<4x16xf32>,
    %c8_1354 = arith.constant 8 : index
    %c0_1355 = arith.constant 0 : index
    %c0_1356 = arith.constant 0 : index
    %920 = vector.load %arg7[%c8_1354, %c0_1355, %c0_1356] : memref<18x4x18xf32, #tpu.memory_space<vmem>>, vector<1x4x16xf32>
    %921 = vector.shape_cast %920 : vector<1x4x16xf32> to vector<4x16xf32>
    %c24_1357 = arith.constant 24 : index
    %c96_1358 = arith.constant 96 : index
    %922 = vector.load %arg8[%c24_1357, %c96_1358] : memref<36x256xf32, #tpu.memory_space<vmem>>, vector<4x16xf32>
    tpu.vector_store %arg8[%c24_1357, %c96_1358], %921 {strides = array<i32>} : memref<36x256xf32, #tpu.memory_space<vmem>>, vector<4x16xf32>,
    %c9_1359 = arith.constant 9 : index
    %c0_1360 = arith.constant 0 : index
    %c0_1361 = arith.constant 0 : index
    %923 = vector.load %arg7[%c9_1359, %c0_1360, %c0_1361] : memref<18x4x18xf32, #tpu.memory_space<vmem>>, vector<1x4x16xf32>
    %924 = vector.shape_cast %923 : vector<1x4x16xf32> to vector<4x16xf32>
    %c24_1362 = arith.constant 24 : index
    %c112_1363 = arith.constant 112 : index
    %925 = vector.load %arg8[%c24_1362, %c112_1363] : memref<36x256xf32, #tpu.memory_space<vmem>>, vector<4x16xf32>
    tpu.vector_store %arg8[%c24_1362, %c112_1363], %924 {strides = array<i32>} : memref<36x256xf32, #tpu.memory_space<vmem>>, vector<4x16xf32>,
    %c10_1364 = arith.constant 10 : index
    %c0_1365 = arith.constant 0 : index
    %c0_1366 = arith.constant 0 : index
    %926 = vector.load %arg7[%c10_1364, %c0_1365, %c0_1366] : memref<18x4x18xf32, #tpu.memory_space<vmem>>, vector<1x4x16xf32>
    %927 = vector.shape_cast %926 : vector<1x4x16xf32> to vector<4x16xf32>
    %c24_1367 = arith.constant 24 : index
    %c128_1368 = arith.constant 128 : index
    %928 = vector.load %arg8[%c24_1367, %c128_1368] : memref<36x256xf32, #tpu.memory_space<vmem>>, vector<4x16xf32>
    tpu.vector_store %arg8[%c24_1367, %c128_1368], %927 {strides = array<i32>} : memref<36x256xf32, #tpu.memory_space<vmem>>, vector<4x16xf32>,
    %c11_1369 = arith.constant 11 : index
    %c0_1370 = arith.constant 0 : index
    %c0_1371 = arith.constant 0 : index
    %929 = vector.load %arg7[%c11_1369, %c0_1370, %c0_1371] : memref<18x4x18xf32, #tpu.memory_space<vmem>>, vector<1x4x16xf32>
    %930 = vector.shape_cast %929 : vector<1x4x16xf32> to vector<4x16xf32>
    %c24_1372 = arith.constant 24 : index
    %c144_1373 = arith.constant 144 : index
    %931 = vector.load %arg8[%c24_1372, %c144_1373] : memref<36x256xf32, #tpu.memory_space<vmem>>, vector<4x16xf32>
    tpu.vector_store %arg8[%c24_1372, %c144_1373], %930 {strides = array<i32>} : memref<36x256xf32, #tpu.memory_space<vmem>>, vector<4x16xf32>,
    %c12_1374 = arith.constant 12 : index
    %c0_1375 = arith.constant 0 : index
    %c0_1376 = arith.constant 0 : index
    %932 = vector.load %arg7[%c12_1374, %c0_1375, %c0_1376] : memref<18x4x18xf32, #tpu.memory_space<vmem>>, vector<1x4x16xf32>
    %933 = vector.shape_cast %932 : vector<1x4x16xf32> to vector<4x16xf32>
    %c24_1377 = arith.constant 24 : index
    %c160_1378 = arith.constant 160 : index
    %934 = vector.load %arg8[%c24_1377, %c160_1378] : memref<36x256xf32, #tpu.memory_space<vmem>>, vector<4x16xf32>
    tpu.vector_store %arg8[%c24_1377, %c160_1378], %933 {strides = array<i32>} : memref<36x256xf32, #tpu.memory_space<vmem>>, vector<4x16xf32>,
    %c13_1379 = arith.constant 13 : index
    %c0_1380 = arith.constant 0 : index
    %c0_1381 = arith.constant 0 : index
    %935 = vector.load %arg7[%c13_1379, %c0_1380, %c0_1381] : memref<18x4x18xf32, #tpu.memory_space<vmem>>, vector<1x4x16xf32>
    %936 = vector.shape_cast %935 : vector<1x4x16xf32> to vector<4x16xf32>
    %c24_1382 = arith.constant 24 : index
    %c176_1383 = arith.constant 176 : index
    %937 = vector.load %arg8[%c24_1382, %c176_1383] : memref<36x256xf32, #tpu.memory_space<vmem>>, vector<4x16xf32>
    tpu.vector_store %arg8[%c24_1382, %c176_1383], %936 {strides = array<i32>} : memref<36x256xf32, #tpu.memory_space<vmem>>, vector<4x16xf32>,
    %c14_1384 = arith.constant 14 : index
    %c0_1385 = arith.constant 0 : index
    %c0_1386 = arith.constant 0 : index
    %938 = vector.load %arg7[%c14_1384, %c0_1385, %c0_1386] : memref<18x4x18xf32, #tpu.memory_space<vmem>>, vector<1x4x16xf32>
    %939 = vector.shape_cast %938 : vector<1x4x16xf32> to vector<4x16xf32>
    %c24_1387 = arith.constant 24 : index
    %c192_1388 = arith.constant 192 : index
    %940 = vector.load %arg8[%c24_1387, %c192_1388] : memref<36x256xf32, #tpu.memory_space<vmem>>, vector<4x16xf32>
    tpu.vector_store %arg8[%c24_1387, %c192_1388], %939 {strides = array<i32>} : memref<36x256xf32, #tpu.memory_space<vmem>>, vector<4x16xf32>,
    %c15_1389 = arith.constant 15 : index
    %c0_1390 = arith.constant 0 : index
    %c0_1391 = arith.constant 0 : index
    %941 = vector.load %arg7[%c15_1389, %c0_1390, %c0_1391] : memref<18x4x18xf32, #tpu.memory_space<vmem>>, vector<1x4x16xf32>
    %942 = vector.shape_cast %941 : vector<1x4x16xf32> to vector<4x16xf32>
    %c24_1392 = arith.constant 24 : index
    %c208_1393 = arith.constant 208 : index
    %943 = vector.load %arg8[%c24_1392, %c208_1393] : memref<36x256xf32, #tpu.memory_space<vmem>>, vector<4x16xf32>
    tpu.vector_store %arg8[%c24_1392, %c208_1393], %942 {strides = array<i32>} : memref<36x256xf32, #tpu.memory_space<vmem>>, vector<4x16xf32>,
    %c16_1394 = arith.constant 16 : index
    %c0_1395 = arith.constant 0 : index
    %c0_1396 = arith.constant 0 : index
    %944 = vector.load %arg7[%c16_1394, %c0_1395, %c0_1396] : memref<18x4x18xf32, #tpu.memory_space<vmem>>, vector<1x4x16xf32>
    %945 = vector.shape_cast %944 : vector<1x4x16xf32> to vector<4x16xf32>
    %c24_1397 = arith.constant 24 : index
    %c224_1398 = arith.constant 224 : index
    %946 = vector.load %arg8[%c24_1397, %c224_1398] : memref<36x256xf32, #tpu.memory_space<vmem>>, vector<4x16xf32>
    tpu.vector_store %arg8[%c24_1397, %c224_1398], %945 {strides = array<i32>} : memref<36x256xf32, #tpu.memory_space<vmem>>, vector<4x16xf32>,
    %c17_1399 = arith.constant 17 : index
    %c0_1400 = arith.constant 0 : index
    %c0_1401 = arith.constant 0 : index
    %947 = vector.load %arg7[%c17_1399, %c0_1400, %c0_1401] : memref<18x4x18xf32, #tpu.memory_space<vmem>>, vector<1x4x16xf32>
    %948 = vector.shape_cast %947 : vector<1x4x16xf32> to vector<4x16xf32>
    %c24_1402 = arith.constant 24 : index
    %c240_1403 = arith.constant 240 : index
    %949 = vector.load %arg8[%c24_1402, %c240_1403] : memref<36x256xf32, #tpu.memory_space<vmem>>, vector<4x16xf32>
    tpu.vector_store %arg8[%c24_1402, %c240_1403], %948 {strides = array<i32>} : memref<36x256xf32, #tpu.memory_space<vmem>>, vector<4x16xf32>,
    %c2_1404 = arith.constant 2 : index
    %c0_1405 = arith.constant 0 : index
    %c1_1406 = arith.constant 1 : index
    %950 = vector.load %arg7[%c2_1404, %c0_1405, %c1_1406] : memref<18x4x18xf32, #tpu.memory_space<vmem>>, vector<1x4x16xf32>
    %951 = vector.shape_cast %950 : vector<1x4x16xf32> to vector<4x16xf32>
    %c28_1407 = arith.constant 28 : index
    %c0_1408 = arith.constant 0 : index
    %952 = vector.load %arg8[%c28_1407, %c0_1408] : memref<36x256xf32, #tpu.memory_space<vmem>>, vector<4x16xf32>
    tpu.vector_store %arg8[%c28_1407, %c0_1408], %951 {strides = array<i32>} : memref<36x256xf32, #tpu.memory_space<vmem>>, vector<4x16xf32>,
    %c3_1409 = arith.constant 3 : index
    %c0_1410 = arith.constant 0 : index
    %c1_1411 = arith.constant 1 : index
    %953 = vector.load %arg7[%c3_1409, %c0_1410, %c1_1411] : memref<18x4x18xf32, #tpu.memory_space<vmem>>, vector<1x4x16xf32>
    %954 = vector.shape_cast %953 : vector<1x4x16xf32> to vector<4x16xf32>
    %c28_1412 = arith.constant 28 : index
    %c16_1413 = arith.constant 16 : index
    %955 = vector.load %arg8[%c28_1412, %c16_1413] : memref<36x256xf32, #tpu.memory_space<vmem>>, vector<4x16xf32>
    tpu.vector_store %arg8[%c28_1412, %c16_1413], %954 {strides = array<i32>} : memref<36x256xf32, #tpu.memory_space<vmem>>, vector<4x16xf32>,
    %c4_1414 = arith.constant 4 : index
    %c0_1415 = arith.constant 0 : index
    %c1_1416 = arith.constant 1 : index
    %956 = vector.load %arg7[%c4_1414, %c0_1415, %c1_1416] : memref<18x4x18xf32, #tpu.memory_space<vmem>>, vector<1x4x16xf32>
    %957 = vector.shape_cast %956 : vector<1x4x16xf32> to vector<4x16xf32>
    %c28_1417 = arith.constant 28 : index
    %c32_1418 = arith.constant 32 : index
    %958 = vector.load %arg8[%c28_1417, %c32_1418] : memref<36x256xf32, #tpu.memory_space<vmem>>, vector<4x16xf32>
    tpu.vector_store %arg8[%c28_1417, %c32_1418], %957 {strides = array<i32>} : memref<36x256xf32, #tpu.memory_space<vmem>>, vector<4x16xf32>,
    %c5_1419 = arith.constant 5 : index
    %c0_1420 = arith.constant 0 : index
    %c1_1421 = arith.constant 1 : index
    %959 = vector.load %arg7[%c5_1419, %c0_1420, %c1_1421] : memref<18x4x18xf32, #tpu.memory_space<vmem>>, vector<1x4x16xf32>
    %960 = vector.shape_cast %959 : vector<1x4x16xf32> to vector<4x16xf32>
    %c28_1422 = arith.constant 28 : index
    %c48_1423 = arith.constant 48 : index
    %961 = vector.load %arg8[%c28_1422, %c48_1423] : memref<36x256xf32, #tpu.memory_space<vmem>>, vector<4x16xf32>
    tpu.vector_store %arg8[%c28_1422, %c48_1423], %960 {strides = array<i32>} : memref<36x256xf32, #tpu.memory_space<vmem>>, vector<4x16xf32>,
    %c6_1424 = arith.constant 6 : index
    %c0_1425 = arith.constant 0 : index
    %c1_1426 = arith.constant 1 : index
    %962 = vector.load %arg7[%c6_1424, %c0_1425, %c1_1426] : memref<18x4x18xf32, #tpu.memory_space<vmem>>, vector<1x4x16xf32>
    %963 = vector.shape_cast %962 : vector<1x4x16xf32> to vector<4x16xf32>
    %c28_1427 = arith.constant 28 : index
    %c64_1428 = arith.constant 64 : index
    %964 = vector.load %arg8[%c28_1427, %c64_1428] : memref<36x256xf32, #tpu.memory_space<vmem>>, vector<4x16xf32>
    tpu.vector_store %arg8[%c28_1427, %c64_1428], %963 {strides = array<i32>} : memref<36x256xf32, #tpu.memory_space<vmem>>, vector<4x16xf32>,
    %c7_1429 = arith.constant 7 : index
    %c0_1430 = arith.constant 0 : index
    %c1_1431 = arith.constant 1 : index
    %965 = vector.load %arg7[%c7_1429, %c0_1430, %c1_1431] : memref<18x4x18xf32, #tpu.memory_space<vmem>>, vector<1x4x16xf32>
    %966 = vector.shape_cast %965 : vector<1x4x16xf32> to vector<4x16xf32>
    %c28_1432 = arith.constant 28 : index
    %c80_1433 = arith.constant 80 : index
    %967 = vector.load %arg8[%c28_1432, %c80_1433] : memref<36x256xf32, #tpu.memory_space<vmem>>, vector<4x16xf32>
    tpu.vector_store %arg8[%c28_1432, %c80_1433], %966 {strides = array<i32>} : memref<36x256xf32, #tpu.memory_space<vmem>>, vector<4x16xf32>,
    %c8_1434 = arith.constant 8 : index
    %c0_1435 = arith.constant 0 : index
    %c1_1436 = arith.constant 1 : index
    %968 = vector.load %arg7[%c8_1434, %c0_1435, %c1_1436] : memref<18x4x18xf32, #tpu.memory_space<vmem>>, vector<1x4x16xf32>
    %969 = vector.shape_cast %968 : vector<1x4x16xf32> to vector<4x16xf32>
    %c28_1437 = arith.constant 28 : index
    %c96_1438 = arith.constant 96 : index
    %970 = vector.load %arg8[%c28_1437, %c96_1438] : memref<36x256xf32, #tpu.memory_space<vmem>>, vector<4x16xf32>
    tpu.vector_store %arg8[%c28_1437, %c96_1438], %969 {strides = array<i32>} : memref<36x256xf32, #tpu.memory_space<vmem>>, vector<4x16xf32>,
    %c9_1439 = arith.constant 9 : index
    %c0_1440 = arith.constant 0 : index
    %c1_1441 = arith.constant 1 : index
    %971 = vector.load %arg7[%c9_1439, %c0_1440, %c1_1441] : memref<18x4x18xf32, #tpu.memory_space<vmem>>, vector<1x4x16xf32>
    %972 = vector.shape_cast %971 : vector<1x4x16xf32> to vector<4x16xf32>
    %c28_1442 = arith.constant 28 : index
    %c112_1443 = arith.constant 112 : index
    %973 = vector.load %arg8[%c28_1442, %c112_1443] : memref<36x256xf32, #tpu.memory_space<vmem>>, vector<4x16xf32>
    tpu.vector_store %arg8[%c28_1442, %c112_1443], %972 {strides = array<i32>} : memref<36x256xf32, #tpu.memory_space<vmem>>, vector<4x16xf32>,
    %c10_1444 = arith.constant 10 : index
    %c0_1445 = arith.constant 0 : index
    %c1_1446 = arith.constant 1 : index
    %974 = vector.load %arg7[%c10_1444, %c0_1445, %c1_1446] : memref<18x4x18xf32, #tpu.memory_space<vmem>>, vector<1x4x16xf32>
    %975 = vector.shape_cast %974 : vector<1x4x16xf32> to vector<4x16xf32>
    %c28_1447 = arith.constant 28 : index
    %c128_1448 = arith.constant 128 : index
    %976 = vector.load %arg8[%c28_1447, %c128_1448] : memref<36x256xf32, #tpu.memory_space<vmem>>, vector<4x16xf32>
    tpu.vector_store %arg8[%c28_1447, %c128_1448], %975 {strides = array<i32>} : memref<36x256xf32, #tpu.memory_space<vmem>>, vector<4x16xf32>,
    %c11_1449 = arith.constant 11 : index
    %c0_1450 = arith.constant 0 : index
    %c1_1451 = arith.constant 1 : index
    %977 = vector.load %arg7[%c11_1449, %c0_1450, %c1_1451] : memref<18x4x18xf32, #tpu.memory_space<vmem>>, vector<1x4x16xf32>
    %978 = vector.shape_cast %977 : vector<1x4x16xf32> to vector<4x16xf32>
    %c28_1452 = arith.constant 28 : index
    %c144_1453 = arith.constant 144 : index
    %979 = vector.load %arg8[%c28_1452, %c144_1453] : memref<36x256xf32, #tpu.memory_space<vmem>>, vector<4x16xf32>
    tpu.vector_store %arg8[%c28_1452, %c144_1453], %978 {strides = array<i32>} : memref<36x256xf32, #tpu.memory_space<vmem>>, vector<4x16xf32>,
    %c12_1454 = arith.constant 12 : index
    %c0_1455 = arith.constant 0 : index
    %c1_1456 = arith.constant 1 : index
    %980 = vector.load %arg7[%c12_1454, %c0_1455, %c1_1456] : memref<18x4x18xf32, #tpu.memory_space<vmem>>, vector<1x4x16xf32>
    %981 = vector.shape_cast %980 : vector<1x4x16xf32> to vector<4x16xf32>
    %c28_1457 = arith.constant 28 : index
    %c160_1458 = arith.constant 160 : index
    %982 = vector.load %arg8[%c28_1457, %c160_1458] : memref<36x256xf32, #tpu.memory_space<vmem>>, vector<4x16xf32>
    tpu.vector_store %arg8[%c28_1457, %c160_1458], %981 {strides = array<i32>} : memref<36x256xf32, #tpu.memory_space<vmem>>, vector<4x16xf32>,
    %c13_1459 = arith.constant 13 : index
    %c0_1460 = arith.constant 0 : index
    %c1_1461 = arith.constant 1 : index
    %983 = vector.load %arg7[%c13_1459, %c0_1460, %c1_1461] : memref<18x4x18xf32, #tpu.memory_space<vmem>>, vector<1x4x16xf32>
    %984 = vector.shape_cast %983 : vector<1x4x16xf32> to vector<4x16xf32>
    %c28_1462 = arith.constant 28 : index
    %c176_1463 = arith.constant 176 : index
    %985 = vector.load %arg8[%c28_1462, %c176_1463] : memref<36x256xf32, #tpu.memory_space<vmem>>, vector<4x16xf32>
    tpu.vector_store %arg8[%c28_1462, %c176_1463], %984 {strides = array<i32>} : memref<36x256xf32, #tpu.memory_space<vmem>>, vector<4x16xf32>,
    %c14_1464 = arith.constant 14 : index
    %c0_1465 = arith.constant 0 : index
    %c1_1466 = arith.constant 1 : index
    %986 = vector.load %arg7[%c14_1464, %c0_1465, %c1_1466] : memref<18x4x18xf32, #tpu.memory_space<vmem>>, vector<1x4x16xf32>
    %987 = vector.shape_cast %986 : vector<1x4x16xf32> to vector<4x16xf32>
    %c28_1467 = arith.constant 28 : index
    %c192_1468 = arith.constant 192 : index
    %988 = vector.load %arg8[%c28_1467, %c192_1468] : memref<36x256xf32, #tpu.memory_space<vmem>>, vector<4x16xf32>
    tpu.vector_store %arg8[%c28_1467, %c192_1468], %987 {strides = array<i32>} : memref<36x256xf32, #tpu.memory_space<vmem>>, vector<4x16xf32>,
    %c15_1469 = arith.constant 15 : index
    %c0_1470 = arith.constant 0 : index
    %c1_1471 = arith.constant 1 : index
    %989 = vector.load %arg7[%c15_1469, %c0_1470, %c1_1471] : memref<18x4x18xf32, #tpu.memory_space<vmem>>, vector<1x4x16xf32>
    %990 = vector.shape_cast %989 : vector<1x4x16xf32> to vector<4x16xf32>
    %c28_1472 = arith.constant 28 : index
    %c208_1473 = arith.constant 208 : index
    %991 = vector.load %arg8[%c28_1472, %c208_1473] : memref<36x256xf32, #tpu.memory_space<vmem>>, vector<4x16xf32>
    tpu.vector_store %arg8[%c28_1472, %c208_1473], %990 {strides = array<i32>} : memref<36x256xf32, #tpu.memory_space<vmem>>, vector<4x16xf32>,
    %c16_1474 = arith.constant 16 : index
    %c0_1475 = arith.constant 0 : index
    %c1_1476 = arith.constant 1 : index
    %992 = vector.load %arg7[%c16_1474, %c0_1475, %c1_1476] : memref<18x4x18xf32, #tpu.memory_space<vmem>>, vector<1x4x16xf32>
    %993 = vector.shape_cast %992 : vector<1x4x16xf32> to vector<4x16xf32>
    %c28_1477 = arith.constant 28 : index
    %c224_1478 = arith.constant 224 : index
    %994 = vector.load %arg8[%c28_1477, %c224_1478] : memref<36x256xf32, #tpu.memory_space<vmem>>, vector<4x16xf32>
    tpu.vector_store %arg8[%c28_1477, %c224_1478], %993 {strides = array<i32>} : memref<36x256xf32, #tpu.memory_space<vmem>>, vector<4x16xf32>,
    %c17_1479 = arith.constant 17 : index
    %c0_1480 = arith.constant 0 : index
    %c1_1481 = arith.constant 1 : index
    %995 = vector.load %arg7[%c17_1479, %c0_1480, %c1_1481] : memref<18x4x18xf32, #tpu.memory_space<vmem>>, vector<1x4x16xf32>
    %996 = vector.shape_cast %995 : vector<1x4x16xf32> to vector<4x16xf32>
    %c28_1482 = arith.constant 28 : index
    %c240_1483 = arith.constant 240 : index
    %997 = vector.load %arg8[%c28_1482, %c240_1483] : memref<36x256xf32, #tpu.memory_space<vmem>>, vector<4x16xf32>
    tpu.vector_store %arg8[%c28_1482, %c240_1483], %996 {strides = array<i32>} : memref<36x256xf32, #tpu.memory_space<vmem>>, vector<4x16xf32>,
    %c2_1484 = arith.constant 2 : index
    %c0_1485 = arith.constant 0 : index
    %c2_1486 = arith.constant 2 : index
    %998 = vector.load %arg7[%c2_1484, %c0_1485, %c2_1486] : memref<18x4x18xf32, #tpu.memory_space<vmem>>, vector<1x4x16xf32>
    %999 = vector.shape_cast %998 : vector<1x4x16xf32> to vector<4x16xf32>
    %c32_1487 = arith.constant 32 : index
    %c0_1488 = arith.constant 0 : index
    %1000 = vector.load %arg8[%c32_1487, %c0_1488] : memref<36x256xf32, #tpu.memory_space<vmem>>, vector<4x16xf32>
    tpu.vector_store %arg8[%c32_1487, %c0_1488], %999 {strides = array<i32>} : memref<36x256xf32, #tpu.memory_space<vmem>>, vector<4x16xf32>,
    %c3_1489 = arith.constant 3 : index
    %c0_1490 = arith.constant 0 : index
    %c2_1491 = arith.constant 2 : index
    %1001 = vector.load %arg7[%c3_1489, %c0_1490, %c2_1491] : memref<18x4x18xf32, #tpu.memory_space<vmem>>, vector<1x4x16xf32>
    %1002 = vector.shape_cast %1001 : vector<1x4x16xf32> to vector<4x16xf32>
    %c32_1492 = arith.constant 32 : index
    %c16_1493 = arith.constant 16 : index
    %1003 = vector.load %arg8[%c32_1492, %c16_1493] : memref<36x256xf32, #tpu.memory_space<vmem>>, vector<4x16xf32>
    tpu.vector_store %arg8[%c32_1492, %c16_1493], %1002 {strides = array<i32>} : memref<36x256xf32, #tpu.memory_space<vmem>>, vector<4x16xf32>,
    %c4_1494 = arith.constant 4 : index
    %c0_1495 = arith.constant 0 : index
    %c2_1496 = arith.constant 2 : index
    %1004 = vector.load %arg7[%c4_1494, %c0_1495, %c2_1496] : memref<18x4x18xf32, #tpu.memory_space<vmem>>, vector<1x4x16xf32>
    %1005 = vector.shape_cast %1004 : vector<1x4x16xf32> to vector<4x16xf32>
    %c32_1497 = arith.constant 32 : index
    %c32_1498 = arith.constant 32 : index
    %1006 = vector.load %arg8[%c32_1497, %c32_1498] : memref<36x256xf32, #tpu.memory_space<vmem>>, vector<4x16xf32>
    tpu.vector_store %arg8[%c32_1497, %c32_1498], %1005 {strides = array<i32>} : memref<36x256xf32, #tpu.memory_space<vmem>>, vector<4x16xf32>,
    %c5_1499 = arith.constant 5 : index
    %c0_1500 = arith.constant 0 : index
    %c2_1501 = arith.constant 2 : index
    %1007 = vector.load %arg7[%c5_1499, %c0_1500, %c2_1501] : memref<18x4x18xf32, #tpu.memory_space<vmem>>, vector<1x4x16xf32>
    %1008 = vector.shape_cast %1007 : vector<1x4x16xf32> to vector<4x16xf32>
    %c32_1502 = arith.constant 32 : index
    %c48_1503 = arith.constant 48 : index
    %1009 = vector.load %arg8[%c32_1502, %c48_1503] : memref<36x256xf32, #tpu.memory_space<vmem>>, vector<4x16xf32>
    tpu.vector_store %arg8[%c32_1502, %c48_1503], %1008 {strides = array<i32>} : memref<36x256xf32, #tpu.memory_space<vmem>>, vector<4x16xf32>,
    %c6_1504 = arith.constant 6 : index
    %c0_1505 = arith.constant 0 : index
    %c2_1506 = arith.constant 2 : index
    %1010 = vector.load %arg7[%c6_1504, %c0_1505, %c2_1506] : memref<18x4x18xf32, #tpu.memory_space<vmem>>, vector<1x4x16xf32>
    %1011 = vector.shape_cast %1010 : vector<1x4x16xf32> to vector<4x16xf32>
    %c32_1507 = arith.constant 32 : index
    %c64_1508 = arith.constant 64 : index
    %1012 = vector.load %arg8[%c32_1507, %c64_1508] : memref<36x256xf32, #tpu.memory_space<vmem>>, vector<4x16xf32>
    tpu.vector_store %arg8[%c32_1507, %c64_1508], %1011 {strides = array<i32>} : memref<36x256xf32, #tpu.memory_space<vmem>>, vector<4x16xf32>,
    %c7_1509 = arith.constant 7 : index
    %c0_1510 = arith.constant 0 : index
    %c2_1511 = arith.constant 2 : index
    %1013 = vector.load %arg7[%c7_1509, %c0_1510, %c2_1511] : memref<18x4x18xf32, #tpu.memory_space<vmem>>, vector<1x4x16xf32>
    %1014 = vector.shape_cast %1013 : vector<1x4x16xf32> to vector<4x16xf32>
    %c32_1512 = arith.constant 32 : index
    %c80_1513 = arith.constant 80 : index
    %1015 = vector.load %arg8[%c32_1512, %c80_1513] : memref<36x256xf32, #tpu.memory_space<vmem>>, vector<4x16xf32>
    tpu.vector_store %arg8[%c32_1512, %c80_1513], %1014 {strides = array<i32>} : memref<36x256xf32, #tpu.memory_space<vmem>>, vector<4x16xf32>,
    %c8_1514 = arith.constant 8 : index
    %c0_1515 = arith.constant 0 : index
    %c2_1516 = arith.constant 2 : index
    %1016 = vector.load %arg7[%c8_1514, %c0_1515, %c2_1516] : memref<18x4x18xf32, #tpu.memory_space<vmem>>, vector<1x4x16xf32>
    %1017 = vector.shape_cast %1016 : vector<1x4x16xf32> to vector<4x16xf32>
    %c32_1517 = arith.constant 32 : index
    %c96_1518 = arith.constant 96 : index
    %1018 = vector.load %arg8[%c32_1517, %c96_1518] : memref<36x256xf32, #tpu.memory_space<vmem>>, vector<4x16xf32>
    tpu.vector_store %arg8[%c32_1517, %c96_1518], %1017 {strides = array<i32>} : memref<36x256xf32, #tpu.memory_space<vmem>>, vector<4x16xf32>,
    %c9_1519 = arith.constant 9 : index
    %c0_1520 = arith.constant 0 : index
    %c2_1521 = arith.constant 2 : index
    %1019 = vector.load %arg7[%c9_1519, %c0_1520, %c2_1521] : memref<18x4x18xf32, #tpu.memory_space<vmem>>, vector<1x4x16xf32>
    %1020 = vector.shape_cast %1019 : vector<1x4x16xf32> to vector<4x16xf32>
    %c32_1522 = arith.constant 32 : index
    %c112_1523 = arith.constant 112 : index
    %1021 = vector.load %arg8[%c32_1522, %c112_1523] : memref<36x256xf32, #tpu.memory_space<vmem>>, vector<4x16xf32>
    tpu.vector_store %arg8[%c32_1522, %c112_1523], %1020 {strides = array<i32>} : memref<36x256xf32, #tpu.memory_space<vmem>>, vector<4x16xf32>,
    %c10_1524 = arith.constant 10 : index
    %c0_1525 = arith.constant 0 : index
    %c2_1526 = arith.constant 2 : index
    %1022 = vector.load %arg7[%c10_1524, %c0_1525, %c2_1526] : memref<18x4x18xf32, #tpu.memory_space<vmem>>, vector<1x4x16xf32>
    %1023 = vector.shape_cast %1022 : vector<1x4x16xf32> to vector<4x16xf32>
    %c32_1527 = arith.constant 32 : index
    %c128_1528 = arith.constant 128 : index
    %1024 = vector.load %arg8[%c32_1527, %c128_1528] : memref<36x256xf32, #tpu.memory_space<vmem>>, vector<4x16xf32>
    tpu.vector_store %arg8[%c32_1527, %c128_1528], %1023 {strides = array<i32>} : memref<36x256xf32, #tpu.memory_space<vmem>>, vector<4x16xf32>,
    %c11_1529 = arith.constant 11 : index
    %c0_1530 = arith.constant 0 : index
    %c2_1531 = arith.constant 2 : index
    %1025 = vector.load %arg7[%c11_1529, %c0_1530, %c2_1531] : memref<18x4x18xf32, #tpu.memory_space<vmem>>, vector<1x4x16xf32>
    %1026 = vector.shape_cast %1025 : vector<1x4x16xf32> to vector<4x16xf32>
    %c32_1532 = arith.constant 32 : index
    %c144_1533 = arith.constant 144 : index
    %1027 = vector.load %arg8[%c32_1532, %c144_1533] : memref<36x256xf32, #tpu.memory_space<vmem>>, vector<4x16xf32>
    tpu.vector_store %arg8[%c32_1532, %c144_1533], %1026 {strides = array<i32>} : memref<36x256xf32, #tpu.memory_space<vmem>>, vector<4x16xf32>,
    %c12_1534 = arith.constant 12 : index
    %c0_1535 = arith.constant 0 : index
    %c2_1536 = arith.constant 2 : index
    %1028 = vector.load %arg7[%c12_1534, %c0_1535, %c2_1536] : memref<18x4x18xf32, #tpu.memory_space<vmem>>, vector<1x4x16xf32>
    %1029 = vector.shape_cast %1028 : vector<1x4x16xf32> to vector<4x16xf32>
    %c32_1537 = arith.constant 32 : index
    %c160_1538 = arith.constant 160 : index
    %1030 = vector.load %arg8[%c32_1537, %c160_1538] : memref<36x256xf32, #tpu.memory_space<vmem>>, vector<4x16xf32>
    tpu.vector_store %arg8[%c32_1537, %c160_1538], %1029 {strides = array<i32>} : memref<36x256xf32, #tpu.memory_space<vmem>>, vector<4x16xf32>,
    %c13_1539 = arith.constant 13 : index
    %c0_1540 = arith.constant 0 : index
    %c2_1541 = arith.constant 2 : index
    %1031 = vector.load %arg7[%c13_1539, %c0_1540, %c2_1541] : memref<18x4x18xf32, #tpu.memory_space<vmem>>, vector<1x4x16xf32>
    %1032 = vector.shape_cast %1031 : vector<1x4x16xf32> to vector<4x16xf32>
    %c32_1542 = arith.constant 32 : index
    %c176_1543 = arith.constant 176 : index
    %1033 = vector.load %arg8[%c32_1542, %c176_1543] : memref<36x256xf32, #tpu.memory_space<vmem>>, vector<4x16xf32>
    tpu.vector_store %arg8[%c32_1542, %c176_1543], %1032 {strides = array<i32>} : memref<36x256xf32, #tpu.memory_space<vmem>>, vector<4x16xf32>,
    %c14_1544 = arith.constant 14 : index
    %c0_1545 = arith.constant 0 : index
    %c2_1546 = arith.constant 2 : index
    %1034 = vector.load %arg7[%c14_1544, %c0_1545, %c2_1546] : memref<18x4x18xf32, #tpu.memory_space<vmem>>, vector<1x4x16xf32>
    %1035 = vector.shape_cast %1034 : vector<1x4x16xf32> to vector<4x16xf32>
    %c32_1547 = arith.constant 32 : index
    %c192_1548 = arith.constant 192 : index
    %1036 = vector.load %arg8[%c32_1547, %c192_1548] : memref<36x256xf32, #tpu.memory_space<vmem>>, vector<4x16xf32>
    tpu.vector_store %arg8[%c32_1547, %c192_1548], %1035 {strides = array<i32>} : memref<36x256xf32, #tpu.memory_space<vmem>>, vector<4x16xf32>,
    %c15_1549 = arith.constant 15 : index
    %c0_1550 = arith.constant 0 : index
    %c2_1551 = arith.constant 2 : index
    %1037 = vector.load %arg7[%c15_1549, %c0_1550, %c2_1551] : memref<18x4x18xf32, #tpu.memory_space<vmem>>, vector<1x4x16xf32>
    %1038 = vector.shape_cast %1037 : vector<1x4x16xf32> to vector<4x16xf32>
    %c32_1552 = arith.constant 32 : index
    %c208_1553 = arith.constant 208 : index
    %1039 = vector.load %arg8[%c32_1552, %c208_1553] : memref<36x256xf32, #tpu.memory_space<vmem>>, vector<4x16xf32>
    tpu.vector_store %arg8[%c32_1552, %c208_1553], %1038 {strides = array<i32>} : memref<36x256xf32, #tpu.memory_space<vmem>>, vector<4x16xf32>,
    %c16_1554 = arith.constant 16 : index
    %c0_1555 = arith.constant 0 : index
    %c2_1556 = arith.constant 2 : index
    %1040 = vector.load %arg7[%c16_1554, %c0_1555, %c2_1556] : memref<18x4x18xf32, #tpu.memory_space<vmem>>, vector<1x4x16xf32>
    %1041 = vector.shape_cast %1040 : vector<1x4x16xf32> to vector<4x16xf32>
    %c32_1557 = arith.constant 32 : index
    %c224_1558 = arith.constant 224 : index
    %1042 = vector.load %arg8[%c32_1557, %c224_1558] : memref<36x256xf32, #tpu.memory_space<vmem>>, vector<4x16xf32>
    tpu.vector_store %arg8[%c32_1557, %c224_1558], %1041 {strides = array<i32>} : memref<36x256xf32, #tpu.memory_space<vmem>>, vector<4x16xf32>,
    %c17_1559 = arith.constant 17 : index
    %c0_1560 = arith.constant 0 : index
    %c2_1561 = arith.constant 2 : index
    %1043 = vector.load %arg7[%c17_1559, %c0_1560, %c2_1561] : memref<18x4x18xf32, #tpu.memory_space<vmem>>, vector<1x4x16xf32>
    %1044 = vector.shape_cast %1043 : vector<1x4x16xf32> to vector<4x16xf32>
    %c32_1562 = arith.constant 32 : index
    %c240_1563 = arith.constant 240 : index
    %1045 = vector.load %arg8[%c32_1562, %c240_1563] : memref<36x256xf32, #tpu.memory_space<vmem>>, vector<4x16xf32>
    tpu.vector_store %arg8[%c32_1562, %c240_1563], %1044 {strides = array<i32>} : memref<36x256xf32, #tpu.memory_space<vmem>>, vector<4x16xf32>,
    %c0_1564 = arith.constant 0 : index
    %c0_1565 = arith.constant 0 : index
    %1046 = vector.load %arg4[%c0_1564, %c0_1565] : memref<4x36xf32, #tpu.memory_space<vmem>>, vector<4x36xf32>
    %c0_1566 = arith.constant 0 : index
    %c0_1567 = arith.constant 0 : index
    %1047 = vector.load %arg8[%c0_1566, %c0_1567] : memref<36x256xf32, #tpu.memory_space<vmem>>, vector<36x256xf32>
    %cst_1568 = arith.constant dense<0.000000e+00> : vector<4x256xf32>
    %1048 = tpu.matmul %1046, %1047, %cst_1568 {dimension_numbers = #tpu.dot_dimension_numbers<[1], [0], [0], [1], [0, 0, 1, 1], [], []>} : vector<4x36xf32>, vector<36x256xf32>, vector<4x256xf32> -> vector<4x256xf32>
    %c0_1569 = arith.constant 0 : index
    %c0_1570 = arith.constant 0 : index
    %1049 = vector.load %arg5[%c0_1569, %c0_1570] : memref<4x1xf32, #tpu.memory_space<vmem>>, vector<4x1xf32>
    %1050 = vector.broadcast %1049 : vector<4x1xf32> to vector<4x256xf32>
    %1051 = arith.addf %1048, %1050 : vector<4x256xf32>
    %cst_1571 = arith.constant dense<0.000000e+00> : vector<4xf32>
    %1052 = vector.multi_reduction <add>, %1051, %cst_1571 [1] : vector<4x256xf32> to vector<4xf32>
    %1053 = vector.shape_cast %1052 : vector<4xf32> to vector<4x1xf32>
    %cst_1572 = arith.constant 2.560000e+02 : f32
    %1054 = vector.broadcast %cst_1572 : f32 to vector<4x1xf32>
    %1055 = arith.divf %1053, %1054 : vector<4x1xf32>
    %1056 = vector.broadcast %1055 : vector<4x1xf32> to vector<4x256xf32>
    %1057 = arith.subf %1051, %1056 : vector<4x256xf32>
    %1058 = arith.mulf %1057, %1057 : vector<4x256xf32>
    %cst_1573 = arith.constant dense<0.000000e+00> : vector<4xf32>
    %1059 = vector.multi_reduction <add>, %1058, %cst_1573 [1] : vector<4x256xf32> to vector<4xf32>
    %1060 = vector.shape_cast %1059 : vector<4xf32> to vector<4x1xf32>
    %cst_1574 = arith.constant 2.560000e+02 : f32
    %1061 = vector.broadcast %cst_1574 : f32 to vector<4x1xf32>
    %1062 = arith.divf %1060, %1061 : vector<4x1xf32>
    %cst_1575 = arith.constant 9.99999974E-6 : f32
    %1063 = vector.broadcast %cst_1575 : f32 to vector<4x1xf32>
    %1064 = arith.addf %1062, %1063 : vector<4x1xf32>
    %1065 = math.rsqrt %1064 : vector<4x1xf32>
    %1066 = vector.broadcast %1065 : vector<4x1xf32> to vector<4x256xf32>
    %1067 = arith.mulf %1057, %1066 : vector<4x256xf32>
    %1068 = arith.addf %1, %1067 : vector<4x256xf32>
    %c0_1576 = arith.constant 0 : index
    %c0_1577 = arith.constant 0 : index
    %c0_1578 = arith.constant 0 : index
    %1069 = vector.load %arg6[%c0_1576, %c0_1577, %c0_1578] : memref<1x4x256xf32, #tpu.memory_space<vmem>>, vector<1x4x256xf32>
    %1070 = vector.shape_cast %1069 : vector<1x4x256xf32> to vector<4x256xf32>
    %1071 = vector.shape_cast %1068 : vector<4x256xf32> to vector<1x4x256xf32>
    tpu.vector_store %arg6[%c0_1576, %c0_1577, %c0_1578], %1071 {strides = array<i32>} : memref<1x4x256xf32, #tpu.memory_space<vmem>>, vector<1x4x256xf32>,
    return
  }
  func.func @transform_0(%arg0: i32) -> (i32, i32, i32) {
    %c0_i32 = arith.constant 0 : i32
    %c0_i32_0 = arith.constant 0 : i32
    %c0_i32_1 = arith.constant 0 : i32
    return %arg0, %c0_i32, %c0_i32_0 : i32, i32, i32
  }
  func.func @transform_1(%arg0: i32) -> (i32, i32) {
    %c0_i32 = arith.constant 0 : i32
    %c0_i32_0 = arith.constant 0 : i32
    %c0_i32_1 = arith.constant 0 : i32
    return %c0_i32, %c0_i32_0 : i32, i32
  }
  func.func @transform_2(%arg0: i32) -> (i32, i32) {
    %c0_i32 = arith.constant 0 : i32
    %c0_i32_0 = arith.constant 0 : i32
    %c0_i32_1 = arith.constant 0 : i32
    return %c0_i32, %c0_i32_0 : i32, i32
  }
  func.func @transform_3(%arg0: i32) -> (i32, i32) {
    %c0_i32 = arith.constant 0 : i32
    %c0_i32_0 = arith.constant 0 : i32
    %c0_i32_1 = arith.constant 0 : i32
    return %c0_i32, %c0_i32_0 : i32, i32
  }
  func.func @transform_4(%arg0: i32) -> (i32, i32) {
    %c0_i32 = arith.constant 0 : i32
    %c0_i32_0 = arith.constant 0 : i32
    %c0_i32_1 = arith.constant 0 : i32
    return %c0_i32, %c0_i32_0 : i32, i32
  }
  func.func @transform_5(%arg0: i32) -> (i32, i32, i32) {
    %c0_i32 = arith.constant 0 : i32
    %c0_i32_0 = arith.constant 0 : i32
    %c0_i32_1 = arith.constant 0 : i32
    return %arg0, %c0_i32, %c0_i32_0 : i32, i32, i32
  }
}

</mosaic_0001>

<bundles_post_ra>
// kernel: tpu_custom_call.1
= control target key start
LH: loop header
LB: loop body
LE: loop exit
PB: predicated region body
PF: predicated region fallthrough
CT: control target
= control target key end

     0   :  { %s4396_s0 = inlined_call_operand.hbm [shape: f32[2,4,256], index: 0, kind: input, shape index: {}]   ;;  %s4397_s1 = inlined_call_operand.vmem [shape: f32[4,36], index: 1, kind: input, shape index: {}]   ;;  %s4398_s2 = inlined_call_operand.vmem [shape: f32[4,1], index: 2, kind: input, shape index: {}]   ;;  %s4399_s3 = inlined_call_operand.vmem [shape: f32[4,36], index: 3, kind: input, shape index: {}]   ;;  %s4400_s4 = inlined_call_operand.vmem [shape: f32[4,1], index: 4, kind: input, shape index: {}]   ;;  %s4401_s5 = inlined_call_operand.hbm [shape: f32[2,4,256], index: 5, kind: output, shape index: {}]  }
   0x1   :  { %4496 = sst [smem:[#allocation21_spill]] %s4396_s0 }
   0x2   :  { %4497 = sst [smem:[#allocation22_spill]] %s4397_s1 }
   0x3   :  { %4498 = sst [smem:[#allocation23_spill]] %s4398_s2 }
   0x4   :  { %4499 = sst [smem:[#allocation24_spill]] %s4399_s3 }
   0x5   :  { %4500 = sst [smem:[#allocation25_spill]] %s4400_s4 }
   0x6   :  { %4501 = sst [smem:[#allocation26_spill]] %s4401_s5 }
   0x7   :  { %10 = vsyncpa [#allocation5], 0 }
   0x8   :  { %12 = vsyncpa [#allocation5 + $0x1], 0 }
   0x9   :  { %13 = vsyncpa [#allocation6], 0 }
   0xa   :  { %15 = vsyncpa [#allocation6 + $0x1], 0  ;;  %s3307_s18 = smov 0   ;;  %s3309_s19 = smov 0  }
   0xb   :  { %s3311_s20 = smov 0   ;;  %s3313_s21 = smov 0  }
   0xc LB: > { %4502 = sst [smem:[#allocation10_spill]] %s3227_s18  ;;  %s3328_s22 = sadd.s32 4294967295, %s3239_s21   ;;  %s3239_s21 = sphi %s3313_s21, %s4684_s21   ;;  %s3235_s20 = sphi %s3311_s20, %s4687_s20   ;;  %s3231_s19 = sphi %s3309_s19, %s4686_s19   ;;  %s3227_s18 = sphi %s3307_s18, %s4685_s18  }
   0xd   : > { %4503 = sst [smem:[#allocation11_spill]] %s3231_s19  ;;  %s3018_s23 = sadd.s32 4294967294, %s3239_s21  }
   0xe   : > { %4504 = sst [smem:[#allocation12_spill]] %s3235_s20  ;;  %s3332_s24 = sadd.s32 1, %s3239_s21  }
   0xf   : > { %4505 = sst [smem:[#allocation13_spill]] %s3239_s21  ;;  %s28_s25 = sadd.s32 1, %s3235_s20 }
  0x10   : > { %4506 = sst [smem:[#allocation14_spill]] %s3328_s22  ;;  %s25_s26 = ssub.s32 %s3239_s21, %s3332_s24 }
  0x11   : > { %4507 = sst [smem:[#allocation15_spill]] %s3332_s24  ;;  %p35_p0 = scmp.ne.s32.totalorder %s3235_s20, %s3231_s19 }
  0x12   : > { %p26_p1 = scmp.eq.s32.totalorder %s25_s26, 0  ;;  %p36_p2 = scmp.eq.s32.totalorder %s3239_s21, 0 }
  0x13   : > { %p41_p3 = scmp.ne.s32.totalorder %s3231_s19, %s3227_s18  ;;  %p42_p4 = scmp.eq.s32.totalorder %s3328_s22, 0 }
  0x14   : > { %s3344_s27 = scalar_select %p26_p1, %s3235_s20, %s28_s25  }
  0x15   : > { %p3346_p5 = por %p36_p2, %p35_p0  ;;  %p3350_p6 = por %p42_p4, %p41_p3 }
  0x16   : > { %4508 = sst [smem:[#allocation16_spill]] %s3344_s27  ;;  %p149_p7 = scmp.eq.s32.totalorder %s3328_s22, 1 }
  0x17   : > { %p155_p8 = scmp.eq.s32.totalorder %s3018_s23, 1  ;;  %p3068_p10 = scmp.lt.s32.totalorder %s3239_s21, 2 }
  0x18   : > { %p3357_p11 = por %p149_p7, %p35_p0  ;;  %s187_s7 = sand.u32 1, %s3235_s20  }
  0x19   : > { %p3361_p12 = por %p155_p8, %p41_p3  ;;  %s3038_s8 = sshll.u32 %s3239_s21, 7 }
  0x1a   : > { %s4511_s30 = scalar_select %p3357_p11, 1, 0 }
  0x1b   : > { %s4513_s6 = scalar_select %p3361_p12, 1, 0 }
  0x1c   : > { %4512 = sst [smem:[#allocation17_spill]] %s4511_s30  ;;  %s3021_s9 = sshll.u32 %s187_s7, 3 }
  0x1d   : > { %4514 = sst [smem:[#allocation18_spill]] %s4513_s6  ;;  %s4515_s0 = sld [smem:[#allocation21_spill]] }
  0x1e   : > { %s191_s13 = scalar_lea.vmem [#allocation4], %s3021_s9  ;;  %p3374_p13 = pnand %p3068_p10, %p3346_p5 }
  0x1f   : > { %s199_s14 = sshll.u32 %s191_s13, 4  ;;  %s188_s16 = scalar_lea.sflag [#allocation5], %s187_s7  ;;  %s3378_s14 = int_to_ptr.vmem [resolvable:$true] %s199_s14 }
  0x20   : > { %p3145_p3 = pneg %p3374_p13 }
  0x23   : > { %s3370_s12 = scalar_lea.hbm %s4515_s0, %s3038_s8  ;;  %s3148_s26 = scalar_lea.hbm %s4515_s0, 256 }
  0x24   : > { %s3143_s17 = scalar_lea.hbm %s3370_s12, 128  ;;  %p3149_p5 = scmp.lt.u32.totalorder %s3370_s12, %s4515_s0 }
  0x25   : > { %p3144_p2 = scmp.ne.s32.totalorder %s3370_s12, %s3143_s17  ;;  %p3150_p8 = scmp.lt.u32.totalorder %s3148_s26, %s3143_s17 }
  0x26   : > { %p3152_p9 = scmp.lt.u32.totalorder %s3143_s17, %s3370_s12 }
  0x27   : > { %p3146_p4 = pnand %p3145_p3, %p3144_p2  ;;  %p3151_p10 = por %p3150_p8, %p3149_p5 }
  0x29   : > { %p3147_p7 = pneg %p3146_p4  ;;  %p3153_p0 = por %p3152_p9, %p3151_p10 }
  0x2b   : > { %p3154_p1 = pnand %p3153_p0, %p3147_p7 }
  0x2d   : > { %3157 = shalt.err (!%p3154_p1)
}
  0x2e   : > { %s3158_s7 = scalar_lea.vmem %s3378_s14, 128  ;;  %s3241_s9 = smov [#allocation4]  }
  0x2f   : > { %p3159_p2 = scmp.ne.s32.totalorder %s3378_s14, %s3158_s7  ;;  %s3163_s10 = sshll.u32 %s3241_s9, 4  ;;  %s3164_s10 = int_to_ptr.vmem [resolvable:$false] %s3163_s10 }
  0x30   : > { %s3165_s11 = scalar_lea.vmem %s3164_s10, 256  ;;  %p3166_p11 = scmp.lt.s32.totalorder %s3378_s14, %s3164_s10 }
  0x31   : > { %p3161_p4 = pnand %p3159_p2, %p3145_p3  ;;  %p3167_p5 = scmp.lt.s32.totalorder %s3165_s11, %s3158_s7 }
  0x33   : > { %p3162_p12 = pneg %p3161_p4  ;;  %p3168_p8 = por %p3167_p5, %p3166_p11 }
  0x35   : > { %p3169_p9 = pnand %p3168_p8, %p3162_p12 }
  0x37   : > { %3172 = shalt.err (!%p3169_p9)
}
  0x38   : > { %3063 = dma.hbm_to_vmem [thread:$0]  (!%p3374_p13), %s3370_s12, 128, %s3378_s14, %s188_s16  }
  0x39   : > { %p4517_p0 = scmp.lt.s32.totalorder %s3239_s21, 3  ;;  %p4518_p1 = scmp.ge.s32.totalorder %s3239_s21, 1 }
  0x3b   : > { %p205_p3 = pnand %p4518_p1, %p4517_p0 }
  0x3d   : > { %208 = sbr.rel (%p205_p3) target bundleno = 2715 (0xa9b), region = 40 }
  0x44   : > { %s3412_s13 = sand.u32 1, %s3231_s19  }
  0x45   : > { %4519 = sst [smem:[#allocation19_spill]] %s3412_s13  ;;  %s4403_s17 = sshll.u32 %s3412_s13, 3 }
  0x46   : > { %s211_s23 = scalar_lea.sflag [#allocation5], %s3412_s13  ;;  %s3418_s15 = scalar_lea.vmem [#allocation4], %s4403_s17 }
  0x47   : > { %4520 = sst [smem:[#allocation20_spill]] %s3418_s15 }
  0x48   : > { %3218 = dma.done.wait (%p3350_p6), %s211_s23, 128  }
  0x49   : > { %3220 = vsyncadd (%p3350_p6), %s211_s23, 4294967168  ;;  %v241_v0 = vld [vmem:[%s3418_s15] sm:$0xff]  ;;  %s4426_s12 = smov 80   ;;  %s4448_s14 = smov 112   ;;  %vm4479_vm0 = vcmask 134152   ;;  %vm4478_vm1 = vcmask 142336  }
  0x4a   : > { %306 = vrot.lane.b32.xlu1 %v241_v0, %s4426_s12  ;;  %290 = vrot.lane.b32.xlu0 %v241_v0, %s4448_s14  ;;  %s4460_s16 = smov 32   ;;  %s4432_s25 = smov 96   ;;  %v284_v1 = vrot.slane %v241_v0, 4  ;;  %vm4477_vm2 = vcmask 3072   ;;  %vm4476_vm3 = vcmask 142472   ;;  %vm571_vm4 = vcmask 125952  }
  0x4b   : > { %s4466_s26 = smov 48   ;;  %s4420_s28 = smov 64   ;;  %vm672_vm5 = vcmask 130052   ;;  %vm578_vm6 = vcmask 257152   ;;  %vm585_vm7 = vcmask 388352   ;;  %vm592_vm8 = vcmask 519552  }
  0x4c   : > { %s4404_s29 = smov 113   ;;  %s4456_s8 = smov 16   ;;  %vm599_vm9 = vcmask 650752   ;;  %vm606_vm10 = vcmask 781952   ;;  %vm613_vm11 = vcmask 913152   ;;  %vm4495_vm12 = vcmask 1044352  }
  0x4d   : > { %s4418_s7 = smov 17   ;;  %s4416_s9 = smov 1   ;;  %vm4494_vm13 = vcmask 261252   ;;  %vm4493_vm14 = vcmask 392452   ;;  %vm4492_vm15 = vcmask 523652  }
  0x4e   : > { %330 = vrot.lane.b32.xlu1 %v241_v0, %s4460_s16  ;;  %298 = vrot.lane.b32.xlu0 %v241_v0, %s4432_s25  ;;  %s4412_s10 = smov 81   ;;  %s4414_s11 = smov 97  }
  0x4f   : > { %s4408_s23 = smov 65   ;;  %s4406_s17 = smov 49  }
  0x50   : > { %s4534_s0 = smov 31   ;;  %s4536_s27 = smov 79  }
  0x51   : > { %s4537_s20 = smov 78   ;;  %s4538_s19 = smov 16  }
  0x52   : > { %322 = vrot.lane.b32.xlu1 %v241_v0, %s4466_s26  ;;  %314 = vrot.lane.b32.xlu0 %v241_v0, %s4420_s28  ;;  %s4539_s24 = smov 32   ;;  %s4540_s21 = smov 15  }
  0x53   : > { %s4541_s6 = smov 111   ;;  %s4542_s18 = smov 48  }
  0x54   : > { %s4543_s5 = smov 126   ;;  %s4544_s2 = sld [smem:[#allocation23_spill]] }
  0x55   : > { %s4545_s1 = sld [smem:[#allocation22_spill]]  ;;  %s4546_s30 = smov 17  }
  0x56   : > { %249 = vrot.lane.b32.xlu1 %v241_v0, %s4404_s29  ;;  %338 = vrot.lane.b32.xlu0 %v241_v0, %s4456_s8  ;;  %s4410_s29 = smov 33   ;;  %s4547_s15 = smov 113  }
  0x57   : > { %s4550_s13 = smov 81   ;;  %s4551_s22 = smov 33  }
  0x58   : > { %s4552_s3 = smov 65   ;;  %s4553_s4 = smov 49  }
  0x5a   : > { %279 = vrot.lane.b32.xlu0 %v241_v0, %s4418_s7  ;;  %285 = vrot.lane.b32.xlu1 %v284_v1, %s4416_s9  ;;  %s4424_s7 = smov 95  }
  0x5e   : > { %243 = vrot.lane.b32.xlu1 %v241_v0, %s4416_s9  ;;  %259 = vrot.lane.b32.xlu0 %v241_v0, %s4412_s10  ;;  %s4436_s10 = smov 62  }
  0x62   : > { %254 = vrot.lane.b32.xlu1 %v241_v0, %s4414_s11  ;;  %264 = vrot.lane.b32.xlu0 %v241_v0, %s4408_s23  ;;  %s4438_s23 = smov 2   ;;  %s4422_s11 = smov 127  }
  0x66   : > { %269 = vrot.lane.b32.xlu0 %v241_v0, %s4406_s17  ;;  %274 = vrot.lane.b32.xlu1 %v241_v0, %s4410_s29  ;;  %s4450_s17 = smov 126   ;;  %s4428_s29 = smov 14  }
  0xbc   : > { %v307_v2 = vpop.permute.xlu1 %306  ;;  %v291_v3 = vpop.permute.xlu0 %290 }
  0xbd   : > { %v292_v4 = vrot.slane %v291_v3, 4  ;;  %v308_v11 = vrot.slane %v307_v2, 4 }
  0xbf   : > { %293 = vrot.lane.b32.xlu0 %v292_v4, %s4416_s9 }
  0xc0   : > { %v331_v5 = vpop.permute.xlu1 %330  ;;  %v299_v6 = vpop.permute.xlu0 %298 }
  0xc1   : > { %v332_v7 = vrot.slane %v331_v5, 4  ;;  %v300_v8 = vrot.slane %v299_v6, 4 }
  0xc3   : > { %301 = vrot.lane.b32.xlu0 %v300_v8, %s4416_s9  ;;  %333 = vrot.lane.b32.xlu1 %v332_v7, %s4416_s9 }
  0xc4   : > { %v323_v9 = vpop.permute.xlu1 %322  ;;  %v315_v10 = vpop.permute.xlu0 %314 }
  0xc5   : > { %v316_v12 = vrot.slane %v315_v10, 4  ;;  %v324_v15 = vrot.slane %v323_v9, 4 }
  0xc7   : > { %309 = vrot.lane.b32.xlu0 %v308_v11, %s4416_s9  ;;  %317 = vrot.lane.b32.xlu1 %v316_v12, %s4416_s9 }
  0xc8   : > { %v250_v13 = vpop.permute.xlu1 %249  ;;  %v339_v14 = vpop.permute.xlu0 %338 }
  0xc9   : > { %253 = vst.msk [vmem:[#allocation2 + $0x8] sm:$0xf] %vm4479_vm0, %v250_v13  ;;  %v340_v16 = vrot.slane %v339_v14, 4 }
  0xcb   : > { %325 = vrot.lane.b32.xlu1 %v324_v15, %s4416_s9  ;;  %341 = vrot.lane.b32.xlu0 %v340_v16, %s4416_s9  ;;  %s4430_s9 = smov 30  }
  0xcc   : > { %v280_v17 = vpop.permute.xlu0 %279  ;;  %v286_v18 = vpop.permute.xlu1 %285 }
  0xcd   : > { %283 = vst.msk [vmem:[#allocation2 + $0x20] sm:$0xf] %vm4479_vm0, %v280_v17  ;;  %289 = vst.msk [vmem:[#allocation2 + $0x24] sm:$0xf] %vm4479_vm0, %v286_v18 }
  0xd0   : > { %v346_v19 = vld [vmem:[#allocation2 + $0x8] sm:$0xf]  ;;  %v244_v20 = vpop.permute.xlu1 %243  ;;  %v260_v22 = vpop.permute.xlu0 %259 }
  0xd1   : > { %v354_v21 = vld [vmem:[#allocation2 + $0x8] sm:$0xf]  ;;  %248 = vst.msk [vmem:[#allocation2 + $0x4] sm:$0xf] %vm4479_vm0, %v244_v20  ;;  %263 = vst.msk [vmem:[#allocation2 + $0x10] sm:$0xf] %vm4479_vm0, %v260_v22 }
  0xd2   : > { %392 = vrot.lane.b32.xlu0 %v354_v21, %s4450_s17  ;;  %348 = vst.msk [vmem:[#allocation2] sm:$0xf] %vm4478_vm1, %v346_v19 }
  0xd4   : > { %v255_v23 = vpop.permute.xlu1 %254  ;;  %v360_v24 = vld [vmem:[#allocation2 + $0x20] sm:$0xf]  ;;  %v265_v25 = vpop.permute.xlu0 %264  ;;  %v361_v29 = vld [vmem:[#allocation2 + $0x24] sm:$0xf] }
  0xd5   : > { %258 = vst.msk [vmem:[#allocation2 + $0xc] sm:$0xf] %vm4479_vm0, %v255_v23  ;;  %404 = vrot.lane.b32.xlu1 %v360_v24, %s4450_s17  ;;  %268 = vst.msk [vmem:[#allocation2 + $0x14] sm:$0xf] %vm4479_vm0, %v265_v25 }
  0xd8   : > { %v353_v26 = vld [vmem:[#allocation2 + $0x4] sm:$0xf]  ;;  %v270_v27 = vpop.permute.xlu0 %269  ;;  %v275_v28 = vpop.permute.xlu1 %274  ;;  %v356_v31 = vld [vmem:[#allocation2 + $0x10] sm:$0xf] }
  0xd9   : > { %390 = vrot.lane.b32.xlu1 %v353_v26, %s4450_s17  ;;  %273 = vst.msk [vmem:[#allocation2 + $0x18] sm:$0xf] %vm4479_vm0, %v270_v27  ;;  %278 = vst.msk [vmem:[#allocation2 + $0x1c] sm:$0xf] %vm4479_vm0, %v275_v28  ;;  %v352_v35 = vld [vmem:[#allocation2] sm:$0xf] }
  0xdc   : > { %v355_v30 = vld [vmem:[#allocation2 + $0xc] sm:$0xf]  ;;  %v357_v32 = vld [vmem:[#allocation2 + $0x14] sm:$0xf] }
  0xdd   : > { %406 = vrot.lane.b32.xlu1 %v361_v29, %s4450_s17  ;;  %394 = vrot.lane.b32.xlu0 %v355_v30, %s4450_s17 }
  0xe0   : > { %v358_v33 = vld [vmem:[#allocation2 + $0x18] sm:$0xf]  ;;  %v359_v34 = vld [vmem:[#allocation2 + $0x1c] sm:$0xf] }
  0xe1   : > { %396 = vrot.lane.b32.xlu0 %v356_v31, %s4450_s17 }
  0xe5   : > { %398 = vrot.lane.b32.xlu0 %v357_v32, %s4450_s17 }
  0xe9   : > { %400 = vrot.lane.b32.xlu0 %v358_v33, %s4450_s17 }
  0xed   : > { %402 = vrot.lane.b32.xlu0 %v359_v34, %s4450_s17 }
  0xf1   : > { %388 = vrot.lane.b32.xlu0 %v352_v35, %s4450_s17 }
 0x131   : > { %v294_v36 = vpop.permute.xlu0 %293 }
 0x132   : > { %297 = vst.msk [vmem:[#allocation2 + $0x28] sm:$0xf] %vm4479_vm0, %v294_v36 }
 0x135   : > { %v302_v37 = vpop.permute.xlu0 %301  ;;  %v334_v38 = vpop.permute.xlu1 %333 }
 0x136   : > { %305 = vst.msk [vmem:[#allocation2 + $0x2c] sm:$0xf] %vm4479_vm0, %v302_v37  ;;  %337 = vst.msk [vmem:[#allocation2 + $0x3c] sm:$0xf] %vm4479_vm0, %v334_v38 }
 0x139   : > { %v310_v39 = vpop.permute.xlu0 %309  ;;  %v318_v40 = vpop.permute.xlu1 %317  ;;  %v362_v41 = vld [vmem:[#allocation2 + $0x28] sm:$0xf] }
 0x13a   : > { %313 = vst.msk [vmem:[#allocation2 + $0x30] sm:$0xf] %vm4479_vm0, %v310_v39  ;;  %321 = vst.msk [vmem:[#allocation2 + $0x34] sm:$0xf] %vm4479_vm0, %v318_v40  ;;  %408 = vrot.lane.b32.xlu0 %v362_v41, %s4450_s17 }
 0x13d   : > { %v349_v42 = vld [vmem:[#allocation2 + $0x3c] sm:$0xf]  ;;  %v326_v43 = vpop.permute.xlu1 %325  ;;  %v363_v44 = vld [vmem:[#allocation2 + $0x2c] sm:$0xf]  ;;  %v342_v45 = vpop.permute.xlu0 %341 }
 0x13e   : > { %351 = vst.msk [vmem:[#allocation2 + $0x44] sm:$0xf] %vm4478_vm1, %v349_v42  ;;  %410 = vrot.lane.b32.xlu1 %v363_v44, %s4450_s17  ;;  %v367_v53 = vld [vmem:[#allocation2 + $0x3c] sm:$0xf]  ;;  %vm4484_vm1 = vcmask 917252  }
 0x13f   : > { %329 = vst.msk [vmem:[#allocation2 + $0x38] sm:$0xf] %vm4479_vm0, %v326_v43  ;;  %345 = vst.msk [vmem:[#allocation2 + $0x40] sm:$0xf] %vm4479_vm0, %v342_v45  ;;  %vm4483_vm0 = vcmask 1048452  }
 0x141   : > { %v364_v46 = vld [vmem:[#allocation2 + $0x30] sm:$0xf]  ;;  %v365_v48 = vld [vmem:[#allocation2 + $0x34] sm:$0xf] }
 0x142   : > { %412 = vrot.lane.b32.xlu1 %v364_v46, %s4450_s17 }
 0x144   : > { %v393_v47 = vpop.permute.xlu0 %392 }
 0x145   : > { %445 = vst.msk [vmem:[#allocation2 + $0x8] sm:$0xf] %vm4477_vm2, %v393_v47  ;;  %v369_v6 = vld [vmem:[#allocation2 + $0x44] sm:$0xf] }
 0x146   : > { %414 = vrot.lane.b32.xlu1 %v365_v48, %s4450_s17  ;;  %v366_v50 = vld [vmem:[#allocation2 + $0x38] sm:$0xf]  ;;  %v368_v56 = vld [vmem:[#allocation2 + $0x40] sm:$0xf] }
 0x147   : > { %v405_v49 = vpop.permute.xlu1 %404 }
 0x148   : > { %451 = vst.msk [vmem:[#allocation2 + $0x20] sm:$0xf] %vm4477_vm2, %v405_v49 }
 0x14a   : > { %416 = vrot.lane.b32.xlu1 %v366_v50, %s4450_s17 }
 0x14b   : > { %v391_v51 = vpop.permute.xlu1 %390 }
 0x14c   : > { %v463_v52 = vld [vmem:[#allocation2 + $0x8] sm:$0xf]  ;;  %444 = vst.msk [vmem:[#allocation2 + $0x4] sm:$0xf] %vm4477_vm2, %v391_v51 }
 0x14d   : > { %501 = vrot.lane.b32.xlu0 %v463_v52, %s4438_s23 }
 0x14e   : > { %418 = vrot.lane.b32.xlu1 %v367_v53, %s4450_s17 }
 0x14f   : > { %v395_v54 = vpop.permute.xlu0 %394  ;;  %v407_v55 = vpop.permute.xlu1 %406  ;;  %v469_v58 = vld [vmem:[#allocation2 + $0x20] sm:$0xf] }
 0x150   : > { %446 = vst.msk [vmem:[#allocation2 + $0xc] sm:$0xf] %vm4477_vm2, %v395_v54  ;;  %452 = vst.msk [vmem:[#allocation2 + $0x24] sm:$0xf] %vm4477_vm2, %v407_v55 }
 0x152   : > { %420 = vrot.lane.b32.xlu1 %v368_v56, %s4450_s17 }
 0x153   : > { %v397_v57 = vpop.permute.xlu0 %396  ;;  %v462_v61 = vld [vmem:[#allocation2 + $0x4] sm:$0xf] }
 0x154   : > { %447 = vst.msk [vmem:[#allocation2 + $0x10] sm:$0xf] %vm4477_vm2, %v397_v57 }
 0x156   : > { %513 = vrot.lane.b32.xlu1 %v469_v58, %s4438_s23 }
 0x157   : > { %v399_v59 = vpop.permute.xlu0 %398  ;;  %v464_v60 = vld [vmem:[#allocation2 + $0xc] sm:$0xf]  ;;  %v470_v0 = vld [vmem:[#allocation2 + $0x24] sm:$0xf] }
 0x158   : > { %448 = vst.msk [vmem:[#allocation2 + $0x14] sm:$0xf] %vm4477_vm2, %v399_v59  ;;  %503 = vrot.lane.b32.xlu0 %v464_v60, %s4438_s23 }
 0x15a   : > { %499 = vrot.lane.b32.xlu1 %v462_v61, %s4438_s23 }
 0x15b   : > { %v401_v62 = vpop.permute.xlu0 %400  ;;  %v465_v63 = vld [vmem:[#allocation2 + $0x10] sm:$0xf] }
 0x15c   : > { %449 = vst.msk [vmem:[#allocation2 + $0x18] sm:$0xf] %vm4477_vm2, %v401_v62  ;;  %505 = vrot.lane.b32.xlu0 %v465_v63, %s4438_s23 }
 0x15e   : > { %515 = vrot.lane.b32.xlu1 %v470_v0, %s4438_s23 }
 0x15f   : > { %v403_v1 = vpop.permute.xlu0 %402  ;;  %v466_v2 = vld [vmem:[#allocation2 + $0x14] sm:$0xf] }
 0x160   : > { %450 = vst.msk [vmem:[#allocation2 + $0x1c] sm:$0xf] %vm4477_vm2, %v403_v1  ;;  %507 = vrot.lane.b32.xlu0 %v466_v2, %s4438_s23 }
 0x163   : > { %v389_v3 = vpop.permute.xlu0 %388  ;;  %v467_v4 = vld [vmem:[#allocation2 + $0x18] sm:$0xf] }
 0x164   : > { %443 = vst.msk [vmem:[#allocation2] sm:$0xf] %vm4477_vm2, %v389_v3  ;;  %509 = vrot.lane.b32.xlu0 %v467_v4, %s4438_s23 }
 0x167   : > { %v468_v5 = vld [vmem:[#allocation2 + $0x1c] sm:$0xf] }
 0x168   : > { %511 = vrot.lane.b32.xlu0 %v468_v5, %s4438_s23 }
 0x16b   : > { %v461_v7 = vld [vmem:[#allocation2] sm:$0xf] }
 0x16c   : > { %422 = vrot.lane.b32.xlu0 %v369_v6, %s4450_s17 }
 0x170   : > { %497 = vrot.lane.b32.xlu0 %v461_v7, %s4438_s23 }
 0x1ac   : > { %v409_v8 = vpop.permute.xlu0 %408 }
 0x1ad   : > { %453 = vst.msk [vmem:[#allocation2 + $0x28] sm:$0xf] %vm4477_vm2, %v409_v8 }
 0x1b0   : > { %v411_v9 = vpop.permute.xlu1 %410 }
 0x1b1   : > { %454 = vst.msk [vmem:[#allocation2 + $0x2c] sm:$0xf] %vm4477_vm2, %v411_v9 }
 0x1b4   : > { %v413_v10 = vpop.permute.xlu1 %412  ;;  %v471_v11 = vld [vmem:[#allocation2 + $0x28] sm:$0xf] }
 0x1b5   : > { %455 = vst.msk [vmem:[#allocation2 + $0x30] sm:$0xf] %vm4477_vm2, %v413_v10  ;;  %517 = vrot.lane.b32.xlu0 %v471_v11, %s4438_s23 }
 0x1b8   : > { %v415_v12 = vpop.permute.xlu1 %414  ;;  %v472_v13 = vld [vmem:[#allocation2 + $0x2c] sm:$0xf] }
 0x1b9   : > { %456 = vst.msk [vmem:[#allocation2 + $0x34] sm:$0xf] %vm4477_vm2, %v415_v12  ;;  %519 = vrot.lane.b32.xlu1 %v472_v13, %s4438_s23 }
 0x1bc   : > { %v417_v14 = vpop.permute.xlu1 %416  ;;  %v473_v15 = vld [vmem:[#allocation2 + $0x30] sm:$0xf] }
 0x1bd   : > { %457 = vst.msk [vmem:[#allocation2 + $0x38] sm:$0xf] %vm4477_vm2, %v417_v14  ;;  %521 = vrot.lane.b32.xlu1 %v473_v15, %s4438_s23 }
 0x1bf   : > { %v502_v16 = vpop.permute.xlu0 %501 }
 0x1c0   : > { %554 = vst.msk [vmem:[#allocation2 + $0x8] sm:$0xf] %vm4476_vm3, %v502_v16  ;;  %v419_v17 = vpop.permute.xlu1 %418  ;;  %v474_v18 = vld [vmem:[#allocation2 + $0x34] sm:$0xf] }
 0x1c1   : > { %458 = vst.msk [vmem:[#allocation2 + $0x3c] sm:$0xf] %vm4477_vm2, %v419_v17  ;;  %523 = vrot.lane.b32.xlu1 %v474_v18, %s4438_s23 }
 0x1c4   : > { %v421_v19 = vpop.permute.xlu1 %420  ;;  %v475_v20 = vld [vmem:[#allocation2 + $0x38] sm:$0xf] }
 0x1c5   : > { %459 = vst.msk [vmem:[#allocation2 + $0x40] sm:$0xf] %vm4477_vm2, %v421_v19  ;;  %525 = vrot.lane.b32.xlu1 %v475_v20, %s4438_s23 }
 0x1c7   : > { %v1198_v23 = vld [vmem:[#allocation2 + $0x8] sm:$0xf] }
 0x1c8   : > { %v514_v21 = vpop.permute.xlu1 %513  ;;  %v476_v22 = vld [vmem:[#allocation2 + $0x3c] sm:$0xf]  ;;  %1199 = vst.msk [vmem:[#allocation3 + $0x30] sm:$0xf] %vm571_vm4, %v1198_v23  ;;  %v580_v37 = vld [vmem:[#allocation2 + $0x8] sm:$0xf] }
 0x1c9   : > { %560 = vst.msk [vmem:[#allocation2 + $0x20] sm:$0xf] %vm4476_vm3, %v514_v21  ;;  %527 = vrot.lane.b32.xlu1 %v476_v22, %s4438_s23  ;;  %v798_v40 = vld [vmem:[#allocation2 + $0x8] sm:$0xf] }
 0x1ca   : > { %v504_v24 = vpop.permute.xlu0 %503  ;;  %v1398_v46 = vld [vmem:[#allocation2 + $0x8] sm:$0xf] }
 0x1cb   : > { %555 = vst.msk [vmem:[#allocation2 + $0xc] sm:$0xf] %vm4476_vm3, %v504_v24  ;;  %v996_v57 = vld [vmem:[#allocation2 + $0x8] sm:$0xf] }
 0x1cc   : > { %v500_v25 = vpop.permute.xlu1 %499  ;;  %v477_v26 = vld [vmem:[#allocation2 + $0x40] sm:$0xf] }
 0x1cd   : > { %553 = vst.msk [vmem:[#allocation2 + $0x4] sm:$0xf] %vm4476_vm3, %v500_v25  ;;  %529 = vrot.lane.b32.xlu1 %v477_v26, %s4438_s23 }
 0x1ce   : > { %v506_v27 = vpop.permute.xlu0 %505 }
 0x1cf   : > { %556 = vst.msk [vmem:[#allocation2 + $0x10] sm:$0xf] %vm4476_vm3, %v506_v27 }
 0x1d0   : > { %v516_v28 = vpop.permute.xlu1 %515  ;;  %v834_v29 = vld [vmem:[#allocation2 + $0x20] sm:$0xf] }
 0x1d1   : > { %561 = vst.msk [vmem:[#allocation2 + $0x24] sm:$0xf] %vm4476_vm3, %v516_v28  ;;  %836 = vrot.lane.b32.xlu0 %v834_v29, %s4450_s17  ;;  %v1230_v44 = vld [vmem:[#allocation2 + $0x20] sm:$0xf] }
 0x1d2   : > { %v508_v30 = vpop.permute.xlu0 %507  ;;  %v587_v43 = vld [vmem:[#allocation2 + $0xc] sm:$0xf]  ;;  %v622_v49 = vld [vmem:[#allocation2 + $0x20] sm:$0xf] }
 0x1d3   : > { %557 = vst.msk [vmem:[#allocation2 + $0x14] sm:$0xf] %vm4476_vm3, %v508_v30  ;;  %v804_v45 = vld [vmem:[#allocation2 + $0xc] sm:$0xf]  ;;  %v1032_v51 = vld [vmem:[#allocation2 + $0x20] sm:$0xf] }
 0x1d4   : > { %v573_v31 = vld [vmem:[#allocation2 + $0x4] sm:$0xf]  ;;  %623 = vst.msk [vmem:[#allocation3 + $0x8] sm:$0xf] %vm571_vm4, %v622_v49  ;;  %v1404_v56 = vld [vmem:[#allocation2 + $0xc] sm:$0xf] }
 0x1d5   : > { %575 = vrot.lane.b32.xlu1 %v573_v31, %s4456_s8  ;;  %v792_v34 = vld [vmem:[#allocation2 + $0x4] sm:$0xf]  ;;  %v1200_v59 = vld [vmem:[#allocation2 + $0xc] sm:$0xf]  ;;  %v929_v15 = vld [vmem:[#allocation2 + $0x20] sm:$0xf] }
 0x1d6   : > { %v510_v32 = vpop.permute.xlu0 %509  ;;  %v594_v33 = vld [vmem:[#allocation2 + $0x10] sm:$0xf]  ;;  %v990_v39 = vld [vmem:[#allocation2 + $0x4] sm:$0xf]  ;;  %v1002_v1 = vld [vmem:[#allocation2 + $0xc] sm:$0xf] }
 0x1d7   : > { %558 = vst.msk [vmem:[#allocation2 + $0x18] sm:$0xf] %vm4476_vm3, %v510_v32  ;;  %596 = vrot.lane.b32.xlu0 %v594_v33, %s4420_s28  ;;  %v810_v36 = vld [vmem:[#allocation2 + $0x10] sm:$0xf]  ;;  %s4452_s28 = smov 46   ;;  %v931_v17 = vrot.slane %v929_v15, 4 }
 0x1d8   : > { %v882_v50 = vld [vmem:[#allocation2 + $0x4] sm:$0xf]  ;;  %v1410_v58 = vld [vmem:[#allocation2 + $0x10] sm:$0xf]  ;;  %v1328_v21 = vld [vmem:[#allocation2 + $0x20] sm:$0xf] }
 0x1d9   : > { %794 = vrot.lane.b32.xlu1 %v792_v34, %s4428_s29  ;;  %v884_v52 = vrot.slane %v882_v50, 4  ;;  %v936_v53 = vld [vmem:[#allocation2 + $0x24] sm:$0xf]  ;;  %v698_v3 = vld [vmem:[#allocation2 + $0x10] sm:$0xf]  ;;  %v1330_v23 = vrot.slane %v1328_v21, 4 }
 0x1da   : > { %v512_v35 = vpop.permute.xlu0 %511  ;;  %v601_v48 = vld [vmem:[#allocation2 + $0x14] sm:$0xf]  ;;  %v938_v55 = vrot.slane %v936_v53, 4  ;;  %v1206_v4 = vld [vmem:[#allocation2 + $0x10] sm:$0xf]  ;;  %v700_v5 = vrot.slane %v698_v3, 4 }
 0x1db   : > { %559 = vst.msk [vmem:[#allocation2 + $0x1c] sm:$0xf] %vm4476_vm3, %v512_v35  ;;  %812 = vrot.lane.b32.xlu0 %v810_v36, %s4436_s10  ;;  %v816_v54 = vld [vmem:[#allocation2 + $0x14] sm:$0xf]  ;;  %v1086_v9 = vld [vmem:[#allocation2 + $0x4] sm:$0xf] }
 0x1dc   : > { %886 = vst.msk [vmem:[#allocation3 + $0x10] sm:$0xf0] %vm672_vm5, %v884_v52  ;;  %940 = vst.msk [vmem:[#allocation3 + $0x18] sm:$0xf0] %vm672_vm5, %v938_v55  ;;  %v1416_v60 = vld [vmem:[#allocation2 + $0x14] sm:$0xf] }
 0x1dd   : > { %582 = vrot.lane.b32.xlu1 %v580_v37, %s4460_s16  ;;  %v908_v6 = vld [vmem:[#allocation2 + $0x14] sm:$0xf]  ;;  %v1088_v11 = vrot.slane %v1086_v9, 4  ;;  %v1008_v13 = vld [vmem:[#allocation2 + $0x10] sm:$0xf] }
 0x1de   : > { %v423_v38 = vpop.permute.xlu0 %422  ;;  %v608_v61 = vld [vmem:[#allocation2 + $0x18] sm:$0xf]  ;;  %v910_v8 = vrot.slane %v908_v6, 4  ;;  %v1212_v16 = vld [vmem:[#allocation2 + $0x14] sm:$0xf] }
 0x1df   : > { %460 = vst.msk [vmem:[#allocation2 + $0x44] sm:$0xf] %vm4477_vm2, %v423_v38  ;;  %992 = vrot.lane.b32.xlu0 %v990_v39, %s4422_s11  ;;  %s4442_s11 = smov 111   ;;  %v1422_v62 = vld [vmem:[#allocation2 + $0x18] sm:$0xf]  ;;  %vm4490_vm2 = vcmask 786052  }
 0x1e0   : > { %v822_v63 = vld [vmem:[#allocation2 + $0x18] sm:$0xf]  ;;  %v1014_v19 = vld [vmem:[#allocation2 + $0x14] sm:$0xf]  ;;  %v1236_v25 = vld [vmem:[#allocation2 + $0x24] sm:$0xf] }
 0x1e1   : > { %800 = vrot.lane.b32.xlu1 %v798_v40, %s4430_s9  ;;  %v1218_v22 = vld [vmem:[#allocation2 + $0x18] sm:$0xf]  ;;  %v1142_v26 = vld [vmem:[#allocation2 + $0x24] sm:$0xf]  ;;  %v730_v29 = vld [vmem:[#allocation2 + $0x20] sm:$0xf] }
 0x1e2   : > { %v498_v41 = vpop.permute.xlu0 %497  ;;  %v1026_v42 = vld [vmem:[#allocation2 + $0x1c] sm:$0xf]  ;;  %v1020_v24 = vld [vmem:[#allocation2 + $0x18] sm:$0xf]  ;;  %v1144_v30 = vrot.slane %v1142_v26, 4  ;;  %v732_v32 = vrot.slane %v730_v29, 4 }
 0x1e3   : > { %552 = vst.msk [vmem:[#allocation2] sm:$0xf] %vm4476_vm3, %v498_v41  ;;  %1028 = vrot.lane.b32.xlu0 %v1026_v42, %s4424_s7  ;;  %s4434_s7 = smov 78   ;;  %v1428_v0 = vld [vmem:[#allocation2 + $0x1c] sm:$0xf] }
 0x1e4   : > { %v615_v7 = vld [vmem:[#allocation2 + $0x1c] sm:$0xf]  ;;  %v624_v36 = vld [vmem:[#allocation2 + $0x24] sm:$0xf]  ;;  %v682_v49 = vld [vmem:[#allocation2 + $0x8] sm:$0xf] }
 0x1e5   : > { %589 = vrot.lane.b32.xlu1 %v587_v43, %s4466_s26  ;;  %v828_v10 = vld [vmem:[#allocation2 + $0x1c] sm:$0xf]  ;;  %v840_v40 = vld [vmem:[#allocation2 + $0x24] sm:$0xf]  ;;  %v684_v52 = vrot.slane %v682_v49, 4 }
 0x1e6   : > { %v478_v2 = vld [vmem:[#allocation2 + $0x44] sm:$0xf]  ;;  %v722_v12 = vld [vmem:[#allocation2 + $0x1c] sm:$0xf]  ;;  %v894_v53 = vld [vmem:[#allocation2 + $0xc] sm:$0xf] }
 0x1e7   : > { %1232 = vrot.lane.b32.xlu0 %v1230_v44, %s4432_s25  ;;  %v724_v14 = vrot.slane %v722_v12, 4  ;;  %v1128_v18 = vld [vmem:[#allocation2 + $0x1c] sm:$0xf]  ;;  %v674_v41 = vld [vmem:[#allocation2 + $0x4] sm:$0xf] }
 0x1e8   : > { %v1130_v20 = vrot.slane %v1128_v18, 4  ;;  %v1224_v28 = vld [vmem:[#allocation2 + $0x1c] sm:$0xf]  ;;  %v676_v44 = vrot.slane %v674_v41, 4  ;;  %v1286_v6 = vld [vmem:[#allocation2 + $0x8] sm:$0xf] }
 0x1e9   : > { %806 = vrot.lane.b32.xlu1 %v804_v45, %s4452_s28  ;;  %v887_v45 = vld [vmem:[#allocation2 + $0x8] sm:$0xf]  ;;  %v1293_v26 = vld [vmem:[#allocation2 + $0xc] sm:$0xf] }
 0x1ea   : > { %v570_v47 = vld [vmem:[#allocation2] sm:$0xf]  ;;  %v1093_v21 = vld [vmem:[#allocation2 + $0x8] sm:$0xf]  ;;  %v1100_v41 = vld [vmem:[#allocation2 + $0xc] sm:$0xf] }
 0x1eb   : > { %1400 = vrot.lane.b32.xlu0 %v1398_v46, %s4450_s17  ;;  %572 = vst.msk [vmem:[#allocation3] sm:$0xf] %vm571_vm4, %v570_v47  ;;  %v786_v33 = vld [vmem:[#allocation2] sm:$0xf] }
 0x1ec   : > { %v666_v34 = vld [vmem:[#allocation2] sm:$0xf] }
 0x1ed   : > { %603 = vrot.lane.b32.xlu1 %v601_v48, %s4426_s12  ;;  %s4464_s12 = smov 15   ;;  %v668_v37 = vrot.slane %v666_v34, 4  ;;  %v889_v48 = vrot.slane %v887_v45, 4  ;;  %v1102_v45 = vrot.slane %v1100_v41, 4 }
 0x1ef   : > { %1034 = vrot.lane.b32.xlu0 %v1032_v51, %s4442_s11 }
 0x1f1   : > { %818 = vrot.lane.b32.xlu1 %v816_v54, %s4434_s7 }
 0x1f3   : > { %1406 = vrot.lane.b32.xlu0 %v1404_v56, %s4428_s29  ;;  %s4446_s29 = smov 94   ;;  %v896_v56 = vrot.slane %v894_v53, 4 }
 0x1f5   : > { %998 = vrot.lane.b32.xlu1 %v996_v57, %s4464_s12  ;;  %v690_v57 = vld [vmem:[#allocation2 + $0xc] sm:$0xf] }
 0x1f7   : > { %1412 = vrot.lane.b32.xlu0 %v1410_v58, %s4430_s9  ;;  %s4462_s9 = smov 31  }
 0x1f9   : > { %1202 = vrot.lane.b32.xlu1 %v1200_v59, %s4456_s8 }
 0x1fb   : > { %1418 = vrot.lane.b32.xlu0 %v1416_v60, %s4452_s28  ;;  %v692_v60 = vrot.slane %v690_v57, 4 }
 0x1fd   : > { %610 = vrot.lane.b32.xlu1 %v608_v61, %s4432_s25  ;;  %s4444_s25 = smov 63   ;;  %v901_v61 = vld [vmem:[#allocation2 + $0x10] sm:$0xf] }
 0x1ff   : > { %1424 = vrot.lane.b32.xlu0 %v1422_v62, %s4436_s10  ;;  %s4440_s10 = smov 110  }
 0x201   : > { %824 = vrot.lane.b32.xlu1 %v822_v63, %s4446_s29 }
 0x203   : > { %1430 = vrot.lane.b32.xlu0 %v1428_v0, %s4434_s7  ;;  %s4521_s7 = smov 64  }
 0x205   : > { %1004 = vrot.lane.b32.xlu1 %v1002_v1, %s4462_s9  ;;  %v903_v1 = vrot.slane %v901_v61, 4  ;;  %v1114_v61 = vld [vmem:[#allocation2 + $0x14] sm:$0xf] }
 0x207   : > { %531 = vrot.lane.b32.xlu0 %v478_v2, %s4438_s23  ;;  %s4454_s23 = smov 47  }
 0x209   : > { %1208 = vrot.lane.b32.xlu1 %v1206_v4, %s4460_s16 }
 0x20b   : > { %701 = vrot.lane.b32.xlu0 %v700_v5, %s4444_s25  ;;  %v1038_v5 = vld [vmem:[#allocation2 + $0x24] sm:$0xf] }
 0x20d   : > { %617 = vrot.lane.b32.xlu1 %v615_v7, %s4448_s14 }
 0x20f   : > { %911 = vrot.lane.b32.xlu0 %v910_v8, %s4521_s7 }
 0x211   : > { %830 = vrot.lane.b32.xlu1 %v828_v10, %s4440_s10  ;;  %s4522_s10 = smov 95   ;;  %v1288_v10 = vrot.slane %v1286_v6, 4 }
 0x213   : > { %1089 = vrot.lane.b32.xlu0 %v1088_v11, %s4450_s17  ;;  %v706_v11 = vld [vmem:[#allocation2 + $0x14] sm:$0xf] }
 0x214   : > { %v708_v15 = vrot.slane %v706_v11, 4 }
 0x215   : > { %1010 = vrot.lane.b32.xlu1 %v1008_v13, %s4454_s23 }
 0x217   : > { %725 = vrot.lane.b32.xlu0 %v724_v14, %s4442_s11  ;;  %s4458_s11 = smov 79  }
 0x219   : > { %1214 = vrot.lane.b32.xlu1 %v1212_v16, %s4466_s26  ;;  %v915_v16 = vld [vmem:[#allocation2 + $0x18] sm:$0xf] }
 0x21b   : > { %932 = vrot.lane.b32.xlu0 %v931_v17, %s4448_s14 }
 0x21d   : > { %1016 = vrot.lane.b32.xlu1 %v1014_v19, %s4444_s25  ;;  %s4523_s25 = smov 80  }
 0x21f   : > { %1131 = vrot.lane.b32.xlu0 %v1130_v20, %s4446_s29  ;;  %s4524_s29 = smov 127   ;;  %v917_v20 = vrot.slane %v915_v16, 4 }
 0x221   : > { %1220 = vrot.lane.b32.xlu1 %v1218_v22, %s4521_s7 }
 0x223   : > { %1331 = vrot.lane.b32.xlu0 %v1330_v23, %s4522_s10 }
 0x225   : > { %1022 = vrot.lane.b32.xlu1 %v1020_v24, %s4458_s11 }
 0x227   : > { %1238 = vrot.lane.b32.xlu0 %v1236_v25, %s4448_s14  ;;  %v518_v27 = vpop.permute.xlu0 %517  ;;  %s4525_s14 = smov 14   ;;  %v1095_v25 = vrot.slane %v1093_v21, 4 }
 0x228   : > { %562 = vst.msk [vmem:[#allocation2 + $0x28] sm:$0xf] %vm4476_vm3, %v518_v27 }
 0x229   : > { %1226 = vrot.lane.b32.xlu1 %v1224_v28, %s4523_s25 }
 0x22b   : > { %1145 = vrot.lane.b32.xlu0 %v1144_v30, %s4450_s17  ;;  %v520_v31 = vpop.permute.xlu1 %519  ;;  %v1295_v30 = vrot.slane %v1293_v26, 4 }
 0x22c   : > { %563 = vst.msk [vmem:[#allocation2 + $0x2c] sm:$0xf] %vm4476_vm3, %v520_v31  ;;  %v714_v31 = vld [vmem:[#allocation2 + $0x18] sm:$0xf] }
 0x22d   : > { %733 = vrot.lane.b32.xlu1 %v732_v32, %s4524_s29 }
 0x22f   : > { %788 = vrot.lane.b32.xlu0 %v786_v33, %s4450_s17  ;;  %v522_v35 = vpop.permute.xlu1 %521  ;;  %v1242_v38 = vld [vmem:[#allocation2 + $0x28] sm:$0xf]  ;;  %s4526_s17 = smov 30  }
 0x230   : > { %564 = vst.msk [vmem:[#allocation2 + $0x30] sm:$0xf] %vm4476_vm3, %v522_v35  ;;  %v630_v42 = vld [vmem:[#allocation2 + $0x28] sm:$0xf]  ;;  %v716_v35 = vrot.slane %v714_v31, 4 }
 0x231   : > { %626 = vrot.lane.b32.xlu1 %v624_v36, %s4456_s8  ;;  %1243 = vst.msk [vmem:[#allocation3 + $0x38] sm:$0xf] %vm571_vm4, %v1242_v38  ;;  %v846_v46 = vld [vmem:[#allocation2 + $0x28] sm:$0xf]  ;;  %v922_v36 = vld [vmem:[#allocation2 + $0x1c] sm:$0xf] }
 0x233   : > { %669 = vrot.lane.b32.xlu0 %v668_v37, %s4524_s29  ;;  %v524_v39 = vpop.permute.xlu1 %523  ;;  %v636_v50 = vld [vmem:[#allocation2 + $0x2c] sm:$0xf] }
 0x234   : > { %565 = vst.msk [vmem:[#allocation2 + $0x34] sm:$0xf] %vm4476_vm3, %v524_v39  ;;  %v852_v54 = vld [vmem:[#allocation2 + $0x2c] sm:$0xf] }
 0x235   : > { %842 = vrot.lane.b32.xlu1 %v840_v40, %s4525_s14  ;;  %v1244_v3 = vld [vmem:[#allocation2 + $0x2c] sm:$0xf]  ;;  %v924_v40 = vrot.slane %v922_v36, 4 }
 0x236   : > { %v1050_v18 = vld [vmem:[#allocation2 + $0x2c] sm:$0xf] }
 0x237   : > { %632 = vrot.lane.b32.xlu0 %v630_v42, %s4460_s16  ;;  %v526_v43 = vpop.permute.xlu1 %525  ;;  %v642_v58 = vld [vmem:[#allocation2 + $0x30] sm:$0xf]  ;;  %v751_v36 = vld [vmem:[#allocation2 + $0x2c] sm:$0xf] }
 0x238   : > { %566 = vst.msk [vmem:[#allocation2 + $0x38] sm:$0xf] %vm4476_vm3, %v526_v43  ;;  %v858_v63 = vld [vmem:[#allocation2 + $0x30] sm:$0xf]  ;;  %v753_v41 = vrot.slane %v751_v36, 4 }
 0x239   : > { %677 = vrot.lane.b32.xlu1 %v676_v44, %s4464_s12  ;;  %v1250_v23 = vld [vmem:[#allocation2 + $0x30] sm:$0xf]  ;;  %v1342_v36 = vld [vmem:[#allocation2 + $0x28] sm:$0xf] }
 0x23a   : > { %v1056_v38 = vld [vmem:[#allocation2 + $0x30] sm:$0xf] }
 0x23b   : > { %848 = vrot.lane.b32.xlu0 %v846_v46, %s4526_s17  ;;  %v528_v47 = vpop.permute.xlu1 %527  ;;  %v1256_v43 = vld [vmem:[#allocation2 + $0x34] sm:$0xf]  ;;  %v1300_v46 = vld [vmem:[#allocation2 + $0x10] sm:$0xf] }
 0x23c   : > { %567 = vst.msk [vmem:[#allocation2 + $0x3c] sm:$0xf] %vm4476_vm3, %v528_v47 }
 0x23d   : > { %890 = vrot.lane.b32.xlu1 %v889_v48, %s4456_s8  ;;  %v1062_v48 = vld [vmem:[#allocation2 + $0x34] sm:$0xf] }
 0x23f   : > { %638 = vrot.lane.b32.xlu0 %v636_v50, %s4466_s26  ;;  %v530_v51 = vpop.permute.xlu1 %529  ;;  %v654_v8 = vld [vmem:[#allocation2 + $0x38] sm:$0xf]  ;;  %v1302_v50 = vrot.slane %v1300_v46, 4 }
 0x240   : > { %568 = vst.msk [vmem:[#allocation2 + $0x40] sm:$0xf] %vm4476_vm3, %v530_v51  ;;  %v870_v13 = vld [vmem:[#allocation2 + $0x38] sm:$0xf]  ;;  %v1107_v51 = vld [vmem:[#allocation2 + $0x10] sm:$0xf] }
 0x241   : > { %685 = vrot.lane.b32.xlu1 %v684_v52, %s4462_s9  ;;  %v1262_v53 = vld [vmem:[#allocation2 + $0x38] sm:$0xf] }
 0x243   : > { %854 = vrot.lane.b32.xlu0 %v852_v54, %s4452_s28  ;;  %v837_v55 = vpop.permute.xlu0 %836  ;;  %s4527_s28 = smov 62   ;;  %v660_v28 = vld [vmem:[#allocation2 + $0x3c] sm:$0xf] }
 0x244   : > { %839 = vst.msk [vmem:[#allocation3 + $0x18] sm:$0xf] %vm571_vm4, %v837_v55  ;;  %v876_v33 = vld [vmem:[#allocation2 + $0x3c] sm:$0xf]  ;;  %v1109_v55 = vrot.slane %v1107_v51, 4 }
 0x245   : > { %897 = vrot.lane.b32.xlu1 %v896_v56, %s4460_s16  ;;  %v1307_v56 = vld [vmem:[#allocation2 + $0x14] sm:$0xf]  ;;  %v1074_v6 = vld [vmem:[#allocation2 + $0x3c] sm:$0xf] }
 0x247   : > { %644 = vrot.lane.b32.xlu0 %v642_v58, %s4521_s7  ;;  %v576_v59 = vpop.permute.xlu1 %575  ;;  %v1068_v58 = vld [vmem:[#allocation2 + $0x38] sm:$0xf] }
 0x248   : > { %579 = vst.msk [vmem:[#allocation3] sm:$0xf] %vm578_vm6, %v576_v59 }
 0x249   : > { %v597_v62 = vpop.permute.xlu0 %596  ;;  %693 = vrot.lane.b32.xlu1 %v692_v60, %s4454_s23  ;;  %s4528_s23 = smov 96   ;;  %v1309_v60 = vrot.slane %v1307_v56, 4 }
 0x24b   : > { %860 = vrot.lane.b32.xlu0 %v858_v63, %s4527_s28  ;;  %v3605_v0 = vpop.permute.xlu1 %794  ;;  %v1268_v63 = vld [vmem:[#allocation2 + $0x3c] sm:$0xf] }
 0x24d   : > { %v3607_v2 = vpop.permute.xlu0 %812  ;;  %904 = vrot.lane.b32.xlu1 %v903_v1, %s4466_s26 }
 0x24f   : > { %1246 = vrot.lane.b32.xlu0 %v1244_v3, %s4456_s8  ;;  %v583_v4 = vpop.permute.xlu1 %582  ;;  %s4529_s8 = smov 94   ;;  %v1116_v3 = vrot.slane %v1114_v61, 4 }
 0x250   : > { %586 = vst.msk [vmem:[#allocation3] sm:$0xf] %vm585_vm7, %v583_v4  ;;  %v1314_v4 = vld [vmem:[#allocation2 + $0x18] sm:$0xf] }
 0x251   : > { %v993_v7 = vpop.permute.xlu0 %992  ;;  %1040 = vrot.lane.b32.xlu1 %v1038_v5, %s4524_s29 }
 0x252   : > { %995 = vst.msk [vmem:[#allocation3 + $0x20] sm:$0xf] %vm571_vm4, %v993_v7 }
 0x253   : > { %656 = vrot.lane.b32.xlu0 %v654_v8, %s4528_s23  ;;  %v3615_v9 = vpop.permute.xlu1 %800  ;;  %v1316_v8 = vrot.slane %v1314_v4, 4 }
 0x255   : > { %v3617_v12 = vpop.permute.xlu0 %1028  ;;  %1289 = vrot.lane.b32.xlu1 %v1288_v10, %s4524_s29  ;;  %v1121_v10 = vld [vmem:[#allocation2 + $0x18] sm:$0xf] }
 0x256   : > { %v1123_v16 = vrot.slane %v1121_v10, 4  ;;  %v1356_v10 = vld [vmem:[#allocation2 + $0x30] sm:$0xf] }
 0x257   : > { %872 = vrot.lane.b32.xlu0 %v870_v13, %s4529_s8  ;;  %v590_v14 = vpop.permute.xlu1 %589  ;;  %v1274_v13 = vld [vmem:[#allocation2 + $0x40] sm:$0xf] }
 0x258   : > { %593 = vst.msk [vmem:[#allocation3] sm:$0xf] %vm592_vm8, %v590_v14  ;;  %v941_v14 = vld [vmem:[#allocation2 + $0x28] sm:$0xf] }
 0x259   : > { %v3622_v17 = vpop.permute.xlu0 %1232  ;;  %709 = vrot.lane.b32.xlu1 %v708_v15, %s4458_s11  ;;  %600 = vst.msk [vmem:[#allocation3] sm:$0xf] %vm599_vm9, %v597_v62  ;;  %s4530_s11 = smov 112   ;;  %v943_v21 = vrot.slane %v941_v14, 4 }
 0x25b   : > { %1052 = vrot.lane.b32.xlu0 %v1050_v18, %s4462_s9  ;;  %v3627_v19 = vpop.permute.xlu1 %806  ;;  %s4532_s9 = smov 47   ;;  %v1321_v18 = vld [vmem:[#allocation2 + $0x1c] sm:$0xf] }
 0x25d   : > { %v1401_v22 = vpop.permute.xlu0 %1400  ;;  %918 = vrot.lane.b32.xlu1 %v917_v20, %s4523_s25 }
 0x25e   : > { %1403 = vst.msk [vmem:[#allocation3 + $0x40] sm:$0xf] %vm571_vm4, %v1401_v22  ;;  %v744_v22 = vld [vmem:[#allocation2 + $0x28] sm:$0xf] }
 0x25f   : > { %1252 = vrot.lane.b32.xlu0 %v1250_v23, %s4460_s16  ;;  %v604_v24 = vpop.permute.xlu1 %603  ;;  %s4531_s16 = smov 110  }
 0x260   : > { %607 = vst.msk [vmem:[#allocation3] sm:$0xf] %vm606_vm10, %v604_v24  ;;  %v1323_v24 = vrot.slane %v1321_v18, 4 }
 0x261   : > { %v3633_v27 = vpop.permute.xlu0 %1034  ;;  %1096 = vrot.lane.b32.xlu1 %v1095_v25, %s4525_s14  ;;  %v1135_v25 = vld [vmem:[#allocation2 + $0x20] sm:$0xf] }
 0x263   : > { %662 = vrot.lane.b32.xlu0 %v660_v28, %s4530_s11  ;;  %v3637_v29 = vpop.permute.xlu1 %818  ;;  %v746_v28 = vrot.slane %v744_v22, 4 }
 0x265   : > { %v1407_v32 = vpop.permute.xlu0 %1406  ;;  %1296 = vrot.lane.b32.xlu1 %v1295_v30, %s4464_s12  ;;  %s4533_s12 = smov 63   ;;  %v948_v30 = vld [vmem:[#allocation2 + $0x2c] sm:$0xf] }
 0x266   : > { %1409 = vst.msk [vmem:[#allocation3 + $0x40] sm:$0xf] %vm578_vm6, %v1407_v32  ;;  %v1137_v32 = vrot.slane %v1135_v25, 4 }
 0x267   : > { %878 = vrot.lane.b32.xlu0 %v876_v33, %s4531_s16  ;;  %v999_v34 = vpop.permute.xlu1 %998  ;;  %v737_v33 = vld [vmem:[#allocation2 + $0x24] sm:$0xf] }
 0x268   : > { %1001 = vst.msk [vmem:[#allocation3 + $0x20] sm:$0xf] %vm578_vm6, %v999_v34 }
 0x269   : > { %v1413_v37 = vpop.permute.xlu0 %1412  ;;  %717 = vrot.lane.b32.xlu1 %v716_v35, %s4522_s10  ;;  %v950_v35 = vrot.slane %v948_v30, 4 }
 0x26a   : > { %1415 = vst.msk [vmem:[#allocation3 + $0x40] sm:$0xf] %vm585_vm7, %v1413_v37 }
 0x26b   : > { %1058 = vrot.lane.b32.xlu0 %v1056_v38, %s4532_s9  ;;  %v1203_v39 = vpop.permute.xlu1 %1202  ;;  %v739_v38 = vrot.slane %v737_v33, 4 }
 0x26c   : > { %1205 = vst.msk [vmem:[#allocation3 + $0x30] sm:$0xf] %vm578_vm6, %v1203_v39  ;;  %v1335_v39 = vld [vmem:[#allocation2 + $0x24] sm:$0xf] }
 0x26d   : > { %v1419_v42 = vpop.permute.xlu0 %1418  ;;  %925 = vrot.lane.b32.xlu1 %v924_v40, %s4528_s23 }
 0x26e   : > { %1421 = vst.msk [vmem:[#allocation3 + $0x40] sm:$0xf] %vm592_vm8, %v1419_v42  ;;  %v955_v42 = vld [vmem:[#allocation2 + $0x30] sm:$0xf] }
 0x26f   : > { %1258 = vrot.lane.b32.xlu0 %v1256_v43, %s4466_s26  ;;  %v611_v44 = vpop.permute.xlu1 %610  ;;  %s4535_s26 = smov 46   ;;  %v957_v46 = vrot.slane %v955_v42, 4  ;;  %v765_v42 = vld [vmem:[#allocation2 + $0x34] sm:$0xf] }
 0x270   : > { %614 = vst.msk [vmem:[#allocation3] sm:$0xf] %vm613_vm11, %v611_v44  ;;  %v1337_v44 = vrot.slane %v1335_v39, 4 }
 0x271   : > { %v1425_v47 = vpop.permute.xlu0 %1424  ;;  %1103 = vrot.lane.b32.xlu1 %v1102_v45, %s4526_s17 }
 0x272   : > { %1427 = vst.msk [vmem:[#allocation3 + $0x40] sm:$0xf] %vm599_vm9, %v1425_v47  ;;  %v758_v47 = vld [vmem:[#allocation2 + $0x30] sm:$0xf] }
 0x273   : > { %1064 = vrot.lane.b32.xlu0 %v1062_v48, %s4533_s12  ;;  %v3654_v49 = vpop.permute.xlu1 %824 }
 0x275   : > { %v1431_v52 = vpop.permute.xlu0 %1430  ;;  %1303 = vrot.lane.b32.xlu1 %v1302_v50, %s4534_s0  ;;  %v648_v50 = vld [vmem:[#allocation2 + $0x34] sm:$0xf] }
 0x276   : > { %1433 = vst.msk [vmem:[#allocation3 + $0x40] sm:$0xf] %vm606_vm10, %v1431_v52  ;;  %v962_v52 = vld [vmem:[#allocation2 + $0x34] sm:$0xf] }
 0x277   : > { %1264 = vrot.lane.b32.xlu0 %v1262_v53, %s4521_s7  ;;  %v1005_v54 = vpop.permute.xlu1 %1004  ;;  %v864_v53 = vld [vmem:[#allocation2 + $0x34] sm:$0xf] }
 0x278   : > { %1007 = vst.msk [vmem:[#allocation3 + $0x20] sm:$0xf] %vm585_vm7, %v1005_v54 }
 0x279   : > { %v532_v57 = vpop.permute.xlu0 %531  ;;  %1110 = vrot.lane.b32.xlu1 %v1109_v55, %s4535_s26  ;;  %v964_v55 = vrot.slane %v962_v52, 4 }
 0x27a   : > { %569 = vst.msk [vmem:[#allocation2 + $0x44] sm:$0xf] %vm4476_vm3, %v532_v57  ;;  %v1044_v57 = vld [vmem:[#allocation2 + $0x28] sm:$0xf]  ;;  %vm4491_vm3 = vcmask 654852  }
 0x27b   : > { %1070 = vrot.lane.b32.xlu0 %v1068_v58, %s4536_s27  ;;  %v1209_v59 = vpop.permute.xlu1 %1208 }
 0x27c   : > { %1211 = vst.msk [vmem:[#allocation3 + $0x30] sm:$0xf] %vm585_vm7, %v1209_v59 }
 0x27d   : > { %v3664_v62 = vpop.permute.xlu0 %701  ;;  %1310 = vrot.lane.b32.xlu1 %v1309_v60, %s4532_s9 }
 0x27f   : > { %1270 = vrot.lane.b32.xlu0 %v1268_v63, %s4523_s25  ;;  %v618_v1 = vpop.permute.xlu1 %617 }
 0x280   : > { %621 = vst.msk [vmem:[#allocation3] sm:$0xf] %vm4495_vm12, %v618_v1 }
 0x281   : > { %v3669_v5 = vpop.permute.xlu0 %911  ;;  %1117 = vrot.lane.b32.xlu1 %v1116_v3, %s4527_s28  ;;  %v1156_v3 = vld [vmem:[#allocation2 + $0x2c] sm:$0xf] }
 0x283   : > { %1076 = vrot.lane.b32.xlu0 %v1074_v6, %s4522_s10  ;;  %v3673_v7 = vpop.permute.xlu1 %830  ;;  %v1452_v6 = vld [vmem:[#allocation2 + $0x2c] sm:$0xf] }
 0x285   : > { %v1090_v11 = vpop.permute.xlu0 %1089  ;;  %1317 = vrot.lane.b32.xlu1 %v1316_v8, %s4533_s12  ;;  %v1158_v8 = vrot.slane %v1156_v3, 4 }
 0x286   : > { %1092 = vst.msk [vmem:[#allocation3 + $0x20] sm:$0xf0] %vm672_vm5, %v1090_v11 }
 0x287   : > { %1276 = vrot.lane.b32.xlu0 %v1274_v13, %s4528_s23  ;;  %v1011_v15 = vpop.permute.xlu1 %1010  ;;  %v1458_v13 = vld [vmem:[#allocation2 + $0x30] sm:$0xf] }
 0x288   : > { %1013 = vst.msk [vmem:[#allocation3 + $0x20] sm:$0xf] %vm592_vm8, %v1011_v15  ;;  %v1358_v15 = vrot.slane %v1356_v10, 4 }
 0x289   : > { %v3679_v20 = vpop.permute.xlu0 %725  ;;  %1124 = vrot.lane.b32.xlu1 %v1123_v16, %s4537_s20  ;;  %v779_v16 = vld [vmem:[#allocation2 + $0x3c] sm:$0xf] }
 0x28b   : > { %944 = vrot.lane.b32.xlu0 %v943_v21, %s4538_s19  ;;  %v1215_v23 = vpop.permute.xlu1 %1214  ;;  %v1464_v21 = vld [vmem:[#allocation2 + $0x34] sm:$0xf] }
 0x28c   : > { %1217 = vst.msk [vmem:[#allocation3 + $0x30] sm:$0xf] %vm592_vm8, %v1215_v23  ;;  %v781_v23 = vrot.slane %v779_v16, 4  ;;  %v3274_v16 = vmov 0.0  }
 0x28d   : > { %v3684_v26 = vpop.permute.xlu0 %932  ;;  %1324 = vrot.lane.b32.xlu1 %v1323_v24, %s4536_s27  ;;  %v983_v24 = vld [vmem:[#allocation2 + $0x40] sm:$0xf]  ;;  %1586 = vmatprep.mubr.f32.mxu0 %v3274_v16 }
 0x28e   : > { %2900 = vmatprep.mubr.f32.mxu1 %v3274_v16 }
 0x28f   : > { %747 = vrot.lane.b32.xlu0 %v746_v28, %s4534_s0  ;;  %v1017_v31 = vpop.permute.xlu1 %1016  ;;  %v1470_v28 = vld [vmem:[#allocation2 + $0x38] sm:$0xf] }
 0x290   : > { %1019 = vst.msk [vmem:[#allocation3 + $0x20] sm:$0xf] %vm599_vm9, %v1017_v31  ;;  %v985_v31 = vrot.slane %v983_v24, 4 }
 0x291   : > { %v3689_v34 = vpop.permute.xlu0 %1131  ;;  %1138 = vrot.lane.b32.xlu1 %v1137_v32, %s4531_s16  ;;  %v1163_v32 = vld [vmem:[#allocation2 + $0x30] sm:$0xf] }
 0x293   : > { %951 = vrot.lane.b32.xlu0 %v950_v35, %s4539_s24  ;;  %v1221_v37 = vpop.permute.xlu1 %1220  ;;  %v1476_v35 = vld [vmem:[#allocation2 + $0x3c] sm:$0xf] }
 0x294   : > { %1223 = vst.msk [vmem:[#allocation3 + $0x30] sm:$0xf] %vm599_vm9, %v1221_v37 }
 0x295   : > { %v3694_v40 = vpop.permute.xlu0 %1331  ;;  %740 = vrot.lane.b32.xlu1 %v739_v38, %s4540_s21  ;;  %v1165_v38 = vrot.slane %v1163_v32, 4 }
 0x297   : > { %754 = vrot.lane.b32.xlu0 %v753_v41, %s4532_s9  ;;  %v1023_v43 = vpop.permute.xlu1 %1022  ;;  %v1344_v41 = vrot.slane %v1342_v36, 4 }
 0x298   : > { %1025 = vst.msk [vmem:[#allocation3 + $0x20] sm:$0xf] %vm606_vm10, %v1023_v43 }
 0x299   : > { %1031 = vst.msk [vmem:[#allocation3 + $0x20] sm:$0xf] %vm613_vm11, %v3617_v12  ;;  %v1239_v45 = vpop.permute.xlu0 %1238  ;;  %1338 = vrot.lane.b32.xlu1 %v1337_v44, %s4541_s6  ;;  %v760_v12 = vrot.slane %v758_v47, 4  ;;  %v969_v47 = vld [vmem:[#allocation2 + $0x38] sm:$0xf] }
 0x29a   : > { %1037 = vst.msk [vmem:[#allocation3 + $0x20] sm:$0xf] %vm4495_vm12, %v3633_v27  ;;  %v971_v52 = vrot.slane %v969_v47, 4 }
 0x29b   : > { %958 = vrot.lane.b32.xlu0 %v957_v46, %s4542_s18  ;;  %v1227_v48 = vpop.permute.xlu1 %1226 }
 0x29c   : > { %1229 = vst.msk [vmem:[#allocation3 + $0x30] sm:$0xf] %vm606_vm10, %v1227_v48 }
 0x29d   : > { %1235 = vst.msk [vmem:[#allocation3 + $0x30] sm:$0xf] %vm613_vm11, %v3622_v17  ;;  %v1146_v51 = vpop.permute.xlu0 %1145  ;;  %650 = vrot.lane.b32.xlu1 %v648_v50, %s4523_s25  ;;  %v1349_v17 = vld [vmem:[#allocation2 + $0x2c] sm:$0xf] }
 0x29e   : > { %1241 = vst.msk [vmem:[#allocation3 + $0x30] sm:$0xf] %vm4495_vm12, %v1239_v45  ;;  %v1351_v59 = vrot.slane %v1349_v17, 4  ;;  %v1170_v45 = vld [vmem:[#allocation2 + $0x34] sm:$0xf] }
 0x29f   : > { %1148 = vst.msk [vmem:[#allocation3 + $0x28] sm:$0xf0] %vm672_vm5, %v1146_v51  ;;  %761 = vrot.lane.b32.xlu0 %v760_v12, %s4533_s12  ;;  %v734_v27 = vpop.permute.xlu1 %733  ;;  %v1172_v50 = vrot.slane %v1170_v45, 4  ;;  %v1370_v51 = vld [vmem:[#allocation2 + $0x38] sm:$0xf] }
 0x2a0   : > { %736 = vst.msk [vmem:[#allocation3 + $0x8] sm:$0xf0] %vm672_vm5, %v734_v27  ;;  %v1149_v27 = vld [vmem:[#allocation2 + $0x28] sm:$0xf] }
 0x2a1   : > { %v789_v54 = vpop.permute.xlu0 %788  ;;  %866 = vrot.lane.b32.xlu1 %v864_v53, %s4537_s20 }
 0x2a2   : > { %791 = vst.msk [vmem:[#allocation3 + $0x10] sm:$0xf] %vm571_vm4, %v789_v54  ;;  %v1372_v54 = vrot.slane %v1370_v51, 4 }
 0x2a3   : > { %797 = vst.msk [vmem:[#allocation3 + $0x10] sm:$0xf] %vm578_vm6, %v3605_v0  ;;  %965 = vrot.lane.b32.xlu0 %v964_v55, %s4521_s7  ;;  %v627_v56 = vpop.permute.xlu1 %626  ;;  %v772_v0 = vld [vmem:[#allocation2 + $0x38] sm:$0xf] }
 0x2a4   : > { %803 = vst.msk [vmem:[#allocation3 + $0x10] sm:$0xf] %vm585_vm7, %v3615_v9  ;;  %v1177_v55 = vld [vmem:[#allocation2 + $0x38] sm:$0xf] }
 0x2a5   : > { %629 = vst.msk [vmem:[#allocation3 + $0x8] sm:$0xf] %vm578_vm6, %v627_v56  ;;  %v670_v58 = vpop.permute.xlu0 %669  ;;  %1046 = vrot.lane.b32.xlu1 %v1044_v57, %s4540_s21  ;;  %v1151_v56 = vrot.slane %v1149_v27, 4  ;;  %v1191_v57 = vld [vmem:[#allocation2 + $0x40] sm:$0xf] }
 0x2a6   : > { %809 = vst.msk [vmem:[#allocation3 + $0x10] sm:$0xf] %vm592_vm8, %v3627_v19  ;;  %v1446_v19 = vld [vmem:[#allocation2 + $0x28] sm:$0xf] }
 0x2a7   : > { %815 = vst.msk [vmem:[#allocation3 + $0x10] sm:$0xf] %vm599_vm9, %v3607_v2  ;;  %1352 = vrot.lane.b32.xlu0 %v1351_v59, %s4540_s21  ;;  %v843_v9 = vpop.permute.xlu1 %842  ;;  %v774_v2 = vrot.slane %v772_v0, 4  ;;  %v1179_v59 = vrot.slane %v1177_v55, 4  ;;  %v1377_v0 = vld [vmem:[#allocation2 + $0x3c] sm:$0xf] }
 0x2a8   : > { %673 = vst.msk [vmem:[#allocation3] sm:$0xf0] %vm672_vm5, %v670_v58 }
 0x2a9   : > { %821 = vst.msk [vmem:[#allocation3 + $0x10] sm:$0xf] %vm606_vm10, %v3637_v29  ;;  %v633_v60 = vpop.permute.xlu0 %632  ;;  %1448 = vrot.lane.b32.xlu1 %v1446_v19, %s4543_s5  ;;  %v976_v29 = vld [vmem:[#allocation2 + $0x3c] sm:$0xf]  ;;  %v1193_v19 = vrot.slane %v1191_v57, 4 }
 0x2aa   : > { %827 = vst.msk [vmem:[#allocation3 + $0x10] sm:$0xf] %vm613_vm11, %v3654_v49  ;;  %v1080_v49 = vld [vmem:[#allocation2 + $0x40] sm:$0xf]  ;;  %v978_v1 = vrot.slane %v976_v29, 4 }
 0x2ab   : > { %845 = vst.msk [vmem:[#allocation3 + $0x18] sm:$0xf] %vm578_vm6, %v843_v9  ;;  %775 = vrot.lane.b32.xlu0 %v774_v2, %s4522_s10  ;;  %v678_v61 = vpop.permute.xlu1 %677  ;;  %v1379_v2 = vrot.slane %v1377_v0, 4  ;;  %v1184_v29 = vld [vmem:[#allocation2 + $0x3c] sm:$0xf] }
 0x2ac   : > { %833 = vst.msk [vmem:[#allocation3 + $0x10] sm:$0xf] %vm4495_vm12, %v3673_v7  ;;  %v1186_v3 = vrot.slane %v1184_v29, 4 }
 0x2ad   : > { %635 = vst.msk [vmem:[#allocation3 + $0x8] sm:$0xf] %vm585_vm7, %v633_v60  ;;  %v849_v63 = vpop.permute.xlu0 %848  ;;  %1082 = vrot.lane.b32.xlu1 %v1080_v49, %s4541_s6  ;;  %v1280_v49 = vld [vmem:[#allocation2 + $0x44] sm:$0xf] }
 0x2ae   : > { %681 = vst.msk [vmem:[#allocation3] sm:$0xf0] %vm4494_vm13, %v678_v61 }
 0x2af   : > { %851 = vst.msk [vmem:[#allocation3 + $0x18] sm:$0xf] %vm585_vm7, %v849_v63  ;;  %979 = vrot.lane.b32.xlu0 %v978_v1, %s4528_s23  ;;  %v891_v4 = vpop.permute.xlu1 %890  ;;  %v1391_v63 = vld [vmem:[#allocation2 + $0x44] sm:$0xf] }
 0x2b0   : > { %893 = vst.msk [vmem:[#allocation3 + $0x10] sm:$0xf0] %vm4494_vm13, %v891_v4  ;;  %v1384_v4 = vld [vmem:[#allocation2 + $0x40] sm:$0xf] }
 0x2b1   : > { %v639_v7 = vpop.permute.xlu0 %638  ;;  %1454 = vrot.lane.b32.xlu1 %v1452_v6, %s4525_s14  ;;  %v1386_v10 = vrot.slane %v1384_v4, 4 }
 0x2b2   : > { %641 = vst.msk [vmem:[#allocation3 + $0x8] sm:$0xf] %vm592_vm8, %v639_v7  ;;  %v1393_v7 = vrot.slane %v1391_v63, 4 }
 0x2b3   : > { %1159 = vrot.lane.b32.xlu0 %v1158_v8, %s4526_s17  ;;  %v686_v11 = vpop.permute.xlu1 %685 }
 0x2b4   : > { %689 = vst.msk [vmem:[#allocation3] sm:$0xf0] %vm4493_vm14, %v686_v11 }
 0x2b5   : > { %v855_v14 = vpop.permute.xlu0 %854  ;;  %1460 = vrot.lane.b32.xlu1 %v1458_v13, %s4526_s17  ;;  %v1482_v13 = vld [vmem:[#allocation2 + $0x40] sm:$0xf] }
 0x2b6   : > { %857 = vst.msk [vmem:[#allocation3 + $0x18] sm:$0xf] %vm592_vm8, %v855_v14 }
 0x2b7   : > { %1359 = vrot.lane.b32.xlu0 %v1358_v15, %s4534_s0  ;;  %v898_v18 = vpop.permute.xlu1 %897 }
 0x2b8   : > { %900 = vst.msk [vmem:[#allocation3 + $0x10] sm:$0xf0] %vm4493_vm14, %v898_v18  ;;  %v1488_v18 = vld [vmem:[#allocation2 + $0x44] sm:$0xf] }
 0x2b9   : > { %v645_v22 = vpop.permute.xlu0 %644  ;;  %1466 = vrot.lane.b32.xlu1 %v1464_v21, %s4535_s26  ;;  %v3275_v21 = vmov 0  }
 0x2ba   : > { %647 = vst.msk [vmem:[#allocation3 + $0x8] sm:$0xf] %vm599_vm9, %v645_v22  ;;  %3136 = vset.pattern.permute.xlu1 %v3275_v21  ;;  %3137 = vset.pattern.permute.xlu0 %v3275_v21 }
 0x2bb   : > { %782 = vrot.lane.b32.xlu0 %v781_v23, %s4541_s6  ;;  %v694_v25 = vpop.permute.xlu1 %693  ;;  %v1505_v23 = vld [vmem:[%s4544_s2] sm:$0xf]  ;;  %s4549_s2 = smov 97  }
 0x2bc   : > { %697 = vst.msk [vmem:[#allocation3] sm:$0xf0] %vm4492_vm15, %v694_v25 }
 0x2bd   : > { %v861_v30 = vpop.permute.xlu0 %860  ;;  %1472 = vrot.lane.b32.xlu1 %v1470_v28, %s4527_s28  ;;  %705 = vst.msk [vmem:[#allocation3] sm:$0xf0] %vm4491_vm3, %v3664_v62  ;;  %v1363_v62 = vld [vmem:[#allocation2 + $0x34] sm:$0xf] }
 0x2be   : > { %863 = vst.msk [vmem:[#allocation3 + $0x18] sm:$0xf] %vm599_vm9, %v861_v30  ;;  %v1365_v44 = vrot.slane %v1363_v62, 4 }
 0x2bf   : > { %986 = vrot.lane.b32.xlu0 %v985_v31, %s4530_s11  ;;  %v905_v33 = vpop.permute.xlu1 %904 }
 0x2c0   : > { %907 = vst.msk [vmem:[#allocation3 + $0x10] sm:$0xf0] %vm4492_vm15, %v905_v33 }
 0x2c1   : > { %v1247_v37 = vpop.permute.xlu0 %1246  ;;  %1478 = vrot.lane.b32.xlu1 %v1476_v35, %s4537_s20  ;;  %914 = vst.msk [vmem:[#allocation3 + $0x10] sm:$0xf0] %vm4491_vm3, %v3669_v5  ;;  %v767_v5 = vrot.slane %v765_v42, 4 }
 0x2c2   : > { %1249 = vst.msk [vmem:[#allocation3 + $0x38] sm:$0xf] %vm578_vm6, %v1247_v37 }
 0x2c3   : > { %1166 = vrot.lane.b32.xlu0 %v1165_v38, %s4535_s26  ;;  %v1041_v39 = vpop.permute.xlu1 %1040 }
 0x2c4   : > { %1043 = vst.msk [vmem:[#allocation3 + $0x28] sm:$0xf] %vm571_vm4, %v1041_v39 }
 0x2c5   : > { %v3767_v43 = vpop.permute.xlu0 %656  ;;  %1345 = vrot.lane.b32.xlu1 %v1344_v41, %s4524_s29 }
 0x2c7   : > { %1366 = vrot.lane.b32.xlu0 %v1365_v44, %s4532_s9  ;;  %v1290_v46 = vpop.permute.xlu1 %1289 }
 0x2c8   : > { %1292 = vst.msk [vmem:[#allocation3 + $0x30] sm:$0xf0] %vm672_vm5, %v1290_v46 }
 0x2c9   : > { %v3772_v48 = vpop.permute.xlu0 %872  ;;  %768 = vrot.lane.b32.xlu1 %v767_v5, %s4536_s27 }
 0x2cb   : > { %1173 = vrot.lane.b32.xlu0 %v1172_v50, %s4527_s28  ;;  %v710_v12 = vpop.permute.xlu1 %709 }
 0x2cc   : > { %713 = vst.msk [vmem:[#allocation3] sm:$0xf0] %vm4490_vm2, %v710_v12 }
 0x2cd   : > { %v3777_v53 = vpop.permute.xlu0 %1052  ;;  %972 = vrot.lane.b32.xlu1 %v971_v52, %s4523_s25 }
 0x2cf   : > { %1373 = vrot.lane.b32.xlu0 %v1372_v54, %s4533_s12  ;;  %v919_v17 = vpop.permute.xlu1 %918 }
 0x2d0   : > { %921 = vst.msk [vmem:[#allocation3 + $0x10] sm:$0xf0] %vm4490_vm2, %v919_v17 }
 0x2d1   : > { %v1253_v58 = vpop.permute.xlu0 %1252  ;;  %1152 = vrot.lane.b32.xlu1 %v1151_v56, %s4525_s14 }
 0x2d2   : > { %1255 = vst.msk [vmem:[#allocation3 + $0x38] sm:$0xf] %vm585_vm7, %v1253_v58 }
 0x2d3   : > { %1180 = vrot.lane.b32.xlu0 %v1179_v59, %s4537_s20  ;;  %v1097_v9 = vpop.permute.xlu1 %1096 }
 0x2d4   : > { %1099 = vst.msk [vmem:[#allocation3 + $0x20] sm:$0xf0] %vm4494_vm13, %v1097_v9 }
 0x2d5   : > { %v3786_v60 = vpop.permute.xlu0 %662  ;;  %1194 = vrot.lane.b32.xlu1 %v1193_v19, %s4531_s16 }
 0x2d7   : > { %1380 = vrot.lane.b32.xlu0 %v1379_v2, %s4536_s27  ;;  %v1297_v61 = vpop.permute.xlu1 %1296 }
 0x2d8   : > { %1299 = vst.msk [vmem:[#allocation3 + $0x30] sm:$0xf0] %vm4494_vm13, %v1297_v61 }
 0x2d9   : > { %v3791_v1 = vpop.permute.xlu0 %878  ;;  %1282 = vrot.lane.b32.xlu1 %v1280_v49, %s4530_s11 }
 0x2db   : > { %1187 = vrot.lane.b32.xlu0 %v1186_v3, %s4529_s8  ;;  %v718_v6 = vpop.permute.xlu1 %717 }
 0x2dc   : > { %721 = vst.msk [vmem:[#allocation3] sm:$0xf0] %vm4484_vm1, %v718_v6 }
 0x2dd   : > { %729 = vst.msk [vmem:[#allocation3] sm:$0xf0] %vm4483_vm0, %v3679_v20  ;;  %v3798_v8 = vpop.permute.xlu0 %1058  ;;  %1394 = vrot.lane.b32.xlu1 %v1393_v7, %s4541_s6  ;;  %v1434_v20 = vld [vmem:[#allocation2 + $0x20] sm:$0xf] }
 0x2df   : > { %1387 = vrot.lane.b32.xlu0 %v1386_v10, %s4522_s10  ;;  %v926_v11 = vpop.permute.xlu1 %925 }
 0x2e0   : > { %928 = vst.msk [vmem:[#allocation3 + $0x10] sm:$0xf0] %vm4484_vm1, %v926_v11 }
 0x2e1   : > { %935 = vst.msk [vmem:[#allocation3 + $0x10] sm:$0xf0] %vm4483_vm0, %v3684_v26  ;;  %v1259_v14 = vpop.permute.xlu0 %1258  ;;  %1484 = vrot.lane.b32.xlu1 %v1482_v13, %s4529_s8  ;;  %v1440_v26 = vld [vmem:[#allocation2 + $0x24] sm:$0xf] }
 0x2e2   : > { %1261 = vst.msk [vmem:[#allocation3 + $0x38] sm:$0xf] %vm592_vm8, %v1259_v14 }
 0x2e3   : > { %1436 = vrot.lane.b32.xlu0 %v1434_v20, %s4529_s8  ;;  %v1104_v15 = vpop.permute.xlu1 %1103 }
 0x2e4   : > { %1106 = vst.msk [vmem:[#allocation3 + $0x20] sm:$0xf0] %vm4493_vm14, %v1104_v15  ;;  %v1495_v11 = vld [vmem:[#allocation3] sm:$0xff] }
 0x2e5   : > { %v3809_v22 = vpop.permute.xlu0 %1064  ;;  %1490 = vrot.lane.b32.xlu1 %v1488_v18, %s4531_s16 }
 0x2e7   : > { %1442 = vrot.lane.b32.xlu0 %v1440_v26, %s4531_s16  ;;  %v1304_v24 = vpop.permute.xlu1 %1303 }
 0x2e8   : > { %1306 = vst.msk [vmem:[#allocation3 + $0x30] sm:$0xf0] %vm4493_vm14, %v1304_v24  ;;  %v1497_v6 = vld [vmem:[#allocation3 + $0x10] sm:$0xff] }
 0x2e9   : > { %v1265_v25 = vpop.permute.xlu0 %1264  ;;  %1508 = vperm.xlu1 %3136, %v1505_v23   ;;  %v3042_v20 = vpack.c.bf16 %v1497_v6, %v1495_v11 }
 0x2ea   : > { %1267 = vst.msk [vmem:[#allocation3 + $0x38] sm:$0xf] %vm599_vm9, %v1265_v25 }
 0x2eb   : > { %v1111_v28 = vpop.permute.xlu1 %1110 }
 0x2ec   : > { %1113 = vst.msk [vmem:[#allocation3 + $0x20] sm:$0xf0] %vm4492_vm15, %v1111_v28 }
 0x2ed   : > { %v1071_v30 = vpop.permute.xlu0 %1070 }
 0x2ef   : > { %v1311_v31 = vpop.permute.xlu1 %1310 }
 0x2f0   : > { %1313 = vst.msk [vmem:[#allocation3 + $0x30] sm:$0xf0] %vm4492_vm15, %v1311_v31 }
 0x2f1   : > { %v1271_v32 = vpop.permute.xlu0 %1270 }
 0x2f2   : > { %1273 = vst.msk [vmem:[#allocation3 + $0x38] sm:$0xf] %vm606_vm10, %v1271_v32 }
 0x2f3   : > { %v1118_v33 = vpop.permute.xlu1 %1117 }
 0x2f4   : > { %1120 = vst.msk [vmem:[#allocation3 + $0x20] sm:$0xf0] %vm4491_vm3, %v1118_v33 }
 0x2f5   : > { %v1077_v35 = vpop.permute.xlu0 %1076 }
 0x2f7   : > { %v1318_v36 = vpop.permute.xlu1 %1317 }
 0x2f8   : > { %1320 = vst.msk [vmem:[#allocation3 + $0x30] sm:$0xf0] %vm4491_vm3, %v1318_v36 }
 0x2f9   : > { %v1277_v37 = vpop.permute.xlu0 %1276 }
 0x2fa   : > { %1279 = vst.msk [vmem:[#allocation3 + $0x38] sm:$0xf] %vm613_vm11, %v1277_v37 }
 0x2fb   : > { %v1125_v38 = vpop.permute.xlu1 %1124 }
 0x2fc   : > { %1127 = vst.msk [vmem:[#allocation3 + $0x20] sm:$0xf0] %vm4490_vm2, %v1125_v38 }
 0x2fd   : > { %1134 = vst.msk [vmem:[#allocation3 + $0x20] sm:$0xf0] %vm4484_vm1, %v3689_v34  ;;  %v945_v62 = vpop.permute.xlu0 %944 }
 0x2fe   : > { %947 = vst.msk [vmem:[#allocation3 + $0x18] sm:$0xf0] %vm4494_vm13, %v945_v62 }
 0x2ff   : > { %v1325_v39 = vpop.permute.xlu1 %1324 }
 0x300   : > { %1327 = vst.msk [vmem:[#allocation3 + $0x30] sm:$0xf0] %vm4490_vm2, %v1325_v39 }
 0x301   : > { %1334 = vst.msk [vmem:[#allocation3 + $0x30] sm:$0xf0] %vm4484_vm1, %v3694_v40  ;;  %v748_v41 = vpop.permute.xlu0 %747 }
 0x303   : > { %v1139_v42 = vpop.permute.xlu1 %1138 }
 0x304   : > { %1141 = vst.msk [vmem:[#allocation3 + $0x20] sm:$0xf0] %vm4483_vm0, %v1139_v42 }
 0x305   : > { %v952_v44 = vpop.permute.xlu0 %951 }
 0x306   : > { %954 = vst.msk [vmem:[#allocation3 + $0x18] sm:$0xf0] %vm4493_vm14, %v952_v44 }
 0x307   : > { %v741_v45 = vpop.permute.xlu1 %740 }
 0x308   : > { %743 = vst.msk [vmem:[#allocation3 + $0x8] sm:$0xf0] %vm4494_vm13, %v741_v45 }
 0x309   : > { %750 = vst.msk [vmem:[#allocation3 + $0x8] sm:$0xf0] %vm4493_vm14, %v748_v41  ;;  %v755_v34 = vpop.permute.xlu0 %754 }
 0x30a   : > { %757 = vst.msk [vmem:[#allocation3 + $0x8] sm:$0xf0] %vm4492_vm15, %v755_v34 }
 0x30b   : > { %v1339_v46 = vpop.permute.xlu1 %1338 }
 0x30c   : > { %1341 = vst.msk [vmem:[#allocation3 + $0x30] sm:$0xf0] %vm4483_vm0, %v1339_v46 }
 0x30d   : > { %v959_v5 = vpop.permute.xlu0 %958 }
 0x30e   : > { %961 = vst.msk [vmem:[#allocation3 + $0x18] sm:$0xf0] %vm4492_vm15, %v959_v5 }
 0x30f   : > { %v651_v40 = vpop.permute.xlu1 %650 }
 0x310   : > { %653 = vst.msk [vmem:[#allocation3 + $0x8] sm:$0xf] %vm606_vm10, %v651_v40 }
 0x311   : > { %659 = vst.msk [vmem:[#allocation3 + $0x8] sm:$0xf] %vm613_vm11, %v3767_v43  ;;  %v762_v47 = vpop.permute.xlu0 %761 }
 0x312   : > { %665 = vst.msk [vmem:[#allocation3 + $0x8] sm:$0xf] %vm4495_vm12, %v3786_v60 }
 0x313   : > { %764 = vst.msk [vmem:[#allocation3 + $0x8] sm:$0xf0] %vm4491_vm3, %v762_v47  ;;  %v867_v50 = vpop.permute.xlu1 %866  ;;  %v1501_v23 = vld [vmem:[#allocation3 + $0x30] sm:$0xff] }
 0x314   : > { %869 = vst.msk [vmem:[#allocation3 + $0x18] sm:$0xf] %vm606_vm10, %v867_v50 }
 0x315   : > { %875 = vst.msk [vmem:[#allocation3 + $0x18] sm:$0xf] %vm613_vm11, %v3772_v48  ;;  %v966_v51 = vpop.permute.xlu0 %965 }
 0x316   : > { %881 = vst.msk [vmem:[#allocation3 + $0x18] sm:$0xf] %vm4495_vm12, %v3791_v1 }
 0x317   : > { %968 = vst.msk [vmem:[#allocation3 + $0x18] sm:$0xf0] %vm4491_vm3, %v966_v51  ;;  %v1047_v12 = vpop.permute.xlu1 %1046 }
 0x318   : > { %1049 = vst.msk [vmem:[#allocation3 + $0x28] sm:$0xf] %vm578_vm6, %v1047_v12 }
 0x319   : > { %1055 = vst.msk [vmem:[#allocation3 + $0x28] sm:$0xf] %vm585_vm7, %v3777_v53  ;;  %v1353_v43 = vpop.permute.xlu0 %1352 }
 0x31a   : > { %1061 = vst.msk [vmem:[#allocation3 + $0x28] sm:$0xf] %vm592_vm8, %v3798_v8 }
 0x31b   : > { %1067 = vst.msk [vmem:[#allocation3 + $0x28] sm:$0xf] %vm599_vm9, %v3809_v22  ;;  %v1449_v48 = vpop.permute.xlu1 %1448 }
 0x31c   : > { %1073 = vst.msk [vmem:[#allocation3 + $0x28] sm:$0xf] %vm606_vm10, %v1071_v30  ;;  %v1499_v30 = vld [vmem:[#allocation3 + $0x20] sm:$0xff] }
 0x31d   : > { %1451 = vst.msk [vmem:[#allocation3 + $0x48] sm:$0xf] %vm571_vm4, %v1449_v48  ;;  %v776_v52 = vpop.permute.xlu0 %775  ;;  %v3046_v32 = vpack.c.bf16 %v1501_v23, %v1499_v30 }
 0x31e   : > { %1079 = vst.msk [vmem:[#allocation3 + $0x28] sm:$0xf] %vm613_vm11, %v1077_v35  ;;  %v1494_v35 = vld [vmem:[%s4545_s1] sm:$0xf]  ;;  %s4548_s1 = smov 1  }
 0x31f   : > { %v1083_v27 = vpop.permute.xlu1 %1082 }
 0x320   : > { %1085 = vst.msk [vmem:[#allocation3 + $0x28] sm:$0xf] %vm4495_vm12, %v1083_v27 }
 0x321   : > { %v980_v54 = vpop.permute.xlu0 %979 }
 0x323   : > { %v1455_v53 = vpop.permute.xlu1 %1454 }
 0x324   : > { %1457 = vst.msk [vmem:[#allocation3 + $0x48] sm:$0xf] %vm578_vm6, %v1455_v53 }
 0x325   : > { %v1160_v55 = vpop.permute.xlu0 %1159 }
 0x327   : > { %v1461_v17 = vpop.permute.xlu1 %1460 }
 0x328   : > { %1463 = vst.msk [vmem:[#allocation3 + $0x48] sm:$0xf] %vm585_vm7, %v1461_v17 }
 0x329   : > { %v1360_v56 = vpop.permute.xlu0 %1359 }
 0x32b   : > { %v1467_v57 = vpop.permute.xlu1 %1466 }
 0x32c   : > { %1469 = vst.msk [vmem:[#allocation3 + $0x48] sm:$0xf] %vm592_vm8, %v1467_v57 }
 0x32d   : > { %v783_v58 = vpop.permute.xlu0 %782 }
 0x32f   : > { %v1473_v59 = vpop.permute.xlu1 %1472 }
 0x330   : > { %1475 = vst.msk [vmem:[#allocation3 + $0x48] sm:$0xf] %vm599_vm9, %v1473_v59 }
 0x331   : > { %v987_v0 = vpop.permute.xlu0 %986 }
 0x333   : > { %v1479_v9 = vpop.permute.xlu1 %1478 }
 0x334   : > { %1481 = vst.msk [vmem:[#allocation3 + $0x48] sm:$0xf] %vm606_vm10, %v1479_v9 }
 0x335   : > { %v1167_v19 = vpop.permute.xlu0 %1166 }
 0x337   : > { %v1346_v60 = vpop.permute.xlu1 %1345 }
 0x338   : > { %1348 = vst.msk [vmem:[#allocation3 + $0x38] sm:$0xf0] %vm672_vm5, %v1346_v60 }
 0x339   : > { %1355 = vst.msk [vmem:[#allocation3 + $0x38] sm:$0xf0] %vm4494_vm13, %v1353_v43  ;;  %v1367_v2 = vpop.permute.xlu0 %1366 }
 0x33a   : > { %1362 = vst.msk [vmem:[#allocation3 + $0x38] sm:$0xf0] %vm4493_vm14, %v1360_v56 }
 0x33b   : > { %1369 = vst.msk [vmem:[#allocation3 + $0x38] sm:$0xf0] %vm4492_vm15, %v1367_v2  ;;  %v769_v29 = vpop.permute.xlu1 %768 }
 0x33c   : > { %771 = vst.msk [vmem:[#allocation3 + $0x8] sm:$0xf0] %vm4490_vm2, %v769_v29 }
 0x33d   : > { %778 = vst.msk [vmem:[#allocation3 + $0x8] sm:$0xf0] %vm4484_vm1, %v776_v52  ;;  %v1174_v61 = vpop.permute.xlu0 %1173 }
 0x33e   : > { %785 = vst.msk [vmem:[#allocation3 + $0x8] sm:$0xf0] %vm4483_vm0, %v783_v58 }
 0x33f   : > { %v973_v49 = vpop.permute.xlu1 %972 }
 0x340   : > { %975 = vst.msk [vmem:[#allocation3 + $0x18] sm:$0xf0] %vm4490_vm2, %v973_v49 }
 0x341   : > { %982 = vst.msk [vmem:[#allocation3 + $0x18] sm:$0xf0] %vm4484_vm1, %v980_v54  ;;  %v1374_v63 = vpop.permute.xlu0 %1373 }
 0x342   : > { %989 = vst.msk [vmem:[#allocation3 + $0x18] sm:$0xf0] %vm4483_vm0, %v987_v0 }
 0x343   : > { %1376 = vst.msk [vmem:[#allocation3 + $0x38] sm:$0xf0] %vm4491_vm3, %v1374_v63  ;;  %v1153_v1 = vpop.permute.xlu1 %1152 }
 0x344   : > { %1155 = vst.msk [vmem:[#allocation3 + $0x28] sm:$0xf0] %vm4494_vm13, %v1153_v1  ;;  %vm4560_vm13 = vcmask 142336  }
 0x345   : > { %1162 = vst.msk [vmem:[#allocation3 + $0x28] sm:$0xf0] %vm4493_vm14, %v1160_v55  ;;  %v1181_v3 = vpop.permute.xlu0 %1180  ;;  %v1496_v7 = vld [vmem:[#allocation3 + $0x8] sm:$0xff] }
 0x346   : > { %1169 = vst.msk [vmem:[#allocation3 + $0x28] sm:$0xf0] %vm4492_vm15, %v1167_v19 }
 0x347   : > { %1176 = vst.msk [vmem:[#allocation3 + $0x28] sm:$0xf0] %vm4491_vm3, %v1174_v61  ;;  %v1195_v4 = vpop.permute.xlu1 %1194 }
 0x348   : > { %1183 = vst.msk [vmem:[#allocation3 + $0x28] sm:$0xf0] %vm4490_vm2, %v1181_v3 }
 0x349   : > { %v1498_v8 = vld [vmem:[#allocation3 + $0x18] sm:$0xff]  ;;  %v1381_v10 = vpop.permute.xlu0 %1380 }
 0x34a   : > { %1383 = vst.msk [vmem:[#allocation3 + $0x38] sm:$0xf0] %vm4490_vm2, %v1381_v10  ;;  %v3040_v13 = vpack.c.bf16 %v1498_v8, %v1496_v7 }
 0x34b   : > { %v1283_v14 = vpop.permute.xlu1 %1282 }
 0x34c   : > { %1285 = vst.msk [vmem:[#allocation3 + $0x38] sm:$0xf] %vm4495_vm12, %v1283_v14  ;;  %3041 = vmatprep.subr.bf16.mxu0 %v3040_v13 }
 0x34d   : > { %v1188_v15 = vpop.permute.xlu0 %1187  ;;  %3043 = vmatpush1.bf16.msra.mxu0 %v3042_v20 }
 0x34e   : > { %1190 = vst.msk [vmem:[#allocation3 + $0x28] sm:$0xf0] %vm4484_vm1, %v1188_v15 }
 0x34f   : > { %1197 = vst.msk [vmem:[#allocation3 + $0x28] sm:$0xf0] %vm4483_vm0, %v1195_v4  ;;  %v1395_v16 = vpop.permute.xlu1 %1394 }
 0x351   : > { %v1388_v18 = vpop.permute.xlu0 %1387 }
 0x352   : > { %1390 = vst.msk [vmem:[#allocation3 + $0x38] sm:$0xf0] %vm4484_vm1, %v1388_v18  ;;  %vm4488_vm1 = vcmask 293888  }
 0x353   : > { %1397 = vst.msk [vmem:[#allocation3 + $0x38] sm:$0xf0] %vm4483_vm0, %v1395_v16  ;;  %v1485_v21 = vpop.permute.xlu1 %1484  ;;  %vm4489_vm0 = vcmask 1043456  }
 0x354   : > { %1487 = vst.msk [vmem:[#allocation3 + $0x48] sm:$0xf] %vm613_vm11, %v1485_v21 }
 0x355   : > { %v1437_v22 = vpop.permute.xlu0 %1436 }
 0x356   : > { %1439 = vst.msk [vmem:[#allocation3 + $0x40] sm:$0xf] %vm613_vm11, %v1437_v22  ;;  %v1500_v25 = vld [vmem:[#allocation3 + $0x28] sm:$0xff] }
 0x357   : > { %v1491_v26 = vpop.permute.xlu1 %1490 }
 0x358   : > { %1493 = vst.msk [vmem:[#allocation3 + $0x48] sm:$0xf] %vm4495_vm12, %v1491_v26 }
 0x359   : > { %v1443_v24 = vpop.permute.xlu0 %1442 }
 0x35a   : > { %v1502_v28 = vld [vmem:[#allocation3 + $0x38] sm:$0xff]  ;;  %1445 = vst.msk [vmem:[#allocation3 + $0x40] sm:$0xf] %vm4495_vm12, %v1443_v24 }
 0x35b   : > { %v3044_v31 = vpack.c.bf16 %v1502_v28, %v1500_v25 }
 0x35d   : > { %3045 = vmatprep.subr.bf16.mxu0 %v3044_v31 }
 0x35e   : > { %3047 = vmatpush1.bf16.msra.mxu0 %v3046_v32 }
 0x35f   : > { %v1504_v33 = vld [vmem:[#allocation3 + $0x48] sm:$0xf] }
 0x360   : > { %3027 = vmatprep.subr.msk.mxu0 %vm4489_vm0, %v1504_v33 }
 0x361   : > { %v1503_v36 = vld [vmem:[#allocation3 + $0x40] sm:$0xf] }
 0x362   : > { %3028 = vmatpush1.msk.msra.mxu0 %vm4489_vm0, %v1503_v36 }
 0x363   : > { %3029 = vmatmul.mubr.msk.f32.vlgmr.msra.gmra.mrb[0].mxu0 %vm4488_vm1, %v1494_v35  ;;  %vm4554_vm1 = vcmask 134152  }
 0x368   : > { %v1509_v37 = vpop.permute.xlu1 %1508 }
 0x436   : > { %v1588_v38 = vpop.f32.mrb[0].mxu0 }
 0x437   : > { %v1589_v62 = vadd.f32 %v1588_v38, %v1509_v37  ;;  %v1590_v39 = vpop.f32.mrb[1].mxu0 }
 0x438   : > { %v1591_v41 = vadd.f32 %v1590_v39, %v1509_v37 }
 0x439   : > { %v1593_v42 = vsel %vm4489_vm0, %v1589_v62, 0.0 }
 0x43a   : > { %v1594_v44 = vsel %vm4489_vm0, %v1591_v41, 0.0 }
 0x43b   : > { %v1595_v45 = vadd.f32 %v1594_v44, %v1593_v42 }
 0x43d   : > { %1596 = vadd.xlane.f32.xlu0 %v1595_v45 }
 0x4ca   : > { %v1597_v34 = vpop.xlane.xlu0 %1596 }
 0x4cb   : > { %v1599_v46 = vmul.f32 0.00390625, %v1597_v34 }
 0x4cd   : > { %v1600_v5 = vsub.f32 %v1589_v62, %v1599_v46  ;;  %v1601_v40 = vsub.f32 %v1591_v41, %v1599_v46 }
 0x4cf   : > { %v1602_v47 = vmul.f32 %v1600_v5, %v1600_v5  ;;  %v1603_v50 = vmul.f32 %v1601_v40, %v1601_v40 }
 0x4d1   : > { %v1604_v51 = vsel %vm4489_vm0, %v1602_v47, 0.0  ;;  %v1605_v12 = vsel %vm4489_vm0, %v1603_v50, 0.0  ;;  %vm4555_vm0 = vmmov %vm4554_vm1 }
 0x4d2   : > { %v1606_v43 = vadd.f32 %v1605_v12, %v1604_v51  ;;  %vm4556_vm2 = vmmov %vm4555_vm0 }
 0x4d3   : > { %vm4557_vm3 = vmmov %vm4555_vm0 }
 0x4d4   : > { %1607 = vadd.xlane.f32.xlu1 %v1606_v43  ;;  %vm4558_vm15 = vmmov %vm4555_vm0 }
 0x4d5   : > { %vm4559_vm14 = vmmov %vm4555_vm0 }
 0x561   : > { %v1608_v48 = vpop.xlane.xlu1 %1607 }
 0x562   : > { %v1609_v52 = vmul.f32 0.00390625, %v1608_v48 }
 0x564   : > { %v1610_v27 = vadd.f32 1e-05, %v1609_v52 }
 0x566   : > { %3138 = vrsqrt.f32 %v1610_v27 }
 0x570   : > { %v3139_v54 = vpop.eup %3138 }
 0x571   : > { %v1612_v53 = vmul.f32 %v3139_v54, %v1600_v5  ;;  %v1613_v55 = vmul.f32 %v3139_v54, %v1601_v40 }
 0x573   : > { %v1614_v17 = vmax.f32 %v1612_v53, 0.0  ;;  %v1615_v56 = vmax.f32 %v1613_v55, 0.0 }
 0x575   : > { %1645 = vrot.lane.b32.xlu1 %v1614_v17, %s4546_s30  ;;  %1621 = vrot.lane.b32.xlu0 %v1614_v17, %s4547_s15 }
 0x579   : > { %1654 = vrot.lane.b32.xlu1 %v1615_v56, %s4547_s15  ;;  %1650 = vrot.lane.b32.xlu0 %v1615_v56, %s4548_s1 }
 0x57d   : > { %1658 = vrot.lane.b32.xlu1 %v1615_v56, %s4549_s2  ;;  %1617 = vrot.lane.b32.xlu0 %v1614_v17, %s4548_s1  ;;  %s4575_s1 = smov 2  }
 0x581   : > { %1662 = vrot.lane.b32.xlu1 %v1615_v56, %s4550_s13  ;;  %1625 = vrot.lane.b32.xlu0 %v1614_v17, %s4549_s2 }
 0x585   : > { %1629 = vrot.lane.b32.xlu1 %v1614_v17, %s4550_s13  ;;  %1674 = vrot.lane.b32.xlu0 %v1615_v56, %s4551_s22 }
 0x589   : > { %1633 = vrot.lane.b32.xlu1 %v1614_v17, %s4552_s3  ;;  %1666 = vrot.lane.b32.xlu0 %v1615_v56, %s4552_s3  ;;  %s4614_s3 = sld [smem:[#allocation25_spill]] }
 0x58d   : > { %1637 = vrot.lane.b32.xlu1 %v1614_v17, %s4553_s4  ;;  %1670 = vrot.lane.b32.xlu0 %v1615_v56, %s4553_s4 }
 0x591   : > { %1678 = vrot.lane.b32.xlu1 %v1615_v56, %s4546_s30  ;;  %1641 = vrot.lane.b32.xlu0 %v1614_v17, %s4551_s22  ;;  %s4675_s22 = sld [smem:[#allocation17_spill]] }
 0x597   : > { %p4678_p11 = scmp.ne.s32.totalorder %s4675_s22, 0 }
 0x5e7   : > { %v1646_v57 = vpop.permute.xlu1 %1645  ;;  %v1622_v58 = vpop.permute.xlu0 %1621 }
 0x5e8   : > { %1648 = vst.msk [vmem:[#allocation2 + $0x20] sm:$0xf] %vm4554_vm1, %v1646_v57  ;;  %vm4561_vm1 = vmmov %vm4555_vm0 }
 0x5e9   : > { %1624 = vst.msk [vmem:[#allocation2 + $0x8] sm:$0xf] %vm4555_vm0, %v1622_v58 }
 0x5eb   : > { %v1655_v59 = vpop.permute.xlu1 %1654  ;;  %v1651_v0 = vpop.permute.xlu0 %1650 }
 0x5ec   : > { %1657 = vst.msk [vmem:[#allocation2 + $0x28] sm:$0xf] %vm4556_vm2, %v1655_v59  ;;  %vm4562_vm2 = vmmov %vm4555_vm0 }
 0x5ed   : > { %1653 = vst.msk [vmem:[#allocation2 + $0x24] sm:$0xf] %vm4557_vm3, %v1651_v0  ;;  %vm4563_vm3 = vmmov %vm4555_vm0 }
 0x5ef   : > { %v1659_v9 = vpop.permute.xlu1 %1658  ;;  %v1618_v19 = vpop.permute.xlu0 %1617  ;;  %v1694_v60 = vld [vmem:[#allocation2 + $0x20] sm:$0xf] }
 0x5f0   : > { %v1682_v2 = vld [vmem:[#allocation2 + $0x8] sm:$0xf]  ;;  %1661 = vst.msk [vmem:[#allocation2 + $0x2c] sm:$0xf] %vm4558_vm15, %v1659_v9  ;;  %1738 = vrot.lane.b32.xlu0 %v1694_v60, %s4543_s5  ;;  %vm4566_vm15 = vmmov %vm4555_vm0 }
 0x5f1   : > { %1620 = vst.msk [vmem:[#allocation2 + $0x4] sm:$0xf] %vm4559_vm14, %v1618_v19  ;;  %v1688_v4 = vld [vmem:[#allocation2 + $0x8] sm:$0xf]  ;;  %vm4565_vm14 = vmmov %vm4555_vm0 }
 0x5f2   : > { %1683 = vst.msk [vmem:[#allocation2] sm:$0xf] %vm4560_vm13, %v1682_v2  ;;  %vm4564_vm13 = vmmov %vm4555_vm0 }
 0x5f3   : > { %v1663_v29 = vpop.permute.xlu1 %1662  ;;  %v1626_v61 = vpop.permute.xlu0 %1625  ;;  %v1696_v49 = vld [vmem:[#allocation2 + $0x28] sm:$0xf] }
 0x5f4   : > { %v1695_v63 = vld [vmem:[#allocation2 + $0x24] sm:$0xf]  ;;  %1665 = vst.msk [vmem:[#allocation2 + $0x30] sm:$0xf] %vm4555_vm0, %v1663_v29  ;;  %1742 = vrot.lane.b32.xlu1 %v1696_v49, %s4543_s5 }
 0x5f5   : > { %1628 = vst.msk [vmem:[#allocation2 + $0xc] sm:$0xf] %vm4561_vm1, %v1626_v61  ;;  %1740 = vrot.lane.b32.xlu0 %v1695_v63, %s4543_s5  ;;  %vm4567_vm1 = vcmask 142336  }
 0x5f7   : > { %v1630_v1 = vpop.permute.xlu1 %1629  ;;  %v1675_v3 = vpop.permute.xlu0 %1674  ;;  %v1697_v10 = vld [vmem:[#allocation2 + $0x2c] sm:$0xf] }
 0x5f8   : > { %v1687_v6 = vld [vmem:[#allocation2 + $0x4] sm:$0xf]  ;;  %1632 = vst.msk [vmem:[#allocation2 + $0x10] sm:$0xf] %vm4562_vm2, %v1630_v1  ;;  %1726 = vrot.lane.b32.xlu1 %v1688_v4, %s4543_s5  ;;  %vm4568_vm2 = vmmov %vm4555_vm0 }
 0x5f9   : > { %1677 = vst.msk [vmem:[#allocation2 + $0x3c] sm:$0xf] %vm4563_vm3, %v1675_v3  ;;  %1724 = vrot.lane.b32.xlu0 %v1687_v6, %s4543_s5  ;;  %vm4569_vm3 = vmmov %vm4555_vm0  ;;  %v1686_v31 = vld [vmem:[#allocation2] sm:$0xf] }
 0x5fb   : > { %v1634_v7 = vpop.permute.xlu1 %1633  ;;  %v1667_v8 = vpop.permute.xlu0 %1666  ;;  %v1698_v20 = vld [vmem:[#allocation2 + $0x30] sm:$0xf] }
 0x5fc   : > { %v1689_v11 = vld [vmem:[#allocation2 + $0xc] sm:$0xf]  ;;  %1636 = vst.msk [vmem:[#allocation2 + $0x14] sm:$0xf] %vm4564_vm13, %v1634_v7  ;;  %vm4570_vm13 = vcmask 3072  }
 0x5fd   : > { %1669 = vst.msk [vmem:[#allocation2 + $0x34] sm:$0xf] %vm4565_vm14, %v1667_v8  ;;  %1744 = vrot.lane.b32.xlu0 %v1697_v10, %s4543_s5  ;;  %1728 = vrot.lane.b32.xlu1 %v1689_v11, %s4543_s5  ;;  %vm4571_vm14 = vmmov %vm4570_vm13 }
 0x5ff   : > { %v1638_v13 = vpop.permute.xlu1 %1637  ;;  %v1671_v14 = vpop.permute.xlu0 %1670  ;;  %v1690_v15 = vld [vmem:[#allocation2 + $0x10] sm:$0xf] }
 0x600   : > { %v1684_v16 = vld [vmem:[#allocation2 + $0x3c] sm:$0xf]  ;;  %1640 = vst.msk [vmem:[#allocation2 + $0x18] sm:$0xf] %vm4566_vm15, %v1638_v13  ;;  %vm4572_vm15 = vmmov %vm4570_vm13 }
 0x601   : > { %1673 = vst.msk [vmem:[#allocation2 + $0x38] sm:$0xf] %vm4555_vm0, %v1671_v14  ;;  %1746 = vrot.lane.b32.xlu0 %v1698_v20, %s4543_s5  ;;  %1730 = vrot.lane.b32.xlu1 %v1690_v15, %s4543_s5  ;;  %v1701_v25 = vld [vmem:[#allocation2 + $0x3c] sm:$0xf]  ;;  %vm4573_vm0 = vmmov %vm4570_vm13 }
 0x602   : > { %1685 = vst.msk [vmem:[#allocation2 + $0x44] sm:$0xf] %vm4567_vm1, %v1684_v16  ;;  %vm4574_vm1 = vmmov %vm4573_vm0 }
 0x603   : > { %v1679_v18 = vpop.permute.xlu1 %1678  ;;  %v1642_v21 = vpop.permute.xlu0 %1641  ;;  %v1691_v22 = vld [vmem:[#allocation2 + $0x14] sm:$0xf] }
 0x604   : > { %v1699_v26 = vld [vmem:[#allocation2 + $0x34] sm:$0xf]  ;;  %1681 = vst.msk [vmem:[#allocation2 + $0x40] sm:$0xf] %vm4568_vm2, %v1679_v18  ;;  %vm4576_vm2 = vmmov %vm4573_vm0 }
 0x605   : > { %1644 = vst.msk [vmem:[#allocation2 + $0x1c] sm:$0xf] %vm4569_vm3, %v1642_v21  ;;  %1732 = vrot.lane.b32.xlu1 %v1691_v22, %s4543_s5  ;;  %1748 = vrot.lane.b32.xlu0 %v1699_v26, %s4543_s5  ;;  %vm4577_vm3 = vmmov %vm4573_vm0 }
 0x607   : > { %v1692_v23 = vld [vmem:[#allocation2 + $0x18] sm:$0xf] }
 0x608   : > { %v1700_v24 = vld [vmem:[#allocation2 + $0x38] sm:$0xf] }
 0x609   : > { %1734 = vrot.lane.b32.xlu1 %v1692_v23, %s4543_s5  ;;  %1750 = vrot.lane.b32.xlu0 %v1700_v24, %s4543_s5  ;;  %v1703_v32 = vld [vmem:[#allocation2 + $0x44] sm:$0xf] }
 0x60b   : > { %v1702_v30 = vld [vmem:[#allocation2 + $0x40] sm:$0xf] }
 0x60c   : > { %v1693_v28 = vld [vmem:[#allocation2 + $0x1c] sm:$0xf] }
 0x60d   : > { %1752 = vrot.lane.b32.xlu0 %v1701_v25, %s4543_s5  ;;  %1736 = vrot.lane.b32.xlu1 %v1693_v28, %s4543_s5 }
 0x611   : > { %1754 = vrot.lane.b32.xlu0 %v1702_v30, %s4543_s5  ;;  %1722 = vrot.lane.b32.xlu1 %v1686_v31, %s4543_s5 }
 0x615   : > { %1756 = vrot.lane.b32.xlu1 %v1703_v32, %s4543_s5 }
 0x662   : > { %v1739_v33 = vpop.permute.xlu0 %1738 }
 0x663   : > { %1784 = vst.msk [vmem:[#allocation2 + $0x20] sm:$0xf] %vm4570_vm13, %v1739_v33  ;;  %vm4578_vm13 = vmmov %vm4573_vm0 }
 0x666   : > { %v1743_v35 = vpop.permute.xlu1 %1742 }
 0x667   : > { %v1741_v36 = vpop.permute.xlu0 %1740  ;;  %1786 = vst.msk [vmem:[#allocation2 + $0x28] sm:$0xf] %vm4571_vm14, %v1743_v35  ;;  %vm4579_vm14 = vmmov %vm4573_vm0 }
 0x668   : > { %1785 = vst.msk [vmem:[#allocation2 + $0x24] sm:$0xf] %vm4572_vm15, %v1741_v36  ;;  %vm4580_vm15 = vmmov %vm4573_vm0 }
 0x66a   : > { %v1727_v37 = vpop.permute.xlu1 %1726  ;;  %v1802_v62 = vld [vmem:[#allocation2 + $0x20] sm:$0xf] }
 0x66b   : > { %v1725_v38 = vpop.permute.xlu0 %1724  ;;  %1778 = vst.msk [vmem:[#allocation2 + $0x8] sm:$0xf] %vm4573_vm0, %v1727_v37  ;;  %1846 = vrot.lane.b32.xlu0 %v1802_v62, %s4575_s1 }
 0x66c   : > { %1777 = vst.msk [vmem:[#allocation2 + $0x4] sm:$0xf] %vm4574_vm1, %v1725_v38  ;;  %vm4581_vm1 = vmmov %vm4573_vm0 }
 0x66e   : > { %v1804_v42 = vld [vmem:[#allocation2 + $0x28] sm:$0xf] }
 0x66f   : > { %v1729_v39 = vpop.permute.xlu1 %1728  ;;  %v1745_v41 = vpop.permute.xlu0 %1744  ;;  %v1803_v44 = vld [vmem:[#allocation2 + $0x24] sm:$0xf]  ;;  %1850 = vrot.lane.b32.xlu1 %v1804_v42, %s4575_s1 }
 0x670   : > { %1779 = vst.msk [vmem:[#allocation2 + $0xc] sm:$0xf] %vm4576_vm2, %v1729_v39  ;;  %1848 = vrot.lane.b32.xlu0 %v1803_v44, %s4575_s1  ;;  %vm4582_vm2 = vmmov %vm4573_vm0 }
 0x671   : > { %1787 = vst.msk [vmem:[#allocation2 + $0x2c] sm:$0xf] %vm4577_vm3, %v1745_v41  ;;  %vm4583_vm3 = vmmov %vm4573_vm0 }
 0x672   : > { %v1796_v46 = vld [vmem:[#allocation2 + $0x8] sm:$0xf] }
 0x673   : > { %v1731_v45 = vpop.permute.xlu1 %1730  ;;  %v1747_v34 = vpop.permute.xlu0 %1746  ;;  %v1795_v5 = vld [vmem:[#allocation2 + $0x4] sm:$0xf]  ;;  %1834 = vrot.lane.b32.xlu1 %v1796_v46, %s4575_s1 }
 0x674   : > { %1780 = vst.msk [vmem:[#allocation2 + $0x10] sm:$0xf] %vm4578_vm13, %v1731_v45  ;;  %1832 = vrot.lane.b32.xlu0 %v1795_v5, %s4575_s1  ;;  %vm4584_vm13 = vmmov %vm4573_vm0 }
 0x675   : > { %1788 = vst.msk [vmem:[#allocation2 + $0x30] sm:$0xf] %vm4579_vm14, %v1747_v34  ;;  %vm4585_vm14 = vmmov %vm4573_vm0 }
 0x677   : > { %v1733_v40 = vpop.permute.xlu1 %1732  ;;  %v1749_v47 = vpop.permute.xlu0 %1748  ;;  %v1797_v50 = vld [vmem:[#allocation2 + $0xc] sm:$0xf] }
 0x678   : > { %v1805_v51 = vld [vmem:[#allocation2 + $0x2c] sm:$0xf]  ;;  %1781 = vst.msk [vmem:[#allocation2 + $0x14] sm:$0xf] %vm4580_vm15, %v1733_v40  ;;  %1836 = vrot.lane.b32.xlu1 %v1797_v50, %s4575_s1  ;;  %vm4586_vm15 = vmmov %vm4573_vm0 }
 0x679   : > { %1789 = vst.msk [vmem:[#allocation2 + $0x34] sm:$0xf] %vm4573_vm0, %v1749_v47  ;;  %1852 = vrot.lane.b32.xlu0 %v1805_v51, %s4575_s1 }
 0x67b   : > { %v1735_v12 = vpop.permute.xlu1 %1734  ;;  %v1751_v43 = vpop.permute.xlu0 %1750  ;;  %v1798_v48 = vld [vmem:[#allocation2 + $0x10] sm:$0xf] }
 0x67c   : > { %v1806_v52 = vld [vmem:[#allocation2 + $0x30] sm:$0xf]  ;;  %1782 = vst.msk [vmem:[#allocation2 + $0x18] sm:$0xf] %vm4581_vm1, %v1735_v12  ;;  %1838 = vrot.lane.b32.xlu1 %v1798_v48, %s4575_s1  ;;  %vm4587_vm1 = vcmask 142472  }
 0x67d   : > { %1790 = vst.msk [vmem:[#allocation2 + $0x38] sm:$0xf] %vm4582_vm2, %v1751_v43  ;;  %1854 = vrot.lane.b32.xlu0 %v1806_v52, %s4575_s1  ;;  %vm4588_vm2 = vmmov %vm4587_vm1 }
 0x67f   : > { %v1737_v27 = vpop.permute.xlu1 %1736  ;;  %v1753_v54 = vpop.permute.xlu0 %1752  ;;  %v1799_v53 = vld [vmem:[#allocation2 + $0x14] sm:$0xf] }
 0x680   : > { %v1807_v55 = vld [vmem:[#allocation2 + $0x34] sm:$0xf]  ;;  %1783 = vst.msk [vmem:[#allocation2 + $0x1c] sm:$0xf] %vm4583_vm3, %v1737_v27  ;;  %1840 = vrot.lane.b32.xlu1 %v1799_v53, %s4575_s1  ;;  %vm4589_vm3 = vmmov %vm4587_vm1 }
 0x681   : > { %1791 = vst.msk [vmem:[#allocation2 + $0x3c] sm:$0xf] %vm4584_vm13, %v1753_v54  ;;  %1856 = vrot.lane.b32.xlu0 %v1807_v55, %s4575_s1  ;;  %vm4590_vm13 = vmmov %vm4587_vm1 }
 0x683   : > { %v1723_v17 = vpop.permute.xlu1 %1722  ;;  %v1755_v56 = vpop.permute.xlu0 %1754  ;;  %v1800_v57 = vld [vmem:[#allocation2 + $0x18] sm:$0xf] }
 0x684   : > { %v1808_v58 = vld [vmem:[#allocation2 + $0x38] sm:$0xf]  ;;  %1776 = vst.msk [vmem:[#allocation2] sm:$0xf] %vm4585_vm14, %v1723_v17  ;;  %1842 = vrot.lane.b32.xlu1 %v1800_v57, %s4575_s1  ;;  %vm4591_vm14 = vmmov %vm4587_vm1 }
 0x685   : > { %1792 = vst.msk [vmem:[#allocation2 + $0x40] sm:$0xf] %vm4586_vm15, %v1755_v56  ;;  %1858 = vrot.lane.b32.xlu0 %v1808_v58, %s4575_s1  ;;  %vm4592_vm15 = vmmov %vm4587_vm1 }
 0x687   : > { %v1757_v59 = vpop.permute.xlu1 %1756  ;;  %v1801_v0 = vld [vmem:[#allocation2 + $0x1c] sm:$0xf] }
 0x688   : > { %v1809_v9 = vld [vmem:[#allocation2 + $0x3c] sm:$0xf]  ;;  %1793 = vst.msk [vmem:[#allocation2 + $0x44] sm:$0xf] %vm4573_vm0, %v1757_v59  ;;  %1844 = vrot.lane.b32.xlu1 %v1801_v0, %s4575_s1  ;;  %vm4593_vm0 = vmmov %vm4587_vm1 }
 0x689   : > { %1860 = vrot.lane.b32.xlu0 %v1809_v9, %s4575_s1 }
 0x68b   : > { %v1794_v19 = vld [vmem:[#allocation2] sm:$0xf] }
 0x68c   : > { %v1810_v60 = vld [vmem:[#allocation2 + $0x40] sm:$0xf]  ;;  %1830 = vrot.lane.b32.xlu1 %v1794_v19, %s4575_s1 }
 0x68d   : > { %1862 = vrot.lane.b32.xlu0 %v1810_v60, %s4575_s1 }
 0x68f   : > { %v1811_v2 = vld [vmem:[#allocation2 + $0x44] sm:$0xf] }
 0x690   : > { %1864 = vrot.lane.b32.xlu1 %v1811_v2, %s4575_s1 }
 0x6dd   : > { %v1847_v29 = vpop.permute.xlu0 %1846 }
 0x6de   : > { %1892 = vst.msk [vmem:[#allocation2 + $0x20] sm:$0xf] %vm4587_vm1, %v1847_v29  ;;  %vm4594_vm1 = vmmov %vm4593_vm0 }
 0x6e1   : > { %v1851_v61 = vpop.permute.xlu1 %1850 }
 0x6e2   : > { %v1849_v49 = vpop.permute.xlu0 %1848  ;;  %1894 = vst.msk [vmem:[#allocation2 + $0x28] sm:$0xf] %vm4588_vm2, %v1851_v61  ;;  %vm4595_vm2 = vmmov %vm4593_vm0 }
 0x6e3   : > { %1893 = vst.msk [vmem:[#allocation2 + $0x24] sm:$0xf] %vm4589_vm3, %v1849_v49  ;;  %vm4596_vm3 = vmmov %vm4593_vm0 }
 0x6e5   : > { %v1835_v63 = vpop.permute.xlu1 %1834  ;;  %v2150_v3 = vld [vmem:[#allocation2 + $0x20] sm:$0xf] }
 0x6e6   : > { %v1833_v1 = vpop.permute.xlu0 %1832  ;;  %1886 = vst.msk [vmem:[#allocation2 + $0x8] sm:$0xf] %vm4590_vm13, %v1835_v63  ;;  %2152 = vrot.lane.b32.xlu1 %v2150_v3, %s4543_s5  ;;  %v1946_v4 = vld [vmem:[#allocation2 + $0x20] sm:$0xf]  ;;  %vm4597_vm13 = vmmov %vm4593_vm0 }
 0x6e7   : > { %1885 = vst.msk [vmem:[#allocation2 + $0x4] sm:$0xf] %vm4591_vm14, %v1833_v1  ;;  %vm4598_vm14 = vmmov %vm4593_vm0 }
 0x6e8   : > { %1947 = vst.msk [vmem:[#allocation3 + $0x8] sm:$0xf] %vm571_vm4, %v1946_v4 }
 0x6e9   : > { %v1954_v8 = vld [vmem:[#allocation2 + $0x28] sm:$0xf] }
 0x6ea   : > { %v1837_v6 = vpop.permute.xlu1 %1836  ;;  %v1948_v10 = vld [vmem:[#allocation2 + $0x24] sm:$0xf]  ;;  %1956 = vrot.lane.b32.xlu1 %v1954_v8, %s4539_s24  ;;  %v2162_v14 = vld [vmem:[#allocation2 + $0x28] sm:$0xf] }
 0x6eb   : > { %v1853_v7 = vpop.permute.xlu0 %1852  ;;  %1887 = vst.msk [vmem:[#allocation2 + $0xc] sm:$0xf] %vm4592_vm15, %v1837_v6  ;;  %1950 = vrot.lane.b32.xlu0 %v1948_v10, %s4538_s19  ;;  %v2156_v20 = vld [vmem:[#allocation2 + $0x24] sm:$0xf]  ;;  %vm4599_vm15 = vmmov %vm4593_vm0  ;;  %v2558_v37 = vld [vmem:[#allocation2 + $0x28] sm:$0xf] }
 0x6ec   : > { %1895 = vst.msk [vmem:[#allocation2 + $0x2c] sm:$0xf] %vm4593_vm0, %v1853_v7  ;;  %v2354_v45 = vld [vmem:[#allocation2 + $0x24] sm:$0xf]  ;;  %v2360_v51 = vld [vmem:[#allocation2 + $0x28] sm:$0xf] }
 0x6ed   : > { %v1910_v30 = vld [vmem:[#allocation2 + $0x8] sm:$0xf]  ;;  %2559 = vst.msk [vmem:[#allocation3 + $0x38] sm:$0xf] %vm571_vm4, %v2558_v37  ;;  %v2252_v52 = vld [vmem:[#allocation2 + $0x24] sm:$0xf] }
 0x6ee   : > { %v1839_v11 = vpop.permute.xlu1 %1838  ;;  %2164 = vrot.lane.b32.xlu1 %v2162_v14, %s4526_s17  ;;  %v1904_v18 = vld [vmem:[#allocation2 + $0x4] sm:$0xf]  ;;  %v2114_v35 = vld [vmem:[#allocation2 + $0x8] sm:$0xf]  ;;  %v2254_v27 = vrot.slane %v2252_v52, 4 }
 0x6ef   : > { %v1855_v13 = vpop.permute.xlu0 %1854  ;;  %1888 = vst.msk [vmem:[#allocation2 + $0x10] sm:$0xf] %vm4594_vm1, %v1839_v11  ;;  %2158 = vrot.lane.b32.xlu0 %v2156_v20, %s4525_s14  ;;  %v2108_v23 = vld [vmem:[#allocation2 + $0x4] sm:$0xf]  ;;  %vm4600_vm1 = vmmov %vm4593_vm0  ;;  %v2514_v46 = vld [vmem:[#allocation2 + $0x8] sm:$0xf] }
 0x6f0   : > { %1896 = vst.msk [vmem:[#allocation2 + $0x30] sm:$0xf] %vm4595_vm2, %v1855_v13  ;;  %vm4601_vm2 = vmmov %vm4593_vm0  ;;  %v2306_v34 = vld [vmem:[#allocation2 + $0x4] sm:$0xf]  ;;  %v2312_v56 = vld [vmem:[#allocation2 + $0x8] sm:$0xf] }
 0x6f1   : > { %2515 = vst.msk [vmem:[#allocation3 + $0x30] sm:$0xf] %vm571_vm4, %v2514_v46  ;;  %v2198_v55 = vld [vmem:[#allocation2 + $0x4] sm:$0xf]  ;;  %v2546_v20 = vld [vmem:[#allocation2 + $0x20] sm:$0xf] }
 0x6f2   : > { %v1841_v15 = vpop.permute.xlu1 %1840  ;;  %v1916_v62 = vld [vmem:[#allocation2 + $0xc] sm:$0xf]  ;;  %2256 = vst.msk [vmem:[#allocation3 + $0x18] sm:$0xf0] %vm672_vm5, %v2254_v27  ;;  %v2200_v17 = vrot.slane %v2198_v55, 4 }
 0x6f3   : > { %v1857_v16 = vpop.permute.xlu0 %1856  ;;  %v1960_v21 = vld [vmem:[#allocation2 + $0x2c] sm:$0xf]  ;;  %1889 = vst.msk [vmem:[#allocation2 + $0x14] sm:$0xf] %vm4596_vm3, %v1841_v15  ;;  %1906 = vrot.lane.b32.xlu0 %v1904_v18, %s4538_s19  ;;  %vm4602_vm3 = vmmov %vm4593_vm0  ;;  %v1997_v55 = vld [vmem:[#allocation2 + $0x4] sm:$0xf] }
 0x6f4   : > { %1897 = vst.msk [vmem:[#allocation2 + $0x34] sm:$0xf] %vm4597_vm13, %v1857_v16  ;;  %1962 = vrot.lane.b32.xlu1 %v1960_v21, %s4542_s18  ;;  %v2168_v24 = vld [vmem:[#allocation2 + $0x2c] sm:$0xf]  ;;  %vm4603_vm13 = vmmov %vm4593_vm0  ;;  %v2714_v16 = vld [vmem:[#allocation2 + $0x8] sm:$0xf] }
 0x6f5   : > { %v2120_v41 = vld [vmem:[#allocation2 + $0xc] sm:$0xf]  ;;  %2202 = vst.msk [vmem:[#allocation3 + $0x10] sm:$0xf0] %vm672_vm5, %v2200_v17  ;;  %v2348_v21 = vld [vmem:[#allocation2 + $0x20] sm:$0xf] }
 0x6f6   : > { %v1843_v22 = vpop.permute.xlu1 %1842  ;;  %v1922_v39 = vld [vmem:[#allocation2 + $0x10] sm:$0xf]  ;;  %v2560_v5 = vld [vmem:[#allocation2 + $0x2c] sm:$0xf] }
 0x6f7   : > { %v1859_v26 = vpop.permute.xlu0 %1858  ;;  %1890 = vst.msk [vmem:[#allocation2 + $0x18] sm:$0xf] %vm4598_vm14, %v1843_v22  ;;  %2110 = vrot.lane.b32.xlu0 %v2108_v23, %s4525_s14  ;;  %v1966_v31 = vld [vmem:[#allocation2 + $0x30] sm:$0xf]  ;;  %v2366_v48 = vld [vmem:[#allocation2 + $0x2c] sm:$0xf] }
 0x6f8   : > { %1898 = vst.msk [vmem:[#allocation2 + $0x38] sm:$0xf] %vm4599_vm15, %v1859_v26  ;;  %2170 = vrot.lane.b32.xlu1 %v2168_v24, %s4535_s26  ;;  %v2174_v36 = vld [vmem:[#allocation2 + $0x30] sm:$0xf]  ;;  %v2516_v58 = vld [vmem:[#allocation2 + $0xc] sm:$0xf] }
 0x6f9   : > { %v2126_v42 = vld [vmem:[#allocation2 + $0x10] sm:$0xf]  ;;  %v2318_v2 = vld [vmem:[#allocation2 + $0xc] sm:$0xf]  ;;  %v2762_v26 = vld [vmem:[#allocation2 + $0x28] sm:$0xf] }
 0x6fa   : > { %v1845_v25 = vpop.permute.xlu1 %1844  ;;  %v1928_v43 = vld [vmem:[#allocation2 + $0x14] sm:$0xf]  ;;  %v2566_v53 = vld [vmem:[#allocation2 + $0x30] sm:$0xf]  ;;  %v2552_v23 = vld [vmem:[#allocation2 + $0x24] sm:$0xf] }
 0x6fb   : > { %v1861_v28 = vpop.permute.xlu0 %1860  ;;  %1891 = vst.msk [vmem:[#allocation2 + $0x1c] sm:$0xf] %vm4593_vm0, %v1845_v25  ;;  %1912 = vrot.lane.b32.xlu0 %v1910_v30, %s4539_s24  ;;  %v1972_v40 = vld [vmem:[#allocation2 + $0x34] sm:$0xf]  ;;  %v2372_v9 = vld [vmem:[#allocation2 + $0x30] sm:$0xf] }
 0x6fc   : > { %1899 = vst.msk [vmem:[#allocation2 + $0x3c] sm:$0xf] %vm4600_vm1, %v1861_v28  ;;  %1968 = vrot.lane.b32.xlu1 %v1966_v31, %s4521_s7  ;;  %v2180_v47 = vld [vmem:[#allocation2 + $0x34] sm:$0xf]  ;;  %v2522_v61 = vld [vmem:[#allocation2 + $0x10] sm:$0xf] }
 0x6fd   : > { %v2132_v54 = vld [vmem:[#allocation2 + $0x14] sm:$0xf]  ;;  %v2324_v6 = vld [vmem:[#allocation2 + $0x10] sm:$0xf]  ;;  %v2720_v28 = vld [vmem:[#allocation2 + $0xc] sm:$0xf] }
 0x6fe   : > { %v1831_v32 = vpop.permute.xlu1 %1830  ;;  %v1934_v0 = vld [vmem:[#allocation2 + $0x18] sm:$0xf]  ;;  %v2572_v60 = vld [vmem:[#allocation2 + $0x34] sm:$0xf]  ;;  %v2264_v46 = vld [vmem:[#allocation2 + $0x2c] sm:$0xf] }
 0x6ff   : > { %v1863_v33 = vpop.permute.xlu0 %1862  ;;  %1884 = vst.msk [vmem:[#allocation2] sm:$0xf] %vm4601_vm2, %v1831_v32  ;;  %2116 = vrot.lane.b32.xlu0 %v2114_v35, %s4526_s17  ;;  %v1978_v50 = vld [vmem:[#allocation2 + $0x38] sm:$0xf]  ;;  %v2378_v29 = vld [vmem:[#allocation2 + $0x34] sm:$0xf] }
 0x700   : > { %1900 = vst.msk [vmem:[#allocation2 + $0x40] sm:$0xf] %vm4602_vm3, %v1863_v33  ;;  %2176 = vrot.lane.b32.xlu1 %v2174_v36, %s4527_s28  ;;  %v2186_v12 = vld [vmem:[#allocation2 + $0x38] sm:$0xf]  ;;  %v2528_v8 = vld [vmem:[#allocation2 + $0x14] sm:$0xf] }
 0x701   : > { %v2138_v19 = vld [vmem:[#allocation2 + $0x18] sm:$0xf]  ;;  %v2330_v11 = vld [vmem:[#allocation2 + $0x14] sm:$0xf]  ;;  %v2726_v33 = vld [vmem:[#allocation2 + $0x10] sm:$0xf] }
 0x702   : > { %v1865_v38 = vpop.permute.xlu1 %1864  ;;  %v2578_v49 = vld [vmem:[#allocation2 + $0x38] sm:$0xf]  ;;  %v1940_v63 = vld [vmem:[#allocation2 + $0x1c] sm:$0xf]  ;;  %v2768_v35 = vld [vmem:[#allocation2 + $0x2c] sm:$0xf] }
 0x703   : > { %1901 = vst.msk [vmem:[#allocation2 + $0x44] sm:$0xf] %vm4603_vm13, %v1865_v38  ;;  %1918 = vrot.lane.b32.xlu0 %v1916_v62, %s4542_s18  ;;  %v1984_v57 = vld [vmem:[#allocation2 + $0x3c] sm:$0xf]  ;;  %v2384_v1 = vld [vmem:[#allocation2 + $0x38] sm:$0xf] }
 0x704   : > { %1924 = vrot.lane.b32.xlu1 %v1922_v39, %s4521_s7  ;;  %v2192_v59 = vld [vmem:[#allocation2 + $0x3c] sm:$0xf]  ;;  %v2534_v14 = vld [vmem:[#allocation2 + $0x18] sm:$0xf]  ;;  %v2257_v36 = vld [vmem:[#allocation2 + $0x28] sm:$0xf] }
 0x705   : > { %v2144_v3 = vld [vmem:[#allocation2 + $0x1c] sm:$0xf]  ;;  %v2336_v15 = vld [vmem:[#allocation2 + $0x18] sm:$0xf]  ;;  %v2259_v62 = vrot.slane %v2257_v36, 4  ;;  %vm4604_vm14 = vcmask 261252  }
 0x706   : > { %v1902_v44 = vld [vmem:[#allocation2] sm:$0xf]  ;;  %v2584_v4 = vld [vmem:[#allocation2 + $0x3c] sm:$0xf]  ;;  %v2774_v39 = vld [vmem:[#allocation2 + $0x30] sm:$0xf] }
 0x707   : > { %2122 = vrot.lane.b32.xlu0 %v2120_v41, %s4535_s26  ;;  %1903 = vst.msk [vmem:[#allocation3] sm:$0xf] %vm571_vm4, %v1902_v44  ;;  %v2390_v7 = vld [vmem:[#allocation2 + $0x3c] sm:$0xf]  ;;  %v2590_v10 = vld [vmem:[#allocation2 + $0x40] sm:$0xf]  ;;  %vm4606_vm0 = vmmov %vm4604_vm14 }
 0x708   : > { %2128 = vrot.lane.b32.xlu1 %v2126_v42, %s4527_s28  ;;  %v2342_v13 = vld [vmem:[#allocation2 + $0x1c] sm:$0xf]  ;;  %v2396_v30 = vld [vmem:[#allocation2 + $0x40] sm:$0xf]  ;;  %v2060_v41 = vld [vmem:[#allocation2 + $0x28] sm:$0xf] }
 0x709   : > { %v2540_v18 = vld [vmem:[#allocation2 + $0x1c] sm:$0xf]  ;;  %v2665_v36 = vld [vmem:[#allocation2 + $0x2c] sm:$0xf]  ;;  %vm4605_vm15 = vcmask 392452   ;;  %vm4608_vm2 = vcmask 523652  }
 0x70a   : > { %vm4607_vm1 = vmmov %vm4605_vm15  ;;  %vm4610_vm13 = vcmask 654852  }
 0x70b   : > { %2356 = vrot.lane.b32.xlu0 %v2354_v45, %s4524_s29  ;;  %v2062_v45 = vrot.slane %v2060_v41, 4  ;;  %vm4609_vm3 = vmmov %vm4608_vm2 }
 0x70c   : > { %2308 = vrot.lane.b32.xlu1 %v2306_v34, %s4524_s29  ;;  %v2780_v34 = vld [vmem:[#allocation2 + $0x34] sm:$0xf] }
 0x70f   : > { %1974 = vrot.lane.b32.xlu0 %v1972_v40, %s4523_s25 }
 0x710   : > { %2562 = vrot.lane.b32.xlu1 %v2560_v5, %s4538_s19  ;;  %v2046_v5 = vld [vmem:[#allocation2 + $0x20] sm:$0xf] }
 0x713   : > { %2182 = vrot.lane.b32.xlu0 %v2180_v47, %s4537_s20 }
 0x714   : > { %1980 = vrot.lane.b32.xlu1 %v1978_v50, %s4528_s23  ;;  %v2266_v50 = vrot.slane %v2264_v46, 4 }
 0x717   : > { %2362 = vrot.lane.b32.xlu0 %v2360_v51, %s4540_s21  ;;  %v2048_v51 = vrot.slane %v2046_v5, 4 }
 0x718   : > { %2188 = vrot.lane.b32.xlu1 %v2186_v12, %s4529_s8  ;;  %v2067_v12 = vld [vmem:[#allocation2 + $0x2c] sm:$0xf] }
 0x719   : > { %v2069_v27 = vrot.slane %v2067_v12, 4 }
 0x71b   : > { %1930 = vrot.lane.b32.xlu0 %v1928_v43, %s4523_s25  ;;  %v2053_v43 = vld [vmem:[#allocation2 + $0x24] sm:$0xf] }
 0x71c   : > { %2368 = vrot.lane.b32.xlu1 %v2366_v48, %s4534_s0 }
 0x71f   : > { %2134 = vrot.lane.b32.xlu0 %v2132_v54, %s4537_s20  ;;  %v2055_v54 = vrot.slane %v2053_v43, 4 }
 0x720   : > { %2568 = vrot.lane.b32.xlu1 %v2566_v53, %s4539_s24  ;;  %v2271_v53 = vld [vmem:[#allocation2 + $0x30] sm:$0xf] }
 0x723   : > { %2314 = vrot.lane.b32.xlu0 %v2312_v56, %s4540_s21 }
 0x724   : > { %1986 = vrot.lane.b32.xlu1 %v1984_v57, %s4530_s11  ;;  %v2273_v57 = vrot.slane %v2271_v53, 4 }
 0x727   : > { %2518 = vrot.lane.b32.xlu0 %v2516_v58, %s4538_s19  ;;  %v1999_v58 = vrot.slane %v1997_v55, 4 }
 0x728   : > { %2194 = vrot.lane.b32.xlu1 %v2192_v59, %s4531_s16  ;;  %v2074_v59 = vld [vmem:[#allocation2 + $0x30] sm:$0xf] }
 0x72b   : > { %1936 = vrot.lane.b32.xlu0 %v1934_v0, %s4528_s23  ;;  %v2203_v0 = vld [vmem:[#allocation2 + $0x8] sm:$0xf] }
 0x72c   : > { %2374 = vrot.lane.b32.xlu1 %v2372_v9, %s4532_s9 }
 0x72f   : > { %2140 = vrot.lane.b32.xlu0 %v2138_v19, %s4529_s8 }
 0x730   : > { %2574 = vrot.lane.b32.xlu1 %v2572_v60, %s4542_s18  ;;  %v2076_v60 = vrot.slane %v2074_v59, 4 }
 0x733   : > { %2320 = vrot.lane.b32.xlu0 %v2318_v2, %s4534_s0  ;;  %v2205_v2 = vrot.slane %v2203_v0, 4 }
 0x734   : > { %2380 = vrot.lane.b32.xlu1 %v2378_v29, %s4533_s12  ;;  %v2278_v29 = vld [vmem:[#allocation2 + $0x34] sm:$0xf] }
 0x737   : > { %2524 = vrot.lane.b32.xlu0 %v2522_v61, %s4539_s24  ;;  %v2004_v61 = vld [vmem:[#allocation2 + $0x8] sm:$0xf] }
 0x738   : > { %2580 = vrot.lane.b32.xlu1 %v2578_v49, %s4521_s7 }
 0x73b   : > { %1942 = vrot.lane.b32.xlu0 %v1940_v63, %s4530_s11 }
 0x73c   : > { %2386 = vrot.lane.b32.xlu1 %v2384_v1, %s4536_s27  ;;  %v2280_v1 = vrot.slane %v2278_v29, 4  ;;  %v2095_v29 = vld [vmem:[#allocation2 + $0x3c] sm:$0xf] }
 0x73f   : > { %2146 = vrot.lane.b32.xlu0 %v2144_v3, %s4531_s16  ;;  %v2006_v3 = vrot.slane %v2004_v61, 4  ;;  %v2231_v61 = vld [vmem:[#allocation2 + $0x18] sm:$0xf] }
 0x740   : > { %2586 = vrot.lane.b32.xlu1 %v2584_v4, %s4523_s25  ;;  %v2458_v4 = vld [vmem:[#allocation2 + $0x24] sm:$0xf] }
 0x743   : > { %2326 = vrot.lane.b32.xlu0 %v2324_v6, %s4532_s9  ;;  %v2210_v6 = vld [vmem:[#allocation2 + $0xc] sm:$0xf] }
 0x744   : > { %2392 = vrot.lane.b32.xlu1 %v2390_v7, %s4522_s10 }
 0x747   : > { %2530 = vrot.lane.b32.xlu0 %v2528_v8, %s4542_s18 }
 0x748   : > { %2592 = vrot.lane.b32.xlu1 %v2590_v10, %s4528_s23  ;;  %v2460_v10 = vrot.slane %v2458_v4, 4  ;;  %v2409_v4 = vld [vmem:[#allocation2 + $0x8] sm:$0xf] }
 0x74b   : > { %2332 = vrot.lane.b32.xlu0 %v2330_v11, %s4533_s12  ;;  %v2212_v11 = vrot.slane %v2210_v6, 4  ;;  %v2299_v6 = vld [vmem:[#allocation2 + $0x40] sm:$0xf] }
 0x74c   : > { %2344 = vrot.lane.b32.xlu1 %v2342_v13, %s4522_s10  ;;  %v2018_v13 = vld [vmem:[#allocation2 + $0x10] sm:$0xf] }
 0x74f   : > { %2536 = vrot.lane.b32.xlu0 %v2534_v14, %s4521_s7  ;;  %v2011_v14 = vld [vmem:[#allocation2 + $0xc] sm:$0xf] }
 0x750   : > { %2548 = vrot.lane.b32.xlu1 %v2546_v20, %s4528_s23 }
 0x753   : > { %2338 = vrot.lane.b32.xlu0 %v2336_v15, %s4536_s27 }
 0x754   : > { %2716 = vrot.lane.b32.xlu1 %v2714_v16, %s4543_s5  ;;  %v2020_v16 = vrot.slane %v2018_v13, 4  ;;  %v2479_v13 = vld [vmem:[#allocation2 + $0x30] sm:$0xf] }
 0x757   : > { %2542 = vrot.lane.b32.xlu0 %v2540_v18, %s4523_s25  ;;  %v2013_v18 = vrot.slane %v2011_v14, 4  ;;  %v2609_v14 = vld [vmem:[#allocation2 + $0xc] sm:$0xf] }
 0x758   : > { %2350 = vrot.lane.b32.xlu1 %v2348_v21, %s4541_s6  ;;  %v2153_v22 = vpop.permute.xlu1 %2152  ;;  %v2224_v21 = vld [vmem:[#allocation2 + $0x14] sm:$0xf] }
 0x759   : > { %2155 = vst.msk [vmem:[#allocation3 + $0x18] sm:$0xf] %vm571_vm4, %v2153_v22  ;;  %v2217_v22 = vld [vmem:[#allocation2 + $0x10] sm:$0xf] }
 0x75b   : > { %2764 = vrot.lane.b32.xlu0 %v2762_v26, %s4543_s5 }
 0x75c   : > { %2554 = vrot.lane.b32.xlu1 %v2552_v23, %s4530_s11  ;;  %v1957_v24 = vpop.permute.xlu1 %1956 }
 0x75d   : > { %v1951_v25 = vpop.permute.xlu0 %1950 }
 0x75e   : > { %1953 = vst.msk [vmem:[#allocation3 + $0x8] sm:$0xf] %vm578_vm6, %v1951_v25  ;;  %v2219_v25 = vrot.slane %v2217_v22, 4  ;;  %v2032_v22 = vld [vmem:[#allocation2 + $0x18] sm:$0xf] }
 0x75f   : > { %1959 = vst.msk [vmem:[#allocation3 + $0x8] sm:$0xf] %vm585_vm7, %v1957_v24  ;;  %2398 = vrot.lane.b32.xlu0 %v2396_v30, %s4541_s6  ;;  %v2226_v24 = vrot.slane %v2224_v21, 4  ;;  %v2658_v30 = vld [vmem:[#allocation2 + $0x28] sm:$0xf] }
 0x760   : > { %2722 = vrot.lane.b32.xlu1 %v2720_v28, %s4525_s14  ;;  %v2165_v31 = vpop.permute.xlu1 %2164  ;;  %v2402_v28 = vld [vmem:[#allocation2 + $0x4] sm:$0xf]  ;;  %v2679_v21 = vld [vmem:[#allocation2 + $0x34] sm:$0xf] }
 0x761   : > { %v2159_v32 = vpop.permute.xlu0 %2158 }
 0x762   : > { %2161 = vst.msk [vmem:[#allocation3 + $0x18] sm:$0xf] %vm578_vm6, %v2159_v32 }
 0x763   : > { %2167 = vst.msk [vmem:[#allocation3 + $0x18] sm:$0xf] %vm585_vm7, %v2165_v31  ;;  %2770 = vrot.lane.b32.xlu0 %v2768_v35, %s4525_s14  ;;  %v2660_v35 = vrot.slane %v2658_v30, 4  ;;  %v2238_v30 = vld [vmem:[#allocation2 + $0x1c] sm:$0xf] }
 0x764   : > { %2728 = vrot.lane.b32.xlu1 %v2726_v33, %s4526_s17  ;;  %v2404_v33 = vrot.slane %v2402_v28, 4  ;;  %v2039_v28 = vld [vmem:[#allocation2 + $0x1c] sm:$0xf] }
 0x765   : > { %v1907_v38 = vpop.permute.xlu0 %1906 }
 0x766   : > { %v1963_v37 = vpop.permute.xlu1 %1962  ;;  %1909 = vst.msk [vmem:[#allocation3] sm:$0xf] %vm578_vm6, %v1907_v38 }
 0x767   : > { %1965 = vst.msk [vmem:[#allocation3 + $0x8] sm:$0xf] %vm592_vm8, %v1963_v37  ;;  %2776 = vrot.lane.b32.xlu0 %v2774_v39, %s4526_s17  ;;  %v2081_v37 = vld [vmem:[#allocation2 + $0x34] sm:$0xf]  ;;  %v2667_v39 = vrot.slane %v2665_v36, 4 }
 0x768   : > { %2260 = vrot.lane.b32.xlu1 %v2259_v62, %s4538_s19  ;;  %v2083_v41 = vrot.slane %v2081_v37, 4  ;;  %v2245_v36 = vld [vmem:[#allocation2 + $0x20] sm:$0xf]  ;;  %v2416_v37 = vld [vmem:[#allocation2 + $0xc] sm:$0xf] }
 0x769   : > { %v4086_v44 = vpop.permute.xlu0 %2110 }
 0x76a   : > { %v2171_v42 = vpop.permute.xlu1 %2170 }
 0x76b   : > { %2173 = vst.msk [vmem:[#allocation3 + $0x18] sm:$0xf] %vm592_vm8, %v2171_v42  ;;  %2782 = vrot.lane.b32.xlu0 %v2780_v34, %s4535_s26  ;;  %v2088_v42 = vld [vmem:[#allocation2 + $0x38] sm:$0xf] }
 0x76c   : > { %2063 = vrot.lane.b32.xlu1 %v2062_v45, %s4534_s0  ;;  %v2285_v45 = vld [vmem:[#allocation2 + $0x38] sm:$0xf]  ;;  %v2090_v5 = vrot.slane %v2088_v42, 4  ;;  %v2418_v42 = vrot.slane %v2416_v37, 4  ;;  %v2102_v37 = vld [vmem:[#allocation2] sm:$0xf] }
 0x76d   : > { %v1913_v47 = vpop.permute.xlu0 %1912 }
 0x76e   : > { %v1969_v40 = vpop.permute.xlu1 %1968  ;;  %1915 = vst.msk [vmem:[#allocation3] sm:$0xf] %vm585_vm7, %v1913_v47  ;;  %v2292_v47 = vld [vmem:[#allocation2 + $0x3c] sm:$0xf] }
 0x76f   : > { %1971 = vst.msk [vmem:[#allocation3 + $0x8] sm:$0xf] %vm599_vm9, %v1969_v40  ;;  %2049 = vrot.lane.b32.xlu0 %v2048_v51, %s4524_s29  ;;  %v2287_v40 = vrot.slane %v2285_v45, 4  ;;  %v2294_v43 = vrot.slane %v2292_v47, 4  ;;  %v2486_v45 = vld [vmem:[#allocation2 + $0x34] sm:$0xf] }
 0x770   : > { %2267 = vrot.lane.b32.xlu1 %v2266_v50, %s4539_s24  ;;  %v2465_v50 = vld [vmem:[#allocation2 + $0x28] sm:$0xf] }
 0x771   : > { %v4095_v52 = vpop.permute.xlu0 %2116 }
 0x772   : > { %v2177_v48 = vpop.permute.xlu1 %2176 }
 0x773   : > { %2179 = vst.msk [vmem:[#allocation3 + $0x18] sm:$0xf] %vm599_vm9, %v2177_v48  ;;  %2056 = vrot.lane.b32.xlu0 %v2055_v54, %s4540_s21  ;;  %v2467_v48 = vrot.slane %v2465_v50, 4  ;;  %v2602_v54 = vld [vmem:[#allocation2 + $0x8] sm:$0xf] }
 0x774   : > { %2070 = vrot.lane.b32.xlu1 %v2069_v27, %s4532_s9  ;;  %v2472_v27 = vld [vmem:[#allocation2 + $0x2c] sm:$0xf]  ;;  %v2686_v50 = vld [vmem:[#allocation2 + $0x38] sm:$0xf] }
 0x775   : > { %v1919_v56 = vpop.permute.xlu0 %1918 }
 0x776   : > { %v1925_v17 = vpop.permute.xlu1 %1924  ;;  %1921 = vst.msk [vmem:[#allocation3] sm:$0xf] %vm592_vm8, %v1919_v56  ;;  %v2604_v56 = vrot.slane %v2602_v54, 4  ;;  %v2493_v54 = vld [vmem:[#allocation2 + $0x38] sm:$0xf] }
 0x777   : > { %1927 = vst.msk [vmem:[#allocation3] sm:$0xf] %vm599_vm9, %v1925_v17  ;;  %2000 = vrot.lane.b32.xlu0 %v1999_v58, %s4540_s21  ;;  %v2474_v17 = vrot.slane %v2472_v27, 4  ;;  %v2025_v58 = vld [vmem:[#allocation2 + $0x14] sm:$0xf] }
 0x778   : > { %2274 = vrot.lane.b32.xlu1 %v2273_v57, %s4542_s18  ;;  %v2672_v57 = vld [vmem:[#allocation2 + $0x30] sm:$0xf] }
 0x779   : > { %v4106_v19 = vpop.permute.xlu0 %2122 }
 0x77a   : > { %v4104_v9 = vpop.permute.xlu1 %2128 }
 0x77b   : > { %2206 = vrot.lane.b32.xlu0 %v2205_v2, %s4538_s19  ;;  %v2027_v2 = vrot.slane %v2025_v58, 4  ;;  %v2693_v58 = vld [vmem:[#allocation2 + $0x3c] sm:$0xf]  ;;  %s4670_s19 = sld [smem:[#allocation14_spill]] }
 0x77c   : > { %2077 = vrot.lane.b32.xlu1 %v2076_v60, %s4533_s12  ;;  %v2674_v60 = vrot.slane %v2672_v57, 4 }
 0x77d   : > { %v2357_v63 = vpop.permute.xlu0 %2356 }
 0x77e   : > { %v2309_v49 = vpop.permute.xlu1 %2308  ;;  %2359 = vst.msk [vmem:[#allocation3 + $0x28] sm:$0xf] %vm571_vm4, %v2357_v63 }
 0x77f   : > { %2311 = vst.msk [vmem:[#allocation3 + $0x20] sm:$0xf] %vm571_vm4, %v2309_v49  ;;  %2007 = vrot.lane.b32.xlu0 %v2006_v3, %s4534_s0  ;;  %v2233_v3 = vrot.slane %v2231_v61, 4 }
 0x780   : > { %2281 = vrot.lane.b32.xlu1 %v2280_v1, %s4521_s7  ;;  %v2097_v1 = vrot.slane %v2095_v29, 4  ;;  %v2695_v29 = vrot.slane %v2693_v58, 4  ;;  %v2750_v58 = vld [vmem:[#allocation2 + $0x20] sm:$0xf] }
 0x781   : > { %v1975_v8 = vpop.permute.xlu0 %1974 }
 0x782   : > { %v2563_v7 = vpop.permute.xlu1 %2562  ;;  %1977 = vst.msk [vmem:[#allocation3 + $0x8] sm:$0xf] %vm606_vm10, %v1975_v8 }
 0x783   : > { %2565 = vst.msk [vmem:[#allocation3 + $0x38] sm:$0xf] %vm578_vm6, %v2563_v7  ;;  %2213 = vrot.lane.b32.xlu0 %v2212_v11, %s4539_s24  ;;  %v2301_v11 = vrot.slane %v2299_v6, 4  ;;  %s3039_s24 = sshll.u32 %s4670_s19, 7 }
 0x784   : > { %2461 = vrot.lane.b32.xlu1 %v2460_v10, %s4543_s5  ;;  %v2411_v10 = vrot.slane %v2409_v4, 4 }
 0x785   : > { %v2183_v15 = vpop.permute.xlu0 %2182 }
 0x786   : > { %v1981_v20 = vpop.permute.xlu1 %1980  ;;  %2185 = vst.msk [vmem:[#allocation3 + $0x18] sm:$0xf] %vm606_vm10, %v2183_v15 }
 0x787   : > { %1983 = vst.msk [vmem:[#allocation3 + $0x8] sm:$0xf] %vm613_vm11, %v1981_v20  ;;  %2014 = vrot.lane.b32.xlu0 %v2013_v18, %s4532_s9  ;;  %v2611_v18 = vrot.slane %v2609_v14, 4 }
 0x788   : > { %2021 = vrot.lane.b32.xlu1 %v2020_v16, %s4533_s12  ;;  %v2481_v16 = vrot.slane %v2479_v13, 4 }
 0x789   : > { %v2363_v23 = vpop.permute.xlu0 %2362 }
 0x78a   : > { %v2189_v26 = vpop.permute.xlu1 %2188  ;;  %2365 = vst.msk [vmem:[#allocation3 + $0x28] sm:$0xf] %vm578_vm6, %v2363_v23 }
 0x78b   : > { %2191 = vst.msk [vmem:[#allocation3 + $0x18] sm:$0xf] %vm613_vm11, %v2189_v26  ;;  %2220 = vrot.lane.b32.xlu0 %v2219_v25, %s4542_s18  ;;  %v2034_v25 = vrot.slane %v2032_v22, 4  ;;  %s4664_s18 = sld [smem:[#allocation24_spill]] }
 0x78c   : > { %2227 = vrot.lane.b32.xlu1 %v2226_v24, %s4521_s7  ;;  %v2681_v24 = vrot.slane %v2679_v21, 4 }
 0x78d   : > { %v1931_v32 = vpop.permute.xlu0 %1930 }
 0x78e   : > { %v2369_v31 = vpop.permute.xlu1 %2368  ;;  %1933 = vst.msk [vmem:[#allocation3] sm:$0xf] %vm606_vm10, %v1931_v32 }
 0x78f   : > { %2371 = vst.msk [vmem:[#allocation3 + $0x28] sm:$0xf] %vm585_vm7, %v2369_v31  ;;  %2661 = vrot.lane.b32.xlu0 %v2660_v35, %s4524_s29  ;;  %v2240_v35 = vrot.slane %v2238_v30, 4 }
 0x790   : > { %2405 = vrot.lane.b32.xlu1 %v2404_v33, %s4543_s5  ;;  %v2041_v33 = vrot.slane %v2039_v28, 4 }
 0x791   : > { %v4130_v62 = vpop.permute.xlu0 %2134 }
 0x792   : > { %v2569_v38 = vpop.permute.xlu1 %2568 }
 0x793   : > { %2571 = vst.msk [vmem:[#allocation3 + $0x38] sm:$0xf] %vm585_vm7, %v2569_v38  ;;  %2084 = vrot.lane.b32.xlu0 %v2083_v41, %s4536_s27  ;;  %v2247_v41 = vrot.slane %v2245_v36, 4 }
 0x794   : > { %2668 = vrot.lane.b32.xlu1 %v2667_v39, %s4540_s21 }
 0x795   : > { %v2315_v46 = vpop.permute.xlu0 %2314 }
 0x796   : > { %v1987_v34 = vpop.permute.xlu1 %1986  ;;  %2317 = vst.msk [vmem:[#allocation3 + $0x20] sm:$0xf] %vm578_vm6, %v2315_v46 }
 0x797   : > { %1989 = vst.msk [vmem:[#allocation3 + $0x8] sm:$0xf] %vm4495_vm12, %v1987_v34  ;;  %2288 = vrot.lane.b32.xlu0 %v2287_v40, %s4523_s25  ;;  %v2616_v34 = vld [vmem:[#allocation2 + $0x10] sm:$0xf]  ;;  %v2488_v40 = vrot.slane %v2486_v45, 4 }
 0x798   : > { %2091 = vrot.lane.b32.xlu1 %v2090_v5, %s4522_s10  ;;  %v2618_v47 = vrot.slane %v2616_v34, 4 }
 0x799   : > { %v2519_v12 = vpop.permute.xlu0 %2518 }
 0x79a   : > { %v2195_v51 = vpop.permute.xlu1 %2194  ;;  %2521 = vst.msk [vmem:[#allocation3 + $0x30] sm:$0xf] %vm578_vm6, %v2519_v12 }
 0x79b   : > { %2197 = vst.msk [vmem:[#allocation3 + $0x18] sm:$0xf] %vm4495_vm12, %v2195_v51  ;;  %2468 = vrot.lane.b32.xlu0 %v2467_v48, %s4525_s14  ;;  %v2423_v51 = vld [vmem:[#allocation2 + $0x10] sm:$0xf]  ;;  %v2688_v48 = vrot.slane %v2686_v50, 4 }
 0x79c   : > { %2295 = vrot.lane.b32.xlu1 %v2294_v43, %s4528_s23  ;;  %v2425_v27 = vrot.slane %v2423_v51, 4 }
 0x79d   : > { %v1937_v55 = vpop.permute.xlu0 %1936 }
 0x79e   : > { %v2375_v53 = vpop.permute.xlu1 %2374  ;;  %1939 = vst.msk [vmem:[#allocation3] sm:$0xf] %vm613_vm11, %v1937_v55 }
 0x79f   : > { %2377 = vst.msk [vmem:[#allocation3 + $0x28] sm:$0xf] %vm592_vm8, %v2375_v53  ;;  %2605 = vrot.lane.b32.xlu0 %v2604_v56, %s4524_s29  ;;  %v2623_v53 = vld [vmem:[#allocation2 + $0x14] sm:$0xf]  ;;  %v2495_v56 = vrot.slane %v2493_v54, 4 }
 0x7a0   : > { %2475 = vrot.lane.b32.xlu1 %v2474_v17, %s4526_s17  ;;  %v2625_v57 = vrot.slane %v2623_v53, 4  ;;  %v2744_v54 = vld [vmem:[#allocation2 + $0x1c] sm:$0xf] }
 0x7a1   : > { %v4147_v0 = vpop.permute.xlu0 %2140  ;;  %v2792_v53 = vld [vmem:[#allocation2 + $0x3c] sm:$0xf] }
 0x7a2   : > { %v2575_v59 = vpop.permute.xlu1 %2574 }
 0x7a3   : > { %2577 = vst.msk [vmem:[#allocation3 + $0x38] sm:$0xf] %vm592_vm8, %v2575_v59  ;;  %2028 = vrot.lane.b32.xlu0 %v2027_v2, %s4536_s27  ;;  %v2430_v59 = vld [vmem:[#allocation2 + $0x14] sm:$0xf] }
 0x7a4   : > { %2675 = vrot.lane.b32.xlu1 %v2674_v60, %s4534_s0  ;;  %v2432_v61 = vrot.slane %v2430_v59, 4 }
 0x7a5   : > { %v2321_v63 = vpop.permute.xlu0 %2320 }
 0x7a6   : > { %v2381_v49 = vpop.permute.xlu1 %2380  ;;  %2323 = vst.msk [vmem:[#allocation3 + $0x20] sm:$0xf] %vm585_vm7, %v2321_v63  ;;  %v2630_v63 = vld [vmem:[#allocation2 + $0x18] sm:$0xf] }
 0x7a7   : > { %2383 = vst.msk [vmem:[#allocation3 + $0x28] sm:$0xf] %vm599_vm9, %v2381_v49  ;;  %2234 = vrot.lane.b32.xlu0 %v2233_v3, %s4523_s25  ;;  %v2500_v49 = vld [vmem:[#allocation2 + $0x3c] sm:$0xf]  ;;  %v2632_v6 = vrot.slane %v2630_v63, 4 }
 0x7a8   : > { %2098 = vrot.lane.b32.xlu1 %v2097_v1, %s4541_s6  ;;  %v2502_v4 = vrot.slane %v2500_v49, 4  ;;  %v2804_v63 = vld [vmem:[#allocation2 + $0x44] sm:$0xf] }
 0x7a9   : > { %v2525_v8 = vpop.permute.xlu0 %2524 }
 0x7aa   : > { %v2581_v7 = vpop.permute.xlu1 %2580  ;;  %2527 = vst.msk [vmem:[#allocation3 + $0x30] sm:$0xf] %vm585_vm7, %v2525_v8  ;;  %v2437_v8 = vld [vmem:[#allocation2 + $0x18] sm:$0xf] }
 0x7ab   : > { %2583 = vst.msk [vmem:[#allocation3 + $0x38] sm:$0xf] %vm599_vm9, %v2581_v7  ;;  %2412 = vrot.lane.b32.xlu0 %v2411_v10, %s4525_s14  ;;  %v2700_v7 = vld [vmem:[#allocation2 + $0x40] sm:$0xf]  ;;  %v2439_v14 = vrot.slane %v2437_v8, 4  ;;  %s4677_s14 = sld [smem:[#allocation26_spill]] }
 0x7ac   : > { %2302 = vrot.lane.b32.xlu1 %v2301_v11, %s4530_s11  ;;  %v2702_v13 = vrot.slane %v2700_v7, 4 }
 0x7ad   : > { %v1943_v15 = vpop.permute.xlu0 %1942 }
 0x7ae   : > { %v2387_v20 = vpop.permute.xlu1 %2386  ;;  %1945 = vst.msk [vmem:[#allocation3] sm:$0xf] %vm4495_vm12, %v1943_v15  ;;  %v2637_v15 = vld [vmem:[#allocation2 + $0x1c] sm:$0xf] }
 0x7af   : > { %2389 = vst.msk [vmem:[#allocation3 + $0x28] sm:$0xf] %vm606_vm10, %v2387_v20  ;;  %2612 = vrot.lane.b32.xlu0 %v2611_v18, %s4540_s21  ;;  %v2444_v20 = vld [vmem:[#allocation2 + $0x1c] sm:$0xf]  ;;  %v2639_v22 = vrot.slane %v2637_v15, 4  ;;  %s4673_s21 = sld [smem:[#allocation20_spill]] }
 0x7b0   : > { %2482 = vrot.lane.b32.xlu1 %v2481_v16, %s4535_s26  ;;  %v2446_v21 = vrot.slane %v2444_v20, 4 }
 0x7b1   : > { %v4164_v23 = vpop.permute.xlu0 %2146 }
 0x7b2   : > { %v2587_v26 = vpop.permute.xlu1 %2586 }
 0x7b3   : > { %2589 = vst.msk [vmem:[#allocation3 + $0x38] sm:$0xf] %vm606_vm10, %v2587_v26  ;;  %2035 = vrot.lane.b32.xlu0 %v2034_v25, %s4522_s10  ;;  %v2644_v26 = vld [vmem:[#allocation2 + $0x20] sm:$0xf] }
 0x7b4   : > { %2682 = vrot.lane.b32.xlu1 %v2681_v24, %s4532_s9  ;;  %v2507_v24 = vld [vmem:[#allocation2 + $0x40] sm:$0xf]  ;;  %v2646_v30 = vrot.slane %v2644_v26, 4 }
 0x7b5   : > { %v2327_v32 = vpop.permute.xlu0 %2326 }
 0x7b6   : > { %v2393_v31 = vpop.permute.xlu1 %2392  ;;  %2329 = vst.msk [vmem:[#allocation3 + $0x20] sm:$0xf] %vm592_vm8, %v2327_v32  ;;  %v2451_v32 = vld [vmem:[#allocation2 + $0x20] sm:$0xf] }
 0x7b7   : > { %2395 = vst.msk [vmem:[#allocation3 + $0x28] sm:$0xf] %vm613_vm11, %v2393_v31  ;;  %2241 = vrot.lane.b32.xlu0 %v2240_v35, %s4528_s23  ;;  %v2509_v31 = vrot.slane %v2507_v24, 4  ;;  %v2453_v36 = vrot.slane %v2451_v32, 4 }
 0x7b8   : > { %2042 = vrot.lane.b32.xlu1 %v2041_v33, %s4541_s6 }
 0x7b9   : > { %v2531_v39 = vpop.permute.xlu0 %2530 }
 0x7ba   : > { %v2593_v38 = vpop.permute.xlu1 %2592  ;;  %2533 = vst.msk [vmem:[#allocation3 + $0x30] sm:$0xf] %vm592_vm8, %v2531_v39  ;;  %v2651_v39 = vld [vmem:[#allocation2 + $0x24] sm:$0xf] }
 0x7bb   : > { %2595 = vst.msk [vmem:[#allocation3 + $0x38] sm:$0xf] %vm613_vm11, %v2593_v38  ;;  %2419 = vrot.lane.b32.xlu0 %v2418_v42, %s4526_s17  ;;  %v1990_v38 = vld [vmem:[#allocation2] sm:$0xf]  ;;  %v2653_v34 = vrot.slane %v2651_v39, 4 }
 0x7bc   : > { %2248 = vrot.lane.b32.xlu1 %v2247_v41, %s4530_s11  ;;  %v1992_v45 = vrot.slane %v1990_v38, 4 }
 0x7bd   : > { %v2333_v5 = vpop.permute.xlu0 %2332 }
 0x7be   : > { %v2345_v46 = vpop.permute.xlu1 %2344  ;;  %2335 = vst.msk [vmem:[#allocation3 + $0x20] sm:$0xf] %vm599_vm9, %v2333_v5 }
 0x7bf   : > { %2619 = vrot.lane.b32.xlu0 %v2618_v47, %s4534_s0  ;;  %v2596_v47 = vld [vmem:[#allocation2 + $0x44] sm:$0xf] }
 0x7c0   : > { %2489 = vrot.lane.b32.xlu1 %v2488_v40, %s4527_s28  ;;  %v2732_v40 = vld [vmem:[#allocation2 + $0x14] sm:$0xf] }
 0x7c1   : > { %v2537_v43 = vpop.permute.xlu0 %2536 }
 0x7c2   : > { %v2549_v12 = vpop.permute.xlu1 %2548  ;;  %2539 = vst.msk [vmem:[#allocation3 + $0x30] sm:$0xf] %vm599_vm9, %v2537_v43  ;;  %v2786_v43 = vld [vmem:[#allocation2 + $0x38] sm:$0xf] }
 0x7c3   : > { %2426 = vrot.lane.b32.xlu0 %v2425_v27, %s4535_s26 }
 0x7c4   : > { %2689 = vrot.lane.b32.xlu1 %v2688_v48, %s4533_s12 }
 0x7c5   : > { %v2339_v17 = vpop.permute.xlu0 %2338 }
 0x7c6   : > { %v2717_v55 = vpop.permute.xlu1 %2716  ;;  %2341 = vst.msk [vmem:[#allocation3 + $0x20] sm:$0xf] %vm606_vm10, %v2339_v17 }
 0x7c7   : > { %2719 = vst.msk [vmem:[#allocation3 + $0x40] sm:$0xf] %vm571_vm4, %v2717_v55  ;;  %2626 = vrot.lane.b32.xlu0 %v2625_v57, %s4532_s9  ;;  %v2707_v55 = vld [vmem:[#allocation2 + $0x44] sm:$0xf] }
 0x7c8   : > { %2347 = vst.msk [vmem:[#allocation3 + $0x20] sm:$0xf] %vm613_vm11, %v2345_v46  ;;  %2496 = vrot.lane.b32.xlu1 %v2495_v56, %s4537_s20  ;;  %v2709_v57 = vrot.slane %v2707_v55, 4 }
 0x7c9   : > { %v2543_v2 = vpop.permute.xlu0 %2542 }
 0x7ca   : > { %v2351_v60 = vpop.permute.xlu1 %2350  ;;  %2545 = vst.msk [vmem:[#allocation3 + $0x30] sm:$0xf] %vm606_vm10, %v2543_v2  ;;  %v2756_v2 = vld [vmem:[#allocation2 + $0x24] sm:$0xf] }
 0x7cb   : > { %2353 = vst.msk [vmem:[#allocation3 + $0x20] sm:$0xf] %vm4495_vm12, %v2351_v60  ;;  %2433 = vrot.lane.b32.xlu0 %v2432_v61, %s4527_s28 }
 0x7cc   : > { %2551 = vst.msk [vmem:[#allocation3 + $0x30] sm:$0xf] %vm613_vm11, %v2549_v12  ;;  %2696 = vrot.lane.b32.xlu1 %v2695_v29, %s4536_s27  ;;  %v2738_v12 = vld [vmem:[#allocation2 + $0x18] sm:$0xf]  ;;  %v2798_v29 = vld [vmem:[#allocation2 + $0x40] sm:$0xf] }
 0x7cd   : > { %v2765_v3 = vpop.permute.xlu0 %2764 }
 0x7ce   : > { %v2555_v1 = vpop.permute.xlu1 %2554  ;;  %2767 = vst.msk [vmem:[#allocation3 + $0x48] sm:$0xf] %vm571_vm4, %v2765_v3 }
 0x7cf   : > { %2557 = vst.msk [vmem:[#allocation3 + $0x30] sm:$0xf] %vm4495_vm12, %v2555_v1  ;;  %2633 = vrot.lane.b32.xlu0 %v2632_v6, %s4533_s12  ;;  %v2821_v1 = vld [vmem:[%s4614_s3] sm:$0xf] }
 0x7d0   : > { %2503 = vrot.lane.b32.xlu1 %v2502_v4, %s4529_s8 }
 0x7d1   : > { %v2399_v11 = vpop.permute.xlu0 %2398 }
 0x7d2   : > { %v2723_v10 = vpop.permute.xlu1 %2722  ;;  %2401 = vst.msk [vmem:[#allocation3 + $0x28] sm:$0xf] %vm4495_vm12, %v2399_v11 }
 0x7d3   : > { %2725 = vst.msk [vmem:[#allocation3 + $0x40] sm:$0xf] %vm578_vm6, %v2723_v10  ;;  %2440 = vrot.lane.b32.xlu0 %v2439_v14, %s4537_s20 }
 0x7d4   : > { %2703 = vrot.lane.b32.xlu1 %v2702_v13, %s4522_s10 }
 0x7d5   : > { %v2771_v18 = vpop.permute.xlu0 %2770 }
 0x7d6   : > { %v2729_v16 = vpop.permute.xlu1 %2728  ;;  %2773 = vst.msk [vmem:[#allocation3 + $0x48] sm:$0xf] %vm578_vm6, %v2771_v18 }
 0x7d7   : > { %2731 = vst.msk [vmem:[#allocation3 + $0x40] sm:$0xf] %vm585_vm7, %v2729_v16  ;;  %2640 = vrot.lane.b32.xlu0 %v2639_v22, %s4536_s27 }
 0x7d8   : > { %2447 = vrot.lane.b32.xlu1 %v2446_v21, %s4529_s8 }
 0x7d9   : > { %v2777_v28 = vpop.permute.xlu0 %2776 }
 0x7da   : > { %v2261_v25 = vpop.permute.xlu1 %2260  ;;  %2779 = vst.msk [vmem:[#allocation3 + $0x48] sm:$0xf] %vm585_vm7, %v2777_v28 }
 0x7db   : > { %2263 = vst.msk [vmem:[#allocation3 + $0x18] sm:$0xf0] %vm4604_vm14, %v2261_v25  ;;  %2510 = vrot.lane.b32.xlu0 %v2509_v31, %s4531_s16  ;;  %vm4611_vm14 = vmmov %vm4606_vm0 }
 0x7dc   : > { %2647 = vrot.lane.b32.xlu1 %v2646_v30, %s4522_s10 }
 0x7dd   : > { %v2783_v35 = vpop.permute.xlu0 %2782 }
 0x7de   : > { %v2064_v33 = vpop.permute.xlu1 %2063  ;;  %2785 = vst.msk [vmem:[#allocation3 + $0x48] sm:$0xf] %vm592_vm8, %v2783_v35 }
 0x7df   : > { %2454 = vrot.lane.b32.xlu0 %v2453_v36, %s4531_s16 }
 0x7e0   : > { %2104 = vrot.lane.b32.xlu1 %v2102_v37, %s4543_s5 }
 0x7e1   : > { %v2050_v42 = vpop.permute.xlu0 %2049 }
 0x7e2   : > { %v2268_v41 = vpop.permute.xlu1 %2267  ;;  %2052 = vst.msk [vmem:[#allocation3 + $0x8] sm:$0xf0] %vm672_vm5, %v2050_v42 }
 0x7e3   : > { %2270 = vst.msk [vmem:[#allocation3 + $0x18] sm:$0xf0] %vm4605_vm15, %v2268_v41  ;;  %2654 = vrot.lane.b32.xlu0 %v2653_v34, %s4541_s6  ;;  %vm4612_vm15 = vmmov %vm4610_vm13 }
 0x7e4   : > { %1993 = vrot.lane.b32.xlu1 %v1992_v45, %s4524_s29 }
 0x7e5   : > { %v2057_v5 = vpop.permute.xlu0 %2056 }
 0x7e6   : > { %v2071_v46 = vpop.permute.xlu1 %2070  ;;  %2059 = vst.msk [vmem:[#allocation3 + $0x8] sm:$0xf0] %vm4606_vm0, %v2057_v5  ;;  %vm4613_vm0 = vmmov %vm4607_vm1 }
 0x7e7   : > { %2066 = vst.msk [vmem:[#allocation3 + $0x8] sm:$0xf0] %vm4607_vm1, %v2064_v33  ;;  %2598 = vrot.lane.b32.xlu0 %v2596_v47, %s4530_s11  ;;  %vm4615_vm1 = vmmov %vm4608_vm2 }
 0x7e8   : > { %2734 = vrot.lane.b32.xlu1 %v2732_v40, %s4535_s26  ;;  %2073 = vst.msk [vmem:[#allocation3 + $0x8] sm:$0xf0] %vm4608_vm2, %v2071_v46  ;;  %vm4616_vm2 = vmmov %vm4610_vm13 }
 0x7e9   : > { %v4221_v51 = vpop.permute.xlu0 %2000 }
 0x7ea   : > { %v2275_v50 = vpop.permute.xlu1 %2274 }
 0x7eb   : > { %2277 = vst.msk [vmem:[#allocation3 + $0x18] sm:$0xf0] %vm4609_vm3, %v2275_v50  ;;  %2788 = vrot.lane.b32.xlu0 %v2786_v43, %s4527_s28  ;;  %vm4617_vm3 = vmmov %vm4611_vm14 }
 0x7ec   : > { %2740 = vrot.lane.b32.xlu1 %v2738_v12, %s4527_s28  ;;  %s3276_s28 = smov [#allocation7]  }
 0x7ed   : > { %v2207_v27 = vpop.permute.xlu0 %2206  ;;  %s3177_s29 = sshll.u32 %s3276_s28, 4  ;;  %s3178_s29 = int_to_ptr.vmem [resolvable:$false] %s3177_s29 }
 0x7ee   : > { %v2078_v48 = vpop.permute.xlu1 %2077  ;;  %2209 = vst.msk [vmem:[#allocation3 + $0x10] sm:$0xf0] %vm4611_vm14, %v2207_v27  ;;  %vm4619_vm14 = vcmask 917252  }
 0x7ef   : > { %2080 = vst.msk [vmem:[#allocation3 + $0x8] sm:$0xf0] %vm4610_vm13, %v2078_v48  ;;  %2794 = vrot.lane.b32.xlu0 %v2792_v53, %s4537_s20  ;;  %vm4618_vm13 = vcmask 786052  }
 0x7f0   : > { %2746 = vrot.lane.b32.xlu1 %v2744_v54, %s4537_s20  ;;  %s4671_s20 = sld [smem:[#allocation19_spill]] }
 0x7f1   : > { %v4230_v56 = vpop.permute.xlu0 %2007 }
 0x7f2   : > { %v2282_v17 = vpop.permute.xlu1 %2281 }
 0x7f3   : > { %2284 = vst.msk [vmem:[#allocation3 + $0x18] sm:$0xf0] %vm4612_vm15, %v2282_v17  ;;  %2710 = vrot.lane.b32.xlu0 %v2709_v57, %s4541_s6  ;;  %vm4620_vm15 = vmmov %vm4618_vm13 }
 0x7f4   : > { %2752 = vrot.lane.b32.xlu1 %v2750_v58, %s4529_s8 }
 0x7f5   : > { %v2214_v60 = vpop.permute.xlu0 %2213 }
 0x7f6   : > { %v2462_v59 = vpop.permute.xlu1 %2461  ;;  %2216 = vst.msk [vmem:[#allocation3 + $0x10] sm:$0xf0] %vm4613_vm0, %v2214_v60  ;;  %vm4621_vm0 = vmmov %vm4619_vm14  ;;  %s4676_s27 = sshll.u32 %s4671_s20, 3  ;;  %s2934_s25 = scalar_lea.sflag [#allocation6], %s4671_s20 }
 0x7f7   : > { %2464 = vst.msk [vmem:[#allocation3 + $0x28] sm:$0xf0] %vm672_vm5, %v2462_v59  ;;  %2800 = vrot.lane.b32.xlu0 %v2798_v29, %s4529_s8  ;;  %s240_s6 = scalar_lea.vmem [#allocation7], %s4676_s27  ;;  %s3179_s8 = scalar_lea.vmem %s3178_s29, 256 }
 0x7f8   : > { %2758 = vrot.lane.b32.xlu1 %v2756_v2, %s4531_s16  ;;  %s2948_s13 = sshll.u32 %s240_s6, 4  ;;  %s4354_s13 = int_to_ptr.vmem [resolvable:$true] %s2948_s13 }
 0x7f9   : > { %v4241_v49 = vpop.permute.xlu0 %2014  ;;  %s3173_s26 = scalar_lea.vmem %s4354_s13, 128  ;;  %p3180_p7 = scmp.lt.s32.totalorder %s4354_s13, %s3178_s29 }
 0x7fa   : > { %v4239_v61 = vpop.permute.xlu1 %2021  ;;  %p3174_p6 = scmp.ne.s32.totalorder %s4354_s13, %s3173_s26  ;;  %p3181_p10 = scmp.lt.s32.totalorder %s3179_s8, %s3173_s26 }
 0x7fb   : > { %2806 = vrot.lane.b32.xlu0 %v2804_v63, %s4531_s16  ;;  %s4352_s16 = scalar_lea.hbm %s4677_s14, %s3039_s24 }
 0x7fc   : > { %p3175_p12 = pnand %p3174_p6, %p4678_p11  ;;  %p3182_p2 = por %p3181_p10, %p3180_p7 }
 0x7fd   : > { %v2221_v4 = vpop.permute.xlu0 %2220 }
 0x7fe   : > { %v2228_v3 = vpop.permute.xlu1 %2227  ;;  %2223 = vst.msk [vmem:[#allocation3 + $0x10] sm:$0xf0] %vm4615_vm1, %v2221_v4  ;;  %vm4622_vm1 = vmmov %vm4617_vm3  ;;  %p3176_p13 = pneg %p3175_p12 }
 0x7ff   : > { %2230 = vst.msk [vmem:[#allocation3 + $0x10] sm:$0xf0] %vm4616_vm2, %v2228_v3  ;;  %2824 = vperm.xlu0 %3137, %v2821_v1   ;;  %vm4623_vm2 = vcmask 392452  }
 0x800   : > { %p3183_p4 = pnand %p3182_p2, %p3176_p13 }
 0x801   : > { %v2662_v7 = vpop.permute.xlu0 %2661 }
 0x802   : > { %v2406_v6 = vpop.permute.xlu1 %2405  ;;  %2664 = vst.msk [vmem:[#allocation3 + $0x38] sm:$0xf0] %vm672_vm5, %v2662_v7 }
 0x803   : > { %2408 = vst.msk [vmem:[#allocation3 + $0x20] sm:$0xf0] %vm672_vm5, %v2406_v6 }
 0x805   : > { %v2085_v10 = vpop.permute.xlu0 %2084 }
 0x806   : > { %v2669_v8 = vpop.permute.xlu1 %2668  ;;  %2087 = vst.msk [vmem:[#allocation3 + $0x8] sm:$0xf0] %vm4618_vm13, %v2085_v10  ;;  %vm4625_vm13 = vcmask 1048452  }
 0x807   : > { %2671 = vst.msk [vmem:[#allocation3 + $0x38] sm:$0xf0] %vm4617_vm3, %v2669_v8  ;;  %vm4624_vm3 = vmmov %vm4623_vm2 }
 0x809   : > { %v2289_v13 = vpop.permute.xlu0 %2288 }
 0x80a   : > { %v2092_v11 = vpop.permute.xlu1 %2091  ;;  %2291 = vst.msk [vmem:[#allocation3 + $0x18] sm:$0xf0] %vm4620_vm15, %v2289_v13 }
 0x80b   : > { %2094 = vst.msk [vmem:[#allocation3 + $0x8] sm:$0xf0] %vm4619_vm14, %v2092_v11  ;;  %vm4626_vm14 = vmmov %vm4620_vm15  ;;  %v2810_v11 = vld [vmem:[%s4664_s18] sm:$0xf] }
 0x80c   : > { %vm4627_vm15 = vmmov %vm4625_vm13 }
 0x80d   : > { %v2469_v20 = vpop.permute.xlu0 %2468 }
 0x80e   : > { %v2296_v14 = vpop.permute.xlu1 %2295  ;;  %2471 = vst.msk [vmem:[#allocation3 + $0x28] sm:$0xf0] %vm4622_vm1, %v2469_v20 }
 0x80f   : > { %2298 = vst.msk [vmem:[#allocation3 + $0x18] sm:$0xf0] %vm4621_vm0, %v2296_v14  ;;  %vm4628_vm0 = vmmov %vm4622_vm1  ;;  %vm4629_vm1 = vcmask 523652  }
 0x811   : > { %v2606_v16 = vpop.permute.xlu0 %2605 }
 0x812   : > { %v2476_v15 = vpop.permute.xlu1 %2475  ;;  %2608 = vst.msk [vmem:[#allocation3 + $0x30] sm:$0xf0] %vm672_vm5, %v2606_v16 }
 0x813   : > { %2478 = vst.msk [vmem:[#allocation3 + $0x28] sm:$0xf0] %vm4623_vm2, %v2476_v15  ;;  %vm4630_vm2 = vmmov %vm4628_vm0 }
 0x815   : > { %v4259_v21 = vpop.permute.xlu0 %2028 }
 0x816   : > { %v2676_v18 = vpop.permute.xlu1 %2675 }
 0x817   : > { %2678 = vst.msk [vmem:[#allocation3 + $0x38] sm:$0xf0] %vm4624_vm3, %v2676_v18  ;;  %vm4631_vm3 = vmmov %vm4629_vm1 }
 0x818   : > { %vm4639_vm12 = vmmov %vm4631_vm3 }
 0x819   : > { %v2235_v26 = vpop.permute.xlu0 %2234 }
 0x81a   : > { %v2099_v22 = vpop.permute.xlu1 %2098  ;;  %2237 = vst.msk [vmem:[#allocation3 + $0x10] sm:$0xf0] %vm4626_vm14, %v2235_v26  ;;  %vm4633_vm14 = vmmov %vm4627_vm15 }
 0x81b   : > { %2101 = vst.msk [vmem:[#allocation3 + $0x8] sm:$0xf0] %vm4625_vm13, %v2099_v22  ;;  %vm4632_vm13 = vcmask 917252  }
 0x81d   : > { %v2413_v25 = vpop.permute.xlu0 %2412 }
 0x81e   : > { %v2303_v24 = vpop.permute.xlu1 %2302  ;;  %2415 = vst.msk [vmem:[#allocation3 + $0x20] sm:$0xf0] %vm4628_vm0, %v2413_v25  ;;  %vm4635_vm0 = vcmask 654852  }
 0x81f   : > { %2305 = vst.msk [vmem:[#allocation3 + $0x18] sm:$0xf0] %vm4627_vm15, %v2303_v24  ;;  %vm4634_vm15 = vcmask 392452  }
 0x821   : > { %v2613_v30 = vpop.permute.xlu0 %2612 }
 0x822   : > { %v2483_v28 = vpop.permute.xlu1 %2482  ;;  %2615 = vst.msk [vmem:[#allocation3 + $0x30] sm:$0xf0] %vm4630_vm2, %v2613_v30  ;;  %v2812_v33 = vld [vmem:[#allocation3 + $0x8] sm:$0xff]  ;;  %vm4637_vm2 = vmmov %vm4635_vm0 }
 0x823   : > { %2485 = vst.msk [vmem:[#allocation3 + $0x28] sm:$0xf0] %vm4629_vm1, %v2483_v28  ;;  %vm4636_vm1 = vmmov %vm4634_vm15 }
 0x825   : > { %v4268_v32 = vpop.permute.xlu0 %2035 }
 0x826   : > { %v2683_v31 = vpop.permute.xlu1 %2682  ;;  %v2814_v35 = vld [vmem:[#allocation3 + $0x18] sm:$0xff] }
 0x827   : > { %2685 = vst.msk [vmem:[#allocation3 + $0x38] sm:$0xf0] %vm4631_vm3, %v2683_v31  ;;  %v3048_v36 = vpack.c.bf16 %v2814_v35, %v2812_v33 }
 0x829   : > { %3049 = vmatprep.subr.bf16.mxu1 %v3048_v36  ;;  %v2242_v38 = vpop.permute.xlu0 %2241 }
 0x82a   : > { %v4271_v37 = vpop.permute.xlu1 %2042  ;;  %2244 = vst.msk [vmem:[#allocation3 + $0x10] sm:$0xf0] %vm4632_vm13, %v2242_v38  ;;  %vm4638_vm13 = vcmask 786052  }
 0x82d   : > { %v2420_v41 = vpop.permute.xlu0 %2419 }
 0x82e   : > { %v2249_v39 = vpop.permute.xlu1 %2248  ;;  %2422 = vst.msk [vmem:[#allocation3 + $0x20] sm:$0xf0] %vm4634_vm15, %v2420_v41  ;;  %vm4641_vm15 = vmmov %vm4635_vm0 }
 0x82f   : > { %2251 = vst.msk [vmem:[#allocation3 + $0x10] sm:$0xf0] %vm4633_vm14, %v2249_v39  ;;  %vm4640_vm14 = vmmov %vm4638_vm13 }
 0x831   : > { %v2620_v45 = vpop.permute.xlu0 %2619 }
 0x832   : > { %v2490_v42 = vpop.permute.xlu1 %2489  ;;  %2622 = vst.msk [vmem:[#allocation3 + $0x30] sm:$0xf0] %vm4636_vm1, %v2620_v45  ;;  %vm4643_vm1 = vmmov %vm4637_vm2 }
 0x833   : > { %2492 = vst.msk [vmem:[#allocation3 + $0x28] sm:$0xf0] %vm4635_vm0, %v2490_v42  ;;  %vm4642_vm0 = vcmask 917252  }
 0x835   : > { %v2427_v46 = vpop.permute.xlu0 %2426 }
 0x836   : > { %v2690_v34 = vpop.permute.xlu1 %2689  ;;  %2429 = vst.msk [vmem:[#allocation3 + $0x20] sm:$0xf0] %vm4631_vm3, %v2427_v46  ;;  %vm4645_vm3 = vmmov %vm4638_vm13  ;;  %v3142_v46 = vld [vmem:[%s4673_s21] sm:$0xff] }
 0x837   : > { %2692 = vst.msk [vmem:[#allocation3 + $0x38] sm:$0xf0] %vm4637_vm2, %v2690_v34  ;;  %vm4644_vm2 = vmmov %vm4642_vm0 }
 0x839   : > { %v2627_v40 = vpop.permute.xlu0 %2626 }
 0x83a   : > { %v2497_v5 = vpop.permute.xlu1 %2496  ;;  %2629 = vst.msk [vmem:[#allocation3 + $0x30] sm:$0xf0] %vm4639_vm12, %v2627_v40  ;;  %vm4646_vm12 = vmmov %vm4642_vm0 }
 0x83b   : > { %2499 = vst.msk [vmem:[#allocation3 + $0x28] sm:$0xf0] %vm4638_vm13, %v2497_v5  ;;  %vm4647_vm13 = vmmov %vm4645_vm3 }
 0x83d   : > { %v2434_v50 = vpop.permute.xlu0 %2433 }
 0x83e   : > { %v2697_v47 = vpop.permute.xlu1 %2696  ;;  %2436 = vst.msk [vmem:[#allocation3 + $0x20] sm:$0xf0] %vm4641_vm15, %v2434_v50  ;;  %vm4649_vm15 = vcmask 1048452  }
 0x83f   : > { %2699 = vst.msk [vmem:[#allocation3 + $0x38] sm:$0xf0] %vm4640_vm14, %v2697_v47  ;;  %vm4648_vm14 = vmmov %vm4642_vm0 }
 0x841   : > { %v2634_v43 = vpop.permute.xlu0 %2633 }
 0x842   : > { %v2504_v12 = vpop.permute.xlu1 %2503  ;;  %2636 = vst.msk [vmem:[#allocation3 + $0x30] sm:$0xf0] %vm4643_vm1, %v2634_v43 }
 0x843   : > { %2506 = vst.msk [vmem:[#allocation3 + $0x28] sm:$0xf0] %vm4642_vm0, %v2504_v12  ;;  %vm4650_vm0 = vmmov %vm4649_vm15 }
 0x844   : > { %vm4651_vm1 = vmmov %vm4650_vm0 }
 0x845   : > { %v2441_v27 = vpop.permute.xlu0 %2440 }
 0x846   : > { %v2704_v48 = vpop.permute.xlu1 %2703  ;;  %2443 = vst.msk [vmem:[#allocation3 + $0x20] sm:$0xf0] %vm4645_vm3, %v2441_v27 }
 0x847   : > { %2706 = vst.msk [vmem:[#allocation3 + $0x38] sm:$0xf0] %vm4644_vm2, %v2704_v48  ;;  %vm4655_vm2 = vcmask 523652  }
 0x849   : > { %v2641_v53 = vpop.permute.xlu0 %2640 }
 0x84a   : > { %v2448_v54 = vpop.permute.xlu1 %2447  ;;  %2643 = vst.msk [vmem:[#allocation3 + $0x30] sm:$0xf0] %vm4647_vm13, %v2641_v53 }
 0x84b   : > { %2450 = vst.msk [vmem:[#allocation3 + $0x20] sm:$0xf0] %vm4646_vm12, %v2448_v54  ;;  %vm4658_vm12 = vmmov %vm4647_vm13 }
 0x84c   : > { %vm4659_vm13 = vmmov %vm4648_vm14 }
 0x84d   : > { %v2511_v17 = vpop.permute.xlu0 %2510 }
 0x84e   : > { %v2648_v55 = vpop.permute.xlu1 %2647  ;;  %2513 = vst.msk [vmem:[#allocation3 + $0x28] sm:$0xf0] %vm4649_vm15, %v2511_v17 }
 0x84f   : > { %2650 = vst.msk [vmem:[#allocation3 + $0x30] sm:$0xf0] %vm4648_vm14, %v2648_v55  ;;  %vm4660_vm14 = vmmov %vm4650_vm0 }
 0x851   : > { %v2455_v58 = vpop.permute.xlu0 %2454 }
 0x852   : > { %v2105_v57 = vpop.permute.xlu1 %2104  ;;  %2457 = vst.msk [vmem:[#allocation3 + $0x20] sm:$0xf0] %vm4650_vm0, %v2455_v58 }
 0x853   : > { %2107 = vst.msk [vmem:[#allocation3 + $0x10] sm:$0xf] %vm571_vm4, %v2105_v57  ;;  %vm4652_vm4 = vcmask 261252  }
 0x854   : > { %2113 = vst.msk [vmem:[#allocation3 + $0x10] sm:$0xf] %vm578_vm6, %v4086_v44  ;;  %vm4653_vm6 = vcmask 392452  }
 0x855   : > { %2119 = vst.msk [vmem:[#allocation3 + $0x10] sm:$0xf] %vm585_vm7, %v4095_v52  ;;  %v2655_v60 = vpop.permute.xlu0 %2654  ;;  %vm4654_vm7 = vcmask 1044352   ;;  %v2816_v3 = vld [vmem:[#allocation3 + $0x28] sm:$0xff] }
 0x856   : > { %2125 = vst.msk [vmem:[#allocation3 + $0x10] sm:$0xf] %vm592_vm8, %v4106_v19  ;;  %v1994_v59 = vpop.permute.xlu1 %1993  ;;  %vm4657_vm3 = vmmov %vm4654_vm7 }
 0x857   : > { %2131 = vst.msk [vmem:[#allocation3 + $0x10] sm:$0xf] %vm599_vm9, %v4104_v9  ;;  %vm4662_vm15 = vmmov %vm4657_vm3 }
 0x858   : > { %1996 = vst.msk [vmem:[#allocation3] sm:$0xf0] %vm672_vm5, %v1994_v59  ;;  %vm4656_vm5 = vcmask 654852  }
 0x859   : > { %2657 = vst.msk [vmem:[#allocation3 + $0x30] sm:$0xf0] %vm4651_vm1, %v2655_v60  ;;  %v2599_v52 = vpop.permute.xlu0 %2598  ;;  %v2815_v7 = vld [vmem:[#allocation3 + $0x20] sm:$0xff] }
 0x85a   : > { %2137 = vst.msk [vmem:[#allocation3 + $0x10] sm:$0xf] %vm606_vm10, %v4130_v62  ;;  %v2735_v44 = vpop.permute.xlu1 %2734 }
 0x85b   : > { %2003 = vst.msk [vmem:[#allocation3] sm:$0xf0] %vm4652_vm4, %v4221_v51 }
 0x85c   : > { %2143 = vst.msk [vmem:[#allocation3 + $0x10] sm:$0xf] %vm613_vm11, %v4147_v0 }
 0x85d   : > { %2010 = vst.msk [vmem:[#allocation3] sm:$0xf0] %vm4653_vm6, %v4230_v56  ;;  %v2789_v19 = vpop.permute.xlu0 %2788 }
 0x85e   : > { %2149 = vst.msk [vmem:[#allocation3 + $0x10] sm:$0xf] %vm4654_vm7, %v4164_v23  ;;  %v2741_v9 = vpop.permute.xlu1 %2740 }
 0x85f   : > { %2017 = vst.msk [vmem:[#allocation3] sm:$0xf0] %vm4655_vm2, %v4241_v49 }
 0x860   : > { %2024 = vst.msk [vmem:[#allocation3] sm:$0xf0] %vm4656_vm5, %v4239_v61  ;;  %v2817_v63 = vld [vmem:[#allocation3 + $0x30] sm:$0xff] }
 0x861   : > { %2737 = vst.msk [vmem:[#allocation3 + $0x40] sm:$0xf] %vm592_vm8, %v2735_v44  ;;  %v2795_v0 = vpop.permute.xlu0 %2794  ;;  %vm4661_vm8 = vmmov %vm4650_vm0  ;;  %v3054_v8 = vpack.c.bf16 %v2817_v63, %v2815_v7  ;;  %vm4667_vm0 = vcmask 293888  }
 0x862   : > { %2601 = vst.msk [vmem:[#allocation3 + $0x38] sm:$0xf] %vm4657_vm3, %v2599_v52  ;;  %v2747_v62 = vpop.permute.xlu1 %2746 }
 0x863   : > { %2031 = vst.msk [vmem:[#allocation3] sm:$0xf0] %vm4658_vm12, %v4259_v21 }
 0x864   : > { %2038 = vst.msk [vmem:[#allocation3] sm:$0xf0] %vm4659_vm13, %v4268_v32 }
 0x865   : > { %2045 = vst.msk [vmem:[#allocation3] sm:$0xf0] %vm4660_vm14, %v4271_v37  ;;  %v2813_v51 = vld [vmem:[#allocation3 + $0x10] sm:$0xff]  ;;  %v2711_v2 = vpop.permute.xlu0 %2710 }
 0x866   : > { %2743 = vst.msk [vmem:[#allocation3 + $0x40] sm:$0xf] %vm599_vm9, %v2741_v9  ;;  %2791 = vst.msk [vmem:[#allocation3 + $0x48] sm:$0xf] %vm599_vm9, %v2789_v19  ;;  %v2753_v56 = vpop.permute.xlu1 %2752 }
 0x867   : > { %2749 = vst.msk [vmem:[#allocation3 + $0x40] sm:$0xf] %vm606_vm10, %v2747_v62  ;;  %2797 = vst.msk [vmem:[#allocation3 + $0x48] sm:$0xf] %vm606_vm10, %v2795_v0  ;;  %vm4665_vm10 = vcmask 1043456  }
 0x868   : > { %2755 = vst.msk [vmem:[#allocation3 + $0x40] sm:$0xf] %vm613_vm11, %v2753_v56  ;;  %vm4663_vm9 = vmmov %vm4657_vm3 }
 0x869   : > { %2713 = vst.msk [vmem:[#allocation3 + $0x38] sm:$0xf0] %vm4661_vm8, %v2711_v2  ;;  %v2801_v49 = vpop.permute.xlu0 %2800  ;;  %vm4668_vm1 = vmmov %vm4665_vm10 }
 0x86a   : > { %v2759_v61 = vpop.permute.xlu1 %2758  ;;  %2803 = vst.msk [vmem:[#allocation3 + $0x48] sm:$0xf] %vm613_vm11, %v2801_v49  ;;  %vm4666_vm11 = vmmov %vm4665_vm10 }
 0x86b   : > { %2761 = vst.msk [vmem:[#allocation3 + $0x40] sm:$0xf] %vm4662_vm15, %v2759_v61  ;;  %vm4669_vm4 = vmmov %vm4668_vm1 }
 0x86c   : > { %v2811_v23 = vld [vmem:[#allocation3] sm:$0xff]  ;;  %vm4672_vm6 = vmmov %vm4668_vm1 }
 0x86d   : > { %v3050_v29 = vpack.c.bf16 %v2813_v51, %v2811_v23  ;;  %v2807_v1 = vpop.permute.xlu0 %2806  ;;  %vm4674_vm7 = vmmov %vm4668_vm1 }
 0x86e   : > { %2809 = vst.msk [vmem:[#allocation3 + $0x48] sm:$0xf] %vm4663_vm9, %v2807_v1 }
 0x86f   : > { %3051 = vmatpush1.bf16.msra.mxu1 %v3050_v29 }
 0x870   : > { %v2818_v4 = vld [vmem:[#allocation3 + $0x38] sm:$0xff] }
 0x871   : > { %v3052_v6 = vpack.c.bf16 %v2818_v4, %v2816_v3 }
 0x872   : > { %v2819_v13 = vld [vmem:[#allocation3 + $0x40] sm:$0xf] }
 0x873   : > { %3053 = vmatprep.subr.bf16.mxu1 %v3052_v6 }
 0x874   : > { %3055 = vmatpush1.bf16.msra.mxu1 %v3054_v8 }
 0x875   : > { %v2820_v10 = vld [vmem:[#allocation3 + $0x48] sm:$0xf] }
 0x876   : > { %3030 = vmatprep.subr.msk.mxu1 %vm4665_vm10, %v2820_v10 }
 0x878   : > { %3031 = vmatpush1.msk.msra.mxu1 %vm4666_vm11, %v2819_v13 }
 0x879   : > { %3032 = vmatmul.mubr.msk.f32.vlgmr.msra.gmra.mrb[0].mxu1 %vm4667_vm0, %v2810_v11 }
 0x87e   : > { %v2825_v14 = vpop.permute.xlu0 %2824 }
 0x94c   : > { %v2902_v20 = vpop.f32.mrb[0].mxu1 }
 0x94d   : > { %v2903_v15 = vadd.f32 %v2902_v20, %v2825_v14  ;;  %v2904_v16 = vpop.f32.mrb[1].mxu1 }
 0x94e   : > { %v2905_v18 = vadd.f32 %v2904_v16, %v2825_v14 }
 0x94f   : > { %v2907_v21 = vsel %vm4668_vm1, %v2903_v15, 0.0 }
 0x950   : > { %v2908_v22 = vsel %vm4669_vm4, %v2905_v18, 0.0 }
 0x951   : > { %v2909_v26 = vadd.f32 %v2908_v22, %v2907_v21 }
 0x953   : > { %2910 = vadd.xlane.f32.xlu1 %v2909_v26 }
 0x9e0   : > { %v2911_v24 = vpop.xlane.xlu1 %2910 }
 0x9e1   : > { %v2912_v25 = vmul.f32 0.00390625, %v2911_v24 }
 0x9e3   : > { %v2913_v28 = vsub.f32 %v2903_v15, %v2912_v25  ;;  %v2914_v30 = vsub.f32 %v2905_v18, %v2912_v25 }
 0x9e5   : > { %v2915_v31 = vmul.f32 %v2913_v28, %v2913_v28  ;;  %v2916_v32 = vmul.f32 %v2914_v30, %v2914_v30 }
 0x9e7   : > { %v2917_v33 = vsel %vm4672_vm6, %v2915_v31, 0.0  ;;  %v2918_v35 = vsel %vm4674_vm7, %v2916_v32, 0.0 }
 0x9e8   : > { %v2919_v36 = vadd.f32 %v2918_v35, %v2917_v33 }
 0x9ea   : > { %2920 = vadd.xlane.f32.xlu0 %v2919_v36 }
 0xa77   : > { %v2921_v37 = vpop.xlane.xlu0 %2920 }
 0xa78   : > { %v2922_v38 = vmul.f32 0.00390625, %v2921_v37 }
 0xa7a   : > { %v2923_v39 = vadd.f32 1e-05, %v2922_v38 }
 0xa7c   : > { %3140 = vrsqrt.f32 %v2923_v39 }
 0xa86   : > { %v3141_v41 = vpop.eup %3140 }
 0xa87   : > { %v2925_v42 = vmul.f32 %v3141_v41, %v2913_v28  ;;  %v2926_v45 = vmul.f32 %v3141_v41, %v2914_v30 }
 0xa89   : > { %v2929_v34 = vcombine.low %v2925_v42, %v2926_v45 }
 0xa8b   : > { %v2931_v5 = vadd.f32 %v3142_v46, %v2929_v34 }
 0xa8d   : > { %2932 = vst [vmem:[%s240_s6] sm:$0xff] %v2931_v5 }
 0xa8e   : > { %3186 = shalt.err (!%p3183_p4)
}
 0xa8f   : > { %s3187_s7 = scalar_lea.hbm %s4352_s16, 128  ;;  %s3191_s11 = scalar_lea.hbm %s4677_s14, 256 }
 0xa90   : > { %p3188_p5 = scmp.ne.s32.totalorder %s4352_s16, %s3187_s7  ;;  %p3192_p0 = scmp.lt.u32.totalorder %s4352_s16, %s4677_s14 }
 0xa91   : > { %p3193_p1 = scmp.lt.u32.totalorder %s3191_s11, %s3187_s7  ;;  %p3195_p6 = scmp.lt.u32.totalorder %s3187_s7, %s4352_s16 }
 0xa92   : > { %p3189_p8 = pnand %p3188_p5, %p4678_p11 }
 0xa93   : > { %p3194_p3 = por %p3193_p1, %p3192_p0 }
 0xa94   : > { %p3190_p9 = pneg %p3189_p8 }
 0xa95   : > { %p3196_p12 = por %p3195_p6, %p3194_p3 }
 0xa97   : > { %p3197_p13 = pnand %p3196_p12, %p3190_p9 }
 0xa99   : > { %3200 = shalt.err (!%p3197_p13)
}
 0xa9a   : > { %3058 = dma.vmem_to_hbm [thread:$0]  (%p4678_p11), %s4354_s13, 128, %s4352_s16, %s2934_s25  }
 0xa9b PF: > { %s4679_s15 = sld [smem:[#allocation10_spill]]  ;;  %s4680_s1 = sld [smem:[#allocation18_spill]] }
 0xa9c   : > { %s4681_s0 = sld [smem:[#allocation13_spill]] }
 0xaa1   : > { %s2960_s2 = sand.u32 1, %s4679_s15   ;;  %p4682_p7 = scmp.ne.s32.totalorder %s4680_s1, 0 }
 0xaa2   : > { %p4683_p10 = scmp.ge.s32.totalorder %s4681_s0, 2  ;;  %s2961_s3 = scalar_lea.sflag [#allocation6], %s2960_s2 }
 0xaa4   : > { %p3065_p2 = pnand %p4683_p10, %p4682_p7 }
 0xaa6   : > { %3222 = dma.done.wait (!%p3065_p2), %s2961_s3, 128  }
 0xaa7   : > { %3224 = vsyncadd (!%p3065_p2), %s2961_s3, 4294967168  ;;  %s4684_s21 = sld [smem:[#allocation15_spill]]  ;;  %s4685_s18 = sld [smem:[#allocation11_spill]] }
 0xaa8   : > { %s4686_s19 = sld [smem:[#allocation12_spill]]  ;;  %s4687_s20 = sld [smem:[#allocation16_spill]] }
 0xaad   : > { %p18_p4 = scmp.ge.s32.totalorder %s4684_s21, 4  }
 0xaaf   :  { %20 = sbr.rel (!%p18_p4) target bundleno = 12 (0xc), region = 102 }
 0xab6   :  { %2966 = vsyncpa [#allocation5], 1 }
 0xab7   :  { %2968 = vsyncpa [#allocation5 + $0x1], 1 }
 0xab8   :  { %2969 = vsyncpa [#allocation6], 1 }
 0xab9   :  { %2971 = vsyncpa [#allocation6 + $0x1], 1 }

</bundles_post_ra>
